<compile_context>
chip_gen: v7x
topology: tpu7x:2x2x1
jax: 0.10.0
libtpu: 0.0.40
codegen_flags: <defaults>
</compile_context>

<pallas_src>
import functools

import jax
import jax.numpy as jnp
from jax.experimental import pallas as pl
from jax.experimental.pallas import tpu as pltpu

_K_FC1 = 15200            # 32 * 25 * 19, pinned by fc1.in_features
_FC1_TK = 7680            # fc1 K tile (multiple of 128) -> 2 reduction steps
_K_FC1_PAD = 2 * _FC1_TK  # 15360 (zero-padded weight rows / activation columns)
_HID = 256
_N_OUT = 2
_GUMBEL_EPS = 1e-8


# ---------------------------------------------------------------------------
# Conv GEMM kernel: relu(a @ w + b), bf16 operands, f32 accumulate/epilogue.
# ---------------------------------------------------------------------------
def _conv_gemm_kernel(a_ref, w_ref, b_ref, o_ref):
    acc = jnp.dot(a_ref[...], w_ref[...], preferred_element_type=jnp.float32)
    o_ref[...] = jnp.maximum(acc + b_ref[...], 0.0).astype(o_ref.dtype)


def conv_gemm_bias_relu(a, w, b, *, m_blocks=1):
    """relu(a @ w + b); a:(M,K) bf16, w:(K,N) bf16, b:(N,) f32 -> (M,N) bf16."""
    m, k = a.shape
    _, n = w.shape
    if m_blocks <= 1 or m < 16:
        tile_m, grid = m, (1,)                       # single full block (full-dim rule)
    else:
        tile_m = ((m + m_blocks - 1) // m_blocks + 7) // 8 * 8   # multiple of 8
        grid = (pl.cdiv(m, tile_m),)
    return pl.pallas_call(
        _conv_gemm_kernel,
        out_shape=jax.ShapeDtypeStruct((m, n), jnp.bfloat16),
        grid_spec=pltpu.PrefetchScalarGridSpec(
            num_scalar_prefetch=0,
            grid=grid,
            in_specs=[pl.BlockSpec((tile_m, k), lambda i: (i, 0)),
                      pl.BlockSpec((k, n), lambda i: (0, 0)),
                      pl.BlockSpec((1, n), lambda i: (0, 0))],
            out_specs=pl.BlockSpec((tile_m, n), lambda i: (i, 0))),
        compiler_params=pltpu.CompilerParams(dimension_semantics=("parallel",)),
    )(a, w, b.reshape(1, n))


# ---------------------------------------------------------------------------
# fc head, fused path (single grid axis = fc1 K reduction):
#   K-tiled fc1 (bf16 weights, f32 acc) + fused ReLU + fc2 + GumbelSoftmax.
# ---------------------------------------------------------------------------
def _fc_head_fused_kernel(flat_ref, w1_ref, b1_ref, w2_ref, b2_ref, u_ref,
                          o_ref, acc_ref):
    s = pl.program_id(0)

    @pl.when(s == 0)
    def _init():
        acc_ref[...] = jnp.zeros_like(acc_ref)

    k0 = pl.multiple_of(s * _FC1_TK, _FC1_TK)
    acc_ref[...] += jnp.dot(flat_ref[:, pl.ds(k0, _FC1_TK)], w1_ref[...],
                            preferred_element_type=jnp.float32)

    @pl.when(s == pl.num_programs(0) - 1)
    def _finalize():
        h = jnp.maximum(acc_ref[...] + b1_ref[...], 0.0)              # (B, 256) f32
        logits = jnp.dot(h, w2_ref[...],
                         preferred_element_type=jnp.float32) + b2_ref[...]
        gumbel = -jnp.log(-jnp.log(u_ref[...] + _GUMBEL_EPS) + _GUMBEL_EPS)
        y = logits + gumbel                                           # tau = 1.0
        y = y - jnp.max(y, axis=-1, keepdims=True)
        e = jnp.exp(y)
        o_ref[...] = e / jnp.sum(e, axis=-1, keepdims=True)


def fc_head_fused(flat, w1, b1, w2, b2, u):
    batch, kpad = flat.shape
    steps = kpad // _FC1_TK
    return pl.pallas_call(
        _fc_head_fused_kernel,
        out_shape=jax.ShapeDtypeStruct((batch, _N_OUT), jnp.float32),
        grid_spec=pltpu.PrefetchScalarGridSpec(
            num_scalar_prefetch=0,
            grid=(steps,),
            in_specs=[pl.BlockSpec((batch, kpad), lambda s: (0, 0)),   # fetched once
                      pl.BlockSpec((_FC1_TK, _HID), lambda s: (s, 0)),
                      pl.BlockSpec((1, _HID), lambda s: (0, 0)),
                      pl.BlockSpec((_HID, _N_OUT), lambda s: (0, 0)),
                      pl.BlockSpec((1, _N_OUT), lambda s: (0, 0)),
                      pl.BlockSpec((batch, _N_OUT), lambda s: (0, 0))],
            out_specs=pl.BlockSpec((batch, _N_OUT), lambda s: (0, 0)),
            scratch_shapes=[pltpu.VMEM((batch, _HID), jnp.float32)]),
        compiler_params=pltpu.CompilerParams(dimension_semantics=("arbitrary",)),
    )(flat, w1, b1.reshape(1, _HID), w2, b2.reshape(1, _N_OUT), u)


# ---------------------------------------------------------------------------
# fc head, megacore-split path (v7x): leading size-2 "parallel" axis splits
# hid=256 into two 128-column halves so each TensorCore streams half the fc1
# weight.  Kernel emits relu(fc1); tiny fc2 + GumbelSoftmax combine runs in XLA.
# ---------------------------------------------------------------------------
def _fc1_split_kernel(flat_ref, w1_ref, b1_ref, h_ref, acc_ref):
    s = pl.program_id(1)

    @pl.when(s == 0)
    def _init():
        acc_ref[...] = jnp.zeros_like(acc_ref)

    k0 = pl.multiple_of(s * _FC1_TK, _FC1_TK)
    acc_ref[...] += jnp.dot(flat_ref[:, pl.ds(k0, _FC1_TK)], w1_ref[...],
                            preferred_element_type=jnp.float32)

    @pl.when(s == pl.num_programs(1) - 1)
    def _finalize():
        h_ref[...] = jnp.maximum(acc_ref[...] + b1_ref[...], 0.0)


def fc1_relu_split(flat, w1, b1, *, hid_splits=2):
    batch, kpad = flat.shape
    steps = kpad // _FC1_TK
    hsub = _HID // hid_splits
    return pl.pallas_call(
        _fc1_split_kernel,
        out_shape=jax.ShapeDtypeStruct((batch, _HID), jnp.float32),
        grid_spec=pltpu.PrefetchScalarGridSpec(
            num_scalar_prefetch=0,
            grid=(hid_splits, steps),
            in_specs=[pl.BlockSpec((batch, kpad), lambda h, s: (0, 0)),
                      pl.BlockSpec((_FC1_TK, hsub), lambda h, s: (s, h)),
                      pl.BlockSpec((1, hsub), lambda h, s: (0, h))],
            out_specs=pl.BlockSpec((batch, hsub), lambda h, s: (0, h)),
            scratch_shapes=[pltpu.VMEM((batch, hsub), jnp.float32)]),
        compiler_params=pltpu.CompilerParams(
            dimension_semantics=("parallel", "arbitrary")),
    )(flat, w1, b1.reshape(1, _HID))


def _gumbel_softmax(logits, u):
    g = -jnp.log(-jnp.log(u + _GUMBEL_EPS) + _GUMBEL_EPS)
    y = logits + g                                                    # tau = 1.0
    return jax.nn.softmax(y, axis=-1)


# ---------------------------------------------------------------------------
# JAX glue: NHWC im2col patch extraction (data rearrangement only, no FLOPs)
# ---------------------------------------------------------------------------
def _im2col_nhwc(x, ksize, stride):
    """x: (B, H, W, C) -> ((B*OH*OW, k*k*C), OH, OW); feature order (kh, kw, c)."""
    b, h, w, c = x.shape
    oh = (h - ksize) // stride + 1
    ow = (w - ksize) // stride + 1
    taps = []
    for i in range(ksize):
        for j in range(ksize):
            taps.append(x[:, i:i + stride * oh:stride, j:j + stride * ow:stride, :])
    cols = jnp.stack(taps, axis=3)                     # (B, OH, OW, k*k, C)
    return cols.reshape(b * oh * ow, ksize * ksize * c), oh, ow


# ---------------------------------------------------------------------------
# Parameters: deterministic synthetic init in PyTorch layouts, then one-time
# repacking into kernel-friendly layouts (outside the jitted forward).
# ---------------------------------------------------------------------------
def init_params(key):
    ks = jax.random.split(key, 8)

    def rnd(k, shape, fan_in):
        return jax.random.normal(k, shape, jnp.float32) / jnp.sqrt(float(fan_in))

    return dict(
        conv1_w=rnd(ks[0], (16, 4, 1, 3, 3), 4 * 9),
        conv1_b=rnd(ks[1], (16,), 4 * 9),
        conv2_w=rnd(ks[2], (32, 16, 1, 3, 3), 16 * 9),
        conv2_b=rnd(ks[3], (32,), 16 * 9),
        fc1_w=rnd(ks[4], (256, 15200), 15200),     # torch Linear: (out, in)
        fc1_b=rnd(ks[5], (256,), 15200),
        fc2_w=rnd(ks[6], (2, 256), 256),
        fc2_b=rnd(ks[7], (2,), 256),
    )


def prepare_params(params):
    """One-time repack: im2col conv weights ((kh,kw,c) ordered, bf16), fc1 weight
    rows permuted to the channels-last flatten order, K-padded to 15360 and cast
    bf16, fc2 pre-transposed.  bf16 weights => ~1e-3 relative deviation vs the
    f32 PyTorch reference (f32 accumulation is kept everywhere)."""
    # conv1: (16, 4, 1, 3, 3) -> (kh, kw, c, out) -> (36, 16)
    w1 = jnp.transpose(params["conv1_w"][:, :, 0], (2, 3, 1, 0)).reshape(36, 16)
    # conv2: (32, 16, 1, 3, 3) -> (144, 32)
    w2 = jnp.transpose(params["conv2_w"][:, :, 0], (2, 3, 1, 0)).reshape(144, 32)
    # fc1: torch columns ordered (c, h, w); our flatten is NHWC (h, w, c)
    fw = params["fc1_w"].reshape(256, 32, 25, 19)
    fw = jnp.transpose(fw, (2, 3, 1, 0)).reshape(_K_FC1, 256)
    fw = jnp.pad(fw, ((0, _K_FC1_PAD - _K_FC1), (0, 0))).astype(jnp.bfloat16)
    return dict(
        conv1_w=w1.astype(jnp.bfloat16), conv1_b=params["conv1_b"],
        conv2_w=w2.astype(jnp.bfloat16), conv2_b=params["conv2_b"],
        fc1_w=fw, fc1_b=params["fc1_b"],
        fc2_w=params["fc2_w"].T, fc2_b=params["fc2_b"],
    )


# ---------------------------------------------------------------------------
# Forward pass (NHWC end-to-end, bf16 activations, 3 pallas_calls).
# ---------------------------------------------------------------------------
@functools.partial(jax.jit, static_argnames=("fc_hid_splits",))
def multi_agent_cnn_actor_forward(prep, state, noise_u, *, fc_hid_splits=1):
    b = state.shape[0]
    # Conv3d kernel depth = 1 and output depth = 1 => only input depth slice 0 is read.
    x = jnp.transpose(state[:, :, 0], (0, 2, 3, 1)).astype(jnp.bfloat16)   # NHWC

    # conv1: Conv3d(4->16, k=(1,3,3), stride=4) + ReLU, as im2col GEMM (2 M blocks)
    p1, oh1, ow1 = _im2col_nhwc(x, ksize=3, stride=4)                      # (B*52*40, 36)
    y1 = conv_gemm_bias_relu(p1, prep["conv1_w"], prep["conv1_b"], m_blocks=2)
    y1 = y1.reshape(b, oh1, ow1, 16)                                       # stays NHWC

    # conv2: Conv3d(16->32, k=(1,3,3), stride=2) + ReLU, single block
    p2, oh2, ow2 = _im2col_nhwc(y1, ksize=3, stride=2)                     # (B*25*19, 144)
    y2 = conv_gemm_bias_relu(p2, prep["conv2_w"], prep["conv2_b"], m_blocks=1)

    # channels-last flatten (fc1 weight rows were permuted to match) + zero-pad K to
    # 15360; bf16, ~61 KB, fuses with the flatten's layout copy in XLA.
    flat = y2.reshape(b, oh2 * ow2 * 32)                                   # (B, 15200) bf16
    flat = jnp.pad(flat, ((0, 0), (0, _K_FC1_PAD - flat.shape[1])))        # (B, 15360)

    if fc_hid_splits <= 1:
        # fc1 + ReLU + fc2 + GumbelSoftmax fully fused in one kernel (v5e/v6e path).
        return fc_head_fused(flat, prep["fc1_w"], prep["fc1_b"],
                             prep["fc2_w"], prep["fc2_b"], noise_u)
    # v7x megacore path: split the fc1 weight stream across both TensorCores,
    # then the tiny fc2 + GumbelSoftmax combine runs as one small XLA fusion.
    h = fc1_relu_split(flat, prep["fc1_w"], prep["fc1_b"], hid_splits=fc_hid_splits)
    logits = jnp.dot(h, prep["fc2_w"],
                     precision=jax.lax.Precision.HIGHEST) + prep["fc2_b"]
    return _gumbel_softmax(logits, noise_u)


def _default_fc_hid_splits():
    """2 on multi-TensorCore chips (v7x) so the fc1 weight stream uses both cores;
    1 (fully fused fc head) on single-core v5e/v6e."""
    try:
        kind = jax.devices()[0].device_kind.lower()
        if "v7" in kind or "tpu7" in kind:
            return 2
    except Exception:
        pass
    return 1


# NOTE: self.pool (MaxPool2d) is defined in __init__ but never used in forward.

if __name__ == "__main__":
    key = jax.random.PRNGKey(0)
    pkey, xkey, ukey = jax.random.split(key, 3)
    prep = prepare_params(init_params(pkey))          # one-time weight repack (outside jit)

    B = 2
    # (B, C=4, D=1, H=210, W=160): H/W are pinned by fc1's in_features = 15200.
    state = jax.random.normal(xkey, (B, 4, 1, 210, 160), jnp.float32)
    # Uniform(0,1) noise for the Gumbel sample (mirrors torch's internal .uniform_()).
    u = jax.random.uniform(ukey, (B, 2), jnp.float32)

    splits = _default_fc_hid_splits()
    out = jax.block_until_ready(
        multi_agent_cnn_actor_forward(prep, state, u, fc_hid_splits=splits))
    # Exercise the alternate fc-head path too (fused <-> megacore split) and check
    # the two implementations agree.
    alt = jax.block_until_ready(
        multi_agent_cnn_actor_forward(prep, state, u, fc_hid_splits=3 - splits))

    assert out.shape == (B, 2)
    assert bool(jnp.all(jnp.isfinite(out)))
    assert bool(jnp.allclose(jnp.sum(out, axis=-1), 1.0, atol=1e-5))
    assert bool(jnp.allclose(out, alt, atol=1e-2)), (out, alt)
    print("KERNEL_OK")
</pallas_src>

<mosaic_0001>
module attributes {stable_mosaic.version = 11 : i64} {
  func.func @_conv_gemm_kernel(%arg0: i32, %arg1: memref<2080x36xbf16, #tpu.memory_space<vmem>>, %arg2: memref<36x16xbf16, #tpu.memory_space<vmem>>, %arg3: memref<1x16xf32, #tpu.memory_space<vmem>>, %arg4: memref<2080x16xbf16, #tpu.memory_space<vmem>>) attributes {dimension_semantics = [#tpu.dimension_semantics<parallel>], iteration_bounds = array<i64: 2>, scalar_prefetch = 0 : i64, scratch_operands = 0 : i64, tpu.core_type = #tpu.core_type<tc>, window_params = [{transform_indices = @transform_0, window_bounds = array<i64: 2080, 36>}, {pipeline_mode = #tpu.pipeline_mode<synchronous>, transform_indices = @transform_1, window_bounds = array<i64: 36, 16>}, {pipeline_mode = #tpu.pipeline_mode<synchronous>, transform_indices = @transform_2, window_bounds = array<i64: 1, 16>}, {transform_indices = @transform_3, window_bounds = array<i64: 2080, 16>}]} {
    %c0 = arith.constant 0 : index
    %c0_0 = arith.constant 0 : index
    %0 = vector.load %arg1[%c0, %c0_0] : memref<2080x36xbf16, #tpu.memory_space<vmem>>, vector<2080x36xbf16>
    %c0_1 = arith.constant 0 : index
    %c0_2 = arith.constant 0 : index
    %1 = vector.load %arg2[%c0_1, %c0_2] : memref<36x16xbf16, #tpu.memory_space<vmem>>, vector<36x16xbf16>
    %cst = arith.constant dense<0.000000e+00> : vector<2080x16xf32>
    %2 = tpu.matmul %0, %1, %cst {dimension_numbers = #tpu.dot_dimension_numbers<[1], [0], [0], [1], [0, 0, 1, 1], [], []>} : vector<2080x36xbf16>, vector<36x16xbf16>, vector<2080x16xf32> -> vector<2080x16xf32>
    %c0_3 = arith.constant 0 : index
    %c0_4 = arith.constant 0 : index
    %3 = vector.load %arg3[%c0_3, %c0_4] : memref<1x16xf32, #tpu.memory_space<vmem>>, vector<1x16xf32>
    %4 = vector.broadcast %3 : vector<1x16xf32> to vector<2080x16xf32>
    %5 = arith.addf %2, %4 : vector<2080x16xf32>
    %cst_5 = arith.constant 0.000000e+00 : f32
    %6 = vector.broadcast %cst_5 : f32 to vector<2080x16xf32>
    %7 = arith.maximumf %5, %6 : vector<2080x16xf32>
    %8 = arith.truncf %7 : vector<2080x16xf32> to vector<2080x16xbf16>
    %c0_6 = arith.constant 0 : index
    %c0_7 = arith.constant 0 : index
    %9 = vector.load %arg4[%c0_6, %c0_7] : memref<2080x16xbf16, #tpu.memory_space<vmem>>, vector<2080x16xbf16>
    tpu.vector_store %arg4[%c0_6, %c0_7], %8 {strides = array<i32>} : memref<2080x16xbf16, #tpu.memory_space<vmem>>, vector<2080x16xbf16>,
    return
  }
  func.func @transform_0(%arg0: i32) -> (i32, i32) {
    %c0_i32 = arith.constant 0 : i32
    %c0_i32_0 = arith.constant 0 : i32
    return %arg0, %c0_i32 : i32, i32
  }
  func.func @transform_1(%arg0: i32) -> (i32, i32) {
    %c0_i32 = arith.constant 0 : i32
    %c0_i32_0 = arith.constant 0 : i32
    %c0_i32_1 = arith.constant 0 : i32
    return %c0_i32, %c0_i32_0 : i32, i32
  }
  func.func @transform_2(%arg0: i32) -> (i32, i32) {
    %c0_i32 = arith.constant 0 : i32
    %c0_i32_0 = arith.constant 0 : i32
    %c0_i32_1 = arith.constant 0 : i32
    return %c0_i32, %c0_i32_0 : i32, i32
  }
  func.func @transform_3(%arg0: i32) -> (i32, i32) {
    %c0_i32 = arith.constant 0 : i32
    %c0_i32_0 = arith.constant 0 : i32
    return %arg0, %c0_i32 : i32, i32
  }
}

module attributes {stable_mosaic.version = 11 : i64} {
  func.func @_conv_gemm_kernel(%arg0: i32, %arg1: memref<950x144xbf16, #tpu.memory_space<vmem>>, %arg2: memref<144x32xbf16, #tpu.memory_space<vmem>>, %arg3: memref<1x32xf32, #tpu.memory_space<vmem>>, %arg4: memref<950x32xbf16, #tpu.memory_space<vmem>>) attributes {dimension_semantics = [#tpu.dimension_semantics<parallel>], iteration_bounds = array<i64: 1>, scalar_prefetch = 0 : i64, scratch_operands = 0 : i64, tpu.core_type = #tpu.core_type<tc>, window_params = [{transform_indices = @transform_0, window_bounds = array<i64: 950, 144>}, {pipeline_mode = #tpu.pipeline_mode<synchronous>, transform_indices = @transform_1, window_bounds = array<i64: 144, 32>}, {pipeline_mode = #tpu.pipeline_mode<synchronous>, transform_indices = @transform_2, window_bounds = array<i64: 1, 32>}, {transform_indices = @transform_3, window_bounds = array<i64: 950, 32>}]} {
    %c0 = arith.constant 0 : index
    %c0_0 = arith.constant 0 : index
    %0 = vector.load %arg1[%c0, %c0_0] : memref<950x144xbf16, #tpu.memory_space<vmem>>, vector<950x144xbf16>
    %c0_1 = arith.constant 0 : index
    %c0_2 = arith.constant 0 : index
    %1 = vector.load %arg2[%c0_1, %c0_2] : memref<144x32xbf16, #tpu.memory_space<vmem>>, vector<144x32xbf16>
    %cst = arith.constant dense<0.000000e+00> : vector<950x32xf32>
    %2 = tpu.matmul %0, %1, %cst {dimension_numbers = #tpu.dot_dimension_numbers<[1], [0], [0], [1], [0, 0, 1, 1], [], []>} : vector<950x144xbf16>, vector<144x32xbf16>, vector<950x32xf32> -> vector<950x32xf32>
    %c0_3 = arith.constant 0 : index
    %c0_4 = arith.constant 0 : index
    %3 = vector.load %arg3[%c0_3, %c0_4] : memref<1x32xf32, #tpu.memory_space<vmem>>, vector<1x32xf32>
    %4 = vector.broadcast %3 : vector<1x32xf32> to vector<950x32xf32>
    %5 = arith.addf %2, %4 : vector<950x32xf32>
    %cst_5 = arith.constant 0.000000e+00 : f32
    %6 = vector.broadcast %cst_5 : f32 to vector<950x32xf32>
    %7 = arith.maximumf %5, %6 : vector<950x32xf32>
    %8 = arith.truncf %7 : vector<950x32xf32> to vector<950x32xbf16>
    %c0_6 = arith.constant 0 : index
    %c0_7 = arith.constant 0 : index
    %9 = vector.load %arg4[%c0_6, %c0_7] : memref<950x32xbf16, #tpu.memory_space<vmem>>, vector<950x32xbf16>
    tpu.vector_store %arg4[%c0_6, %c0_7], %8 {strides = array<i32>} : memref<950x32xbf16, #tpu.memory_space<vmem>>, vector<950x32xbf16>,
    return
  }
  func.func @transform_0(%arg0: i32) -> (i32, i32) {
    %c0_i32 = arith.constant 0 : i32
    %c0_i32_0 = arith.constant 0 : i32
    return %arg0, %c0_i32 : i32, i32
  }
  func.func @transform_1(%arg0: i32) -> (i32, i32) {
    %c0_i32 = arith.constant 0 : i32
    %c0_i32_0 = arith.constant 0 : i32
    %c0_i32_1 = arith.constant 0 : i32
    return %c0_i32, %c0_i32_0 : i32, i32
  }
  func.func @transform_2(%arg0: i32) -> (i32, i32) {
    %c0_i32 = arith.constant 0 : i32
    %c0_i32_0 = arith.constant 0 : i32
    %c0_i32_1 = arith.constant 0 : i32
    return %c0_i32, %c0_i32_0 : i32, i32
  }
  func.func @transform_3(%arg0: i32) -> (i32, i32) {
    %c0_i32 = arith.constant 0 : i32
    %c0_i32_0 = arith.constant 0 : i32
    return %arg0, %c0_i32 : i32, i32
  }
}

module attributes {stable_mosaic.version = 11 : i64} {
  func.func @_fc_head_fused_kernel(%arg0: i32, %arg1: memref<2x15360xbf16, #tpu.memory_space<vmem>>, %arg2: memref<7680x256xbf16, #tpu.memory_space<vmem>>, %arg3: memref<1x256xf32, #tpu.memory_space<vmem>>, %arg4: memref<256x2xf32, #tpu.memory_space<vmem>>, %arg5: memref<1x2xf32, #tpu.memory_space<vmem>>, %arg6: memref<2x2xf32, #tpu.memory_space<vmem>>, %arg7: memref<2x2xf32, #tpu.memory_space<vmem>>, %arg8: memref<2x256xf32, #tpu.memory_space<vmem>>) attributes {dimension_semantics = [#tpu.dimension_semantics<arbitrary>], iteration_bounds = array<i64: 2>, scalar_prefetch = 0 : i64, scratch_operands = 1 : i64, tpu.core_type = #tpu.core_type<tc>, window_params = [{pipeline_mode = #tpu.pipeline_mode<synchronous>, transform_indices = @transform_0, window_bounds = array<i64: 2, 15360>}, {transform_indices = @transform_1, window_bounds = array<i64: 7680, 256>}, {pipeline_mode = #tpu.pipeline_mode<synchronous>, transform_indices = @transform_2, window_bounds = array<i64: 1, 256>}, {pipeline_mode = #tpu.pipeline_mode<synchronous>, transform_indices = @transform_3, window_bounds = array<i64: 256, 2>}, {pipeline_mode = #tpu.pipeline_mode<synchronous>, transform_indices = @transform_4, window_bounds = array<i64: 1, 2>}, {pipeline_mode = #tpu.pipeline_mode<synchronous>, transform_indices = @transform_5, window_bounds = array<i64: 2, 2>}, {pipeline_mode = #tpu.pipeline_mode<synchronous>, transform_indices = @transform_6, window_bounds = array<i64: 2, 2>}]} {
    %c0_i32 = arith.constant 0 : i32
    %0 = arith.cmpi eq, %arg0, %c0_i32 : i32
    %1 = arith.extui %0 : i1 to i32
    %c0_i32_0 = arith.constant 0 : i32
    %2 = arith.cmpi ne, %1, %c0_i32_0 : i32
    scf.if %2 {
      %cst_8 = arith.constant 0.000000e+00 : f32
      %15 = vector.broadcast %cst_8 : f32 to vector<2x256xf32>
      %c0_9 = arith.constant 0 : index
      %c0_10 = arith.constant 0 : index
      %16 = vector.load %arg8[%c0_9, %c0_10] : memref<2x256xf32, #tpu.memory_space<vmem>>, vector<2x256xf32>
      tpu.vector_store %arg8[%c0_9, %c0_10], %15 {strides = array<i32>} : memref<2x256xf32, #tpu.memory_space<vmem>>, vector<2x256xf32>,
    } else {
    }
    %c7680_i32 = arith.constant 7680 : i32
    %3 = arith.muli %arg0, %c7680_i32 : i32
    %4 = tpu.assume_multiple %3, 7680 : i32
    %c0 = arith.constant 0 : index
    %c0_1 = arith.constant 0 : index
    %5 = vector.load %arg8[%c0, %c0_1] : memref<2x256xf32, #tpu.memory_space<vmem>>, vector<2x256xf32>
    %c0_2 = arith.constant 0 : index
    %6 = arith.index_cast %4 : i32 to index
    %7 = vector.load %arg1[%c0_2, %6] : memref<2x15360xbf16, #tpu.memory_space<vmem>>, vector<2x7680xbf16>
    %c0_3 = arith.constant 0 : index
    %c0_4 = arith.constant 0 : index
    %8 = vector.load %arg2[%c0_3, %c0_4] : memref<7680x256xbf16, #tpu.memory_space<vmem>>, vector<7680x256xbf16>
    %cst = arith.constant dense<0.000000e+00> : vector<2x256xf32>
    %9 = tpu.matmul %7, %8, %cst {dimension_numbers = #tpu.dot_dimension_numbers<[1], [0], [0], [1], [0, 0, 1, 1], [], []>} : vector<2x7680xbf16>, vector<7680x256xbf16>, vector<2x256xf32> -> vector<2x256xf32>
    %10 = arith.addf %5, %9 : vector<2x256xf32>
    %c0_5 = arith.constant 0 : index
    %c0_6 = arith.constant 0 : index
    %11 = vector.load %arg8[%c0_5, %c0_6] : memref<2x256xf32, #tpu.memory_space<vmem>>, vector<2x256xf32>
    tpu.vector_store %arg8[%c0_5, %c0_6], %10 {strides = array<i32>} : memref<2x256xf32, #tpu.memory_space<vmem>>, vector<2x256xf32>,
    %c1_i32 = arith.constant 1 : i32
    %12 = arith.cmpi eq, %arg0, %c1_i32 : i32
    %13 = arith.extui %12 : i1 to i32
    %c0_i32_7 = arith.constant 0 : i32
    %14 = arith.cmpi ne, %13, %c0_i32_7 : i32
    scf.if %14 {
      %c0_8 = arith.constant 0 : index
      %c0_9 = arith.constant 0 : index
      %15 = vector.load %arg8[%c0_8, %c0_9] : memref<2x256xf32, #tpu.memory_space<vmem>>, vector<2x256xf32>
      %c0_10 = arith.constant 0 : index
      %c0_11 = arith.constant 0 : index
      %16 = vector.load %arg3[%c0_10, %c0_11] : memref<1x256xf32, #tpu.memory_space<vmem>>, vector<1x256xf32>
      %17 = vector.broadcast %16 : vector<1x256xf32> to vector<2x256xf32>
      %18 = arith.addf %15, %17 : vector<2x256xf32>
      %cst_12 = arith.constant 0.000000e+00 : f32
      %19 = vector.broadcast %cst_12 : f32 to vector<2x256xf32>
      %20 = arith.maximumf %18, %19 : vector<2x256xf32>
      %c0_13 = arith.constant 0 : index
      %c0_14 = arith.constant 0 : index
      %21 = vector.load %arg4[%c0_13, %c0_14] : memref<256x2xf32, #tpu.memory_space<vmem>>, vector<256x2xf32>
      %cst_15 = arith.constant dense<0.000000e+00> : vector<2x2xf32>
      %22 = tpu.matmul %20, %21, %cst_15 {dimension_numbers = #tpu.dot_dimension_numbers<[1], [0], [0], [1], [0, 0, 1, 1], [], []>} : vector<2x256xf32>, vector<256x2xf32>, vector<2x2xf32> -> vector<2x2xf32>
      %c0_16 = arith.constant 0 : index
      %c0_17 = arith.constant 0 : index
      %23 = vector.load %arg5[%c0_16, %c0_17] : memref<1x2xf32, #tpu.memory_space<vmem>>, vector<1x2xf32>
      %24 = vector.broadcast %23 : vector<1x2xf32> to vector<2x2xf32>
      %25 = arith.addf %22, %24 : vector<2x2xf32>
      %c0_18 = arith.constant 0 : index
      %c0_19 = arith.constant 0 : index
      %26 = vector.load %arg6[%c0_18, %c0_19] : memref<2x2xf32, #tpu.memory_space<vmem>>, vector<2x2xf32>
      %cst_20 = arith.constant 9.99999993E-9 : f32
      %27 = vector.broadcast %cst_20 : f32 to vector<2x2xf32>
      %28 = arith.addf %26, %27 : vector<2x2xf32>
      %29 = math.log %28 : vector<2x2xf32>
      %cst_21 = arith.constant 0.000000e+00 : f32
      %30 = vector.broadcast %cst_21 : f32 to vector<2x2xf32>
      %31 = arith.subf %30, %29 : vector<2x2xf32>
      %cst_22 = arith.constant 9.99999993E-9 : f32
      %32 = vector.broadcast %cst_22 : f32 to vector<2x2xf32>
      %33 = arith.addf %31, %32 : vector<2x2xf32>
      %34 = math.log %33 : vector<2x2xf32>
      %cst_23 = arith.constant 0.000000e+00 : f32
      %35 = vector.broadcast %cst_23 : f32 to vector<2x2xf32>
      %36 = arith.subf %35, %34 : vector<2x2xf32>
      %37 = arith.addf %25, %36 : vector<2x2xf32>
      %cst_24 = arith.constant dense<0xFF800000> : vector<2xf32>
      %38 = vector.multi_reduction <maximumf>, %37, %cst_24 [1] : vector<2x2xf32> to vector<2xf32>
      %39 = vector.shape_cast %38 : vector<2xf32> to vector<2x1xf32>
      %40 = vector.broadcast %39 : vector<2x1xf32> to vector<2x2xf32>
      %41 = arith.subf %37, %40 : vector<2x2xf32>
      %42 = math.exp %41 : vector<2x2xf32>
      %cst_25 = arith.constant dense<0.000000e+00> : vector<2xf32>
      %43 = vector.multi_reduction <add>, %42, %cst_25 [1] : vector<2x2xf32> to vector<2xf32>
      %44 = vector.shape_cast %43 : vector<2xf32> to vector<2x1xf32>
      %45 = vector.broadcast %44 : vector<2x1xf32> to vector<2x2xf32>
      %46 = arith.divf %42, %45 : vector<2x2xf32>
      %c0_26 = arith.constant 0 : index
      %c0_27 = arith.constant 0 : index
      %47 = vector.load %arg7[%c0_26, %c0_27] : memref<2x2xf32, #tpu.memory_space<vmem>>, vector<2x2xf32>
      tpu.vector_store %arg7[%c0_26, %c0_27], %46 {strides = array<i32>} : memref<2x2xf32, #tpu.memory_space<vmem>>, vector<2x2xf32>,
    } else {
    }
    return
  }
  func.func @transform_0(%arg0: i32) -> (i32, i32) {
    %c0_i32 = arith.constant 0 : i32
    %c0_i32_0 = arith.constant 0 : i32
    %c0_i32_1 = arith.constant 0 : i32
    return %c0_i32, %c0_i32_0 : i32, i32
  }
  func.func @transform_1(%arg0: i32) -> (i32, i32) {
    %c0_i32 = arith.constant 0 : i32
    %c0_i32_0 = arith.constant 0 : i32
    return %arg0, %c0_i32 : i32, i32
  }
  func.func @transform_2(%arg0: i32) -> (i32, i32) {
    %c0_i32 = arith.constant 0 : i32
    %c0_i32_0 = arith.constant 0 : i32
    %c0_i32_1 = arith.constant 0 : i32
    return %c0_i32, %c0_i32_0 : i32, i32
  }
  func.func @transform_3(%arg0: i32) -> (i32, i32) {
    %c0_i32 = arith.constant 0 : i32
    %c0_i32_0 = arith.constant 0 : i32
    %c0_i32_1 = arith.constant 0 : i32
    return %c0_i32, %c0_i32_0 : i32, i32
  }
  func.func @transform_4(%arg0: i32) -> (i32, i32) {
    %c0_i32 = arith.constant 0 : i32
    %c0_i32_0 = arith.constant 0 : i32
    %c0_i32_1 = arith.constant 0 : i32
    return %c0_i32, %c0_i32_0 : i32, i32
  }
  func.func @transform_5(%arg0: i32) -> (i32, i32) {
    %c0_i32 = arith.constant 0 : i32
    %c0_i32_0 = arith.constant 0 : i32
    %c0_i32_1 = arith.constant 0 : i32
    return %c0_i32, %c0_i32_0 : i32, i32
  }
  func.func @transform_6(%arg0: i32) -> (i32, i32) {
    %c0_i32 = arith.constant 0 : i32
    %c0_i32_0 = arith.constant 0 : i32
    %c0_i32_1 = arith.constant 0 : i32
    return %c0_i32, %c0_i32_0 : i32, i32
  }
}

</mosaic_0001>

<bundles_post_ra>
// kernel: multi_agent_cnn_actor_forward.3
= control target key start
LH: loop header
LB: loop body
LE: loop exit
PB: predicated region body
PF: predicated region fallthrough
CT: control target
= control target key end

     0   :  { %s5568_s12 = smov 0   ;;  %s6660_s0 = inlined_call_operand.vmem [shape: bf16[4160,36], index: 0, kind: input, shape index: {}]   ;;  %s6661_s1 = inlined_call_operand.vmem [shape: bf16[36,16], index: 1, kind: input, shape index: {}]   ;;  %s6662_s2 = inlined_call_operand.vmem [shape: f32[1,16], index: 2, kind: input, shape index: {}]   ;;  %s6663_s3 = inlined_call_operand.vmem [shape: bf16[4160,16], index: 3, kind: output, shape index: {}]  }
   0x1 LB: > { %s4197_s13 = sadd.s32 4294967295, %s5546_s12   ;;  %p4201_p0 = scmp.ge.s32.totalorder %s5546_s12, 1  ;;  %s5546_s12 = sphi %s5568_s12, %s13_s12  }
   0x2   : > { %p138_p1 = scmp.lt.s32.totalorder %s5546_s12, 3 }
   0x4   : > { %p139_p2 = pnand %p4201_p0, %p138_p1 }
   0x5   : > { %v5405_v0 = vld [vmem:[%s6661_s1] sm:$0xff] (!%p139_p2)   ;;  %v5406_v1 = vld [vmem:[%s6661_s1 + $0x8] sm:$0xff] (!%p139_p2)   ;;  %s162_s18 = smul.u32 (!%p139_p2), 260, %s4197_s13  ;;  %v5407_v2 = vld [vmem:[%s6661_s1 + $0x10] ss:$0 sps:$4 sm:$0x33] (!%p139_p2)  }
   0x6   : > { %142 = sbr.rel (%p139_p2) target bundleno = 496 (0x1f0), region = 32  ;;  %5123 = vmatprep.subr.bf16.mxu0 (!%p139_p2), %v5405_v0  ;;  %5389 = vmatprep.subr.bf16.mxu1 (!%p139_p2), %v5405_v0  ;;  %vm1503_vm0 = vcmask (!%p139_p2), 1041408   ;;  %vm1112_vm1 = vcmask (!%p139_p2), 293888   ;;  %vm3880_vm2 = vcmask (!%p139_p2), 125952  }
   0x7   : > { %5124 = vmatpush3.bf16.msra.mxu0 (!%p139_p2), %v5405_v0  ;;  %5392 = vmatpush3.bf16.msra.mxu1 (!%p139_p2), %v5405_v0  ;;  %p163_p3 = scmp.lt.s32.totalorder (!%p139_p2), %s162_s18, 519  ;;  %v1505_v3 = vsel (!%p139_p2), %vm1503_vm0, %v5407_v2, 0 }
   0x8   : > { %5125 = vmatprep.subr.bf16.mxu0 (!%p139_p2), %v5406_v1  ;;  %5390 = vmatprep.subr.bf16.mxu1 (!%p139_p2), %v5406_v1 }
   0xb   : > { %5126 = vmatpush3.bf16.msra.mxu0 (!%p139_p2), %v5406_v1  ;;  %5393 = vmatpush3.bf16.msra.mxu1 (!%p139_p2), %v5406_v1 }
   0xc   : > { %5395 = vmatprep.subr.msk.bf16.mxu0 (!%p139_p2), %vm1503_vm0, %v5407_v2  ;;  %5396 = vmatprep.subr.msk.bf16.mxu1 (!%p139_p2), %vm1503_vm0, %v5407_v2 }
   0xd   : > { %s6665_s18 = smov (!%p163_p3, %s162_s18), 519 }
   0xe   : > { %s4202_s21 = sshll.u32 %s6665_s18, 2 }
   0xf   : > { %s5593_s24 = scalar_lea.vmem %s6660_s0, %s4202_s21  ;;  %5128 = vmatpush3.bf16.msra.mxu0 %v1505_v3  ;;  %5394 = vmatpush3.bf16.msra.mxu1 %v1505_v3  ;;  %s5834_s29 = scalar_lea.vmem %s6663_s3, %s4202_s21 }
  0x10   : > { %v5408_v4 = vld [vmem:[%s5593_s24] sm:$0xff]   ;;  %v5409_v5 = vld [vmem:[%s5593_s24 + $0x8] sm:$0xff]   ;;  %v5410_v6 = vld [vmem:[%s5593_s24 + $0x210] sm:$0xff]  }
  0x11   : > { %5129 = vmatprep.mubr.msk.bf16.mxu0 %vm1112_vm1, %v5408_v4  ;;  %v5411_v7 = vld [vmem:[%s5593_s24 + $0x218] sm:$0xff]   ;;  %5261 = vmatprep.mubr.msk.bf16.mxu1 %vm1112_vm1, %v5410_v6  ;;  %v5412_v8 = vld [vmem:[%s5593_s24 + $0x10] sm:$0xff]   ;;  %v5414_v9 = vld [vmem:[%s5593_s24 + $0x220] sm:$0xff]  }
  0x12   : > { %5130 = vmatmul.mubr.msk.bf16.vlgmr.msra.gmra.mrb[0].mxu0 %vm1112_vm1, %v5409_v5  ;;  %5262 = vmatmul.mubr.msk.bf16.vlgmr.msra.gmra.mrb[0].mxu1 %vm1112_vm1, %v5411_v7  ;;  %v5413_v10 = vld [vmem:[%s5593_s24 + $0x18] sm:$0xff]   ;;  %v5415_v11 = vld [vmem:[%s5593_s24 + $0x228] sm:$0xff]   ;;  %v5416_v12 = vld [vmem:[%s5593_s24 + $0x20] sm:$0xff]  }
  0x13   : > { %5133 = vmatprep.mubr.msk.bf16.mxu0 %vm1112_vm1, %v5412_v8  ;;  %5265 = vmatprep.mubr.msk.bf16.mxu1 %vm1112_vm1, %v5414_v9  ;;  %v5418_v13 = vld [vmem:[%s5593_s24 + $0x230] sm:$0xff]   ;;  %v5417_v14 = vld [vmem:[%s5593_s24 + $0x28] sm:$0xff]   ;;  %v5419_v15 = vld [vmem:[%s5593_s24 + $0x238] sm:$0xff]  }
  0x14   : > { %v5420_v16 = vld [vmem:[%s5593_s24 + $0x30] sm:$0xff]   ;;  %v5422_v17 = vld [vmem:[%s5593_s24 + $0x240] sm:$0xff]   ;;  %v5421_v18 = vld [vmem:[%s5593_s24 + $0x38] sm:$0xff]  }
  0x15   : > { %v5423_v19 = vld [vmem:[%s5593_s24 + $0x248] sm:$0xff]   ;;  %v5424_v20 = vld [vmem:[%s5593_s24 + $0x40] sm:$0xff]   ;;  %v5426_v21 = vld [vmem:[%s5593_s24 + $0x250] sm:$0xff]  }
  0x16   : > { %v5425_v22 = vld [vmem:[%s5593_s24 + $0x48] sm:$0xff]   ;;  %v5427_v23 = vld [vmem:[%s5593_s24 + $0x258] sm:$0xff]   ;;  %v5428_v24 = vld [vmem:[%s5593_s24 + $0x50] sm:$0xff]  }
  0x17   : > { %v5430_v25 = vld [vmem:[%s5593_s24 + $0x260] sm:$0xff]   ;;  %v5429_v26 = vld [vmem:[%s5593_s24 + $0x58] sm:$0xff]   ;;  %v5431_v27 = vld [vmem:[%s5593_s24 + $0x268] sm:$0xff]  }
  0x18   : > { %v5432_v28 = vld [vmem:[%s5593_s24 + $0x60] sm:$0xff]   ;;  %v5434_v29 = vld [vmem:[%s5593_s24 + $0x270] sm:$0xff]   ;;  %v5433_v30 = vld [vmem:[%s5593_s24 + $0x68] sm:$0xff]  }
  0x19   : > { %v5435_v31 = vld [vmem:[%s5593_s24 + $0x278] sm:$0xff]   ;;  %v5436_v32 = vld [vmem:[%s5593_s24 + $0x70] sm:$0xff]   ;;  %v5438_v33 = vld [vmem:[%s5593_s24 + $0x280] sm:$0xff]  }
  0x1a   : > { %5134 = vmatmul.mubr.msk.bf16.gmra.mrb[4].mxu0 %vm1112_vm1, %v5413_v10  ;;  %5266 = vmatmul.mubr.msk.bf16.gmra.mrb[4].mxu1 %vm1112_vm1, %v5415_v11  ;;  %v5437_v34 = vld [vmem:[%s5593_s24 + $0x78] sm:$0xff]   ;;  %v5439_v35 = vld [vmem:[%s5593_s24 + $0x288] sm:$0xff]   ;;  %v5440_v36 = vld [vmem:[%s5593_s24 + $0x80] sm:$0xff]  }
  0x1b   : > { %5137 = vmatprep.mubr.msk.bf16.mxu0 %vm1112_vm1, %v5416_v12  ;;  %5269 = vmatprep.mubr.msk.bf16.mxu1 %vm1112_vm1, %v5418_v13  ;;  %v5442_v37 = vld [vmem:[%s5593_s24 + $0x290] sm:$0xff]   ;;  %v5441_v38 = vld [vmem:[%s5593_s24 + $0x88] sm:$0xff]   ;;  %v5443_v39 = vld [vmem:[%s5593_s24 + $0x298] sm:$0xff]  }
  0x1c   : > { %v5444_v40 = vld [vmem:[%s5593_s24 + $0x90] sm:$0xff]   ;;  %v5446_v41 = vld [vmem:[%s5593_s24 + $0x2a0] sm:$0xff]   ;;  %v5445_v42 = vld [vmem:[%s5593_s24 + $0x98] sm:$0xff]  }
  0x1d   : > { %v5447_v43 = vld [vmem:[%s5593_s24 + $0x2a8] sm:$0xff]   ;;  %v5448_v44 = vld [vmem:[%s5593_s24 + $0xa0] sm:$0xff]   ;;  %v5450_v45 = vld [vmem:[%s5593_s24 + $0x2b0] sm:$0xff]  }
  0x1e   : > { %v5449_v46 = vld [vmem:[%s5593_s24 + $0xa8] sm:$0xff]   ;;  %v5451_v47 = vld [vmem:[%s5593_s24 + $0x2b8] sm:$0xff]   ;;  %v5452_v48 = vld [vmem:[%s5593_s24 + $0xb0] sm:$0xff]  }
  0x1f   : > { %v5454_v49 = vld [vmem:[%s5593_s24 + $0x2c0] sm:$0xff]   ;;  %v5453_v50 = vld [vmem:[%s5593_s24 + $0xb8] sm:$0xff]   ;;  %v5455_v51 = vld [vmem:[%s5593_s24 + $0x2c8] sm:$0xff]  }
  0x20   : > { %v5456_v52 = vld [vmem:[%s5593_s24 + $0xc0] sm:$0xff]   ;;  %v5458_v53 = vld [vmem:[%s5593_s24 + $0x2d0] sm:$0xff]   ;;  %v5457_v54 = vld [vmem:[%s5593_s24 + $0xc8] sm:$0xff]  }
  0x21   : > { %v5459_v55 = vld [vmem:[%s5593_s24 + $0x2d8] sm:$0xff]   ;;  %v5460_v56 = vld [vmem:[%s5593_s24 + $0xd0] sm:$0xff]   ;;  %v5462_v57 = vld [vmem:[%s5593_s24 + $0x2e0] sm:$0xff]  }
  0x22   : > { %5138 = vmatmul.mubr.msk.bf16.gmra.mrb[8].mxu0 %vm1112_vm1, %v5417_v14  ;;  %5270 = vmatmul.mubr.msk.bf16.gmra.mrb[8].mxu1 %vm1112_vm1, %v5419_v15  ;;  %v5461_v58 = vld [vmem:[%s5593_s24 + $0xd8] sm:$0xff]   ;;  %v5463_v59 = vld [vmem:[%s5593_s24 + $0x2e8] sm:$0xff]   ;;  %v5464_v60 = vld [vmem:[%s5593_s24 + $0xe0] sm:$0xff]  }
  0x23   : > { %5141 = vmatprep.mubr.msk.bf16.mxu0 %vm1112_vm1, %v5420_v16  ;;  %5273 = vmatprep.mubr.msk.bf16.mxu1 %vm1112_vm1, %v5422_v17  ;;  %v5466_v61 = vld [vmem:[%s5593_s24 + $0x2f0] sm:$0xff]   ;;  %v5465_v62 = vld [vmem:[%s5593_s24 + $0xe8] sm:$0xff]   ;;  %v5467_v63 = vld [vmem:[%s5593_s24 + $0x2f8] sm:$0xff]  }
  0x24   : > { %v5468_v0 = vld [vmem:[%s5593_s24 + $0xf0] sm:$0xff]   ;;  %v5470_v1 = vld [vmem:[%s5593_s24 + $0x300] sm:$0xff]   ;;  %v5469_v2 = vld [vmem:[%s5593_s24 + $0xf8] sm:$0xff]  }
  0x25   : > { %v5471_v3 = vld [vmem:[%s5593_s24 + $0x308] sm:$0xff]   ;;  %v5472_v4 = vld [vmem:[%s5593_s24 + $0x100] sm:$0xff]   ;;  %v5474_v5 = vld [vmem:[%s5593_s24 + $0x310] sm:$0xff]  }
  0x26   : > { %v5473_v6 = vld [vmem:[%s5593_s24 + $0x108] sm:$0xff]   ;;  %v5475_v7 = vld [vmem:[%s5593_s24 + $0x318] sm:$0xff]   ;;  %v5476_v8 = vld [vmem:[%s5593_s24 + $0x110] sm:$0xff]  }
  0x27   : > { %v5478_v9 = vld [vmem:[%s5593_s24 + $0x320] sm:$0xff]   ;;  %v5477_v10 = vld [vmem:[%s5593_s24 + $0x118] sm:$0xff]   ;;  %v5479_v11 = vld [vmem:[%s5593_s24 + $0x328] sm:$0xff]  }
  0x28   : > { %v5480_v12 = vld [vmem:[%s5593_s24 + $0x120] sm:$0xff]   ;;  %v5482_v13 = vld [vmem:[%s5593_s24 + $0x330] sm:$0xff]   ;;  %v5481_v14 = vld [vmem:[%s5593_s24 + $0x128] sm:$0xff]  }
  0x29   : > { %v5483_v15 = vld [vmem:[%s5593_s24 + $0x338] sm:$0xff]   ;;  %v5484_v16 = vld [vmem:[%s5593_s24 + $0x130] sm:$0xff]   ;;  %v5486_v17 = vld [vmem:[%s5593_s24 + $0x340] sm:$0xff]  }
  0x2a   : > { %5142 = vmatmul.mubr.msk.bf16.gmra.mrb[12].mxu0 %vm1112_vm1, %v5421_v18  ;;  %5274 = vmatmul.mubr.msk.bf16.gmra.mrb[12].mxu1 %vm1112_vm1, %v5423_v19  ;;  %v5485_v18 = vld [vmem:[%s5593_s24 + $0x138] sm:$0xff]   ;;  %v5487_v19 = vld [vmem:[%s5593_s24 + $0x348] sm:$0xff]  }
  0x2b   : > { %5145 = vmatprep.mubr.msk.bf16.mxu0 %vm1112_vm1, %v5424_v20  ;;  %5277 = vmatprep.mubr.msk.bf16.mxu1 %vm1112_vm1, %v5426_v21  ;;  %v5488_v20 = vld [vmem:[%s5593_s24 + $0x140] sm:$0xff]   ;;  %v5490_v21 = vld [vmem:[%s5593_s24 + $0x350] sm:$0xff]  }
  0x32   : > { %5146 = vmatmul.mubr.msk.bf16.gmra.mrb[16].mxu0 %vm1112_vm1, %v5425_v22  ;;  %5278 = vmatmul.mubr.msk.bf16.gmra.mrb[16].mxu1 %vm1112_vm1, %v5427_v23  ;;  %v5489_v22 = vld [vmem:[%s5593_s24 + $0x148] sm:$0xff]   ;;  %v5491_v23 = vld [vmem:[%s5593_s24 + $0x358] sm:$0xff]  }
  0x33   : > { %5149 = vmatprep.mubr.msk.bf16.mxu0 %vm1112_vm1, %v5428_v24  ;;  %5281 = vmatprep.mubr.msk.bf16.mxu1 %vm1112_vm1, %v5430_v25  ;;  %v5492_v24 = vld [vmem:[%s5593_s24 + $0x150] sm:$0xff]   ;;  %v5494_v25 = vld [vmem:[%s5593_s24 + $0x360] sm:$0xff]  }
  0x3a   : > { %5150 = vmatmul.mubr.msk.bf16.gmra.mrb[20].mxu0 %vm1112_vm1, %v5429_v26  ;;  %5282 = vmatmul.mubr.msk.bf16.gmra.mrb[20].mxu1 %vm1112_vm1, %v5431_v27  ;;  %v5493_v26 = vld [vmem:[%s5593_s24 + $0x158] sm:$0xff]   ;;  %v5495_v27 = vld [vmem:[%s5593_s24 + $0x368] sm:$0xff]  }
  0x3b   : > { %5153 = vmatprep.mubr.msk.bf16.mxu0 %vm1112_vm1, %v5432_v28  ;;  %5285 = vmatprep.mubr.msk.bf16.mxu1 %vm1112_vm1, %v5434_v29  ;;  %v5496_v28 = vld [vmem:[%s5593_s24 + $0x160] sm:$0xff]   ;;  %v5498_v29 = vld [vmem:[%s5593_s24 + $0x370] sm:$0xff]  }
  0x42   : > { %5154 = vmatmul.mubr.msk.bf16.gmra.mrb[24].mxu0 %vm1112_vm1, %v5433_v30  ;;  %5286 = vmatmul.mubr.msk.bf16.gmra.mrb[24].mxu1 %vm1112_vm1, %v5435_v31  ;;  %v5497_v30 = vld [vmem:[%s5593_s24 + $0x168] sm:$0xff]   ;;  %v5499_v31 = vld [vmem:[%s5593_s24 + $0x378] sm:$0xff]  }
  0x43   : > { %5157 = vmatprep.mubr.msk.bf16.mxu0 %vm1112_vm1, %v5436_v32  ;;  %5289 = vmatprep.mubr.msk.bf16.mxu1 %vm1112_vm1, %v5438_v33  ;;  %v5500_v32 = vld [vmem:[%s5593_s24 + $0x170] sm:$0xff]   ;;  %v5502_v33 = vld [vmem:[%s5593_s24 + $0x380] sm:$0xff]  }
  0x4a   : > { %5158 = vmatmul.mubr.msk.bf16.gmra.mrb[28].mxu0 %vm1112_vm1, %v5437_v34  ;;  %5290 = vmatmul.mubr.msk.bf16.gmra.mrb[28].mxu1 %vm1112_vm1, %v5439_v35  ;;  %v5501_v34 = vld [vmem:[%s5593_s24 + $0x178] sm:$0xff]   ;;  %v5503_v35 = vld [vmem:[%s5593_s24 + $0x388] sm:$0xff]  }
  0x4b   : > { %5161 = vmatprep.mubr.msk.bf16.mxu0 %vm1112_vm1, %v5440_v36  ;;  %5293 = vmatprep.mubr.msk.bf16.mxu1 %vm1112_vm1, %v5442_v37  ;;  %v5504_v36 = vld [vmem:[%s5593_s24 + $0x180] sm:$0xff]   ;;  %v5506_v37 = vld [vmem:[%s5593_s24 + $0x390] sm:$0xff]  }
  0x52   : > { %5162 = vmatmul.mubr.msk.bf16.gmra.mrb[32].mxu0 %vm1112_vm1, %v5441_v38  ;;  %5294 = vmatmul.mubr.msk.bf16.gmra.mrb[32].mxu1 %vm1112_vm1, %v5443_v39  ;;  %v5505_v38 = vld [vmem:[%s5593_s24 + $0x188] sm:$0xff]   ;;  %v5507_v39 = vld [vmem:[%s5593_s24 + $0x398] sm:$0xff]  }
  0x53   : > { %5165 = vmatprep.mubr.msk.bf16.mxu0 %vm1112_vm1, %v5444_v40  ;;  %5297 = vmatprep.mubr.msk.bf16.mxu1 %vm1112_vm1, %v5446_v41  ;;  %v5508_v40 = vld [vmem:[%s5593_s24 + $0x190] sm:$0xff]   ;;  %v5510_v41 = vld [vmem:[%s5593_s24 + $0x3a0] sm:$0xff]  }
  0x5a   : > { %5166 = vmatmul.mubr.msk.bf16.gmra.mrb[36].mxu0 %vm1112_vm1, %v5445_v42  ;;  %5298 = vmatmul.mubr.msk.bf16.gmra.mrb[36].mxu1 %vm1112_vm1, %v5447_v43  ;;  %v5509_v42 = vld [vmem:[%s5593_s24 + $0x198] sm:$0xff]   ;;  %v5511_v43 = vld [vmem:[%s5593_s24 + $0x3a8] sm:$0xff]  }
  0x5b   : > { %5169 = vmatprep.mubr.msk.bf16.mxu0 %vm1112_vm1, %v5448_v44  ;;  %5301 = vmatprep.mubr.msk.bf16.mxu1 %vm1112_vm1, %v5450_v45  ;;  %v5512_v44 = vld [vmem:[%s5593_s24 + $0x1a0] sm:$0xff]   ;;  %v5514_v45 = vld [vmem:[%s5593_s24 + $0x3b0] sm:$0xff]  }
  0x62   : > { %5170 = vmatmul.mubr.msk.bf16.gmra.mrb[40].mxu0 %vm1112_vm1, %v5449_v46  ;;  %5302 = vmatmul.mubr.msk.bf16.gmra.mrb[40].mxu1 %vm1112_vm1, %v5451_v47  ;;  %v5513_v46 = vld [vmem:[%s5593_s24 + $0x1a8] sm:$0xff]   ;;  %v5515_v47 = vld [vmem:[%s5593_s24 + $0x3b8] sm:$0xff]  }
  0x63   : > { %5173 = vmatprep.mubr.msk.bf16.mxu0 %vm1112_vm1, %v5452_v48  ;;  %5305 = vmatprep.mubr.msk.bf16.mxu1 %vm1112_vm1, %v5454_v49  ;;  %v5516_v48 = vld [vmem:[%s5593_s24 + $0x1b0] sm:$0xff]   ;;  %v5518_v49 = vld [vmem:[%s5593_s24 + $0x3c0] sm:$0xff]  }
  0x6a   : > { %5174 = vmatmul.mubr.msk.bf16.gmra.mrb[44].mxu0 %vm1112_vm1, %v5453_v50  ;;  %5306 = vmatmul.mubr.msk.bf16.gmra.mrb[44].mxu1 %vm1112_vm1, %v5455_v51  ;;  %v5815_v50 = vld [vmem:[%s6662_s2] ss:$0 sm:$0xff] }
  0x6b   : > { %5177 = vmatprep.mubr.msk.bf16.mxu0 %vm1112_vm1, %v5456_v52  ;;  %5309 = vmatprep.mubr.msk.bf16.mxu1 %vm1112_vm1, %v5458_v53 }
  0x72   : > { %5178 = vmatmul.mubr.msk.bf16.gmra.mrb[48].mxu0 %vm1112_vm1, %v5457_v54  ;;  %5310 = vmatmul.mubr.msk.bf16.gmra.mrb[48].mxu1 %vm1112_vm1, %v5459_v55  ;;  %v5517_v54 = vld [vmem:[%s5593_s24 + $0x1b8] sm:$0xff]  }
  0x73   : > { %5181 = vmatprep.mubr.msk.bf16.mxu0 %vm1112_vm1, %v5460_v56  ;;  %5313 = vmatprep.mubr.msk.bf16.mxu1 %vm1112_vm1, %v5462_v57 }
  0x7a   : > { %5182 = vmatmul.mubr.msk.bf16.gmra.mrb[52].mxu0 %vm1112_vm1, %v5461_v58  ;;  %5314 = vmatmul.mubr.msk.bf16.gmra.mrb[52].mxu1 %vm1112_vm1, %v5463_v59 }
  0x7b   : > { %5185 = vmatprep.mubr.msk.bf16.mxu0 %vm1112_vm1, %v5464_v60  ;;  %5317 = vmatprep.mubr.msk.bf16.mxu1 %vm1112_vm1, %v5466_v61  ;;  %v5519_v60 = vld [vmem:[%s5593_s24 + $0x3c8] sm:$0xff]   ;;  %v5520_v61 = vld [vmem:[%s5593_s24 + $0x1c0] sm:$0xff]  }
  0x82   : > { %5186 = vmatmul.mubr.msk.bf16.gmra.mrb[56].mxu0 %vm1112_vm1, %v5465_v62  ;;  %5318 = vmatmul.mubr.msk.bf16.gmra.mrb[56].mxu1 %vm1112_vm1, %v5467_v63 }
  0x83   : > { %5189 = vmatprep.mubr.msk.bf16.mxu0 %vm1112_vm1, %v5468_v0  ;;  %5321 = vmatprep.mubr.msk.bf16.mxu1 %vm1112_vm1, %v5470_v1 }
  0x8a   : > { %5190 = vmatmul.mubr.msk.bf16.gmra.mrb[60].mxu0 %vm1112_vm1, %v5469_v2  ;;  %5322 = vmatmul.mubr.msk.bf16.gmra.mrb[60].mxu1 %vm1112_vm1, %v5471_v3  ;;  %v5522_v3 = vld [vmem:[%s5593_s24 + $0x3d0] sm:$0xff]  }
  0x8b   : > { %5193 = vmatprep.mubr.msk.bf16.mxu0 %vm1112_vm1, %v5472_v4  ;;  %5325 = vmatprep.mubr.msk.bf16.mxu1 %vm1112_vm1, %v5474_v5 }
  0x92   : > { %5194 = vmatmul.mubr.msk.bf16.gmra.mrb[64].mxu0 %vm1112_vm1, %v5473_v6  ;;  %5326 = vmatmul.mubr.msk.bf16.gmra.mrb[64].mxu1 %vm1112_vm1, %v5475_v7 }
  0x93   : > { %5197 = vmatprep.mubr.msk.bf16.mxu0 %vm1112_vm1, %v5476_v8  ;;  %5329 = vmatprep.mubr.msk.bf16.mxu1 %vm1112_vm1, %v5478_v9 }
  0x9a   : > { %5198 = vmatmul.mubr.msk.bf16.gmra.mrb[68].mxu0 %vm1112_vm1, %v5477_v10  ;;  %5330 = vmatmul.mubr.msk.bf16.gmra.mrb[68].mxu1 %vm1112_vm1, %v5479_v11 }
  0x9b   : > { %5201 = vmatprep.mubr.msk.bf16.mxu0 %vm1112_vm1, %v5480_v12  ;;  %5333 = vmatprep.mubr.msk.bf16.mxu1 %vm1112_vm1, %v5482_v13 }
  0xa2   : > { %5202 = vmatmul.mubr.msk.bf16.gmra.mrb[72].mxu0 %vm1112_vm1, %v5481_v14  ;;  %5334 = vmatmul.mubr.msk.bf16.gmra.mrb[72].mxu1 %vm1112_vm1, %v5483_v15 }
  0xa3   : > { %5205 = vmatprep.mubr.msk.bf16.mxu0 %vm1112_vm1, %v5484_v16  ;;  %5337 = vmatprep.mubr.msk.bf16.mxu1 %vm1112_vm1, %v5486_v17 }
  0xaa   : > { %5206 = vmatmul.mubr.msk.bf16.gmra.mrb[76].mxu0 %vm1112_vm1, %v5485_v18  ;;  %5338 = vmatmul.mubr.msk.bf16.gmra.mrb[76].mxu1 %vm1112_vm1, %v5487_v19 }
  0xab   : > { %5209 = vmatprep.mubr.msk.bf16.mxu0 %vm1112_vm1, %v5488_v20  ;;  %5341 = vmatprep.mubr.msk.bf16.mxu1 %vm1112_vm1, %v5490_v21 }
  0xb2   : > { %5210 = vmatmul.mubr.msk.bf16.gmra.mrb[80].mxu0 %vm1112_vm1, %v5489_v22  ;;  %5342 = vmatmul.mubr.msk.bf16.gmra.mrb[80].mxu1 %vm1112_vm1, %v5491_v23 }
  0xb3   : > { %5213 = vmatprep.mubr.msk.bf16.mxu0 %vm1112_vm1, %v5492_v24  ;;  %5345 = vmatprep.mubr.msk.bf16.mxu1 %vm1112_vm1, %v5494_v25 }
  0xba   : > { %5214 = vmatmul.mubr.msk.bf16.gmra.mrb[84].mxu0 %vm1112_vm1, %v5493_v26  ;;  %5346 = vmatmul.mubr.msk.bf16.gmra.mrb[84].mxu1 %vm1112_vm1, %v5495_v27  ;;  %v5521_v26 = vld [vmem:[%s5593_s24 + $0x1c8] sm:$0xff]  }
  0xbb   : > { %5217 = vmatprep.mubr.msk.bf16.mxu0 %vm1112_vm1, %v5496_v28  ;;  %5349 = vmatprep.mubr.msk.bf16.mxu1 %vm1112_vm1, %v5498_v29 }
  0xc2   : > { %5218 = vmatmul.mubr.msk.bf16.gmra.mrb[88].mxu0 %vm1112_vm1, %v5497_v30  ;;  %5350 = vmatmul.mubr.msk.bf16.gmra.mrb[88].mxu1 %vm1112_vm1, %v5499_v31 }
  0xc3   : > { %5221 = vmatprep.mubr.msk.bf16.mxu0 %vm1112_vm1, %v5500_v32  ;;  %5353 = vmatprep.mubr.msk.bf16.mxu1 %vm1112_vm1, %v5502_v33  ;;  %v5523_v32 = vld [vmem:[%s5593_s24 + $0x3d8] sm:$0xff]   ;;  %v5524_v33 = vld [vmem:[%s5593_s24 + $0x1d0] sm:$0xff]  }
  0xca   : > { %5222 = vmatmul.mubr.msk.bf16.gmra.mrb[92].mxu0 %vm1112_vm1, %v5501_v34  ;;  %5354 = vmatmul.mubr.msk.bf16.gmra.mrb[92].mxu1 %vm1112_vm1, %v5503_v35 }
  0xcb   : > { %5225 = vmatprep.mubr.msk.bf16.mxu0 %vm1112_vm1, %v5504_v36  ;;  %5357 = vmatprep.mubr.msk.bf16.mxu1 %vm1112_vm1, %v5506_v37 }
  0xd2   : > { %5226 = vmatmul.mubr.msk.bf16.gmra.mrb[96].mxu0 %vm1112_vm1, %v5505_v38  ;;  %5358 = vmatmul.mubr.msk.bf16.gmra.mrb[96].mxu1 %vm1112_vm1, %v5507_v39  ;;  %v5526_v39 = vld [vmem:[%s5593_s24 + $0x3e0] sm:$0xff]  }
  0xd3   : > { %5229 = vmatprep.mubr.msk.bf16.mxu0 %vm1112_vm1, %v5508_v40  ;;  %5361 = vmatprep.mubr.msk.bf16.mxu1 %vm1112_vm1, %v5510_v41 }
  0xda   : > { %5230 = vmatmul.mubr.msk.bf16.gmra.mrb[100].mxu0 %vm1112_vm1, %v5509_v42  ;;  %5362 = vmatmul.mubr.msk.bf16.gmra.mrb[100].mxu1 %vm1112_vm1, %v5511_v43 }
  0xdb   : > { %5233 = vmatprep.mubr.msk.bf16.mxu0 %vm1112_vm1, %v5512_v44  ;;  %5365 = vmatprep.mubr.msk.bf16.mxu1 %vm1112_vm1, %v5514_v45 }
  0xe2   : > { %5234 = vmatmul.mubr.msk.bf16.gmra.mrb[104].mxu0 %vm1112_vm1, %v5513_v46  ;;  %5366 = vmatmul.mubr.msk.bf16.gmra.mrb[104].mxu1 %vm1112_vm1, %v5515_v47 }
  0xe3   : > { %5237 = vmatprep.mubr.msk.bf16.mxu0 %vm1112_vm1, %v5516_v48  ;;  %5369 = vmatprep.mubr.msk.bf16.mxu1 %vm1112_vm1, %v5518_v49 }
  0xe5   : > { %v5131_v51 = vpop.f32.mrb[0].mxu0  ;;  %v5263_v55 = vpop.f32.mrb[0].mxu1 }
  0xe6   : > { %v1550_v52 = vadd.f32 %v5131_v51, %v5815_v50  ;;  %v1541_v53 = vpop.f32.mrb[1].mxu0  ;;  %v2078_v58 = vadd.f32 %v5263_v55, %v5815_v50  ;;  %v2069_v59 = vpop.f32.mrb[1].mxu1 }
  0xe7   : > { %v1542_v56 = vadd.f32 %v5815_v50, %v1541_v53  ;;  %v5132_v57 = vpop.f32.mrb[2].mxu0  ;;  %v2070_v1 = vadd.f32 %v5815_v50, %v2069_v59  ;;  %v5264_v2 = vpop.f32.mrb[2].mxu1 }
  0xe8   : > { %v2582_v62 = vmax.f32 %v1550_v52, 0.0  ;;  %v1553_v63 = vadd.f32 %v5132_v57, %v5815_v50  ;;  %v1544_v0 = vpop.f32.mrb[3].mxu0  ;;  %v2714_v6 = vmax.f32 %v2078_v58, 0.0  ;;  %v2081_v7 = vadd.f32 %v5264_v2, %v5815_v50  ;;  %v2072_v8 = vpop.f32.mrb[3].mxu1 }
  0xe9   : > { %v2580_v4 = vmax.f32 %v1542_v56, 0.0  ;;  %v1545_v5 = vadd.f32 %v5815_v50, %v1544_v0  ;;  %v2712_v11 = vmax.f32 %v2070_v1, 0.0  ;;  %v2073_v12 = vadd.f32 %v5815_v50, %v2072_v8 }
  0xea   : > { %v4732_v9 = vpack.c.bf16 %v2582_v62, %v2582_v62  ;;  %v2583_v10 = vmax.f32 %v1553_v63, 0.0  ;;  %5238 = vmatmul.mubr.msk.bf16.gmra.mrb[108].mxu0 %vm1112_vm1, %v5517_v54  ;;  %v4864_v15 = vpack.c.bf16 %v2714_v6, %v2714_v6  ;;  %v2715_v16 = vmax.f32 %v2081_v7, 0.0  ;;  %5370 = vmatmul.mubr.msk.bf16.gmra.mrb[108].mxu1 %vm1112_vm1, %v5519_v60  ;;  %v5525_v63 = vld [vmem:[%s5593_s24 + $0x1d8] sm:$0xff]   ;;  %v5528_v6 = vld [vmem:[%s5593_s24 + $0x1e0] sm:$0xff]  }
  0xeb   : > { %v4730_v13 = vpack.c.bf16 %v2580_v4, %v2580_v4  ;;  %v2581_v14 = vmax.f32 %v1545_v5, 0.0  ;;  %5241 = vmatprep.mubr.msk.bf16.mxu0 %vm1112_vm1, %v5520_v61  ;;  %v4862_v18 = vpack.c.bf16 %v2712_v11, %v2712_v11  ;;  %v2713_v19 = vmax.f32 %v2073_v12, 0.0  ;;  %5373 = vmatprep.mubr.msk.bf16.mxu1 %vm1112_vm1, %v5522_v3  ;;  %v5527_v5 = vld [vmem:[%s5593_s24 + $0x3e8] sm:$0xff]   ;;  %v5530_v12 = vld [vmem:[%s5593_s24 + $0x3f0] sm:$0xff]  }
  0xec   : > { %3883 = vst.msk [vmem:[%s5834_s29 + $0x8] sm:$0xf] %vm3880_vm2, %v4732_v9  ;;  %v4733_v17 = vpack.c.bf16 %v2583_v10, %v2583_v10  ;;  %4015 = vst.msk [vmem:[%s5834_s29 + $0x218] sm:$0xf] %vm3880_vm2, %v4864_v15  ;;  %v4865_v21 = vpack.c.bf16 %v2715_v16, %v2715_v16 }
  0xed   : > { %3881 = vst.msk [vmem:[%s5834_s29] sm:$0xf] %vm3880_vm2, %v4730_v13  ;;  %v4731_v20 = vpack.c.bf16 %v2581_v14, %v2581_v14  ;;  %v5135_v22 = vpop.f32.mrb[4].mxu0  ;;  %4013 = vst.msk [vmem:[%s5834_s29 + $0x210] sm:$0xf] %vm3880_vm2, %v4862_v18  ;;  %v4863_v24 = vpack.c.bf16 %v2713_v19, %v2713_v19  ;;  %v5267_v27 = vpop.f32.mrb[4].mxu1 }
  0xee   : > { %3884 = vst.msk [vmem:[%s5834_s29 + $0xc] sm:$0xf] %vm3880_vm2, %v4733_v17  ;;  %v1566_v23 = vadd.f32 %v5135_v22, %v5815_v50  ;;  %v1557_v25 = vpop.f32.mrb[5].mxu0  ;;  %4016 = vst.msk [vmem:[%s5834_s29 + $0x21c] sm:$0xf] %vm3880_vm2, %v4865_v21  ;;  %v2094_v30 = vadd.f32 %v5267_v27, %v5815_v50  ;;  %v2085_v31 = vpop.f32.mrb[5].mxu1 }
  0xef   : > { %3882 = vst.msk [vmem:[%s5834_s29 + $0x4] sm:$0xf] %vm3880_vm2, %v4731_v20  ;;  %v1558_v28 = vadd.f32 %v5815_v50, %v1557_v25  ;;  %v5136_v29 = vpop.f32.mrb[6].mxu0  ;;  %4014 = vst.msk [vmem:[%s5834_s29 + $0x214] sm:$0xf] %vm3880_vm2, %v4863_v24  ;;  %v2086_v37 = vadd.f32 %v5815_v50, %v2085_v31  ;;  %v5268_v38 = vpop.f32.mrb[6].mxu1 }
  0xf0   : > { %v2586_v34 = vmax.f32 %v1566_v23, 0.0  ;;  %v1569_v35 = vadd.f32 %v5136_v29, %v5815_v50  ;;  %v1560_v36 = vpop.f32.mrb[7].mxu0  ;;  %v2718_v42 = vmax.f32 %v2094_v30, 0.0  ;;  %v2097_v43 = vadd.f32 %v5268_v38, %v5815_v50  ;;  %v2088_v44 = vpop.f32.mrb[7].mxu1 }
  0xf1   : > { %v2584_v40 = vmax.f32 %v1558_v28, 0.0  ;;  %v1561_v41 = vadd.f32 %v5815_v50, %v1560_v36  ;;  %v2716_v47 = vmax.f32 %v2086_v37, 0.0  ;;  %v2089_v48 = vadd.f32 %v5815_v50, %v2088_v44 }
  0xf2   : > { %v4736_v45 = vpack.c.bf16 %v2586_v34, %v2586_v34  ;;  %v2587_v46 = vmax.f32 %v1569_v35, 0.0  ;;  %5242 = vmatmul.mubr.msk.bf16.gmra.mrb[112].mxu0 %vm1112_vm1, %v5521_v26  ;;  %v4868_v52 = vpack.c.bf16 %v2718_v42, %v2718_v42  ;;  %v2719_v53 = vmax.f32 %v2097_v43, 0.0  ;;  %5374 = vmatmul.mubr.msk.bf16.gmra.mrb[112].mxu1 %vm1112_vm1, %v5523_v32  ;;  %v5529_v35 = vld [vmem:[%s5593_s24 + $0x1e8] sm:$0xff]   ;;  %v5532_v42 = vld [vmem:[%s5593_s24 + $0x1f0] sm:$0xff]  }
  0xf3   : > { %v4734_v49 = vpack.c.bf16 %v2584_v40, %v2584_v40  ;;  %v2585_v51 = vmax.f32 %v1561_v41, 0.0  ;;  %5245 = vmatprep.mubr.msk.bf16.mxu0 %vm1112_vm1, %v5524_v33  ;;  %v4866_v55 = vpack.c.bf16 %v2716_v47, %v2716_v47  ;;  %v2717_v56 = vmax.f32 %v2089_v48, 0.0  ;;  %5377 = vmatprep.mubr.msk.bf16.mxu1 %vm1112_vm1, %v5526_v39  ;;  %v5531_v41 = vld [vmem:[%s5593_s24 + $0x3f8] sm:$0xff]   ;;  %v5534_v48 = vld [vmem:[%s5593_s24 + $0x400] sm:$0xff]  }
  0xf4   : > { %3887 = vst.msk [vmem:[%s5834_s29 + $0x18] sm:$0xf] %vm3880_vm2, %v4736_v45  ;;  %v4737_v54 = vpack.c.bf16 %v2587_v46, %v2587_v46  ;;  %4019 = vst.msk [vmem:[%s5834_s29 + $0x228] sm:$0xf] %vm3880_vm2, %v4868_v52  ;;  %v4869_v58 = vpack.c.bf16 %v2719_v53, %v2719_v53 }
  0xf5   : > { %3885 = vst.msk [vmem:[%s5834_s29 + $0x10] sm:$0xf] %vm3880_vm2, %v4734_v49  ;;  %v4735_v57 = vpack.c.bf16 %v2585_v51, %v2585_v51  ;;  %v5139_v59 = vpop.f32.mrb[8].mxu0  ;;  %4017 = vst.msk [vmem:[%s5834_s29 + $0x220] sm:$0xf] %vm3880_vm2, %v4866_v55  ;;  %v4867_v61 = vpack.c.bf16 %v2717_v56, %v2717_v56  ;;  %v5271_v0 = vpop.f32.mrb[8].mxu1 }
  0xf6   : > { %3888 = vst.msk [vmem:[%s5834_s29 + $0x1c] sm:$0xf] %vm3880_vm2, %v4737_v54  ;;  %v1582_v60 = vadd.f32 %v5139_v59, %v5815_v50  ;;  %v1573_v62 = vpop.f32.mrb[9].mxu0  ;;  %4020 = vst.msk [vmem:[%s5834_s29 + $0x22c] sm:$0xf] %vm3880_vm2, %v4869_v58  ;;  %v2110_v3 = vadd.f32 %v5271_v0, %v5815_v50  ;;  %v2101_v4 = vpop.f32.mrb[9].mxu1 }
  0xf7   : > { %3886 = vst.msk [vmem:[%s5834_s29 + $0x14] sm:$0xf] %vm3880_vm2, %v4735_v57  ;;  %v1574_v1 = vadd.f32 %v5815_v50, %v1573_v62  ;;  %v5140_v2 = vpop.f32.mrb[10].mxu0  ;;  %4018 = vst.msk [vmem:[%s5834_s29 + $0x224] sm:$0xf] %vm3880_vm2, %v4867_v61  ;;  %v2102_v10 = vadd.f32 %v5815_v50, %v2101_v4  ;;  %v5272_v11 = vpop.f32.mrb[10].mxu1 }
  0xf8   : > { %v2590_v7 = vmax.f32 %v1582_v60, 0.0  ;;  %v1585_v8 = vadd.f32 %v5140_v2, %v5815_v50  ;;  %v1576_v9 = vpop.f32.mrb[11].mxu0  ;;  %v2722_v15 = vmax.f32 %v2110_v3, 0.0  ;;  %v2113_v16 = vadd.f32 %v5272_v11, %v5815_v50  ;;  %v2104_v17 = vpop.f32.mrb[11].mxu1 }
  0xf9   : > { %v2588_v13 = vmax.f32 %v1574_v1, 0.0  ;;  %v1577_v14 = vadd.f32 %v5815_v50, %v1576_v9  ;;  %v2720_v20 = vmax.f32 %v2102_v10, 0.0  ;;  %v2105_v21 = vadd.f32 %v5815_v50, %v2104_v17 }
  0xfa   : > { %v4740_v18 = vpack.c.bf16 %v2590_v7, %v2590_v7  ;;  %v2591_v19 = vmax.f32 %v1585_v8, 0.0  ;;  %5246 = vmatmul.mubr.msk.bf16.gmra.mrb[116].mxu0 %vm1112_vm1, %v5525_v63  ;;  %v4872_v24 = vpack.c.bf16 %v2722_v15, %v2722_v15  ;;  %v2723_v25 = vmax.f32 %v2113_v16, 0.0  ;;  %5378 = vmatmul.mubr.msk.bf16.gmra.mrb[116].mxu1 %vm1112_vm1, %v5527_v5  ;;  %v5533_v8 = vld [vmem:[%s5593_s24 + $0x1f8] sm:$0xff]   ;;  %v5536_v15 = vld [vmem:[%s5593_s24 + $0x200] sm:$0xff]  }
  0xfb   : > { %v4738_v22 = vpack.c.bf16 %v2588_v13, %v2588_v13  ;;  %v2589_v23 = vmax.f32 %v1577_v14, 0.0  ;;  %5249 = vmatprep.mubr.msk.bf16.mxu0 %vm1112_vm1, %v5528_v6  ;;  %v4870_v27 = vpack.c.bf16 %v2720_v20, %v2720_v20  ;;  %v2721_v28 = vmax.f32 %v2105_v21, 0.0  ;;  %5381 = vmatprep.mubr.msk.bf16.mxu1 %vm1112_vm1, %v5530_v12  ;;  %v5535_v14 = vld [vmem:[%s5593_s24 + $0x408] sm:$0xff]  }
  0xfc   : > { %3891 = vst.msk [vmem:[%s5834_s29 + $0x28] sm:$0xf] %vm3880_vm2, %v4740_v18  ;;  %v4741_v26 = vpack.c.bf16 %v2591_v19, %v2591_v19  ;;  %4023 = vst.msk [vmem:[%s5834_s29 + $0x238] sm:$0xf] %vm3880_vm2, %v4872_v24  ;;  %v4873_v30 = vpack.c.bf16 %v2723_v25, %v2723_v25 }
  0xfd   : > { %3889 = vst.msk [vmem:[%s5834_s29 + $0x20] sm:$0xf] %vm3880_vm2, %v4738_v22  ;;  %v4739_v29 = vpack.c.bf16 %v2589_v23, %v2589_v23  ;;  %v5143_v31 = vpop.f32.mrb[12].mxu0  ;;  %4021 = vst.msk [vmem:[%s5834_s29 + $0x230] sm:$0xf] %vm3880_vm2, %v4870_v27  ;;  %v4871_v33 = vpack.c.bf16 %v2721_v28, %v2721_v28  ;;  %v5275_v36 = vpop.f32.mrb[12].mxu1 }
  0xfe   : > { %3892 = vst.msk [vmem:[%s5834_s29 + $0x2c] sm:$0xf] %vm3880_vm2, %v4741_v26  ;;  %v1598_v32 = vadd.f32 %v5143_v31, %v5815_v50  ;;  %v1589_v34 = vpop.f32.mrb[13].mxu0  ;;  %4024 = vst.msk [vmem:[%s5834_s29 + $0x23c] sm:$0xf] %vm3880_vm2, %v4873_v30  ;;  %v2126_v39 = vadd.f32 %v5275_v36, %v5815_v50  ;;  %v2117_v40 = vpop.f32.mrb[13].mxu1 }
  0xff   : > { %3890 = vst.msk [vmem:[%s5834_s29 + $0x24] sm:$0xf] %vm3880_vm2, %v4739_v29  ;;  %v1590_v37 = vadd.f32 %v5815_v50, %v1589_v34  ;;  %v5144_v38 = vpop.f32.mrb[14].mxu0  ;;  %4022 = vst.msk [vmem:[%s5834_s29 + $0x234] sm:$0xf] %vm3880_vm2, %v4871_v33  ;;  %v2118_v46 = vadd.f32 %v5815_v50, %v2117_v40  ;;  %v5276_v47 = vpop.f32.mrb[14].mxu1 }
 0x100   : > { %v2594_v43 = vmax.f32 %v1598_v32, 0.0  ;;  %v1601_v44 = vadd.f32 %v5144_v38, %v5815_v50  ;;  %v1592_v45 = vpop.f32.mrb[15].mxu0  ;;  %v2726_v52 = vmax.f32 %v2126_v39, 0.0  ;;  %v2129_v53 = vadd.f32 %v5276_v47, %v5815_v50  ;;  %v2120_v54 = vpop.f32.mrb[15].mxu1 }
 0x101   : > { %v2592_v49 = vmax.f32 %v1590_v37, 0.0  ;;  %v1593_v51 = vadd.f32 %v5815_v50, %v1592_v45  ;;  %v2724_v57 = vmax.f32 %v2118_v46, 0.0  ;;  %v2121_v58 = vadd.f32 %v5815_v50, %v2120_v54 }
 0x102   : > { %v4744_v55 = vpack.c.bf16 %v2594_v43, %v2594_v43  ;;  %v2595_v56 = vmax.f32 %v1601_v44, 0.0  ;;  %5250 = vmatmul.mubr.msk.bf16.gmra.mrb[120].mxu0 %vm1112_vm1, %v5529_v35  ;;  %v4876_v61 = vpack.c.bf16 %v2726_v52, %v2726_v52  ;;  %v2727_v62 = vmax.f32 %v2129_v53, 0.0  ;;  %5382 = vmatmul.mubr.msk.bf16.gmra.mrb[120].mxu1 %vm1112_vm1, %v5531_v41  ;;  %v5537_v43 = vld [vmem:[%s5593_s24 + $0x208] sm:$0xff]  }
 0x103   : > { %v4742_v59 = vpack.c.bf16 %v2592_v49, %v2592_v49  ;;  %v2593_v60 = vmax.f32 %v1593_v51, 0.0  ;;  %5253 = vmatprep.mubr.msk.bf16.mxu0 %vm1112_vm1, %v5532_v42  ;;  %v4874_v0 = vpack.c.bf16 %v2724_v57, %v2724_v57  ;;  %v2725_v1 = vmax.f32 %v2121_v58, 0.0  ;;  %5385 = vmatprep.mubr.msk.bf16.mxu1 %vm1112_vm1, %v5534_v48 }
 0x104   : > { %3895 = vst.msk [vmem:[%s5834_s29 + $0x38] sm:$0xf] %vm3880_vm2, %v4744_v55  ;;  %v4745_v63 = vpack.c.bf16 %v2595_v56, %v2595_v56  ;;  %4027 = vst.msk [vmem:[%s5834_s29 + $0x248] sm:$0xf] %vm3880_vm2, %v4876_v61  ;;  %v4877_v3 = vpack.c.bf16 %v2727_v62, %v2727_v62 }
 0x105   : > { %3893 = vst.msk [vmem:[%s5834_s29 + $0x30] sm:$0xf] %vm3880_vm2, %v4742_v59  ;;  %v4743_v2 = vpack.c.bf16 %v2593_v60, %v2593_v60  ;;  %v5147_v4 = vpop.f32.mrb[16].mxu0  ;;  %4025 = vst.msk [vmem:[%s5834_s29 + $0x240] sm:$0xf] %vm3880_vm2, %v4874_v0  ;;  %v4875_v6 = vpack.c.bf16 %v2725_v1, %v2725_v1  ;;  %v5279_v9 = vpop.f32.mrb[16].mxu1 }
 0x106   : > { %3896 = vst.msk [vmem:[%s5834_s29 + $0x3c] sm:$0xf] %vm3880_vm2, %v4745_v63  ;;  %v1614_v5 = vadd.f32 %v5147_v4, %v5815_v50  ;;  %v1605_v7 = vpop.f32.mrb[17].mxu0  ;;  %4028 = vst.msk [vmem:[%s5834_s29 + $0x24c] sm:$0xf] %vm3880_vm2, %v4877_v3  ;;  %v2142_v12 = vadd.f32 %v5279_v9, %v5815_v50  ;;  %v2133_v13 = vpop.f32.mrb[17].mxu1 }
 0x107   : > { %3894 = vst.msk [vmem:[%s5834_s29 + $0x34] sm:$0xf] %vm3880_vm2, %v4743_v2  ;;  %v1606_v10 = vadd.f32 %v5815_v50, %v1605_v7  ;;  %v5148_v11 = vpop.f32.mrb[18].mxu0  ;;  %4026 = vst.msk [vmem:[%s5834_s29 + $0x244] sm:$0xf] %vm3880_vm2, %v4875_v6  ;;  %v2134_v19 = vadd.f32 %v5815_v50, %v2133_v13  ;;  %v5280_v20 = vpop.f32.mrb[18].mxu1 }
 0x108   : > { %v2598_v16 = vmax.f32 %v1614_v5, 0.0  ;;  %v1617_v17 = vadd.f32 %v5148_v11, %v5815_v50  ;;  %v1608_v18 = vpop.f32.mrb[19].mxu0  ;;  %v2730_v23 = vmax.f32 %v2142_v12, 0.0  ;;  %v2145_v24 = vadd.f32 %v5280_v20, %v5815_v50  ;;  %v2136_v25 = vpop.f32.mrb[19].mxu1 }
 0x109   : > { %v2596_v21 = vmax.f32 %v1606_v10, 0.0  ;;  %v1609_v22 = vadd.f32 %v5815_v50, %v1608_v18  ;;  %v2728_v28 = vmax.f32 %v2134_v19, 0.0  ;;  %v2137_v29 = vadd.f32 %v5815_v50, %v2136_v25 }
 0x10a   : > { %v4748_v26 = vpack.c.bf16 %v2598_v16, %v2598_v16  ;;  %v2599_v27 = vmax.f32 %v1617_v17, 0.0  ;;  %5254 = vmatmul.mubr.msk.bf16.gmra.mrb[124].mxu0 %vm1112_vm1, %v5533_v8  ;;  %v4880_v32 = vpack.c.bf16 %v2730_v23, %v2730_v23  ;;  %v2731_v33 = vmax.f32 %v2145_v24, 0.0  ;;  %5386 = vmatmul.mubr.msk.bf16.gmra.mrb[124].mxu1 %vm1112_vm1, %v5535_v14 }
 0x10b   : > { %v4746_v30 = vpack.c.bf16 %v2596_v21, %v2596_v21  ;;  %v2597_v31 = vmax.f32 %v1609_v22, 0.0  ;;  %5257 = vmatprep.mubr.msk.bf16.mxu0 %vm1112_vm1, %v5536_v15  ;;  %v4878_v35 = vpack.c.bf16 %v2728_v28, %v2728_v28  ;;  %v2729_v36 = vmax.f32 %v2137_v29, 0.0 }
 0x10c   : > { %3899 = vst.msk [vmem:[%s5834_s29 + $0x48] sm:$0xf] %vm3880_vm2, %v4748_v26  ;;  %v4749_v34 = vpack.c.bf16 %v2599_v27, %v2599_v27  ;;  %4031 = vst.msk [vmem:[%s5834_s29 + $0x258] sm:$0xf] %vm3880_vm2, %v4880_v32  ;;  %v4881_v38 = vpack.c.bf16 %v2731_v33, %v2731_v33 }
 0x10d   : > { %3897 = vst.msk [vmem:[%s5834_s29 + $0x40] sm:$0xf] %vm3880_vm2, %v4746_v30  ;;  %v4747_v37 = vpack.c.bf16 %v2597_v31, %v2597_v31  ;;  %v5151_v39 = vpop.f32.mrb[20].mxu0  ;;  %4029 = vst.msk [vmem:[%s5834_s29 + $0x250] sm:$0xf] %vm3880_vm2, %v4878_v35  ;;  %v4879_v41 = vpack.c.bf16 %v2729_v36, %v2729_v36  ;;  %v5283_v44 = vpop.f32.mrb[20].mxu1 }
 0x10e   : > { %3900 = vst.msk [vmem:[%s5834_s29 + $0x4c] sm:$0xf] %vm3880_vm2, %v4749_v34  ;;  %v1630_v40 = vadd.f32 %v5151_v39, %v5815_v50  ;;  %v1621_v42 = vpop.f32.mrb[21].mxu0  ;;  %4032 = vst.msk [vmem:[%s5834_s29 + $0x25c] sm:$0xf] %vm3880_vm2, %v4881_v38  ;;  %v2158_v47 = vadd.f32 %v5283_v44, %v5815_v50  ;;  %v2149_v48 = vpop.f32.mrb[21].mxu1 }
 0x10f   : > { %3898 = vst.msk [vmem:[%s5834_s29 + $0x44] sm:$0xf] %vm3880_vm2, %v4747_v37  ;;  %v1622_v45 = vadd.f32 %v5815_v50, %v1621_v42  ;;  %v5152_v46 = vpop.f32.mrb[22].mxu0  ;;  %4030 = vst.msk [vmem:[%s5834_s29 + $0x254] sm:$0xf] %vm3880_vm2, %v4879_v41  ;;  %v2150_v53 = vadd.f32 %v5815_v50, %v2149_v48  ;;  %v5284_v54 = vpop.f32.mrb[22].mxu1 }
 0x110   : > { %v2602_v49 = vmax.f32 %v1630_v40, 0.0  ;;  %v1633_v51 = vadd.f32 %v5152_v46, %v5815_v50  ;;  %v1624_v52 = vpop.f32.mrb[23].mxu0  ;;  %v2734_v57 = vmax.f32 %v2158_v47, 0.0  ;;  %v2161_v58 = vadd.f32 %v5284_v54, %v5815_v50  ;;  %v2152_v59 = vpop.f32.mrb[23].mxu1 }
 0x111   : > { %v2600_v55 = vmax.f32 %v1622_v45, 0.0  ;;  %v1625_v56 = vadd.f32 %v5815_v50, %v1624_v52  ;;  %v2732_v62 = vmax.f32 %v2150_v53, 0.0  ;;  %v2153_v63 = vadd.f32 %v5815_v50, %v2152_v59 }
 0x112   : > { %v4752_v60 = vpack.c.bf16 %v2602_v49, %v2602_v49  ;;  %v2603_v61 = vmax.f32 %v1633_v51, 0.0  ;;  %5258 = vmatmul.mubr.msk.bf16.gmra.mrb[128].mxu0 %vm1112_vm1, %v5537_v43  ;;  %v4884_v2 = vpack.c.bf16 %v2734_v57, %v2734_v57  ;;  %v2735_v3 = vmax.f32 %v2161_v58, 0.0 }
 0x113   : > { %v4750_v0 = vpack.c.bf16 %v2600_v55, %v2600_v55  ;;  %v2601_v1 = vmax.f32 %v1625_v56, 0.0  ;;  %v4882_v5 = vpack.c.bf16 %v2732_v62, %v2732_v62  ;;  %v2733_v6 = vmax.f32 %v2153_v63, 0.0 }
 0x114   : > { %3903 = vst.msk [vmem:[%s5834_s29 + $0x58] sm:$0xf] %vm3880_vm2, %v4752_v60  ;;  %v4753_v4 = vpack.c.bf16 %v2603_v61, %v2603_v61  ;;  %4035 = vst.msk [vmem:[%s5834_s29 + $0x268] sm:$0xf] %vm3880_vm2, %v4884_v2  ;;  %v4885_v8 = vpack.c.bf16 %v2735_v3, %v2735_v3 }
 0x115   : > { %3901 = vst.msk [vmem:[%s5834_s29 + $0x50] sm:$0xf] %vm3880_vm2, %v4750_v0  ;;  %v4751_v7 = vpack.c.bf16 %v2601_v1, %v2601_v1  ;;  %v5155_v9 = vpop.f32.mrb[24].mxu0  ;;  %4033 = vst.msk [vmem:[%s5834_s29 + $0x260] sm:$0xf] %vm3880_vm2, %v4882_v5  ;;  %v4883_v11 = vpack.c.bf16 %v2733_v6, %v2733_v6  ;;  %v5287_v13 = vpop.f32.mrb[24].mxu1 }
 0x116   : > { %3904 = vst.msk [vmem:[%s5834_s29 + $0x5c] sm:$0xf] %vm3880_vm2, %v4753_v4  ;;  %v1646_v10 = vadd.f32 %v5155_v9, %v5815_v50  ;;  %v1637_v12 = vpop.f32.mrb[25].mxu0  ;;  %4036 = vst.msk [vmem:[%s5834_s29 + $0x26c] sm:$0xf] %vm3880_vm2, %v4885_v8  ;;  %v2174_v16 = vadd.f32 %v5287_v13, %v5815_v50  ;;  %v2165_v17 = vpop.f32.mrb[25].mxu1 }
 0x117   : > { %3902 = vst.msk [vmem:[%s5834_s29 + $0x54] sm:$0xf] %vm3880_vm2, %v4751_v7  ;;  %v1638_v14 = vadd.f32 %v5815_v50, %v1637_v12  ;;  %v5156_v15 = vpop.f32.mrb[26].mxu0  ;;  %4034 = vst.msk [vmem:[%s5834_s29 + $0x264] sm:$0xf] %vm3880_vm2, %v4883_v11  ;;  %v2166_v21 = vadd.f32 %v5815_v50, %v2165_v17  ;;  %v5288_v22 = vpop.f32.mrb[26].mxu1 }
 0x118   : > { %v2606_v18 = vmax.f32 %v1646_v10, 0.0  ;;  %v1649_v19 = vadd.f32 %v5156_v15, %v5815_v50  ;;  %v1640_v20 = vpop.f32.mrb[27].mxu0  ;;  %v2738_v25 = vmax.f32 %v2174_v16, 0.0  ;;  %v2177_v26 = vadd.f32 %v5288_v22, %v5815_v50  ;;  %v2168_v27 = vpop.f32.mrb[27].mxu1 }
 0x119   : > { %v2604_v23 = vmax.f32 %v1638_v14, 0.0  ;;  %v1641_v24 = vadd.f32 %v5815_v50, %v1640_v20  ;;  %v2736_v30 = vmax.f32 %v2166_v21, 0.0  ;;  %v2169_v31 = vadd.f32 %v5815_v50, %v2168_v27 }
 0x11a   : > { %v4756_v28 = vpack.c.bf16 %v2606_v18, %v2606_v18  ;;  %v2607_v29 = vmax.f32 %v1649_v19, 0.0  ;;  %v4888_v34 = vpack.c.bf16 %v2738_v25, %v2738_v25  ;;  %v2739_v35 = vmax.f32 %v2177_v26, 0.0 }
 0x11b   : > { %v4754_v32 = vpack.c.bf16 %v2604_v23, %v2604_v23  ;;  %v2605_v33 = vmax.f32 %v1641_v24, 0.0  ;;  %v4886_v37 = vpack.c.bf16 %v2736_v30, %v2736_v30  ;;  %v2737_v38 = vmax.f32 %v2169_v31, 0.0 }
 0x11c   : > { %3907 = vst.msk [vmem:[%s5834_s29 + $0x68] sm:$0xf] %vm3880_vm2, %v4756_v28  ;;  %v4757_v36 = vpack.c.bf16 %v2607_v29, %v2607_v29  ;;  %4039 = vst.msk [vmem:[%s5834_s29 + $0x278] sm:$0xf] %vm3880_vm2, %v4888_v34  ;;  %v4889_v40 = vpack.c.bf16 %v2739_v35, %v2739_v35 }
 0x11d   : > { %3905 = vst.msk [vmem:[%s5834_s29 + $0x60] sm:$0xf] %vm3880_vm2, %v4754_v32  ;;  %v4755_v39 = vpack.c.bf16 %v2605_v33, %v2605_v33  ;;  %v5159_v41 = vpop.f32.mrb[28].mxu0  ;;  %4037 = vst.msk [vmem:[%s5834_s29 + $0x270] sm:$0xf] %vm3880_vm2, %v4886_v37  ;;  %v4887_v43 = vpack.c.bf16 %v2737_v38, %v2737_v38  ;;  %v5291_v45 = vpop.f32.mrb[28].mxu1 }
 0x11e   : > { %3908 = vst.msk [vmem:[%s5834_s29 + $0x6c] sm:$0xf] %vm3880_vm2, %v4757_v36  ;;  %v1662_v42 = vadd.f32 %v5159_v41, %v5815_v50  ;;  %v1653_v44 = vpop.f32.mrb[29].mxu0  ;;  %4040 = vst.msk [vmem:[%s5834_s29 + $0x27c] sm:$0xf] %vm3880_vm2, %v4889_v40  ;;  %v2190_v48 = vadd.f32 %v5291_v45, %v5815_v50  ;;  %v2181_v49 = vpop.f32.mrb[29].mxu1 }
 0x11f   : > { %3906 = vst.msk [vmem:[%s5834_s29 + $0x64] sm:$0xf] %vm3880_vm2, %v4755_v39  ;;  %v1654_v46 = vadd.f32 %v5815_v50, %v1653_v44  ;;  %v5160_v47 = vpop.f32.mrb[30].mxu0  ;;  %4038 = vst.msk [vmem:[%s5834_s29 + $0x274] sm:$0xf] %vm3880_vm2, %v4887_v43  ;;  %v2182_v54 = vadd.f32 %v5815_v50, %v2181_v49  ;;  %v5292_v55 = vpop.f32.mrb[30].mxu1 }
 0x120   : > { %v2610_v51 = vmax.f32 %v1662_v42, 0.0  ;;  %v1665_v52 = vadd.f32 %v5160_v47, %v5815_v50  ;;  %v1656_v53 = vpop.f32.mrb[31].mxu0  ;;  %v2742_v58 = vmax.f32 %v2190_v48, 0.0  ;;  %v2193_v59 = vadd.f32 %v5292_v55, %v5815_v50  ;;  %v2184_v60 = vpop.f32.mrb[31].mxu1 }
 0x121   : > { %v2608_v56 = vmax.f32 %v1654_v46, 0.0  ;;  %v1657_v57 = vadd.f32 %v5815_v50, %v1656_v53  ;;  %v2740_v63 = vmax.f32 %v2182_v54, 0.0  ;;  %v2185_v0 = vadd.f32 %v5815_v50, %v2184_v60 }
 0x122   : > { %v4760_v61 = vpack.c.bf16 %v2610_v51, %v2610_v51  ;;  %v2611_v62 = vmax.f32 %v1665_v52, 0.0  ;;  %v4892_v3 = vpack.c.bf16 %v2742_v58, %v2742_v58  ;;  %v2743_v4 = vmax.f32 %v2193_v59, 0.0 }
 0x123   : > { %v4758_v1 = vpack.c.bf16 %v2608_v56, %v2608_v56  ;;  %v2609_v2 = vmax.f32 %v1657_v57, 0.0  ;;  %v4890_v6 = vpack.c.bf16 %v2740_v63, %v2740_v63  ;;  %v2741_v7 = vmax.f32 %v2185_v0, 0.0 }
 0x124   : > { %3911 = vst.msk [vmem:[%s5834_s29 + $0x78] sm:$0xf] %vm3880_vm2, %v4760_v61  ;;  %v4761_v5 = vpack.c.bf16 %v2611_v62, %v2611_v62  ;;  %4043 = vst.msk [vmem:[%s5834_s29 + $0x288] sm:$0xf] %vm3880_vm2, %v4892_v3  ;;  %v4893_v9 = vpack.c.bf16 %v2743_v4, %v2743_v4 }
 0x125   : > { %3909 = vst.msk [vmem:[%s5834_s29 + $0x70] sm:$0xf] %vm3880_vm2, %v4758_v1  ;;  %v4759_v8 = vpack.c.bf16 %v2609_v2, %v2609_v2  ;;  %v5163_v10 = vpop.f32.mrb[32].mxu0  ;;  %4041 = vst.msk [vmem:[%s5834_s29 + $0x280] sm:$0xf] %vm3880_vm2, %v4890_v6  ;;  %v4891_v12 = vpack.c.bf16 %v2741_v7, %v2741_v7  ;;  %v5295_v14 = vpop.f32.mrb[32].mxu1 }
 0x126   : > { %3912 = vst.msk [vmem:[%s5834_s29 + $0x7c] sm:$0xf] %vm3880_vm2, %v4761_v5  ;;  %v1678_v11 = vadd.f32 %v5163_v10, %v5815_v50  ;;  %v1669_v13 = vpop.f32.mrb[33].mxu0  ;;  %4044 = vst.msk [vmem:[%s5834_s29 + $0x28c] sm:$0xf] %vm3880_vm2, %v4893_v9  ;;  %v2206_v17 = vadd.f32 %v5295_v14, %v5815_v50  ;;  %v2197_v18 = vpop.f32.mrb[33].mxu1 }
 0x127   : > { %3910 = vst.msk [vmem:[%s5834_s29 + $0x74] sm:$0xf] %vm3880_vm2, %v4759_v8  ;;  %v1670_v15 = vadd.f32 %v5815_v50, %v1669_v13  ;;  %v5164_v16 = vpop.f32.mrb[34].mxu0  ;;  %4042 = vst.msk [vmem:[%s5834_s29 + $0x284] sm:$0xf] %vm3880_vm2, %v4891_v12  ;;  %v2198_v22 = vadd.f32 %v5815_v50, %v2197_v18  ;;  %v5296_v23 = vpop.f32.mrb[34].mxu1 }
 0x128   : > { %v2614_v19 = vmax.f32 %v1678_v11, 0.0  ;;  %v1681_v20 = vadd.f32 %v5164_v16, %v5815_v50  ;;  %v1672_v21 = vpop.f32.mrb[35].mxu0  ;;  %v2746_v26 = vmax.f32 %v2206_v17, 0.0  ;;  %v2209_v27 = vadd.f32 %v5296_v23, %v5815_v50  ;;  %v2200_v28 = vpop.f32.mrb[35].mxu1 }
 0x129   : > { %v2612_v24 = vmax.f32 %v1670_v15, 0.0  ;;  %v1673_v25 = vadd.f32 %v5815_v50, %v1672_v21  ;;  %v2744_v31 = vmax.f32 %v2198_v22, 0.0  ;;  %v2201_v32 = vadd.f32 %v5815_v50, %v2200_v28 }
 0x12a   : > { %v4764_v29 = vpack.c.bf16 %v2614_v19, %v2614_v19  ;;  %v2615_v30 = vmax.f32 %v1681_v20, 0.0  ;;  %v4896_v35 = vpack.c.bf16 %v2746_v26, %v2746_v26  ;;  %v2747_v36 = vmax.f32 %v2209_v27, 0.0 }
 0x12b   : > { %v4762_v33 = vpack.c.bf16 %v2612_v24, %v2612_v24  ;;  %v2613_v34 = vmax.f32 %v1673_v25, 0.0  ;;  %v4894_v38 = vpack.c.bf16 %v2744_v31, %v2744_v31  ;;  %v2745_v39 = vmax.f32 %v2201_v32, 0.0 }
 0x12c   : > { %3915 = vst.msk [vmem:[%s5834_s29 + $0x88] sm:$0xf] %vm3880_vm2, %v4764_v29  ;;  %v4765_v37 = vpack.c.bf16 %v2615_v30, %v2615_v30  ;;  %4047 = vst.msk [vmem:[%s5834_s29 + $0x298] sm:$0xf] %vm3880_vm2, %v4896_v35  ;;  %v4897_v41 = vpack.c.bf16 %v2747_v36, %v2747_v36 }
 0x12d   : > { %3913 = vst.msk [vmem:[%s5834_s29 + $0x80] sm:$0xf] %vm3880_vm2, %v4762_v33  ;;  %v4763_v40 = vpack.c.bf16 %v2613_v34, %v2613_v34  ;;  %v5167_v42 = vpop.f32.mrb[36].mxu0  ;;  %4045 = vst.msk [vmem:[%s5834_s29 + $0x290] sm:$0xf] %vm3880_vm2, %v4894_v38  ;;  %v4895_v44 = vpack.c.bf16 %v2745_v39, %v2745_v39  ;;  %v5299_v46 = vpop.f32.mrb[36].mxu1 }
 0x12e   : > { %3916 = vst.msk [vmem:[%s5834_s29 + $0x8c] sm:$0xf] %vm3880_vm2, %v4765_v37  ;;  %v1694_v43 = vadd.f32 %v5167_v42, %v5815_v50  ;;  %v1685_v45 = vpop.f32.mrb[37].mxu0  ;;  %4048 = vst.msk [vmem:[%s5834_s29 + $0x29c] sm:$0xf] %vm3880_vm2, %v4897_v41  ;;  %v2222_v49 = vadd.f32 %v5299_v46, %v5815_v50  ;;  %v2213_v51 = vpop.f32.mrb[37].mxu1 }
 0x12f   : > { %3914 = vst.msk [vmem:[%s5834_s29 + $0x84] sm:$0xf] %vm3880_vm2, %v4763_v40  ;;  %v1686_v47 = vadd.f32 %v5815_v50, %v1685_v45  ;;  %v5168_v48 = vpop.f32.mrb[38].mxu0  ;;  %4046 = vst.msk [vmem:[%s5834_s29 + $0x294] sm:$0xf] %vm3880_vm2, %v4895_v44  ;;  %v2214_v55 = vadd.f32 %v5815_v50, %v2213_v51  ;;  %v5300_v56 = vpop.f32.mrb[38].mxu1 }
 0x130   : > { %v2618_v52 = vmax.f32 %v1694_v43, 0.0  ;;  %v1697_v53 = vadd.f32 %v5168_v48, %v5815_v50  ;;  %v1688_v54 = vpop.f32.mrb[39].mxu0  ;;  %v2750_v59 = vmax.f32 %v2222_v49, 0.0  ;;  %v2225_v60 = vadd.f32 %v5300_v56, %v5815_v50  ;;  %v2216_v61 = vpop.f32.mrb[39].mxu1 }
 0x131   : > { %v2616_v57 = vmax.f32 %v1686_v47, 0.0  ;;  %v1689_v58 = vadd.f32 %v5815_v50, %v1688_v54  ;;  %v2748_v0 = vmax.f32 %v2214_v55, 0.0  ;;  %v2217_v1 = vadd.f32 %v5815_v50, %v2216_v61 }
 0x132   : > { %v4768_v62 = vpack.c.bf16 %v2618_v52, %v2618_v52  ;;  %v2619_v63 = vmax.f32 %v1697_v53, 0.0  ;;  %v4900_v4 = vpack.c.bf16 %v2750_v59, %v2750_v59  ;;  %v2751_v5 = vmax.f32 %v2225_v60, 0.0 }
 0x133   : > { %v4766_v2 = vpack.c.bf16 %v2616_v57, %v2616_v57  ;;  %v2617_v3 = vmax.f32 %v1689_v58, 0.0  ;;  %v4898_v7 = vpack.c.bf16 %v2748_v0, %v2748_v0  ;;  %v2749_v8 = vmax.f32 %v2217_v1, 0.0 }
 0x134   : > { %3919 = vst.msk [vmem:[%s5834_s29 + $0x98] sm:$0xf] %vm3880_vm2, %v4768_v62  ;;  %v4769_v6 = vpack.c.bf16 %v2619_v63, %v2619_v63  ;;  %4051 = vst.msk [vmem:[%s5834_s29 + $0x2a8] sm:$0xf] %vm3880_vm2, %v4900_v4  ;;  %v4901_v10 = vpack.c.bf16 %v2751_v5, %v2751_v5 }
 0x135   : > { %3917 = vst.msk [vmem:[%s5834_s29 + $0x90] sm:$0xf] %vm3880_vm2, %v4766_v2  ;;  %v4767_v9 = vpack.c.bf16 %v2617_v3, %v2617_v3  ;;  %v5171_v11 = vpop.f32.mrb[40].mxu0  ;;  %4049 = vst.msk [vmem:[%s5834_s29 + $0x2a0] sm:$0xf] %vm3880_vm2, %v4898_v7  ;;  %v4899_v13 = vpack.c.bf16 %v2749_v8, %v2749_v8  ;;  %v5303_v15 = vpop.f32.mrb[40].mxu1 }
 0x136   : > { %3920 = vst.msk [vmem:[%s5834_s29 + $0x9c] sm:$0xf] %vm3880_vm2, %v4769_v6  ;;  %v1710_v12 = vadd.f32 %v5171_v11, %v5815_v50  ;;  %v1701_v14 = vpop.f32.mrb[41].mxu0  ;;  %4052 = vst.msk [vmem:[%s5834_s29 + $0x2ac] sm:$0xf] %vm3880_vm2, %v4901_v10  ;;  %v2238_v18 = vadd.f32 %v5303_v15, %v5815_v50  ;;  %v2229_v19 = vpop.f32.mrb[41].mxu1 }
 0x137   : > { %3918 = vst.msk [vmem:[%s5834_s29 + $0x94] sm:$0xf] %vm3880_vm2, %v4767_v9  ;;  %v1702_v16 = vadd.f32 %v5815_v50, %v1701_v14  ;;  %v5172_v17 = vpop.f32.mrb[42].mxu0  ;;  %4050 = vst.msk [vmem:[%s5834_s29 + $0x2a4] sm:$0xf] %vm3880_vm2, %v4899_v13  ;;  %v2230_v23 = vadd.f32 %v5815_v50, %v2229_v19  ;;  %v5304_v24 = vpop.f32.mrb[42].mxu1 }
 0x138   : > { %v2622_v20 = vmax.f32 %v1710_v12, 0.0  ;;  %v1713_v21 = vadd.f32 %v5172_v17, %v5815_v50  ;;  %v1704_v22 = vpop.f32.mrb[43].mxu0  ;;  %v2754_v27 = vmax.f32 %v2238_v18, 0.0  ;;  %v2241_v28 = vadd.f32 %v5304_v24, %v5815_v50  ;;  %v2232_v29 = vpop.f32.mrb[43].mxu1 }
 0x139   : > { %v2620_v25 = vmax.f32 %v1702_v16, 0.0  ;;  %v1705_v26 = vadd.f32 %v5815_v50, %v1704_v22  ;;  %v2752_v32 = vmax.f32 %v2230_v23, 0.0  ;;  %v2233_v33 = vadd.f32 %v5815_v50, %v2232_v29 }
 0x13a   : > { %v4772_v30 = vpack.c.bf16 %v2622_v20, %v2622_v20  ;;  %v2623_v31 = vmax.f32 %v1713_v21, 0.0  ;;  %v4904_v36 = vpack.c.bf16 %v2754_v27, %v2754_v27  ;;  %v2755_v37 = vmax.f32 %v2241_v28, 0.0 }
 0x13b   : > { %v4770_v34 = vpack.c.bf16 %v2620_v25, %v2620_v25  ;;  %v2621_v35 = vmax.f32 %v1705_v26, 0.0  ;;  %v4902_v39 = vpack.c.bf16 %v2752_v32, %v2752_v32  ;;  %v2753_v40 = vmax.f32 %v2233_v33, 0.0 }
 0x13c   : > { %3923 = vst.msk [vmem:[%s5834_s29 + $0xa8] sm:$0xf] %vm3880_vm2, %v4772_v30  ;;  %v4773_v38 = vpack.c.bf16 %v2623_v31, %v2623_v31  ;;  %4055 = vst.msk [vmem:[%s5834_s29 + $0x2b8] sm:$0xf] %vm3880_vm2, %v4904_v36  ;;  %v4905_v42 = vpack.c.bf16 %v2755_v37, %v2755_v37 }
 0x13d   : > { %3921 = vst.msk [vmem:[%s5834_s29 + $0xa0] sm:$0xf] %vm3880_vm2, %v4770_v34  ;;  %v4771_v41 = vpack.c.bf16 %v2621_v35, %v2621_v35  ;;  %v5175_v43 = vpop.f32.mrb[44].mxu0  ;;  %4053 = vst.msk [vmem:[%s5834_s29 + $0x2b0] sm:$0xf] %vm3880_vm2, %v4902_v39  ;;  %v4903_v45 = vpack.c.bf16 %v2753_v40, %v2753_v40  ;;  %v5307_v47 = vpop.f32.mrb[44].mxu1 }
 0x13e   : > { %3924 = vst.msk [vmem:[%s5834_s29 + $0xac] sm:$0xf] %vm3880_vm2, %v4773_v38  ;;  %v1726_v44 = vadd.f32 %v5175_v43, %v5815_v50  ;;  %v1717_v46 = vpop.f32.mrb[45].mxu0  ;;  %4056 = vst.msk [vmem:[%s5834_s29 + $0x2bc] sm:$0xf] %vm3880_vm2, %v4905_v42  ;;  %v2254_v51 = vadd.f32 %v5307_v47, %v5815_v50  ;;  %v2245_v52 = vpop.f32.mrb[45].mxu1 }
 0x13f   : > { %3922 = vst.msk [vmem:[%s5834_s29 + $0xa4] sm:$0xf] %vm3880_vm2, %v4771_v41  ;;  %v1718_v48 = vadd.f32 %v5815_v50, %v1717_v46  ;;  %v5176_v49 = vpop.f32.mrb[46].mxu0  ;;  %4054 = vst.msk [vmem:[%s5834_s29 + $0x2b4] sm:$0xf] %vm3880_vm2, %v4903_v45  ;;  %v2246_v56 = vadd.f32 %v5815_v50, %v2245_v52  ;;  %v5308_v57 = vpop.f32.mrb[46].mxu1 }
 0x140   : > { %v2626_v53 = vmax.f32 %v1726_v44, 0.0  ;;  %v1729_v54 = vadd.f32 %v5176_v49, %v5815_v50  ;;  %v1720_v55 = vpop.f32.mrb[47].mxu0  ;;  %v2758_v60 = vmax.f32 %v2254_v51, 0.0  ;;  %v2257_v61 = vadd.f32 %v5308_v57, %v5815_v50  ;;  %v2248_v62 = vpop.f32.mrb[47].mxu1 }
 0x141   : > { %v2624_v58 = vmax.f32 %v1718_v48, 0.0  ;;  %v1721_v59 = vadd.f32 %v5815_v50, %v1720_v55  ;;  %v2756_v1 = vmax.f32 %v2246_v56, 0.0  ;;  %v2249_v2 = vadd.f32 %v5815_v50, %v2248_v62  ;;  %v6152_v50 = vld [vmem:[%s6662_s2] ss:$0 sm:$0xff] }
 0x142   : > { %v4776_v63 = vpack.c.bf16 %v2626_v53, %v2626_v53  ;;  %v2627_v0 = vmax.f32 %v1729_v54, 0.0  ;;  %v4908_v5 = vpack.c.bf16 %v2758_v60, %v2758_v60  ;;  %v2759_v6 = vmax.f32 %v2257_v61, 0.0 }
 0x143   : > { %v4774_v3 = vpack.c.bf16 %v2624_v58, %v2624_v58  ;;  %v2625_v4 = vmax.f32 %v1721_v59, 0.0  ;;  %v4906_v8 = vpack.c.bf16 %v2756_v1, %v2756_v1  ;;  %v2757_v9 = vmax.f32 %v2249_v2, 0.0 }
 0x144   : > { %3927 = vst.msk [vmem:[%s5834_s29 + $0xb8] sm:$0xf] %vm3880_vm2, %v4776_v63  ;;  %v4777_v7 = vpack.c.bf16 %v2627_v0, %v2627_v0  ;;  %4059 = vst.msk [vmem:[%s5834_s29 + $0x2c8] sm:$0xf] %vm3880_vm2, %v4908_v5  ;;  %v4909_v11 = vpack.c.bf16 %v2759_v6, %v2759_v6 }
 0x145   : > { %3925 = vst.msk [vmem:[%s5834_s29 + $0xb0] sm:$0xf] %vm3880_vm2, %v4774_v3  ;;  %v4775_v10 = vpack.c.bf16 %v2625_v4, %v2625_v4  ;;  %v5179_v12 = vpop.f32.mrb[48].mxu0  ;;  %4057 = vst.msk [vmem:[%s5834_s29 + $0x2c0] sm:$0xf] %vm3880_vm2, %v4906_v8  ;;  %v4907_v14 = vpack.c.bf16 %v2757_v9, %v2757_v9  ;;  %v5311_v16 = vpop.f32.mrb[48].mxu1 }
 0x146   : > { %3928 = vst.msk [vmem:[%s5834_s29 + $0xbc] sm:$0xf] %vm3880_vm2, %v4777_v7  ;;  %v1742_v13 = vadd.f32 %v6152_v50, %v5179_v12  ;;  %v1733_v15 = vpop.f32.mrb[49].mxu0  ;;  %4060 = vst.msk [vmem:[%s5834_s29 + $0x2cc] sm:$0xf] %vm3880_vm2, %v4909_v11  ;;  %v2270_v19 = vadd.f32 %v6152_v50, %v5311_v16  ;;  %v2261_v20 = vpop.f32.mrb[49].mxu1 }
 0x147   : > { %3926 = vst.msk [vmem:[%s5834_s29 + $0xb4] sm:$0xf] %vm3880_vm2, %v4775_v10  ;;  %v1734_v17 = vadd.f32 %v6152_v50, %v1733_v15  ;;  %v5180_v18 = vpop.f32.mrb[50].mxu0  ;;  %4058 = vst.msk [vmem:[%s5834_s29 + $0x2c4] sm:$0xf] %vm3880_vm2, %v4907_v14  ;;  %v2262_v24 = vadd.f32 %v6152_v50, %v2261_v20  ;;  %v5312_v25 = vpop.f32.mrb[50].mxu1 }
 0x148   : > { %v2630_v21 = vmax.f32 %v1742_v13, 0.0  ;;  %v1745_v22 = vadd.f32 %v6152_v50, %v5180_v18  ;;  %v1736_v23 = vpop.f32.mrb[51].mxu0  ;;  %v2762_v28 = vmax.f32 %v2270_v19, 0.0  ;;  %v2273_v29 = vadd.f32 %v6152_v50, %v5312_v25  ;;  %v2264_v30 = vpop.f32.mrb[51].mxu1 }
 0x149   : > { %v2628_v26 = vmax.f32 %v1734_v17, 0.0  ;;  %v1737_v27 = vadd.f32 %v6152_v50, %v1736_v23  ;;  %v2760_v33 = vmax.f32 %v2262_v24, 0.0  ;;  %v2265_v34 = vadd.f32 %v6152_v50, %v2264_v30 }
 0x14a   : > { %v4780_v31 = vpack.c.bf16 %v2630_v21, %v2630_v21  ;;  %v2631_v32 = vmax.f32 %v1745_v22, 0.0  ;;  %v4912_v37 = vpack.c.bf16 %v2762_v28, %v2762_v28  ;;  %v2763_v38 = vmax.f32 %v2273_v29, 0.0 }
 0x14b   : > { %v4778_v35 = vpack.c.bf16 %v2628_v26, %v2628_v26  ;;  %v2629_v36 = vmax.f32 %v1737_v27, 0.0  ;;  %v4910_v40 = vpack.c.bf16 %v2760_v33, %v2760_v33  ;;  %v2761_v41 = vmax.f32 %v2265_v34, 0.0 }
 0x14c   : > { %3931 = vst.msk [vmem:[%s5834_s29 + $0xc8] sm:$0xf] %vm3880_vm2, %v4780_v31  ;;  %v4781_v39 = vpack.c.bf16 %v2631_v32, %v2631_v32  ;;  %4063 = vst.msk [vmem:[%s5834_s29 + $0x2d8] sm:$0xf] %vm3880_vm2, %v4912_v37  ;;  %v4913_v43 = vpack.c.bf16 %v2763_v38, %v2763_v38 }
 0x14d   : > { %3929 = vst.msk [vmem:[%s5834_s29 + $0xc0] sm:$0xf] %vm3880_vm2, %v4778_v35  ;;  %v4779_v42 = vpack.c.bf16 %v2629_v36, %v2629_v36  ;;  %v5183_v44 = vpop.f32.mrb[52].mxu0  ;;  %4061 = vst.msk [vmem:[%s5834_s29 + $0x2d0] sm:$0xf] %vm3880_vm2, %v4910_v40  ;;  %v4911_v46 = vpack.c.bf16 %v2761_v41, %v2761_v41  ;;  %v5315_v48 = vpop.f32.mrb[52].mxu1 }
 0x14e   : > { %3932 = vst.msk [vmem:[%s5834_s29 + $0xcc] sm:$0xf] %vm3880_vm2, %v4781_v39  ;;  %v1758_v45 = vadd.f32 %v6152_v50, %v5183_v44  ;;  %v1749_v47 = vpop.f32.mrb[53].mxu0  ;;  %4064 = vst.msk [vmem:[%s5834_s29 + $0x2dc] sm:$0xf] %vm3880_vm2, %v4913_v43  ;;  %v2286_v52 = vadd.f32 %v6152_v50, %v5315_v48  ;;  %v2277_v53 = vpop.f32.mrb[53].mxu1 }
 0x14f   : > { %3930 = vst.msk [vmem:[%s5834_s29 + $0xc4] sm:$0xf] %vm3880_vm2, %v4779_v42  ;;  %v1750_v49 = vadd.f32 %v6152_v50, %v1749_v47  ;;  %v5184_v51 = vpop.f32.mrb[54].mxu0  ;;  %4062 = vst.msk [vmem:[%s5834_s29 + $0x2d4] sm:$0xf] %vm3880_vm2, %v4911_v46  ;;  %v2278_v57 = vadd.f32 %v6152_v50, %v2277_v53  ;;  %v5316_v58 = vpop.f32.mrb[54].mxu1 }
 0x150   : > { %v2634_v54 = vmax.f32 %v1758_v45, 0.0  ;;  %v1761_v55 = vadd.f32 %v6152_v50, %v5184_v51  ;;  %v1752_v56 = vpop.f32.mrb[55].mxu0  ;;  %v2766_v61 = vmax.f32 %v2286_v52, 0.0  ;;  %v2289_v62 = vadd.f32 %v6152_v50, %v5316_v58  ;;  %v2280_v63 = vpop.f32.mrb[55].mxu1 }
 0x151   : > { %v2632_v59 = vmax.f32 %v1750_v49, 0.0  ;;  %v1753_v60 = vadd.f32 %v6152_v50, %v1752_v56  ;;  %v2764_v2 = vmax.f32 %v2278_v57, 0.0  ;;  %v2281_v3 = vadd.f32 %v6152_v50, %v2280_v63 }
 0x152   : > { %v4784_v0 = vpack.c.bf16 %v2634_v54, %v2634_v54  ;;  %v2635_v1 = vmax.f32 %v1761_v55, 0.0  ;;  %v4916_v6 = vpack.c.bf16 %v2766_v61, %v2766_v61  ;;  %v2767_v7 = vmax.f32 %v2289_v62, 0.0 }
 0x153   : > { %v4782_v4 = vpack.c.bf16 %v2632_v59, %v2632_v59  ;;  %v2633_v5 = vmax.f32 %v1753_v60, 0.0  ;;  %v4914_v9 = vpack.c.bf16 %v2764_v2, %v2764_v2  ;;  %v2765_v10 = vmax.f32 %v2281_v3, 0.0 }
 0x154   : > { %3935 = vst.msk [vmem:[%s5834_s29 + $0xd8] sm:$0xf] %vm3880_vm2, %v4784_v0  ;;  %v4785_v8 = vpack.c.bf16 %v2635_v1, %v2635_v1  ;;  %4067 = vst.msk [vmem:[%s5834_s29 + $0x2e8] sm:$0xf] %vm3880_vm2, %v4916_v6  ;;  %v4917_v12 = vpack.c.bf16 %v2767_v7, %v2767_v7 }
 0x155   : > { %3933 = vst.msk [vmem:[%s5834_s29 + $0xd0] sm:$0xf] %vm3880_vm2, %v4782_v4  ;;  %v4783_v11 = vpack.c.bf16 %v2633_v5, %v2633_v5  ;;  %v5187_v13 = vpop.f32.mrb[56].mxu0  ;;  %4065 = vst.msk [vmem:[%s5834_s29 + $0x2e0] sm:$0xf] %vm3880_vm2, %v4914_v9  ;;  %v4915_v15 = vpack.c.bf16 %v2765_v10, %v2765_v10  ;;  %v5319_v17 = vpop.f32.mrb[56].mxu1 }
 0x156   : > { %3936 = vst.msk [vmem:[%s5834_s29 + $0xdc] sm:$0xf] %vm3880_vm2, %v4785_v8  ;;  %v1774_v14 = vadd.f32 %v6152_v50, %v5187_v13  ;;  %v1765_v16 = vpop.f32.mrb[57].mxu0  ;;  %4068 = vst.msk [vmem:[%s5834_s29 + $0x2ec] sm:$0xf] %vm3880_vm2, %v4917_v12  ;;  %v2302_v20 = vadd.f32 %v6152_v50, %v5319_v17  ;;  %v2293_v21 = vpop.f32.mrb[57].mxu1 }
 0x157   : > { %3934 = vst.msk [vmem:[%s5834_s29 + $0xd4] sm:$0xf] %vm3880_vm2, %v4783_v11  ;;  %v1766_v18 = vadd.f32 %v6152_v50, %v1765_v16  ;;  %v5188_v19 = vpop.f32.mrb[58].mxu0  ;;  %4066 = vst.msk [vmem:[%s5834_s29 + $0x2e4] sm:$0xf] %vm3880_vm2, %v4915_v15  ;;  %v2294_v25 = vadd.f32 %v6152_v50, %v2293_v21  ;;  %v5320_v26 = vpop.f32.mrb[58].mxu1 }
 0x158   : > { %v2638_v22 = vmax.f32 %v1774_v14, 0.0  ;;  %v1777_v23 = vadd.f32 %v6152_v50, %v5188_v19  ;;  %v1768_v24 = vpop.f32.mrb[59].mxu0  ;;  %v2770_v29 = vmax.f32 %v2302_v20, 0.0  ;;  %v2305_v30 = vadd.f32 %v6152_v50, %v5320_v26  ;;  %v2296_v31 = vpop.f32.mrb[59].mxu1 }
 0x159   : > { %v2636_v27 = vmax.f32 %v1766_v18, 0.0  ;;  %v1769_v28 = vadd.f32 %v6152_v50, %v1768_v24  ;;  %v2768_v34 = vmax.f32 %v2294_v25, 0.0  ;;  %v2297_v35 = vadd.f32 %v6152_v50, %v2296_v31 }
 0x15a   : > { %v4788_v32 = vpack.c.bf16 %v2638_v22, %v2638_v22  ;;  %v2639_v33 = vmax.f32 %v1777_v23, 0.0  ;;  %v4920_v38 = vpack.c.bf16 %v2770_v29, %v2770_v29  ;;  %v2771_v39 = vmax.f32 %v2305_v30, 0.0 }
 0x15b   : > { %v4786_v36 = vpack.c.bf16 %v2636_v27, %v2636_v27  ;;  %v2637_v37 = vmax.f32 %v1769_v28, 0.0  ;;  %v4918_v41 = vpack.c.bf16 %v2768_v34, %v2768_v34  ;;  %v2769_v42 = vmax.f32 %v2297_v35, 0.0 }
 0x15c   : > { %3939 = vst.msk [vmem:[%s5834_s29 + $0xe8] sm:$0xf] %vm3880_vm2, %v4788_v32  ;;  %v4789_v40 = vpack.c.bf16 %v2639_v33, %v2639_v33  ;;  %4071 = vst.msk [vmem:[%s5834_s29 + $0x2f8] sm:$0xf] %vm3880_vm2, %v4920_v38  ;;  %v4921_v44 = vpack.c.bf16 %v2771_v39, %v2771_v39 }
 0x15d   : > { %3937 = vst.msk [vmem:[%s5834_s29 + $0xe0] sm:$0xf] %vm3880_vm2, %v4786_v36  ;;  %v4787_v43 = vpack.c.bf16 %v2637_v37, %v2637_v37  ;;  %v5191_v45 = vpop.f32.mrb[60].mxu0  ;;  %4069 = vst.msk [vmem:[%s5834_s29 + $0x2f0] sm:$0xf] %vm3880_vm2, %v4918_v41  ;;  %v4919_v47 = vpack.c.bf16 %v2769_v42, %v2769_v42  ;;  %v5323_v49 = vpop.f32.mrb[60].mxu1 }
 0x15e   : > { %3940 = vst.msk [vmem:[%s5834_s29 + $0xec] sm:$0xf] %vm3880_vm2, %v4789_v40  ;;  %v1790_v46 = vadd.f32 %v6152_v50, %v5191_v45  ;;  %v1781_v48 = vpop.f32.mrb[61].mxu0  ;;  %4072 = vst.msk [vmem:[%s5834_s29 + $0x2fc] sm:$0xf] %vm3880_vm2, %v4921_v44  ;;  %v2318_v53 = vadd.f32 %v6152_v50, %v5323_v49  ;;  %v2309_v54 = vpop.f32.mrb[61].mxu1 }
 0x15f   : > { %3938 = vst.msk [vmem:[%s5834_s29 + $0xe4] sm:$0xf] %vm3880_vm2, %v4787_v43  ;;  %v1782_v51 = vadd.f32 %v6152_v50, %v1781_v48  ;;  %v5192_v52 = vpop.f32.mrb[62].mxu0  ;;  %4070 = vst.msk [vmem:[%s5834_s29 + $0x2f4] sm:$0xf] %vm3880_vm2, %v4919_v47  ;;  %v2310_v58 = vadd.f32 %v6152_v50, %v2309_v54  ;;  %v5324_v59 = vpop.f32.mrb[62].mxu1 }
 0x160   : > { %v2642_v55 = vmax.f32 %v1790_v46, 0.0  ;;  %v1793_v56 = vadd.f32 %v6152_v50, %v5192_v52  ;;  %v1784_v57 = vpop.f32.mrb[63].mxu0  ;;  %v2774_v62 = vmax.f32 %v2318_v53, 0.0  ;;  %v2321_v63 = vadd.f32 %v6152_v50, %v5324_v59  ;;  %v2312_v0 = vpop.f32.mrb[63].mxu1 }
 0x161   : > { %v2640_v60 = vmax.f32 %v1782_v51, 0.0  ;;  %v1785_v61 = vadd.f32 %v6152_v50, %v1784_v57  ;;  %v2772_v3 = vmax.f32 %v2310_v58, 0.0  ;;  %v2313_v4 = vadd.f32 %v6152_v50, %v2312_v0 }
 0x162   : > { %v4792_v1 = vpack.c.bf16 %v2642_v55, %v2642_v55  ;;  %v2643_v2 = vmax.f32 %v1793_v56, 0.0  ;;  %v4924_v7 = vpack.c.bf16 %v2774_v62, %v2774_v62  ;;  %v2775_v8 = vmax.f32 %v2321_v63, 0.0 }
 0x163   : > { %v4790_v5 = vpack.c.bf16 %v2640_v60, %v2640_v60  ;;  %v2641_v6 = vmax.f32 %v1785_v61, 0.0  ;;  %v4922_v10 = vpack.c.bf16 %v2772_v3, %v2772_v3  ;;  %v2773_v11 = vmax.f32 %v2313_v4, 0.0 }
 0x164   : > { %3943 = vst.msk [vmem:[%s5834_s29 + $0xf8] sm:$0xf] %vm3880_vm2, %v4792_v1  ;;  %v4793_v9 = vpack.c.bf16 %v2643_v2, %v2643_v2  ;;  %4075 = vst.msk [vmem:[%s5834_s29 + $0x308] sm:$0xf] %vm3880_vm2, %v4924_v7  ;;  %v4925_v13 = vpack.c.bf16 %v2775_v8, %v2775_v8 }
 0x165   : > { %3941 = vst.msk [vmem:[%s5834_s29 + $0xf0] sm:$0xf] %vm3880_vm2, %v4790_v5  ;;  %v4791_v12 = vpack.c.bf16 %v2641_v6, %v2641_v6  ;;  %v5195_v14 = vpop.f32.mrb[64].mxu0  ;;  %4073 = vst.msk [vmem:[%s5834_s29 + $0x300] sm:$0xf] %vm3880_vm2, %v4922_v10  ;;  %v4923_v16 = vpack.c.bf16 %v2773_v11, %v2773_v11  ;;  %v5327_v18 = vpop.f32.mrb[64].mxu1 }
 0x166   : > { %3944 = vst.msk [vmem:[%s5834_s29 + $0xfc] sm:$0xf] %vm3880_vm2, %v4793_v9  ;;  %v1806_v15 = vadd.f32 %v6152_v50, %v5195_v14  ;;  %v1797_v17 = vpop.f32.mrb[65].mxu0  ;;  %4076 = vst.msk [vmem:[%s5834_s29 + $0x30c] sm:$0xf] %vm3880_vm2, %v4925_v13  ;;  %v2334_v21 = vadd.f32 %v6152_v50, %v5327_v18  ;;  %v2325_v22 = vpop.f32.mrb[65].mxu1 }
 0x167   : > { %3942 = vst.msk [vmem:[%s5834_s29 + $0xf4] sm:$0xf] %vm3880_vm2, %v4791_v12  ;;  %v1798_v19 = vadd.f32 %v6152_v50, %v1797_v17  ;;  %v5196_v20 = vpop.f32.mrb[66].mxu0  ;;  %4074 = vst.msk [vmem:[%s5834_s29 + $0x304] sm:$0xf] %vm3880_vm2, %v4923_v16  ;;  %v2326_v26 = vadd.f32 %v6152_v50, %v2325_v22  ;;  %v5328_v27 = vpop.f32.mrb[66].mxu1 }
 0x168   : > { %v2646_v23 = vmax.f32 %v1806_v15, 0.0  ;;  %v1809_v24 = vadd.f32 %v6152_v50, %v5196_v20  ;;  %v1800_v25 = vpop.f32.mrb[67].mxu0  ;;  %v2778_v30 = vmax.f32 %v2334_v21, 0.0  ;;  %v2337_v31 = vadd.f32 %v6152_v50, %v5328_v27  ;;  %v2328_v32 = vpop.f32.mrb[67].mxu1 }
 0x169   : > { %v2644_v28 = vmax.f32 %v1798_v19, 0.0  ;;  %v1801_v29 = vadd.f32 %v6152_v50, %v1800_v25  ;;  %v2776_v35 = vmax.f32 %v2326_v26, 0.0  ;;  %v2329_v36 = vadd.f32 %v6152_v50, %v2328_v32 }
 0x16a   : > { %v4796_v33 = vpack.c.bf16 %v2646_v23, %v2646_v23  ;;  %v2647_v34 = vmax.f32 %v1809_v24, 0.0  ;;  %v4928_v39 = vpack.c.bf16 %v2778_v30, %v2778_v30  ;;  %v2779_v40 = vmax.f32 %v2337_v31, 0.0 }
 0x16b   : > { %v4794_v37 = vpack.c.bf16 %v2644_v28, %v2644_v28  ;;  %v2645_v38 = vmax.f32 %v1801_v29, 0.0  ;;  %v4926_v42 = vpack.c.bf16 %v2776_v35, %v2776_v35  ;;  %v2777_v43 = vmax.f32 %v2329_v36, 0.0 }
 0x16c   : > { %3947 = vst.msk [vmem:[%s5834_s29 + $0x108] sm:$0xf] %vm3880_vm2, %v4796_v33  ;;  %v4797_v41 = vpack.c.bf16 %v2647_v34, %v2647_v34  ;;  %4079 = vst.msk [vmem:[%s5834_s29 + $0x318] sm:$0xf] %vm3880_vm2, %v4928_v39  ;;  %v4929_v45 = vpack.c.bf16 %v2779_v40, %v2779_v40 }
 0x16d   : > { %3945 = vst.msk [vmem:[%s5834_s29 + $0x100] sm:$0xf] %vm3880_vm2, %v4794_v37  ;;  %v4795_v44 = vpack.c.bf16 %v2645_v38, %v2645_v38  ;;  %v5199_v46 = vpop.f32.mrb[68].mxu0  ;;  %4077 = vst.msk [vmem:[%s5834_s29 + $0x310] sm:$0xf] %vm3880_vm2, %v4926_v42  ;;  %v4927_v48 = vpack.c.bf16 %v2777_v43, %v2777_v43  ;;  %v5331_v51 = vpop.f32.mrb[68].mxu1 }
 0x16e   : > { %3948 = vst.msk [vmem:[%s5834_s29 + $0x10c] sm:$0xf] %vm3880_vm2, %v4797_v41  ;;  %v1822_v47 = vadd.f32 %v6152_v50, %v5199_v46  ;;  %v1813_v49 = vpop.f32.mrb[69].mxu0  ;;  %4080 = vst.msk [vmem:[%s5834_s29 + $0x31c] sm:$0xf] %vm3880_vm2, %v4929_v45  ;;  %v2350_v54 = vadd.f32 %v6152_v50, %v5331_v51  ;;  %v2341_v55 = vpop.f32.mrb[69].mxu1 }
 0x16f   : > { %3946 = vst.msk [vmem:[%s5834_s29 + $0x104] sm:$0xf] %vm3880_vm2, %v4795_v44  ;;  %v1814_v52 = vadd.f32 %v6152_v50, %v1813_v49  ;;  %v5200_v53 = vpop.f32.mrb[70].mxu0  ;;  %4078 = vst.msk [vmem:[%s5834_s29 + $0x314] sm:$0xf] %vm3880_vm2, %v4927_v48  ;;  %v2342_v59 = vadd.f32 %v6152_v50, %v2341_v55  ;;  %v5332_v60 = vpop.f32.mrb[70].mxu1 }
 0x170   : > { %v2650_v56 = vmax.f32 %v1822_v47, 0.0  ;;  %v1825_v57 = vadd.f32 %v6152_v50, %v5200_v53  ;;  %v1816_v58 = vpop.f32.mrb[71].mxu0  ;;  %v2782_v63 = vmax.f32 %v2350_v54, 0.0  ;;  %v2353_v0 = vadd.f32 %v6152_v50, %v5332_v60  ;;  %v2344_v1 = vpop.f32.mrb[71].mxu1 }
 0x171   : > { %v2648_v61 = vmax.f32 %v1814_v52, 0.0  ;;  %v1817_v62 = vadd.f32 %v6152_v50, %v1816_v58  ;;  %v2780_v4 = vmax.f32 %v2342_v59, 0.0  ;;  %v2345_v5 = vadd.f32 %v6152_v50, %v2344_v1 }
 0x172   : > { %v4800_v2 = vpack.c.bf16 %v2650_v56, %v2650_v56  ;;  %v2651_v3 = vmax.f32 %v1825_v57, 0.0  ;;  %v4932_v8 = vpack.c.bf16 %v2782_v63, %v2782_v63  ;;  %v2783_v9 = vmax.f32 %v2353_v0, 0.0 }
 0x173   : > { %v4798_v6 = vpack.c.bf16 %v2648_v61, %v2648_v61  ;;  %v2649_v7 = vmax.f32 %v1817_v62, 0.0  ;;  %v4930_v11 = vpack.c.bf16 %v2780_v4, %v2780_v4  ;;  %v2781_v12 = vmax.f32 %v2345_v5, 0.0 }
 0x174   : > { %3951 = vst.msk [vmem:[%s5834_s29 + $0x118] sm:$0xf] %vm3880_vm2, %v4800_v2  ;;  %v4801_v10 = vpack.c.bf16 %v2651_v3, %v2651_v3  ;;  %4083 = vst.msk [vmem:[%s5834_s29 + $0x328] sm:$0xf] %vm3880_vm2, %v4932_v8  ;;  %v4933_v14 = vpack.c.bf16 %v2783_v9, %v2783_v9 }
 0x175   : > { %3949 = vst.msk [vmem:[%s5834_s29 + $0x110] sm:$0xf] %vm3880_vm2, %v4798_v6  ;;  %v4799_v13 = vpack.c.bf16 %v2649_v7, %v2649_v7  ;;  %v5203_v15 = vpop.f32.mrb[72].mxu0  ;;  %4081 = vst.msk [vmem:[%s5834_s29 + $0x320] sm:$0xf] %vm3880_vm2, %v4930_v11  ;;  %v4931_v17 = vpack.c.bf16 %v2781_v12, %v2781_v12  ;;  %v5335_v19 = vpop.f32.mrb[72].mxu1 }
 0x176   : > { %3952 = vst.msk [vmem:[%s5834_s29 + $0x11c] sm:$0xf] %vm3880_vm2, %v4801_v10  ;;  %v1838_v16 = vadd.f32 %v6152_v50, %v5203_v15  ;;  %v1829_v18 = vpop.f32.mrb[73].mxu0  ;;  %4084 = vst.msk [vmem:[%s5834_s29 + $0x32c] sm:$0xf] %vm3880_vm2, %v4933_v14  ;;  %v2366_v22 = vadd.f32 %v6152_v50, %v5335_v19  ;;  %v2357_v23 = vpop.f32.mrb[73].mxu1 }
 0x177   : > { %3950 = vst.msk [vmem:[%s5834_s29 + $0x114] sm:$0xf] %vm3880_vm2, %v4799_v13  ;;  %v1830_v20 = vadd.f32 %v6152_v50, %v1829_v18  ;;  %v5204_v21 = vpop.f32.mrb[74].mxu0  ;;  %4082 = vst.msk [vmem:[%s5834_s29 + $0x324] sm:$0xf] %vm3880_vm2, %v4931_v17  ;;  %v2358_v27 = vadd.f32 %v6152_v50, %v2357_v23  ;;  %v5336_v28 = vpop.f32.mrb[74].mxu1 }
 0x178   : > { %v2654_v24 = vmax.f32 %v1838_v16, 0.0  ;;  %v1841_v25 = vadd.f32 %v6152_v50, %v5204_v21  ;;  %v1832_v26 = vpop.f32.mrb[75].mxu0  ;;  %v2786_v31 = vmax.f32 %v2366_v22, 0.0  ;;  %v2369_v32 = vadd.f32 %v6152_v50, %v5336_v28  ;;  %v2360_v33 = vpop.f32.mrb[75].mxu1 }
 0x179   : > { %v2652_v29 = vmax.f32 %v1830_v20, 0.0  ;;  %v1833_v30 = vadd.f32 %v6152_v50, %v1832_v26  ;;  %v2784_v36 = vmax.f32 %v2358_v27, 0.0  ;;  %v2361_v37 = vadd.f32 %v6152_v50, %v2360_v33 }
 0x17a   : > { %v4804_v34 = vpack.c.bf16 %v2654_v24, %v2654_v24  ;;  %v2655_v35 = vmax.f32 %v1841_v25, 0.0  ;;  %v4936_v40 = vpack.c.bf16 %v2786_v31, %v2786_v31  ;;  %v2787_v41 = vmax.f32 %v2369_v32, 0.0 }
 0x17b   : > { %v4802_v38 = vpack.c.bf16 %v2652_v29, %v2652_v29  ;;  %v2653_v39 = vmax.f32 %v1833_v30, 0.0  ;;  %v4934_v43 = vpack.c.bf16 %v2784_v36, %v2784_v36  ;;  %v2785_v44 = vmax.f32 %v2361_v37, 0.0 }
 0x17c   : > { %3955 = vst.msk [vmem:[%s5834_s29 + $0x128] sm:$0xf] %vm3880_vm2, %v4804_v34  ;;  %v4805_v42 = vpack.c.bf16 %v2655_v35, %v2655_v35  ;;  %4087 = vst.msk [vmem:[%s5834_s29 + $0x338] sm:$0xf] %vm3880_vm2, %v4936_v40  ;;  %v4937_v46 = vpack.c.bf16 %v2787_v41, %v2787_v41 }
 0x17d   : > { %3953 = vst.msk [vmem:[%s5834_s29 + $0x120] sm:$0xf] %vm3880_vm2, %v4802_v38  ;;  %v4803_v45 = vpack.c.bf16 %v2653_v39, %v2653_v39  ;;  %v5207_v47 = vpop.f32.mrb[76].mxu0  ;;  %4085 = vst.msk [vmem:[%s5834_s29 + $0x330] sm:$0xf] %vm3880_vm2, %v4934_v43  ;;  %v4935_v49 = vpack.c.bf16 %v2785_v44, %v2785_v44  ;;  %v5339_v52 = vpop.f32.mrb[76].mxu1 }
 0x17e   : > { %3956 = vst.msk [vmem:[%s5834_s29 + $0x12c] sm:$0xf] %vm3880_vm2, %v4805_v42  ;;  %v1854_v48 = vadd.f32 %v6152_v50, %v5207_v47  ;;  %v1845_v51 = vpop.f32.mrb[77].mxu0  ;;  %4088 = vst.msk [vmem:[%s5834_s29 + $0x33c] sm:$0xf] %vm3880_vm2, %v4937_v46  ;;  %v2382_v55 = vadd.f32 %v6152_v50, %v5339_v52  ;;  %v2373_v56 = vpop.f32.mrb[77].mxu1 }
 0x17f   : > { %3954 = vst.msk [vmem:[%s5834_s29 + $0x124] sm:$0xf] %vm3880_vm2, %v4803_v45  ;;  %v1846_v53 = vadd.f32 %v6152_v50, %v1845_v51  ;;  %v5208_v54 = vpop.f32.mrb[78].mxu0  ;;  %4086 = vst.msk [vmem:[%s5834_s29 + $0x334] sm:$0xf] %vm3880_vm2, %v4935_v49  ;;  %v2374_v60 = vadd.f32 %v6152_v50, %v2373_v56  ;;  %v5340_v61 = vpop.f32.mrb[78].mxu1 }
 0x180   : > { %v2658_v57 = vmax.f32 %v1854_v48, 0.0  ;;  %v1857_v58 = vadd.f32 %v6152_v50, %v5208_v54  ;;  %v1848_v59 = vpop.f32.mrb[79].mxu0  ;;  %v2790_v0 = vmax.f32 %v2382_v55, 0.0  ;;  %v2385_v1 = vadd.f32 %v6152_v50, %v5340_v61  ;;  %v2376_v2 = vpop.f32.mrb[79].mxu1 }
 0x181   : > { %v2656_v62 = vmax.f32 %v1846_v53, 0.0  ;;  %v1849_v63 = vadd.f32 %v6152_v50, %v1848_v59  ;;  %v2788_v5 = vmax.f32 %v2374_v60, 0.0  ;;  %v2377_v6 = vadd.f32 %v6152_v50, %v2376_v2 }
 0x182   : > { %v4808_v3 = vpack.c.bf16 %v2658_v57, %v2658_v57  ;;  %v2659_v4 = vmax.f32 %v1857_v58, 0.0  ;;  %v4940_v9 = vpack.c.bf16 %v2790_v0, %v2790_v0  ;;  %v2791_v10 = vmax.f32 %v2385_v1, 0.0 }
 0x183   : > { %v4806_v7 = vpack.c.bf16 %v2656_v62, %v2656_v62  ;;  %v2657_v8 = vmax.f32 %v1849_v63, 0.0  ;;  %v4938_v12 = vpack.c.bf16 %v2788_v5, %v2788_v5  ;;  %v2789_v13 = vmax.f32 %v2377_v6, 0.0 }
 0x184   : > { %3959 = vst.msk [vmem:[%s5834_s29 + $0x138] sm:$0xf] %vm3880_vm2, %v4808_v3  ;;  %v4809_v11 = vpack.c.bf16 %v2659_v4, %v2659_v4  ;;  %4091 = vst.msk [vmem:[%s5834_s29 + $0x348] sm:$0xf] %vm3880_vm2, %v4940_v9  ;;  %v4941_v15 = vpack.c.bf16 %v2791_v10, %v2791_v10 }
 0x185   : > { %3957 = vst.msk [vmem:[%s5834_s29 + $0x130] sm:$0xf] %vm3880_vm2, %v4806_v7  ;;  %v4807_v14 = vpack.c.bf16 %v2657_v8, %v2657_v8  ;;  %v5211_v16 = vpop.f32.mrb[80].mxu0  ;;  %4089 = vst.msk [vmem:[%s5834_s29 + $0x340] sm:$0xf] %vm3880_vm2, %v4938_v12  ;;  %v4939_v18 = vpack.c.bf16 %v2789_v13, %v2789_v13  ;;  %v5343_v20 = vpop.f32.mrb[80].mxu1 }
 0x186   : > { %3960 = vst.msk [vmem:[%s5834_s29 + $0x13c] sm:$0xf] %vm3880_vm2, %v4809_v11  ;;  %v1870_v17 = vadd.f32 %v6152_v50, %v5211_v16  ;;  %v1861_v19 = vpop.f32.mrb[81].mxu0  ;;  %4092 = vst.msk [vmem:[%s5834_s29 + $0x34c] sm:$0xf] %vm3880_vm2, %v4941_v15  ;;  %v2398_v23 = vadd.f32 %v6152_v50, %v5343_v20  ;;  %v2389_v24 = vpop.f32.mrb[81].mxu1 }
 0x187   : > { %3958 = vst.msk [vmem:[%s5834_s29 + $0x134] sm:$0xf] %vm3880_vm2, %v4807_v14  ;;  %v1862_v21 = vadd.f32 %v6152_v50, %v1861_v19  ;;  %v5212_v22 = vpop.f32.mrb[82].mxu0  ;;  %4090 = vst.msk [vmem:[%s5834_s29 + $0x344] sm:$0xf] %vm3880_vm2, %v4939_v18  ;;  %v2390_v28 = vadd.f32 %v6152_v50, %v2389_v24  ;;  %v5344_v29 = vpop.f32.mrb[82].mxu1 }
 0x188   : > { %v2662_v25 = vmax.f32 %v1870_v17, 0.0  ;;  %v1873_v26 = vadd.f32 %v6152_v50, %v5212_v22  ;;  %v1864_v27 = vpop.f32.mrb[83].mxu0  ;;  %v2794_v32 = vmax.f32 %v2398_v23, 0.0  ;;  %v2401_v33 = vadd.f32 %v6152_v50, %v5344_v29  ;;  %v2392_v34 = vpop.f32.mrb[83].mxu1 }
 0x189   : > { %v2660_v30 = vmax.f32 %v1862_v21, 0.0  ;;  %v1865_v31 = vadd.f32 %v6152_v50, %v1864_v27  ;;  %v2792_v37 = vmax.f32 %v2390_v28, 0.0  ;;  %v2393_v38 = vadd.f32 %v6152_v50, %v2392_v34 }
 0x18a   : > { %v4812_v35 = vpack.c.bf16 %v2662_v25, %v2662_v25  ;;  %v2663_v36 = vmax.f32 %v1873_v26, 0.0  ;;  %v4944_v41 = vpack.c.bf16 %v2794_v32, %v2794_v32  ;;  %v2795_v42 = vmax.f32 %v2401_v33, 0.0 }
 0x18b   : > { %v4810_v39 = vpack.c.bf16 %v2660_v30, %v2660_v30  ;;  %v2661_v40 = vmax.f32 %v1865_v31, 0.0  ;;  %v4942_v44 = vpack.c.bf16 %v2792_v37, %v2792_v37  ;;  %v2793_v45 = vmax.f32 %v2393_v38, 0.0 }
 0x18c   : > { %3963 = vst.msk [vmem:[%s5834_s29 + $0x148] sm:$0xf] %vm3880_vm2, %v4812_v35  ;;  %v4813_v43 = vpack.c.bf16 %v2663_v36, %v2663_v36  ;;  %4095 = vst.msk [vmem:[%s5834_s29 + $0x358] sm:$0xf] %vm3880_vm2, %v4944_v41  ;;  %v4945_v47 = vpack.c.bf16 %v2795_v42, %v2795_v42 }
 0x18d   : > { %3961 = vst.msk [vmem:[%s5834_s29 + $0x140] sm:$0xf] %vm3880_vm2, %v4810_v39  ;;  %v4811_v46 = vpack.c.bf16 %v2661_v40, %v2661_v40  ;;  %v5215_v48 = vpop.f32.mrb[84].mxu0  ;;  %4093 = vst.msk [vmem:[%s5834_s29 + $0x350] sm:$0xf] %vm3880_vm2, %v4942_v44  ;;  %v4943_v51 = vpack.c.bf16 %v2793_v45, %v2793_v45  ;;  %v5347_v53 = vpop.f32.mrb[84].mxu1 }
 0x18e   : > { %3964 = vst.msk [vmem:[%s5834_s29 + $0x14c] sm:$0xf] %vm3880_vm2, %v4813_v43  ;;  %v1886_v49 = vadd.f32 %v6152_v50, %v5215_v48  ;;  %v1877_v52 = vpop.f32.mrb[85].mxu0  ;;  %4096 = vst.msk [vmem:[%s5834_s29 + $0x35c] sm:$0xf] %vm3880_vm2, %v4945_v47  ;;  %v2414_v56 = vadd.f32 %v6152_v50, %v5347_v53  ;;  %v2405_v57 = vpop.f32.mrb[85].mxu1 }
 0x18f   : > { %3962 = vst.msk [vmem:[%s5834_s29 + $0x144] sm:$0xf] %vm3880_vm2, %v4811_v46  ;;  %v1878_v54 = vadd.f32 %v6152_v50, %v1877_v52  ;;  %v5216_v55 = vpop.f32.mrb[86].mxu0  ;;  %4094 = vst.msk [vmem:[%s5834_s29 + $0x354] sm:$0xf] %vm3880_vm2, %v4943_v51  ;;  %v2406_v61 = vadd.f32 %v6152_v50, %v2405_v57  ;;  %v5348_v62 = vpop.f32.mrb[86].mxu1 }
 0x190   : > { %v2666_v58 = vmax.f32 %v1886_v49, 0.0  ;;  %v1889_v59 = vadd.f32 %v6152_v50, %v5216_v55  ;;  %v1880_v60 = vpop.f32.mrb[87].mxu0  ;;  %v2798_v1 = vmax.f32 %v2414_v56, 0.0  ;;  %v2417_v2 = vadd.f32 %v6152_v50, %v5348_v62  ;;  %v2408_v3 = vpop.f32.mrb[87].mxu1 }
 0x191   : > { %v2664_v63 = vmax.f32 %v1878_v54, 0.0  ;;  %v1881_v0 = vadd.f32 %v6152_v50, %v1880_v60  ;;  %v2796_v6 = vmax.f32 %v2406_v61, 0.0  ;;  %v2409_v7 = vadd.f32 %v6152_v50, %v2408_v3 }
 0x192   : > { %v4816_v4 = vpack.c.bf16 %v2666_v58, %v2666_v58  ;;  %v2667_v5 = vmax.f32 %v1889_v59, 0.0  ;;  %v4948_v10 = vpack.c.bf16 %v2798_v1, %v2798_v1  ;;  %v2799_v11 = vmax.f32 %v2417_v2, 0.0 }
 0x193   : > { %v4814_v8 = vpack.c.bf16 %v2664_v63, %v2664_v63  ;;  %v2665_v9 = vmax.f32 %v1881_v0, 0.0  ;;  %v4946_v13 = vpack.c.bf16 %v2796_v6, %v2796_v6  ;;  %v2797_v14 = vmax.f32 %v2409_v7, 0.0 }
 0x194   : > { %3967 = vst.msk [vmem:[%s5834_s29 + $0x158] sm:$0xf] %vm3880_vm2, %v4816_v4  ;;  %v4817_v12 = vpack.c.bf16 %v2667_v5, %v2667_v5  ;;  %4099 = vst.msk [vmem:[%s5834_s29 + $0x368] sm:$0xf] %vm3880_vm2, %v4948_v10  ;;  %v4949_v16 = vpack.c.bf16 %v2799_v11, %v2799_v11 }
 0x195   : > { %3965 = vst.msk [vmem:[%s5834_s29 + $0x150] sm:$0xf] %vm3880_vm2, %v4814_v8  ;;  %v4815_v15 = vpack.c.bf16 %v2665_v9, %v2665_v9  ;;  %v5219_v17 = vpop.f32.mrb[88].mxu0  ;;  %4097 = vst.msk [vmem:[%s5834_s29 + $0x360] sm:$0xf] %vm3880_vm2, %v4946_v13  ;;  %v4947_v19 = vpack.c.bf16 %v2797_v14, %v2797_v14  ;;  %v5351_v21 = vpop.f32.mrb[88].mxu1 }
 0x196   : > { %3968 = vst.msk [vmem:[%s5834_s29 + $0x15c] sm:$0xf] %vm3880_vm2, %v4817_v12  ;;  %v1902_v18 = vadd.f32 %v6152_v50, %v5219_v17  ;;  %v1893_v20 = vpop.f32.mrb[89].mxu0  ;;  %4100 = vst.msk [vmem:[%s5834_s29 + $0x36c] sm:$0xf] %vm3880_vm2, %v4949_v16  ;;  %v2430_v24 = vadd.f32 %v6152_v50, %v5351_v21  ;;  %v2421_v25 = vpop.f32.mrb[89].mxu1 }
 0x197   : > { %3966 = vst.msk [vmem:[%s5834_s29 + $0x154] sm:$0xf] %vm3880_vm2, %v4815_v15  ;;  %v1894_v22 = vadd.f32 %v6152_v50, %v1893_v20  ;;  %v5220_v23 = vpop.f32.mrb[90].mxu0  ;;  %4098 = vst.msk [vmem:[%s5834_s29 + $0x364] sm:$0xf] %vm3880_vm2, %v4947_v19  ;;  %v2422_v29 = vadd.f32 %v6152_v50, %v2421_v25  ;;  %v5352_v30 = vpop.f32.mrb[90].mxu1 }
 0x198   : > { %v2670_v26 = vmax.f32 %v1902_v18, 0.0  ;;  %v1905_v27 = vadd.f32 %v6152_v50, %v5220_v23  ;;  %v1896_v28 = vpop.f32.mrb[91].mxu0  ;;  %v2802_v33 = vmax.f32 %v2430_v24, 0.0  ;;  %v2433_v34 = vadd.f32 %v6152_v50, %v5352_v30  ;;  %v2424_v35 = vpop.f32.mrb[91].mxu1 }
 0x199   : > { %v2668_v31 = vmax.f32 %v1894_v22, 0.0  ;;  %v1897_v32 = vadd.f32 %v6152_v50, %v1896_v28  ;;  %v2800_v38 = vmax.f32 %v2422_v29, 0.0  ;;  %v2425_v39 = vadd.f32 %v6152_v50, %v2424_v35 }
 0x19a   : > { %v4820_v36 = vpack.c.bf16 %v2670_v26, %v2670_v26  ;;  %v2671_v37 = vmax.f32 %v1905_v27, 0.0  ;;  %v4952_v42 = vpack.c.bf16 %v2802_v33, %v2802_v33  ;;  %v2803_v43 = vmax.f32 %v2433_v34, 0.0 }
 0x19b   : > { %v4818_v40 = vpack.c.bf16 %v2668_v31, %v2668_v31  ;;  %v2669_v41 = vmax.f32 %v1897_v32, 0.0  ;;  %v4950_v45 = vpack.c.bf16 %v2800_v38, %v2800_v38  ;;  %v2801_v46 = vmax.f32 %v2425_v39, 0.0 }
 0x19c   : > { %3971 = vst.msk [vmem:[%s5834_s29 + $0x168] sm:$0xf] %vm3880_vm2, %v4820_v36  ;;  %v4821_v44 = vpack.c.bf16 %v2671_v37, %v2671_v37  ;;  %4103 = vst.msk [vmem:[%s5834_s29 + $0x378] sm:$0xf] %vm3880_vm2, %v4952_v42  ;;  %v4953_v48 = vpack.c.bf16 %v2803_v43, %v2803_v43 }
 0x19d   : > { %3969 = vst.msk [vmem:[%s5834_s29 + $0x160] sm:$0xf] %vm3880_vm2, %v4818_v40  ;;  %v4819_v47 = vpack.c.bf16 %v2669_v41, %v2669_v41  ;;  %v5223_v49 = vpop.f32.mrb[92].mxu0  ;;  %4101 = vst.msk [vmem:[%s5834_s29 + $0x370] sm:$0xf] %vm3880_vm2, %v4950_v45  ;;  %v4951_v52 = vpack.c.bf16 %v2801_v46, %v2801_v46  ;;  %v5355_v54 = vpop.f32.mrb[92].mxu1 }
 0x19e   : > { %3972 = vst.msk [vmem:[%s5834_s29 + $0x16c] sm:$0xf] %vm3880_vm2, %v4821_v44  ;;  %v1918_v51 = vadd.f32 %v6152_v50, %v5223_v49  ;;  %v1909_v53 = vpop.f32.mrb[93].mxu0  ;;  %4104 = vst.msk [vmem:[%s5834_s29 + $0x37c] sm:$0xf] %vm3880_vm2, %v4953_v48  ;;  %v2446_v57 = vadd.f32 %v6152_v50, %v5355_v54  ;;  %v2437_v58 = vpop.f32.mrb[93].mxu1 }
 0x19f   : > { %3970 = vst.msk [vmem:[%s5834_s29 + $0x164] sm:$0xf] %vm3880_vm2, %v4819_v47  ;;  %v1910_v55 = vadd.f32 %v6152_v50, %v1909_v53  ;;  %v5224_v56 = vpop.f32.mrb[94].mxu0  ;;  %4102 = vst.msk [vmem:[%s5834_s29 + $0x374] sm:$0xf] %vm3880_vm2, %v4951_v52  ;;  %v2438_v62 = vadd.f32 %v6152_v50, %v2437_v58  ;;  %v5356_v63 = vpop.f32.mrb[94].mxu1 }
 0x1a0   : > { %v2674_v59 = vmax.f32 %v1918_v51, 0.0  ;;  %v1921_v60 = vadd.f32 %v6152_v50, %v5224_v56  ;;  %v1912_v61 = vpop.f32.mrb[95].mxu0  ;;  %v2806_v2 = vmax.f32 %v2446_v57, 0.0  ;;  %v2449_v3 = vadd.f32 %v6152_v50, %v5356_v63  ;;  %v2440_v4 = vpop.f32.mrb[95].mxu1 }
 0x1a1   : > { %v2672_v0 = vmax.f32 %v1910_v55, 0.0  ;;  %v1913_v1 = vadd.f32 %v6152_v50, %v1912_v61  ;;  %v2804_v7 = vmax.f32 %v2438_v62, 0.0  ;;  %v2441_v8 = vadd.f32 %v6152_v50, %v2440_v4 }
 0x1a2   : > { %v4824_v5 = vpack.c.bf16 %v2674_v59, %v2674_v59  ;;  %v2675_v6 = vmax.f32 %v1921_v60, 0.0  ;;  %v4956_v11 = vpack.c.bf16 %v2806_v2, %v2806_v2  ;;  %v2807_v12 = vmax.f32 %v2449_v3, 0.0 }
 0x1a3   : > { %v4822_v9 = vpack.c.bf16 %v2672_v0, %v2672_v0  ;;  %v2673_v10 = vmax.f32 %v1913_v1, 0.0  ;;  %v4954_v14 = vpack.c.bf16 %v2804_v7, %v2804_v7  ;;  %v2805_v15 = vmax.f32 %v2441_v8, 0.0 }
 0x1a4   : > { %3975 = vst.msk [vmem:[%s5834_s29 + $0x178] sm:$0xf] %vm3880_vm2, %v4824_v5  ;;  %v4825_v13 = vpack.c.bf16 %v2675_v6, %v2675_v6  ;;  %4107 = vst.msk [vmem:[%s5834_s29 + $0x388] sm:$0xf] %vm3880_vm2, %v4956_v11  ;;  %v4957_v17 = vpack.c.bf16 %v2807_v12, %v2807_v12 }
 0x1a5   : > { %3973 = vst.msk [vmem:[%s5834_s29 + $0x170] sm:$0xf] %vm3880_vm2, %v4822_v9  ;;  %v4823_v16 = vpack.c.bf16 %v2673_v10, %v2673_v10  ;;  %v5227_v18 = vpop.f32.mrb[96].mxu0  ;;  %4105 = vst.msk [vmem:[%s5834_s29 + $0x380] sm:$0xf] %vm3880_vm2, %v4954_v14  ;;  %v4955_v20 = vpack.c.bf16 %v2805_v15, %v2805_v15  ;;  %v5359_v22 = vpop.f32.mrb[96].mxu1 }
 0x1a6   : > { %3976 = vst.msk [vmem:[%s5834_s29 + $0x17c] sm:$0xf] %vm3880_vm2, %v4825_v13  ;;  %v1934_v19 = vadd.f32 %v6152_v50, %v5227_v18  ;;  %v1925_v21 = vpop.f32.mrb[97].mxu0  ;;  %4108 = vst.msk [vmem:[%s5834_s29 + $0x38c] sm:$0xf] %vm3880_vm2, %v4957_v17  ;;  %v2462_v25 = vadd.f32 %v6152_v50, %v5359_v22  ;;  %v2453_v26 = vpop.f32.mrb[97].mxu1 }
 0x1a7   : > { %3974 = vst.msk [vmem:[%s5834_s29 + $0x174] sm:$0xf] %vm3880_vm2, %v4823_v16  ;;  %v1926_v23 = vadd.f32 %v6152_v50, %v1925_v21  ;;  %v5228_v24 = vpop.f32.mrb[98].mxu0  ;;  %4106 = vst.msk [vmem:[%s5834_s29 + $0x384] sm:$0xf] %vm3880_vm2, %v4955_v20  ;;  %v2454_v30 = vadd.f32 %v6152_v50, %v2453_v26  ;;  %v5360_v31 = vpop.f32.mrb[98].mxu1 }
 0x1a8   : > { %v2678_v27 = vmax.f32 %v1934_v19, 0.0  ;;  %v1937_v28 = vadd.f32 %v6152_v50, %v5228_v24  ;;  %v1928_v29 = vpop.f32.mrb[99].mxu0  ;;  %v2810_v34 = vmax.f32 %v2462_v25, 0.0  ;;  %v2465_v35 = vadd.f32 %v6152_v50, %v5360_v31  ;;  %v2456_v36 = vpop.f32.mrb[99].mxu1 }
 0x1a9   : > { %v2676_v32 = vmax.f32 %v1926_v23, 0.0  ;;  %v1929_v33 = vadd.f32 %v6152_v50, %v1928_v29  ;;  %v2808_v39 = vmax.f32 %v2454_v30, 0.0  ;;  %v2457_v40 = vadd.f32 %v6152_v50, %v2456_v36  ;;  %v6469_v50 = vld [vmem:[%s6662_s2] ss:$0 sm:$0xff] }
 0x1aa   : > { %v4828_v37 = vpack.c.bf16 %v2678_v27, %v2678_v27  ;;  %v2679_v38 = vmax.f32 %v1937_v28, 0.0  ;;  %v4960_v43 = vpack.c.bf16 %v2810_v34, %v2810_v34  ;;  %v2811_v44 = vmax.f32 %v2465_v35, 0.0 }
 0x1ab   : > { %v4826_v41 = vpack.c.bf16 %v2676_v32, %v2676_v32  ;;  %v2677_v42 = vmax.f32 %v1929_v33, 0.0  ;;  %v4958_v46 = vpack.c.bf16 %v2808_v39, %v2808_v39  ;;  %v2809_v47 = vmax.f32 %v2457_v40, 0.0 }
 0x1ac   : > { %3979 = vst.msk [vmem:[%s5834_s29 + $0x188] sm:$0xf] %vm3880_vm2, %v4828_v37  ;;  %v4829_v45 = vpack.c.bf16 %v2679_v38, %v2679_v38  ;;  %4111 = vst.msk [vmem:[%s5834_s29 + $0x398] sm:$0xf] %vm3880_vm2, %v4960_v43  ;;  %v4961_v49 = vpack.c.bf16 %v2811_v44, %v2811_v44 }
 0x1ad   : > { %3977 = vst.msk [vmem:[%s5834_s29 + $0x180] sm:$0xf] %vm3880_vm2, %v4826_v41  ;;  %v4827_v48 = vpack.c.bf16 %v2677_v42, %v2677_v42  ;;  %v5231_v51 = vpop.f32.mrb[100].mxu0  ;;  %4109 = vst.msk [vmem:[%s5834_s29 + $0x390] sm:$0xf] %vm3880_vm2, %v4958_v46  ;;  %v4959_v53 = vpack.c.bf16 %v2809_v47, %v2809_v47  ;;  %v5363_v55 = vpop.f32.mrb[100].mxu1 }
 0x1ae   : > { %3980 = vst.msk [vmem:[%s5834_s29 + $0x18c] sm:$0xf] %vm3880_vm2, %v4829_v45  ;;  %v1950_v52 = vadd.f32 %v6469_v50, %v5231_v51  ;;  %v1941_v54 = vpop.f32.mrb[101].mxu0  ;;  %4112 = vst.msk [vmem:[%s5834_s29 + $0x39c] sm:$0xf] %vm3880_vm2, %v4961_v49  ;;  %v2478_v58 = vadd.f32 %v6469_v50, %v5363_v55  ;;  %v2469_v59 = vpop.f32.mrb[101].mxu1 }
 0x1af   : > { %3978 = vst.msk [vmem:[%s5834_s29 + $0x184] sm:$0xf] %vm3880_vm2, %v4827_v48  ;;  %v1942_v56 = vadd.f32 %v6469_v50, %v1941_v54  ;;  %v5232_v57 = vpop.f32.mrb[102].mxu0  ;;  %4110 = vst.msk [vmem:[%s5834_s29 + $0x394] sm:$0xf] %vm3880_vm2, %v4959_v53  ;;  %v2470_v63 = vadd.f32 %v6469_v50, %v2469_v59  ;;  %v5364_v0 = vpop.f32.mrb[102].mxu1 }
 0x1b0   : > { %v2682_v60 = vmax.f32 %v1950_v52, 0.0  ;;  %v1953_v61 = vadd.f32 %v6469_v50, %v5232_v57  ;;  %v1944_v62 = vpop.f32.mrb[103].mxu0  ;;  %v2814_v3 = vmax.f32 %v2478_v58, 0.0  ;;  %v2481_v4 = vadd.f32 %v6469_v50, %v5364_v0  ;;  %v2472_v5 = vpop.f32.mrb[103].mxu1 }
 0x1b1   : > { %v2680_v1 = vmax.f32 %v1942_v56, 0.0  ;;  %v1945_v2 = vadd.f32 %v6469_v50, %v1944_v62  ;;  %v2812_v8 = vmax.f32 %v2470_v63, 0.0  ;;  %v2473_v9 = vadd.f32 %v6469_v50, %v2472_v5 }
 0x1b2   : > { %v4832_v6 = vpack.c.bf16 %v2682_v60, %v2682_v60  ;;  %v2683_v7 = vmax.f32 %v1953_v61, 0.0  ;;  %v4964_v12 = vpack.c.bf16 %v2814_v3, %v2814_v3  ;;  %v2815_v13 = vmax.f32 %v2481_v4, 0.0 }
 0x1b3   : > { %v4830_v10 = vpack.c.bf16 %v2680_v1, %v2680_v1  ;;  %v2681_v11 = vmax.f32 %v1945_v2, 0.0  ;;  %v4962_v15 = vpack.c.bf16 %v2812_v8, %v2812_v8  ;;  %v2813_v16 = vmax.f32 %v2473_v9, 0.0 }
 0x1b4   : > { %3983 = vst.msk [vmem:[%s5834_s29 + $0x198] sm:$0xf] %vm3880_vm2, %v4832_v6  ;;  %v4833_v14 = vpack.c.bf16 %v2683_v7, %v2683_v7  ;;  %4115 = vst.msk [vmem:[%s5834_s29 + $0x3a8] sm:$0xf] %vm3880_vm2, %v4964_v12  ;;  %v4965_v18 = vpack.c.bf16 %v2815_v13, %v2815_v13 }
 0x1b5   : > { %3981 = vst.msk [vmem:[%s5834_s29 + $0x190] sm:$0xf] %vm3880_vm2, %v4830_v10  ;;  %v4831_v17 = vpack.c.bf16 %v2681_v11, %v2681_v11  ;;  %v5235_v19 = vpop.f32.mrb[104].mxu0  ;;  %4113 = vst.msk [vmem:[%s5834_s29 + $0x3a0] sm:$0xf] %vm3880_vm2, %v4962_v15  ;;  %v4963_v21 = vpack.c.bf16 %v2813_v16, %v2813_v16  ;;  %v5367_v23 = vpop.f32.mrb[104].mxu1 }
 0x1b6   : > { %3984 = vst.msk [vmem:[%s5834_s29 + $0x19c] sm:$0xf] %vm3880_vm2, %v4833_v14  ;;  %v1966_v20 = vadd.f32 %v6469_v50, %v5235_v19  ;;  %v1957_v22 = vpop.f32.mrb[105].mxu0  ;;  %4116 = vst.msk [vmem:[%s5834_s29 + $0x3ac] sm:$0xf] %vm3880_vm2, %v4965_v18  ;;  %v2494_v26 = vadd.f32 %v6469_v50, %v5367_v23  ;;  %v2485_v27 = vpop.f32.mrb[105].mxu1 }
 0x1b7   : > { %3982 = vst.msk [vmem:[%s5834_s29 + $0x194] sm:$0xf] %vm3880_vm2, %v4831_v17  ;;  %v1958_v24 = vadd.f32 %v6469_v50, %v1957_v22  ;;  %v5236_v25 = vpop.f32.mrb[106].mxu0  ;;  %4114 = vst.msk [vmem:[%s5834_s29 + $0x3a4] sm:$0xf] %vm3880_vm2, %v4963_v21  ;;  %v2486_v31 = vadd.f32 %v6469_v50, %v2485_v27  ;;  %v5368_v32 = vpop.f32.mrb[106].mxu1 }
 0x1b8   : > { %v2686_v28 = vmax.f32 %v1966_v20, 0.0  ;;  %v1969_v29 = vadd.f32 %v6469_v50, %v5236_v25  ;;  %v1960_v30 = vpop.f32.mrb[107].mxu0  ;;  %v2818_v35 = vmax.f32 %v2494_v26, 0.0  ;;  %v2497_v36 = vadd.f32 %v6469_v50, %v5368_v32  ;;  %v2488_v37 = vpop.f32.mrb[107].mxu1 }
 0x1b9   : > { %v2684_v33 = vmax.f32 %v1958_v24, 0.0  ;;  %v1961_v34 = vadd.f32 %v6469_v50, %v1960_v30  ;;  %v2816_v40 = vmax.f32 %v2486_v31, 0.0  ;;  %v2489_v41 = vadd.f32 %v6469_v50, %v2488_v37 }
 0x1ba   : > { %v4836_v38 = vpack.c.bf16 %v2686_v28, %v2686_v28  ;;  %v2687_v39 = vmax.f32 %v1969_v29, 0.0  ;;  %v4968_v44 = vpack.c.bf16 %v2818_v35, %v2818_v35  ;;  %v2819_v45 = vmax.f32 %v2497_v36, 0.0 }
 0x1bb   : > { %v4834_v42 = vpack.c.bf16 %v2684_v33, %v2684_v33  ;;  %v2685_v43 = vmax.f32 %v1961_v34, 0.0  ;;  %v4966_v47 = vpack.c.bf16 %v2816_v40, %v2816_v40  ;;  %v2817_v48 = vmax.f32 %v2489_v41, 0.0 }
 0x1bc   : > { %3987 = vst.msk [vmem:[%s5834_s29 + $0x1a8] sm:$0xf] %vm3880_vm2, %v4836_v38  ;;  %v4837_v46 = vpack.c.bf16 %v2687_v39, %v2687_v39  ;;  %4119 = vst.msk [vmem:[%s5834_s29 + $0x3b8] sm:$0xf] %vm3880_vm2, %v4968_v44  ;;  %v4969_v51 = vpack.c.bf16 %v2819_v45, %v2819_v45 }
 0x1bd   : > { %3985 = vst.msk [vmem:[%s5834_s29 + $0x1a0] sm:$0xf] %vm3880_vm2, %v4834_v42  ;;  %v4835_v49 = vpack.c.bf16 %v2685_v43, %v2685_v43  ;;  %v5239_v52 = vpop.f32.mrb[108].mxu0  ;;  %4117 = vst.msk [vmem:[%s5834_s29 + $0x3b0] sm:$0xf] %vm3880_vm2, %v4966_v47  ;;  %v4967_v54 = vpack.c.bf16 %v2817_v48, %v2817_v48  ;;  %v5371_v56 = vpop.f32.mrb[108].mxu1 }
 0x1be   : > { %3988 = vst.msk [vmem:[%s5834_s29 + $0x1ac] sm:$0xf] %vm3880_vm2, %v4837_v46  ;;  %v1982_v53 = vadd.f32 %v6469_v50, %v5239_v52  ;;  %v1973_v55 = vpop.f32.mrb[109].mxu0  ;;  %4120 = vst.msk [vmem:[%s5834_s29 + $0x3bc] sm:$0xf] %vm3880_vm2, %v4969_v51  ;;  %v2510_v59 = vadd.f32 %v6469_v50, %v5371_v56  ;;  %v2501_v60 = vpop.f32.mrb[109].mxu1 }
 0x1bf   : > { %3986 = vst.msk [vmem:[%s5834_s29 + $0x1a4] sm:$0xf] %vm3880_vm2, %v4835_v49  ;;  %v1974_v57 = vadd.f32 %v6469_v50, %v1973_v55  ;;  %v5240_v58 = vpop.f32.mrb[110].mxu0  ;;  %4118 = vst.msk [vmem:[%s5834_s29 + $0x3b4] sm:$0xf] %vm3880_vm2, %v4967_v54  ;;  %v2502_v0 = vadd.f32 %v6469_v50, %v2501_v60  ;;  %v5372_v1 = vpop.f32.mrb[110].mxu1 }
 0x1c0   : > { %v2690_v61 = vmax.f32 %v1982_v53, 0.0  ;;  %v1985_v62 = vadd.f32 %v6469_v50, %v5240_v58  ;;  %v1976_v63 = vpop.f32.mrb[111].mxu0  ;;  %v2822_v4 = vmax.f32 %v2510_v59, 0.0  ;;  %v2513_v5 = vadd.f32 %v6469_v50, %v5372_v1  ;;  %v2504_v6 = vpop.f32.mrb[111].mxu1 }
 0x1c1   : > { %v2688_v2 = vmax.f32 %v1974_v57, 0.0  ;;  %v1977_v3 = vadd.f32 %v6469_v50, %v1976_v63  ;;  %v2820_v9 = vmax.f32 %v2502_v0, 0.0  ;;  %v2505_v10 = vadd.f32 %v6469_v50, %v2504_v6 }
 0x1c2   : > { %v4840_v7 = vpack.c.bf16 %v2690_v61, %v2690_v61  ;;  %v2691_v8 = vmax.f32 %v1985_v62, 0.0  ;;  %v4972_v13 = vpack.c.bf16 %v2822_v4, %v2822_v4  ;;  %v2823_v14 = vmax.f32 %v2513_v5, 0.0 }
 0x1c3   : > { %v4838_v11 = vpack.c.bf16 %v2688_v2, %v2688_v2  ;;  %v2689_v12 = vmax.f32 %v1977_v3, 0.0  ;;  %v4970_v16 = vpack.c.bf16 %v2820_v9, %v2820_v9  ;;  %v2821_v17 = vmax.f32 %v2505_v10, 0.0 }
 0x1c4   : > { %3991 = vst.msk [vmem:[%s5834_s29 + $0x1b8] sm:$0xf] %vm3880_vm2, %v4840_v7  ;;  %v4841_v15 = vpack.c.bf16 %v2691_v8, %v2691_v8  ;;  %4123 = vst.msk [vmem:[%s5834_s29 + $0x3c8] sm:$0xf] %vm3880_vm2, %v4972_v13  ;;  %v4973_v19 = vpack.c.bf16 %v2823_v14, %v2823_v14 }
 0x1c5   : > { %3989 = vst.msk [vmem:[%s5834_s29 + $0x1b0] sm:$0xf] %vm3880_vm2, %v4838_v11  ;;  %v4839_v18 = vpack.c.bf16 %v2689_v12, %v2689_v12  ;;  %v5243_v20 = vpop.f32.mrb[112].mxu0  ;;  %4121 = vst.msk [vmem:[%s5834_s29 + $0x3c0] sm:$0xf] %vm3880_vm2, %v4970_v16  ;;  %v4971_v22 = vpack.c.bf16 %v2821_v17, %v2821_v17  ;;  %v5375_v24 = vpop.f32.mrb[112].mxu1 }
 0x1c6   : > { %3992 = vst.msk [vmem:[%s5834_s29 + $0x1bc] sm:$0xf] %vm3880_vm2, %v4841_v15  ;;  %v1998_v21 = vadd.f32 %v6469_v50, %v5243_v20  ;;  %v1989_v23 = vpop.f32.mrb[113].mxu0  ;;  %4124 = vst.msk [vmem:[%s5834_s29 + $0x3cc] sm:$0xf] %vm3880_vm2, %v4973_v19  ;;  %v2526_v27 = vadd.f32 %v6469_v50, %v5375_v24  ;;  %v2517_v28 = vpop.f32.mrb[113].mxu1 }
 0x1c7   : > { %3990 = vst.msk [vmem:[%s5834_s29 + $0x1b4] sm:$0xf] %vm3880_vm2, %v4839_v18  ;;  %v1990_v25 = vadd.f32 %v6469_v50, %v1989_v23  ;;  %v5244_v26 = vpop.f32.mrb[114].mxu0  ;;  %4122 = vst.msk [vmem:[%s5834_s29 + $0x3c4] sm:$0xf] %vm3880_vm2, %v4971_v22  ;;  %v2518_v32 = vadd.f32 %v6469_v50, %v2517_v28  ;;  %v5376_v33 = vpop.f32.mrb[114].mxu1 }
 0x1c8   : > { %v2694_v29 = vmax.f32 %v1998_v21, 0.0  ;;  %v2001_v30 = vadd.f32 %v6469_v50, %v5244_v26  ;;  %v1992_v31 = vpop.f32.mrb[115].mxu0  ;;  %v2826_v36 = vmax.f32 %v2526_v27, 0.0  ;;  %v2529_v37 = vadd.f32 %v6469_v50, %v5376_v33  ;;  %v2520_v38 = vpop.f32.mrb[115].mxu1 }
 0x1c9   : > { %v2692_v34 = vmax.f32 %v1990_v25, 0.0  ;;  %v1993_v35 = vadd.f32 %v6469_v50, %v1992_v31  ;;  %v2824_v41 = vmax.f32 %v2518_v32, 0.0  ;;  %v2521_v42 = vadd.f32 %v6469_v50, %v2520_v38 }
 0x1ca   : > { %v4844_v39 = vpack.c.bf16 %v2694_v29, %v2694_v29  ;;  %v2695_v40 = vmax.f32 %v2001_v30, 0.0  ;;  %v4976_v45 = vpack.c.bf16 %v2826_v36, %v2826_v36  ;;  %v2827_v46 = vmax.f32 %v2529_v37, 0.0 }
 0x1cb   : > { %v4842_v43 = vpack.c.bf16 %v2692_v34, %v2692_v34  ;;  %v2693_v44 = vmax.f32 %v1993_v35, 0.0  ;;  %v4974_v48 = vpack.c.bf16 %v2824_v41, %v2824_v41  ;;  %v2825_v49 = vmax.f32 %v2521_v42, 0.0 }
 0x1cc   : > { %3995 = vst.msk [vmem:[%s5834_s29 + $0x1c8] sm:$0xf] %vm3880_vm2, %v4844_v39  ;;  %v4845_v47 = vpack.c.bf16 %v2695_v40, %v2695_v40  ;;  %4127 = vst.msk [vmem:[%s5834_s29 + $0x3d8] sm:$0xf] %vm3880_vm2, %v4976_v45  ;;  %v4977_v52 = vpack.c.bf16 %v2827_v46, %v2827_v46 }
 0x1cd   : > { %3993 = vst.msk [vmem:[%s5834_s29 + $0x1c0] sm:$0xf] %vm3880_vm2, %v4842_v43  ;;  %v4843_v51 = vpack.c.bf16 %v2693_v44, %v2693_v44  ;;  %v5247_v53 = vpop.f32.mrb[116].mxu0  ;;  %4125 = vst.msk [vmem:[%s5834_s29 + $0x3d0] sm:$0xf] %vm3880_vm2, %v4974_v48  ;;  %v4975_v55 = vpack.c.bf16 %v2825_v49, %v2825_v49  ;;  %v5379_v57 = vpop.f32.mrb[116].mxu1 }
 0x1ce   : > { %3996 = vst.msk [vmem:[%s5834_s29 + $0x1cc] sm:$0xf] %vm3880_vm2, %v4845_v47  ;;  %v2014_v54 = vadd.f32 %v6469_v50, %v5247_v53  ;;  %v2005_v56 = vpop.f32.mrb[117].mxu0  ;;  %4128 = vst.msk [vmem:[%s5834_s29 + $0x3dc] sm:$0xf] %vm3880_vm2, %v4977_v52  ;;  %v2542_v60 = vadd.f32 %v6469_v50, %v5379_v57  ;;  %v2533_v61 = vpop.f32.mrb[117].mxu1 }
 0x1cf   : > { %3994 = vst.msk [vmem:[%s5834_s29 + $0x1c4] sm:$0xf] %vm3880_vm2, %v4843_v51  ;;  %v2006_v58 = vadd.f32 %v6469_v50, %v2005_v56  ;;  %v5248_v59 = vpop.f32.mrb[118].mxu0  ;;  %4126 = vst.msk [vmem:[%s5834_s29 + $0x3d4] sm:$0xf] %vm3880_vm2, %v4975_v55  ;;  %v2534_v1 = vadd.f32 %v6469_v50, %v2533_v61  ;;  %v5380_v2 = vpop.f32.mrb[118].mxu1 }
 0x1d0   : > { %v2698_v62 = vmax.f32 %v2014_v54, 0.0  ;;  %v2017_v63 = vadd.f32 %v6469_v50, %v5248_v59  ;;  %v2008_v0 = vpop.f32.mrb[119].mxu0  ;;  %v2830_v5 = vmax.f32 %v2542_v60, 0.0  ;;  %v2545_v6 = vadd.f32 %v6469_v50, %v5380_v2  ;;  %v2536_v7 = vpop.f32.mrb[119].mxu1 }
 0x1d1   : > { %v2696_v3 = vmax.f32 %v2006_v58, 0.0  ;;  %v2009_v4 = vadd.f32 %v6469_v50, %v2008_v0  ;;  %v2828_v10 = vmax.f32 %v2534_v1, 0.0  ;;  %v2537_v11 = vadd.f32 %v6469_v50, %v2536_v7 }
 0x1d2   : > { %v4848_v8 = vpack.c.bf16 %v2698_v62, %v2698_v62  ;;  %v2699_v9 = vmax.f32 %v2017_v63, 0.0  ;;  %v4980_v14 = vpack.c.bf16 %v2830_v5, %v2830_v5  ;;  %v2831_v15 = vmax.f32 %v2545_v6, 0.0 }
 0x1d3   : > { %v4846_v12 = vpack.c.bf16 %v2696_v3, %v2696_v3  ;;  %v2697_v13 = vmax.f32 %v2009_v4, 0.0  ;;  %v4978_v17 = vpack.c.bf16 %v2828_v10, %v2828_v10  ;;  %v2829_v18 = vmax.f32 %v2537_v11, 0.0 }
 0x1d4   : > { %3999 = vst.msk [vmem:[%s5834_s29 + $0x1d8] sm:$0xf] %vm3880_vm2, %v4848_v8  ;;  %v4849_v16 = vpack.c.bf16 %v2699_v9, %v2699_v9  ;;  %4131 = vst.msk [vmem:[%s5834_s29 + $0x3e8] sm:$0xf] %vm3880_vm2, %v4980_v14  ;;  %v4981_v20 = vpack.c.bf16 %v2831_v15, %v2831_v15 }
 0x1d5   : > { %3997 = vst.msk [vmem:[%s5834_s29 + $0x1d0] sm:$0xf] %vm3880_vm2, %v4846_v12  ;;  %v4847_v19 = vpack.c.bf16 %v2697_v13, %v2697_v13  ;;  %v5251_v21 = vpop.f32.mrb[120].mxu0  ;;  %4129 = vst.msk [vmem:[%s5834_s29 + $0x3e0] sm:$0xf] %vm3880_vm2, %v4978_v17  ;;  %v4979_v23 = vpack.c.bf16 %v2829_v18, %v2829_v18  ;;  %v5383_v25 = vpop.f32.mrb[120].mxu1 }
 0x1d6   : > { %4000 = vst.msk [vmem:[%s5834_s29 + $0x1dc] sm:$0xf] %vm3880_vm2, %v4849_v16  ;;  %v2030_v22 = vadd.f32 %v6469_v50, %v5251_v21  ;;  %v2021_v24 = vpop.f32.mrb[121].mxu0  ;;  %4132 = vst.msk [vmem:[%s5834_s29 + $0x3ec] sm:$0xf] %vm3880_vm2, %v4981_v20  ;;  %v2558_v28 = vadd.f32 %v6469_v50, %v5383_v25  ;;  %v2549_v29 = vpop.f32.mrb[121].mxu1 }
 0x1d7   : > { %3998 = vst.msk [vmem:[%s5834_s29 + $0x1d4] sm:$0xf] %vm3880_vm2, %v4847_v19  ;;  %v2022_v26 = vadd.f32 %v6469_v50, %v2021_v24  ;;  %v5252_v27 = vpop.f32.mrb[122].mxu0  ;;  %4130 = vst.msk [vmem:[%s5834_s29 + $0x3e4] sm:$0xf] %vm3880_vm2, %v4979_v23  ;;  %v2550_v33 = vadd.f32 %v6469_v50, %v2549_v29  ;;  %v5384_v34 = vpop.f32.mrb[122].mxu1 }
 0x1d8   : > { %v2702_v30 = vmax.f32 %v2030_v22, 0.0  ;;  %v2033_v31 = vadd.f32 %v6469_v50, %v5252_v27  ;;  %v2024_v32 = vpop.f32.mrb[123].mxu0  ;;  %v2834_v37 = vmax.f32 %v2558_v28, 0.0  ;;  %v2561_v38 = vadd.f32 %v6469_v50, %v5384_v34  ;;  %v2552_v39 = vpop.f32.mrb[123].mxu1 }
 0x1d9   : > { %v2700_v35 = vmax.f32 %v2022_v26, 0.0  ;;  %v2025_v36 = vadd.f32 %v6469_v50, %v2024_v32  ;;  %v2832_v42 = vmax.f32 %v2550_v33, 0.0  ;;  %v2553_v43 = vadd.f32 %v6469_v50, %v2552_v39 }
 0x1da   : > { %v4852_v40 = vpack.c.bf16 %v2702_v30, %v2702_v30  ;;  %v2703_v41 = vmax.f32 %v2033_v31, 0.0  ;;  %v4984_v46 = vpack.c.bf16 %v2834_v37, %v2834_v37  ;;  %v2835_v47 = vmax.f32 %v2561_v38, 0.0 }
 0x1db   : > { %v4850_v44 = vpack.c.bf16 %v2700_v35, %v2700_v35  ;;  %v2701_v45 = vmax.f32 %v2025_v36, 0.0  ;;  %v4982_v49 = vpack.c.bf16 %v2832_v42, %v2832_v42  ;;  %v2833_v51 = vmax.f32 %v2553_v43, 0.0 }
 0x1dc   : > { %4003 = vst.msk [vmem:[%s5834_s29 + $0x1e8] sm:$0xf] %vm3880_vm2, %v4852_v40  ;;  %v4853_v48 = vpack.c.bf16 %v2703_v41, %v2703_v41  ;;  %4135 = vst.msk [vmem:[%s5834_s29 + $0x3f8] sm:$0xf] %vm3880_vm2, %v4984_v46  ;;  %v4985_v53 = vpack.c.bf16 %v2835_v47, %v2835_v47 }
 0x1dd   : > { %4001 = vst.msk [vmem:[%s5834_s29 + $0x1e0] sm:$0xf] %vm3880_vm2, %v4850_v44  ;;  %v4851_v52 = vpack.c.bf16 %v2701_v45, %v2701_v45  ;;  %v5255_v54 = vpop.f32.mrb[124].mxu0  ;;  %4133 = vst.msk [vmem:[%s5834_s29 + $0x3f0] sm:$0xf] %vm3880_vm2, %v4982_v49  ;;  %v4983_v56 = vpack.c.bf16 %v2833_v51, %v2833_v51  ;;  %v5387_v58 = vpop.f32.mrb[124].mxu1 }
 0x1de   : > { %4004 = vst.msk [vmem:[%s5834_s29 + $0x1ec] sm:$0xf] %vm3880_vm2, %v4853_v48  ;;  %v2046_v55 = vadd.f32 %v6469_v50, %v5255_v54  ;;  %v2037_v57 = vpop.f32.mrb[125].mxu0  ;;  %4136 = vst.msk [vmem:[%s5834_s29 + $0x3fc] sm:$0xf] %vm3880_vm2, %v4985_v53  ;;  %v2574_v61 = vadd.f32 %v6469_v50, %v5387_v58  ;;  %v2565_v62 = vpop.f32.mrb[125].mxu1 }
 0x1df   : > { %4002 = vst.msk [vmem:[%s5834_s29 + $0x1e4] sm:$0xf] %vm3880_vm2, %v4851_v52  ;;  %v2038_v59 = vadd.f32 %v6469_v50, %v2037_v57  ;;  %v5256_v60 = vpop.f32.mrb[126].mxu0  ;;  %4134 = vst.msk [vmem:[%s5834_s29 + $0x3f4] sm:$0xf] %vm3880_vm2, %v4983_v56  ;;  %v2566_v2 = vadd.f32 %v6469_v50, %v2565_v62  ;;  %v5388_v3 = vpop.f32.mrb[126].mxu1 }
 0x1e0   : > { %v2706_v63 = vmax.f32 %v2046_v55, 0.0  ;;  %v2049_v0 = vadd.f32 %v6469_v50, %v5256_v60  ;;  %v2040_v1 = vpop.f32.mrb[127].mxu0  ;;  %v2838_v6 = vmax.f32 %v2574_v61, 0.0  ;;  %v2577_v7 = vadd.f32 %v6469_v50, %v5388_v3  ;;  %v2568_v8 = vpop.f32.mrb[127].mxu1 }
 0x1e1   : > { %v2704_v4 = vmax.f32 %v2038_v59, 0.0  ;;  %v2041_v5 = vadd.f32 %v6469_v50, %v2040_v1  ;;  %v2836_v11 = vmax.f32 %v2566_v2, 0.0  ;;  %v2569_v12 = vadd.f32 %v6469_v50, %v2568_v8 }
 0x1e2   : > { %v4856_v9 = vpack.c.bf16 %v2706_v63, %v2706_v63  ;;  %v2707_v10 = vmax.f32 %v2049_v0, 0.0  ;;  %v4988_v15 = vpack.c.bf16 %v2838_v6, %v2838_v6  ;;  %v2839_v16 = vmax.f32 %v2577_v7, 0.0 }
 0x1e3   : > { %v4854_v13 = vpack.c.bf16 %v2704_v4, %v2704_v4  ;;  %v2705_v14 = vmax.f32 %v2041_v5, 0.0  ;;  %v4986_v18 = vpack.c.bf16 %v2836_v11, %v2836_v11  ;;  %v2837_v19 = vmax.f32 %v2569_v12, 0.0 }
 0x1e4   : > { %4007 = vst.msk [vmem:[%s5834_s29 + $0x1f8] sm:$0xf] %vm3880_vm2, %v4856_v9  ;;  %v4857_v17 = vpack.c.bf16 %v2707_v10, %v2707_v10  ;;  %4139 = vst.msk [vmem:[%s5834_s29 + $0x408] sm:$0xf] %vm3880_vm2, %v4988_v15  ;;  %v4989_v21 = vpack.c.bf16 %v2839_v16, %v2839_v16 }
 0x1e5   : > { %4005 = vst.msk [vmem:[%s5834_s29 + $0x1f0] sm:$0xf] %vm3880_vm2, %v4854_v13  ;;  %v4855_v20 = vpack.c.bf16 %v2705_v14, %v2705_v14  ;;  %v5259_v22 = vpop.f32.mrb[128].mxu0  ;;  %4137 = vst.msk [vmem:[%s5834_s29 + $0x400] sm:$0xf] %vm3880_vm2, %v4986_v18  ;;  %v4987_v24 = vpack.c.bf16 %v2837_v19, %v2837_v19 }
 0x1e6   : > { %4008 = vst.msk [vmem:[%s5834_s29 + $0x1fc] sm:$0xf] %vm3880_vm2, %v4857_v17  ;;  %v2062_v23 = vadd.f32 %v6469_v50, %v5259_v22  ;;  %v2053_v25 = vpop.f32.mrb[129].mxu0  ;;  %4140 = vst.msk [vmem:[%s5834_s29 + $0x40c] sm:$0xf] %vm3880_vm2, %v4989_v21 }
 0x1e7   : > { %4006 = vst.msk [vmem:[%s5834_s29 + $0x1f4] sm:$0xf] %vm3880_vm2, %v4855_v20  ;;  %v2054_v26 = vadd.f32 %v6469_v50, %v2053_v25  ;;  %v5260_v27 = vpop.f32.mrb[130].mxu0  ;;  %4138 = vst.msk [vmem:[%s5834_s29 + $0x404] sm:$0xf] %vm3880_vm2, %v4987_v24 }
 0x1e8   : > { %v2710_v28 = vmax.f32 %v2062_v23, 0.0  ;;  %v2065_v29 = vadd.f32 %v6469_v50, %v5260_v27  ;;  %v2056_v30 = vpop.f32.mrb[131].mxu0 }
 0x1e9   : > { %v2708_v31 = vmax.f32 %v2054_v26, 0.0  ;;  %v2057_v32 = vadd.f32 %v6469_v50, %v2056_v30 }
 0x1ea   : > { %v4860_v33 = vpack.c.bf16 %v2710_v28, %v2710_v28  ;;  %v2711_v34 = vmax.f32 %v2065_v29, 0.0 }
 0x1eb   : > { %v4858_v35 = vpack.c.bf16 %v2708_v31, %v2708_v31  ;;  %v2709_v36 = vmax.f32 %v2057_v32, 0.0 }
 0x1ec   : > { %4011 = vst.msk [vmem:[%s5834_s29 + $0x208] sm:$0xf] %vm3880_vm2, %v4860_v33  ;;  %v4861_v37 = vpack.c.bf16 %v2711_v34, %v2711_v34 }
 0x1ed   : > { %4009 = vst.msk [vmem:[%s5834_s29 + $0x200] sm:$0xf] %vm3880_vm2, %v4858_v35  ;;  %v4859_v38 = vpack.c.bf16 %v2709_v36, %v2709_v36 }
 0x1ee   : > { %4012 = vst.msk [vmem:[%s5834_s29 + $0x20c] sm:$0xf] %vm3880_vm2, %v4861_v37 }
 0x1ef   : > { %4010 = vst.msk [vmem:[%s5834_s29 + $0x204] sm:$0xf] %vm3880_vm2, %v4859_v38 }
 0x1f0 PF: > { %s13_s12 = sadd.s32 1, %s5546_s12  }
 0x1f1   : > { %p10_p4 = scmp.ge.s32.totalorder %s13_s12, 4  }
 0x1f3   :  { %12 = sbr.rel (!%p10_p4) target bundleno = 1 (0x1), region = 62 }

// kernel: multi_agent_cnn_actor_forward.4
= control target key start
LH: loop header
LB: loop body
LE: loop exit
PB: predicated region body
PF: predicated region fallthrough
CT: control target
= control target key end

     0   :  { %v2800_v0 = vmov 0   ;;  %vm750_vm0 = vcmask 130048   ;;  %vm2039_vm1 = vcmask 257024   ;;  %vm2158_vm2 = vcmask 256000   ;;  %s3869_s1 = inlined_call_operand.vmem [shape: bf16[144,32], index: 1, kind: input, shape index: {}]   ;;  %s3870_s0 = inlined_call_operand.vmem [shape: bf16[950,144], index: 0, kind: input, shape index: {}]   ;;  %s3871_s2 = inlined_call_operand.vmem [shape: f32[1,32], index: 2, kind: input, shape index: {}]   ;;  %s3872_s3 = inlined_call_operand.vmem [shape: bf16[950,32], index: 3, kind: output, shape index: {}]  }
   0x1   :  { %931 = vmatprep.subr.bf16.mxu0 %v2800_v0  ;;  %2592 = vmatprep.subr.bf16.mxu1 %v2800_v0  ;;  %v2611_v1 = vld [vmem:[%s3869_s1] sm:$0xff]   ;;  %v2612_v2 = vld [vmem:[%s3869_s1 + $0x8] sm:$0xff]   ;;  %v2613_v3 = vld [vmem:[%s3869_s1 + $0x10] sm:$0xff]  }
   0x2   :  { %932 = vmatpush1.bf16.msra.mxu0 %v2611_v1  ;;  %2601 = vmatpush1.bf16.msra.mxu1 %v2611_v1  ;;  %v2614_v4 = vld [vmem:[%s3869_s1 + $0x18] sm:$0xff]   ;;  %v2622_v5 = vld [vmem:[%s3870_s0 + $0x4] ss:$8 sps:$4 sm:$0xff]   ;;  %v2617_v9 = vld [vmem:[%s3869_s1 + $0x30] sm:$0xff]  }
   0x3   :  { %933 = vmatprep.subr.bf16.mxu0 %v2800_v0  ;;  %2593 = vmatprep.subr.bf16.mxu1 %v2800_v0  ;;  %v2625_v6 = vld [vmem:[%s3870_s0 + $0x1e4] ss:$8 sps:$4 sm:$0xff]   ;;  %v2618_v10 = vld [vmem:[%s3869_s1 + $0x38] sm:$0xff]   ;;  %v2620_v12 = vld [vmem:[%s3870_s0] ss:$8 sps:$4 sm:$0xff]  }
   0x4   :  { %2294 = vmatprep.mubr.msk.bf16.mxu0 %vm750_vm0, %v2622_v5  ;;  %2324 = vmatprep.mubr.msk.bf16.mxu1 %vm750_vm0, %v2625_v6  ;;  %v2615_v7 = vld [vmem:[%s3869_s1 + $0x20] sm:$0xff]   ;;  %v2616_v8 = vld [vmem:[%s3869_s1 + $0x28] sm:$0xff]   ;;  %v2626_v14 = vld [vmem:[%s3870_s0 + $0x14] ss:$8 sps:$4 sm:$0xff]  }
   0x5   :  { %v2619_v11 = vld [vmem:[%s3869_s1 + $0x40] sm:$0xff]   ;;  %v2628_v15 = vld [vmem:[%s3870_s0 + $0x1f4] ss:$8 sps:$4 sm:$0xff]   ;;  %v2630_v16 = vld [vmem:[%s3870_s0 + $0x10] ss:$8 sps:$4 sm:$0xff]  }
   0x6   :  { %934 = vmatpush1.bf16.msra.mxu0 %v2612_v2  ;;  %2602 = vmatpush1.bf16.msra.mxu1 %v2612_v2  ;;  %v2623_v13 = vld [vmem:[%s3870_s0 + $0x1e0] ss:$8 sps:$4 sm:$0xff]   ;;  %v2631_v17 = vld [vmem:[%s3870_s0 + $0x1f0] ss:$8 sps:$4 sm:$0xff]   ;;  %v2632_v18 = vld [vmem:[%s3870_s0 + $0x24] ss:$8 sps:$4 sm:$0xff]  }
   0x7   :  { %935 = vmatprep.subr.bf16.mxu0 %v2800_v0  ;;  %2594 = vmatprep.subr.bf16.mxu1 %v2800_v0  ;;  %v2634_v19 = vld [vmem:[%s3870_s0 + $0x204] ss:$8 sps:$4 sm:$0xff]   ;;  %v2636_v20 = vld [vmem:[%s3870_s0 + $0x20] ss:$8 sps:$4 sm:$0xff]   ;;  %v2638_v22 = vld [vmem:[%s3870_s0 + $0x34] ss:$8 sps:$4 sm:$0xff]  }
   0x8   :  { %v2637_v21 = vld [vmem:[%s3870_s0 + $0x200] ss:$8 sps:$4 sm:$0xff]   ;;  %v2640_v23 = vld [vmem:[%s3870_s0 + $0x214] ss:$8 sps:$4 sm:$0xff]   ;;  %v2642_v24 = vld [vmem:[%s3870_s0 + $0x30] ss:$8 sps:$4 sm:$0xff]  }
   0x9   :  { %v2643_v25 = vld [vmem:[%s3870_s0 + $0x210] ss:$8 sps:$4 sm:$0xff]   ;;  %v2644_v26 = vld [vmem:[%s3870_s0 + $0x44] ss:$8 sps:$4 sm:$0xff]   ;;  %v2648_v28 = vld [vmem:[%s3870_s0 + $0x40] ss:$8 sps:$4 sm:$0xff]  }
   0xa   :  { %936 = vmatpush1.bf16.msra.mxu0 %v2613_v3  ;;  %2603 = vmatpush1.bf16.msra.mxu1 %v2613_v3  ;;  %v2646_v27 = vld [vmem:[%s3870_s0 + $0x224] ss:$8 sps:$4 sm:$0xff]   ;;  %v2649_v29 = vld [vmem:[%s3870_s0 + $0x220] ss:$8 sps:$4 sm:$0xff]   ;;  %v2650_v30 = vld [vmem:[%s3870_s0 + $0x54] ss:$8 sps:$4 sm:$0xff]  }
   0xb   :  { %937 = vmatprep.subr.bf16.mxu0 %v2800_v0  ;;  %2595 = vmatprep.subr.bf16.mxu1 %v2800_v0  ;;  %v2652_v31 = vld [vmem:[%s3870_s0 + $0x234] ss:$8 sps:$4 sm:$0xff]   ;;  %v2654_v32 = vld [vmem:[%s3870_s0 + $0x50] ss:$8 sps:$4 sm:$0xff]   ;;  %v2656_v34 = vld [vmem:[%s3870_s0 + $0x64] ss:$8 sps:$4 sm:$0xff]  }
   0xc   :  { %v2655_v33 = vld [vmem:[%s3870_s0 + $0x230] ss:$8 sps:$4 sm:$0xff]   ;;  %v2658_v35 = vld [vmem:[%s3870_s0 + $0x244] ss:$8 sps:$4 sm:$0xff]   ;;  %v2660_v36 = vld [vmem:[%s3870_s0 + $0x60] ss:$8 sps:$4 sm:$0xff]  }
   0xd   :  { %v2661_v37 = vld [vmem:[%s3870_s0 + $0x240] ss:$8 sps:$4 sm:$0xff]   ;;  %v2662_v38 = vld [vmem:[%s3870_s0 + $0x74] ss:$8 sps:$4 sm:$0xff]   ;;  %v2666_v40 = vld [vmem:[%s3870_s0 + $0x70] ss:$8 sps:$4 sm:$0xff]  }
   0xe   :  { %938 = vmatpush1.bf16.msra.mxu0 %v2614_v4  ;;  %2604 = vmatpush1.bf16.msra.mxu1 %v2614_v4  ;;  %v2664_v39 = vld [vmem:[%s3870_s0 + $0x254] ss:$8 sps:$4 sm:$0xff]   ;;  %v2667_v41 = vld [vmem:[%s3870_s0 + $0x250] ss:$8 sps:$4 sm:$0xff]   ;;  %v2668_v42 = vld [vmem:[%s3870_s0 + $0x84] ss:$8 sps:$4 sm:$0xff]  }
   0xf   :  { %939 = vmatprep.subr.bf16.mxu0 %v2800_v0  ;;  %2596 = vmatprep.subr.bf16.mxu1 %v2800_v0  ;;  %v2670_v43 = vld [vmem:[%s3870_s0 + $0x264] ss:$8 sps:$4 sm:$0xff]   ;;  %v2672_v44 = vld [vmem:[%s3870_s0 + $0x80] ss:$8 sps:$4 sm:$0xff]   ;;  %v2674_v46 = vld [vmem:[%s3870_s0 + $0x94] ss:$8 sps:$4 sm:$0xff]  }
  0x10   :  { %v2673_v45 = vld [vmem:[%s3870_s0 + $0x260] ss:$8 sps:$4 sm:$0xff]   ;;  %v2676_v47 = vld [vmem:[%s3870_s0 + $0x274] ss:$8 sps:$4 sm:$0xff]   ;;  %v2678_v48 = vld [vmem:[%s3870_s0 + $0x90] ss:$8 sps:$4 sm:$0xff]  }
  0x11   :  { %v2679_v49 = vld [vmem:[%s3870_s0 + $0x270] ss:$8 sps:$4 sm:$0xff]   ;;  %v2680_v50 = vld [vmem:[%s3870_s0 + $0xa4] ss:$8 sps:$4 sm:$0xff]   ;;  %v2684_v52 = vld [vmem:[%s3870_s0 + $0xa0] ss:$8 sps:$4 sm:$0xff]  }
  0x12   :  { %940 = vmatpush1.bf16.msra.mxu0 %v2615_v7  ;;  %2605 = vmatpush1.bf16.msra.mxu1 %v2615_v7  ;;  %v2682_v51 = vld [vmem:[%s3870_s0 + $0x284] ss:$8 sps:$4 sm:$0xff]   ;;  %v2685_v53 = vld [vmem:[%s3870_s0 + $0x280] ss:$8 sps:$4 sm:$0xff]   ;;  %v2686_v54 = vld [vmem:[%s3870_s0 + $0xb4] ss:$8 sps:$4 sm:$0xff]  }
  0x13   :  { %941 = vmatprep.subr.bf16.mxu0 %v2800_v0  ;;  %2597 = vmatprep.subr.bf16.mxu1 %v2800_v0  ;;  %v2688_v55 = vld [vmem:[%s3870_s0 + $0x294] ss:$8 sps:$4 sm:$0xff]   ;;  %v2690_v56 = vld [vmem:[%s3870_s0 + $0xb0] ss:$8 sps:$4 sm:$0xff]   ;;  %v2692_v58 = vld [vmem:[%s3870_s0 + $0xc4] ss:$8 sps:$4 sm:$0xff]  }
  0x14   :  { %v2691_v57 = vld [vmem:[%s3870_s0 + $0x290] ss:$8 sps:$4 sm:$0xff]   ;;  %v2694_v59 = vld [vmem:[%s3870_s0 + $0x2a4] ss:$8 sps:$4 sm:$0xff]   ;;  %v2696_v60 = vld [vmem:[%s3870_s0 + $0xc0] ss:$8 sps:$4 sm:$0xff]  }
  0x15   :  { %v2697_v61 = vld [vmem:[%s3870_s0 + $0x2a0] ss:$8 sps:$4 sm:$0xff]   ;;  %v2698_v62 = vld [vmem:[%s3870_s0 + $0xd4] ss:$8 sps:$4 sm:$0xff]   ;;  %v2703_v1 = vld [vmem:[%s3870_s0 + $0x2b0] ss:$8 sps:$4 sm:$0xff]  }
  0x16   :  { %942 = vmatpush1.bf16.msra.mxu0 %v2616_v8  ;;  %2606 = vmatpush1.bf16.msra.mxu1 %v2616_v8  ;;  %v2700_v63 = vld [vmem:[%s3870_s0 + $0x2b4] ss:$8 sps:$4 sm:$0xff]   ;;  %v2704_v2 = vld [vmem:[%s3870_s0 + $0xe4] ss:$8 sps:$4 sm:$0xff]   ;;  %v2708_v4 = vld [vmem:[%s3870_s0 + $0xe0] ss:$8 sps:$4 sm:$0xff]  }
  0x17   :  { %943 = vmatprep.subr.bf16.mxu0 %v2800_v0  ;;  %2598 = vmatprep.subr.bf16.mxu1 %v2800_v0  ;;  %v2706_v3 = vld [vmem:[%s3870_s0 + $0x2c4] ss:$8 sps:$4 sm:$0xff]   ;;  %v2709_v5 = vld [vmem:[%s3870_s0 + $0x2c0] ss:$8 sps:$4 sm:$0xff]   ;;  %v2710_v6 = vld [vmem:[%s3870_s0 + $0xf4] ss:$8 sps:$4 sm:$0xff]  }
  0x18   :  { %v2712_v7 = vld [vmem:[%s3870_s0 + $0x2d4] ss:$8 sps:$4 sm:$0xff]   ;;  %v2714_v8 = vld [vmem:[%s3870_s0 + $0xf0] ss:$8 sps:$4 sm:$0xff]  }
  0x1a   :  { %944 = vmatpush1.bf16.msra.mxu0 %v2617_v9  ;;  %2607 = vmatpush1.bf16.msra.mxu1 %v2617_v9  ;;  %v2715_v9 = vld [vmem:[%s3870_s0 + $0x2d0] ss:$8 sps:$4 sm:$0xff]  }
  0x1b   :  { %945 = vmatprep.subr.bf16.mxu0 %v2800_v0  ;;  %2599 = vmatprep.subr.bf16.mxu1 %v2800_v0 }
  0x1e   :  { %946 = vmatpush1.bf16.msra.mxu0 %v2618_v10  ;;  %2608 = vmatpush1.bf16.msra.mxu1 %v2618_v10  ;;  %v2716_v10 = vld [vmem:[%s3870_s0 + $0x104] ss:$8 sps:$4 sm:$0xff]  }
  0x1f   :  { %947 = vmatprep.subr.bf16.mxu0 %v2800_v0  ;;  %2600 = vmatprep.subr.bf16.mxu1 %v2800_v0  ;;  %v2702_v0 = vld [vmem:[%s3870_s0 + $0xd0] ss:$8 sps:$4 sm:$0xff]  }
  0x22   :  { %948 = vmatpush1.bf16.msra.mxu0 %v2619_v11  ;;  %2609 = vmatpush1.bf16.msra.mxu1 %v2619_v11  ;;  %v2718_v11 = vld [vmem:[%s3870_s0 + $0x2e4] ss:$8 sps:$4 sm:$0xff]  }
  0x25   :  { %964 = vmatmul.mubr.bf16.vlgmr.msra.gmra.mrb[0].mxu0 %v2620_v12  ;;  %1204 = vmatmul.mubr.bf16.vlgmr.msra.gmra.mrb[0].mxu1 %v2623_v13  ;;  %v2720_v12 = vld [vmem:[%s3870_s0 + $0x100] ss:$8 sps:$4 sm:$0xff]  }
  0x26   :  { %2295 = vmatprep.mubr.msk.bf16.mxu0 %vm750_vm0, %v2626_v14  ;;  %2325 = vmatprep.mubr.msk.bf16.mxu1 %vm750_vm0, %v2628_v15  ;;  %v2721_v13 = vld [vmem:[%s3870_s0 + $0x2e0] ss:$8 sps:$4 sm:$0xff]   ;;  %v2722_v14 = vld [vmem:[%s3870_s0 + $0x114] ss:$8 sps:$4 sm:$0xff]  }
  0x27   :  { %v2724_v15 = vld [vmem:[%s3870_s0 + $0x2f4] ss:$8 sps:$4 sm:$0xff]  }
  0x2d   :  { %972 = vmatmul.mubr.bf16.gmra.mrb[4].mxu0 %v2630_v16  ;;  %1212 = vmatmul.mubr.bf16.gmra.mrb[4].mxu1 %v2631_v17  ;;  %v2726_v16 = vld [vmem:[%s3870_s0 + $0x110] ss:$8 sps:$4 sm:$0xff]  }
  0x2e   :  { %2296 = vmatprep.mubr.msk.bf16.mxu0 %vm750_vm0, %v2632_v18  ;;  %2326 = vmatprep.mubr.msk.bf16.mxu1 %vm750_vm0, %v2634_v19  ;;  %v2727_v17 = vld [vmem:[%s3870_s0 + $0x2f0] ss:$8 sps:$4 sm:$0xff]   ;;  %v2728_v18 = vld [vmem:[%s3870_s0 + $0x124] ss:$8 sps:$4 sm:$0xff]  }
  0x2f   :  { %v2730_v19 = vld [vmem:[%s3870_s0 + $0x304] ss:$8 sps:$4 sm:$0xff]  }
  0x35   :  { %980 = vmatmul.mubr.bf16.gmra.mrb[8].mxu0 %v2636_v20  ;;  %1220 = vmatmul.mubr.bf16.gmra.mrb[8].mxu1 %v2637_v21  ;;  %v2732_v20 = vld [vmem:[%s3870_s0 + $0x120] ss:$8 sps:$4 sm:$0xff]  }
  0x36   :  { %2297 = vmatprep.mubr.msk.bf16.mxu0 %vm750_vm0, %v2638_v22  ;;  %2327 = vmatprep.mubr.msk.bf16.mxu1 %vm750_vm0, %v2640_v23  ;;  %v2733_v21 = vld [vmem:[%s3870_s0 + $0x300] ss:$8 sps:$4 sm:$0xff]   ;;  %v2734_v22 = vld [vmem:[%s3870_s0 + $0x134] ss:$8 sps:$4 sm:$0xff]  }
  0x37   :  { %v2736_v23 = vld [vmem:[%s3870_s0 + $0x314] ss:$8 sps:$4 sm:$0xff]  }
  0x3d   :  { %988 = vmatmul.mubr.bf16.gmra.mrb[12].mxu0 %v2642_v24  ;;  %1228 = vmatmul.mubr.bf16.gmra.mrb[12].mxu1 %v2643_v25  ;;  %v2738_v24 = vld [vmem:[%s3870_s0 + $0x130] ss:$8 sps:$4 sm:$0xff]  }
  0x3e   :  { %2298 = vmatprep.mubr.msk.bf16.mxu0 %vm750_vm0, %v2644_v26  ;;  %2328 = vmatprep.mubr.msk.bf16.mxu1 %vm750_vm0, %v2646_v27  ;;  %v2739_v25 = vld [vmem:[%s3870_s0 + $0x310] ss:$8 sps:$4 sm:$0xff]   ;;  %v2740_v26 = vld [vmem:[%s3870_s0 + $0x144] ss:$8 sps:$4 sm:$0xff]  }
  0x3f   :  { %v2742_v27 = vld [vmem:[%s3870_s0 + $0x324] ss:$8 sps:$4 sm:$0xff]  }
  0x45   :  { %996 = vmatmul.mubr.bf16.gmra.mrb[16].mxu0 %v2648_v28  ;;  %1236 = vmatmul.mubr.bf16.gmra.mrb[16].mxu1 %v2649_v29  ;;  %v2744_v28 = vld [vmem:[%s3870_s0 + $0x140] ss:$8 sps:$4 sm:$0xff]  }
  0x46   :  { %2299 = vmatprep.mubr.msk.bf16.mxu0 %vm750_vm0, %v2650_v30  ;;  %2329 = vmatprep.mubr.msk.bf16.mxu1 %vm750_vm0, %v2652_v31  ;;  %v2745_v29 = vld [vmem:[%s3870_s0 + $0x320] ss:$8 sps:$4 sm:$0xff]   ;;  %v2746_v30 = vld [vmem:[%s3870_s0 + $0x154] ss:$8 sps:$4 sm:$0xff]  }
  0x47   :  { %v2748_v31 = vld [vmem:[%s3870_s0 + $0x334] ss:$8 sps:$4 sm:$0xff]  }
  0x4d   :  { %1004 = vmatmul.mubr.bf16.gmra.mrb[20].mxu0 %v2654_v32  ;;  %1244 = vmatmul.mubr.bf16.gmra.mrb[20].mxu1 %v2655_v33  ;;  %v2750_v32 = vld [vmem:[%s3870_s0 + $0x150] ss:$8 sps:$4 sm:$0xff]  }
  0x4e   :  { %2300 = vmatprep.mubr.msk.bf16.mxu0 %vm750_vm0, %v2656_v34  ;;  %2330 = vmatprep.mubr.msk.bf16.mxu1 %vm750_vm0, %v2658_v35  ;;  %v2751_v33 = vld [vmem:[%s3870_s0 + $0x330] ss:$8 sps:$4 sm:$0xff]   ;;  %v2752_v34 = vld [vmem:[%s3870_s0 + $0x164] ss:$8 sps:$4 sm:$0xff]  }
  0x4f   :  { %v2754_v35 = vld [vmem:[%s3870_s0 + $0x344] ss:$8 sps:$4 sm:$0xff]  }
  0x55   :  { %1012 = vmatmul.mubr.bf16.gmra.mrb[24].mxu0 %v2660_v36  ;;  %1252 = vmatmul.mubr.bf16.gmra.mrb[24].mxu1 %v2661_v37  ;;  %v2756_v36 = vld [vmem:[%s3870_s0 + $0x160] ss:$8 sps:$4 sm:$0xff]  }
  0x56   :  { %2301 = vmatprep.mubr.msk.bf16.mxu0 %vm750_vm0, %v2662_v38  ;;  %2331 = vmatprep.mubr.msk.bf16.mxu1 %vm750_vm0, %v2664_v39  ;;  %v2757_v37 = vld [vmem:[%s3870_s0 + $0x340] ss:$8 sps:$4 sm:$0xff]   ;;  %v2758_v38 = vld [vmem:[%s3870_s0 + $0x174] ss:$8 sps:$4 sm:$0xff]  }
  0x57   :  { %v2760_v39 = vld [vmem:[%s3870_s0 + $0x354] ss:$8 sps:$4 sm:$0xff]  }
  0x5d   :  { %1020 = vmatmul.mubr.bf16.gmra.mrb[28].mxu0 %v2666_v40  ;;  %1260 = vmatmul.mubr.bf16.gmra.mrb[28].mxu1 %v2667_v41  ;;  %v2762_v40 = vld [vmem:[%s3870_s0 + $0x170] ss:$8 sps:$4 sm:$0xff]  }
  0x5e   :  { %2302 = vmatprep.mubr.msk.bf16.mxu0 %vm750_vm0, %v2668_v42  ;;  %2332 = vmatprep.mubr.msk.bf16.mxu1 %vm750_vm0, %v2670_v43  ;;  %v2763_v41 = vld [vmem:[%s3870_s0 + $0x350] ss:$8 sps:$4 sm:$0xff]   ;;  %v2764_v42 = vld [vmem:[%s3870_s0 + $0x184] ss:$8 sps:$4 sm:$0xff]  }
  0x5f   :  { %v2766_v43 = vld [vmem:[%s3870_s0 + $0x364] ss:$8 sps:$4 sm:$0xff]  }
  0x65   :  { %1028 = vmatmul.mubr.bf16.gmra.mrb[32].mxu0 %v2672_v44  ;;  %1268 = vmatmul.mubr.bf16.gmra.mrb[32].mxu1 %v2673_v45  ;;  %v2768_v44 = vld [vmem:[%s3870_s0 + $0x180] ss:$8 sps:$4 sm:$0xff]  }
  0x66   :  { %2303 = vmatprep.mubr.msk.bf16.mxu0 %vm750_vm0, %v2674_v46  ;;  %2333 = vmatprep.mubr.msk.bf16.mxu1 %vm750_vm0, %v2676_v47  ;;  %v2769_v45 = vld [vmem:[%s3870_s0 + $0x360] ss:$8 sps:$4 sm:$0xff]   ;;  %v2770_v46 = vld [vmem:[%s3870_s0 + $0x194] ss:$8 sps:$4 sm:$0xff]  }
  0x67   :  { %v2772_v47 = vld [vmem:[%s3870_s0 + $0x374] ss:$8 sps:$4 sm:$0xff]  }
  0x6d   :  { %1036 = vmatmul.mubr.bf16.gmra.mrb[36].mxu0 %v2678_v48  ;;  %1276 = vmatmul.mubr.bf16.gmra.mrb[36].mxu1 %v2679_v49  ;;  %v2774_v48 = vld [vmem:[%s3870_s0 + $0x190] ss:$8 sps:$4 sm:$0xff]  }
  0x6e   :  { %2304 = vmatprep.mubr.msk.bf16.mxu0 %vm750_vm0, %v2680_v50  ;;  %2334 = vmatprep.mubr.msk.bf16.mxu1 %vm750_vm0, %v2682_v51  ;;  %v2775_v49 = vld [vmem:[%s3870_s0 + $0x370] ss:$8 sps:$4 sm:$0xff]   ;;  %v2776_v50 = vld [vmem:[%s3870_s0 + $0x1a4] ss:$8 sps:$4 sm:$0xff]  }
  0x6f   :  { %v2778_v51 = vld [vmem:[%s3870_s0 + $0x384] ss:$8 sps:$4 sm:$0xff]  }
  0x75   :  { %1044 = vmatmul.mubr.bf16.gmra.mrb[40].mxu0 %v2684_v52  ;;  %1284 = vmatmul.mubr.bf16.gmra.mrb[40].mxu1 %v2685_v53  ;;  %v2780_v52 = vld [vmem:[%s3870_s0 + $0x1a0] ss:$8 sps:$4 sm:$0xff]  }
  0x76   :  { %2305 = vmatprep.mubr.msk.bf16.mxu0 %vm750_vm0, %v2686_v54  ;;  %2335 = vmatprep.mubr.msk.bf16.mxu1 %vm750_vm0, %v2688_v55  ;;  %v2781_v53 = vld [vmem:[%s3870_s0 + $0x380] ss:$8 sps:$4 sm:$0xff]   ;;  %v2782_v54 = vld [vmem:[%s3870_s0 + $0x1b4] ss:$8 sps:$4 sm:$0xff]  }
  0x77   :  { %v2784_v55 = vld [vmem:[%s3870_s0 + $0x394] ss:$8 sps:$4 sm:$0xff]  }
  0x7d   :  { %1052 = vmatmul.mubr.bf16.gmra.mrb[44].mxu0 %v2690_v56  ;;  %1292 = vmatmul.mubr.bf16.gmra.mrb[44].mxu1 %v2691_v57  ;;  %v3235_v56 = vld [vmem:[%s3871_s2] ss:$0 sm:$0xff] }
  0x7e   :  { %2306 = vmatprep.mubr.msk.bf16.mxu0 %vm750_vm0, %v2692_v58  ;;  %2336 = vmatprep.mubr.msk.bf16.mxu1 %vm750_vm0, %v2694_v59 }
  0x85   :  { %1060 = vmatmul.mubr.bf16.gmra.mrb[48].mxu0 %v2696_v60  ;;  %1300 = vmatmul.mubr.bf16.gmra.mrb[48].mxu1 %v2697_v61 }
  0x86   :  { %2307 = vmatprep.mubr.msk.bf16.mxu0 %vm750_vm0, %v2698_v62  ;;  %2337 = vmatprep.mubr.msk.bf16.mxu1 %vm750_vm0, %v2700_v63  ;;  %v2786_v63 = vld [vmem:[%s3870_s0 + $0x1b0] ss:$8 sps:$4 sm:$0xff]  }
  0x8d   :  { %1068 = vmatmul.mubr.bf16.gmra.mrb[52].mxu0 %v2702_v0  ;;  %1308 = vmatmul.mubr.bf16.gmra.mrb[52].mxu1 %v2703_v1  ;;  %v2787_v0 = vld [vmem:[%s3870_s0 + $0x390] ss:$8 sps:$4 sm:$0xff]  }
  0x8e   :  { %2308 = vmatprep.mubr.msk.bf16.mxu0 %vm750_vm0, %v2704_v2  ;;  %2338 = vmatprep.mubr.msk.bf16.mxu1 %vm750_vm0, %v2706_v3  ;;  %v2788_v3 = vld [vmem:[%s3870_s0 + $0x1c4] ss:$8 sps:$4 sm:$0xff]  }
  0x95   :  { %1076 = vmatmul.mubr.bf16.gmra.mrb[56].mxu0 %v2708_v4  ;;  %1316 = vmatmul.mubr.bf16.gmra.mrb[56].mxu1 %v2709_v5  ;;  %v2790_v4 = vld [vmem:[%s3870_s0 + $0x3a4] ss:$8 sps:$4 sm:$0xff]  }
  0x96   :  { %2309 = vmatprep.mubr.msk.bf16.mxu0 %vm750_vm0, %v2710_v6  ;;  %2339 = vmatprep.mubr.msk.bf16.mxu1 %vm750_vm0, %v2712_v7 }
  0x9d   :  { %1084 = vmatmul.mubr.bf16.gmra.mrb[60].mxu0 %v2714_v8  ;;  %1324 = vmatmul.mubr.bf16.gmra.mrb[60].mxu1 %v2715_v9 }
  0x9e   :  { %2310 = vmatprep.mubr.msk.bf16.mxu0 %vm750_vm0, %v2716_v10  ;;  %2340 = vmatprep.mubr.msk.bf16.mxu1 %vm750_vm0, %v2718_v11 }
  0xa5   :  { %1092 = vmatmul.mubr.bf16.gmra.mrb[64].mxu0 %v2720_v12  ;;  %1332 = vmatmul.mubr.bf16.gmra.mrb[64].mxu1 %v2721_v13 }
  0xa6   :  { %2311 = vmatprep.mubr.msk.bf16.mxu0 %vm750_vm0, %v2722_v14  ;;  %2341 = vmatprep.mubr.msk.bf16.mxu1 %vm750_vm0, %v2724_v15 }
  0xad   :  { %1100 = vmatmul.mubr.bf16.gmra.mrb[68].mxu0 %v2726_v16  ;;  %1340 = vmatmul.mubr.bf16.gmra.mrb[68].mxu1 %v2727_v17  ;;  %v133_v17 = vld [vmem:[%s3870_s0 + $0x3b0] sm:$0x77] }
  0xae   :  { %2312 = vmatprep.mubr.msk.bf16.mxu0 %vm750_vm0, %v2728_v18  ;;  %2342 = vmatprep.mubr.msk.bf16.mxu1 %vm750_vm0, %v2730_v19 }
  0xb5   :  { %1108 = vmatmul.mubr.bf16.gmra.mrb[72].mxu0 %v2732_v20  ;;  %1348 = vmatmul.mubr.bf16.gmra.mrb[72].mxu1 %v2733_v21 }
  0xb6   :  { %2313 = vmatprep.mubr.msk.bf16.mxu0 %vm750_vm0, %v2734_v22  ;;  %2343 = vmatprep.mubr.msk.bf16.mxu1 %vm750_vm0, %v2736_v23 }
  0xbd   :  { %1116 = vmatmul.mubr.bf16.gmra.mrb[76].mxu0 %v2738_v24  ;;  %1356 = vmatmul.mubr.bf16.gmra.mrb[76].mxu1 %v2739_v25  ;;  %v2792_v24 = vld [vmem:[%s3870_s0 + $0x1c0] ss:$8 sps:$4 sm:$0xff]  }
  0xbe   :  { %2314 = vmatprep.mubr.msk.bf16.mxu0 %vm750_vm0, %v2740_v26  ;;  %2344 = vmatprep.mubr.msk.bf16.mxu1 %vm750_vm0, %v2742_v27  ;;  %v2793_v25 = vld [vmem:[%s3870_s0 + $0x3a0] ss:$8 sps:$4 sm:$0xff]  }
  0xc5   :  { %1124 = vmatmul.mubr.bf16.gmra.mrb[80].mxu0 %v2744_v28  ;;  %1364 = vmatmul.mubr.bf16.gmra.mrb[80].mxu1 %v2745_v29  ;;  %v2794_v28 = vld [vmem:[%s3870_s0 + $0x1d4] ss:$8 sps:$4 sm:$0xff]   ;;  %v2284_v29 = vcombine.high %v133_v17, %v133_v17 }
  0xc6   :  { %2315 = vmatprep.mubr.msk.bf16.mxu0 %vm750_vm0, %v2746_v30  ;;  %2345 = vmatprep.mubr.msk.bf16.mxu1 %vm750_vm0, %v2748_v31 }
  0xcd   :  { %1132 = vmatmul.mubr.bf16.gmra.mrb[84].mxu0 %v2750_v32  ;;  %1372 = vmatmul.mubr.bf16.gmra.mrb[84].mxu1 %v2751_v33 }
  0xce   :  { %2316 = vmatprep.mubr.msk.bf16.mxu0 %vm750_vm0, %v2752_v34  ;;  %2346 = vmatprep.mubr.msk.bf16.mxu1 %vm750_vm0, %v2754_v35 }
  0xd5   :  { %1140 = vmatmul.mubr.bf16.gmra.mrb[88].mxu0 %v2756_v36  ;;  %1380 = vmatmul.mubr.bf16.gmra.mrb[88].mxu1 %v2757_v37 }
  0xd6   :  { %2317 = vmatprep.mubr.msk.bf16.mxu0 %vm750_vm0, %v2758_v38  ;;  %2347 = vmatprep.mubr.msk.bf16.mxu1 %vm750_vm0, %v2760_v39 }
  0xdd   :  { %1148 = vmatmul.mubr.bf16.gmra.mrb[92].mxu0 %v2762_v40  ;;  %1388 = vmatmul.mubr.bf16.gmra.mrb[92].mxu1 %v2763_v41 }
  0xde   :  { %2318 = vmatprep.mubr.msk.bf16.mxu0 %vm750_vm0, %v2764_v42  ;;  %2348 = vmatprep.mubr.msk.bf16.mxu1 %vm750_vm0, %v2766_v43 }
  0xe5   :  { %1156 = vmatmul.mubr.bf16.gmra.mrb[96].mxu0 %v2768_v44  ;;  %1396 = vmatmul.mubr.bf16.gmra.mrb[96].mxu1 %v2769_v45 }
  0xe6   :  { %2319 = vmatprep.mubr.msk.bf16.mxu0 %vm750_vm0, %v2770_v46  ;;  %2349 = vmatprep.mubr.msk.bf16.mxu1 %vm750_vm0, %v2772_v47 }
  0xed   :  { %1164 = vmatmul.mubr.bf16.gmra.mrb[100].mxu0 %v2774_v48  ;;  %1404 = vmatmul.mubr.bf16.gmra.mrb[100].mxu1 %v2775_v49  ;;  %v2797_v48 = vld [vmem:[%s3870_s0 + $0x1d0] ss:$8 sps:$4 sm:$0xff]   ;;  %v2283_v49 = vcombine.low %v133_v17, %v133_v17 }
  0xee   :  { %2320 = vmatprep.mubr.msk.bf16.mxu0 %vm750_vm0, %v2776_v50  ;;  %2350 = vmatprep.mubr.msk.bf16.mxu1 %vm750_vm0, %v2778_v51 }
  0xf5   :  { %1172 = vmatmul.mubr.bf16.gmra.mrb[104].mxu0 %v2780_v52  ;;  %1412 = vmatmul.mubr.bf16.gmra.mrb[104].mxu1 %v2781_v53 }
  0xf6   :  { %2321 = vmatprep.mubr.msk.bf16.mxu0 %vm750_vm0, %v2782_v54  ;;  %2351 = vmatprep.mubr.msk.bf16.mxu1 %vm750_vm0, %v2784_v55 }
  0xf8   :  { %v965_v57 = vpop.f32.mrb[0].mxu0  ;;  %v1205_v58 = vpop.f32.mrb[0].mxu1 }
  0xf9   :  { %v966_v59 = vadd.f32 %v3235_v56, %v965_v57  ;;  %v1206_v60 = vadd.f32 %v3235_v56, %v1205_v58  ;;  %v967_v61 = vpop.f32.mrb[1].mxu0  ;;  %v1207_v62 = vpop.f32.mrb[1].mxu1 }
  0xfa   :  { %v968_v1 = vpop.f32.mrb[2].mxu0  ;;  %v1208_v2 = vpop.f32.mrb[2].mxu1 }
  0xfb   :  { %v1443_v5 = vmax.f32 %v966_v59, 0.0  ;;  %v1503_v6 = vmax.f32 %v1206_v60, 0.0  ;;  %v969_v7 = vadd.f32 %v3235_v56, %v968_v1  ;;  %v1209_v8 = vadd.f32 %v3235_v56, %v1208_v2  ;;  %v970_v9 = vpop.f32.mrb[3].mxu0  ;;  %v1210_v10 = vpop.f32.mrb[3].mxu1 }
  0xfd   :  { %v2473_v11 = vpack.c.bf16 %v1443_v5, %v1443_v5  ;;  %v2533_v12 = vpack.c.bf16 %v1503_v6, %v1503_v6  ;;  %v1444_v13 = vmax.f32 %v969_v7, 0.0  ;;  %v1504_v14 = vmax.f32 %v1209_v8, 0.0  ;;  %1180 = vmatmul.mubr.bf16.gmra.mrb[108].mxu0 %v2786_v63  ;;  %1420 = vmatmul.mubr.bf16.gmra.mrb[108].mxu1 %v2787_v0 }
  0xfe   :  { %2322 = vmatprep.mubr.msk.bf16.mxu0 %vm750_vm0, %v2788_v3  ;;  %2352 = vmatprep.mubr.msk.bf16.mxu1 %vm750_vm0, %v2790_v4 }
  0xff   :  { %2040 = vst.msk [vmem:[%s3872_s3] sm:$0xf] %vm2039_vm1, %v2473_v11  ;;  %2100 = vst.msk [vmem:[%s3872_s3 + $0xf0] sm:$0xf] %vm2039_vm1, %v2533_v12  ;;  %v2474_v15 = vpack.c.bf16 %v1444_v13, %v1444_v13  ;;  %v2534_v16 = vpack.c.bf16 %v1504_v14, %v1504_v14 }
 0x100   :  { %v973_v18 = vpop.f32.mrb[4].mxu0  ;;  %v1213_v19 = vpop.f32.mrb[4].mxu1 }
 0x101   :  { %2041 = vst.msk [vmem:[%s3872_s3 + $0x4] sm:$0xf] %vm2039_vm1, %v2474_v15  ;;  %2101 = vst.msk [vmem:[%s3872_s3 + $0xf4] sm:$0xf] %vm2039_vm1, %v2534_v16  ;;  %v974_v20 = vadd.f32 %v3235_v56, %v973_v18  ;;  %v1214_v21 = vadd.f32 %v3235_v56, %v1213_v19  ;;  %v975_v22 = vpop.f32.mrb[5].mxu0  ;;  %v1215_v23 = vpop.f32.mrb[5].mxu1 }
 0x102   :  { %v976_v26 = vpop.f32.mrb[6].mxu0  ;;  %v1216_v27 = vpop.f32.mrb[6].mxu1 }
 0x103   :  { %v1445_v30 = vmax.f32 %v974_v20, 0.0  ;;  %v1505_v31 = vmax.f32 %v1214_v21, 0.0  ;;  %v977_v32 = vadd.f32 %v3235_v56, %v976_v26  ;;  %v1217_v33 = vadd.f32 %v3235_v56, %v1216_v27  ;;  %v978_v34 = vpop.f32.mrb[7].mxu0  ;;  %v1218_v35 = vpop.f32.mrb[7].mxu1 }
 0x105   :  { %v2475_v36 = vpack.c.bf16 %v1445_v30, %v1445_v30  ;;  %v2535_v37 = vpack.c.bf16 %v1505_v31, %v1505_v31  ;;  %v1446_v38 = vmax.f32 %v977_v32, 0.0  ;;  %v1506_v39 = vmax.f32 %v1217_v33, 0.0  ;;  %1188 = vmatmul.mubr.bf16.gmra.mrb[112].mxu0 %v2792_v24  ;;  %1428 = vmatmul.mubr.bf16.gmra.mrb[112].mxu1 %v2793_v25 }
 0x106   :  { %2323 = vmatprep.mubr.msk.bf16.mxu0 %vm750_vm0, %v2794_v28  ;;  %2353 = vmatprep.mubr.msk.bf16.mxu1 %vm750_vm0, %v2284_v29 }
 0x107   :  { %2042 = vst.msk [vmem:[%s3872_s3 + $0x8] sm:$0xf] %vm2039_vm1, %v2475_v36  ;;  %2102 = vst.msk [vmem:[%s3872_s3 + $0xf8] sm:$0xf] %vm2039_vm1, %v2535_v37  ;;  %v2476_v40 = vpack.c.bf16 %v1446_v38, %v1446_v38  ;;  %v2536_v41 = vpack.c.bf16 %v1506_v39, %v1506_v39 }
 0x108   :  { %v981_v42 = vpop.f32.mrb[8].mxu0  ;;  %v1221_v43 = vpop.f32.mrb[8].mxu1 }
 0x109   :  { %2043 = vst.msk [vmem:[%s3872_s3 + $0xc] sm:$0xf] %vm2039_vm1, %v2476_v40  ;;  %2103 = vst.msk [vmem:[%s3872_s3 + $0xfc] sm:$0xf] %vm2039_vm1, %v2536_v41  ;;  %v982_v44 = vadd.f32 %v3235_v56, %v981_v42  ;;  %v1222_v45 = vadd.f32 %v3235_v56, %v1221_v43  ;;  %v983_v46 = vpop.f32.mrb[9].mxu0  ;;  %v1223_v47 = vpop.f32.mrb[9].mxu1 }
 0x10a   :  { %v984_v50 = vpop.f32.mrb[10].mxu0  ;;  %v1224_v51 = vpop.f32.mrb[10].mxu1 }
 0x10b   :  { %v1447_v52 = vmax.f32 %v982_v44, 0.0  ;;  %v1507_v53 = vmax.f32 %v1222_v45, 0.0  ;;  %v985_v54 = vadd.f32 %v3235_v56, %v984_v50  ;;  %v1225_v55 = vadd.f32 %v3235_v56, %v1224_v51  ;;  %v986_v57 = vpop.f32.mrb[11].mxu0  ;;  %v1226_v58 = vpop.f32.mrb[11].mxu1 }
 0x10d   :  { %v2477_v59 = vpack.c.bf16 %v1447_v52, %v1447_v52  ;;  %v2537_v60 = vpack.c.bf16 %v1507_v53, %v1507_v53  ;;  %v1448_v61 = vmax.f32 %v985_v54, 0.0  ;;  %v1508_v62 = vmax.f32 %v1225_v55, 0.0  ;;  %1196 = vmatmul.mubr.bf16.gmra.mrb[116].mxu0 %v2797_v48  ;;  %1436 = vmatmul.mubr.bf16.gmra.mrb[116].mxu1 %v2283_v49 }
 0x10f   :  { %2044 = vst.msk [vmem:[%s3872_s3 + $0x10] sm:$0xf] %vm2039_vm1, %v2477_v59  ;;  %2104 = vst.msk [vmem:[%s3872_s3 + $0x100] sm:$0xf] %vm2039_vm1, %v2537_v60  ;;  %v2478_v63 = vpack.c.bf16 %v1448_v61, %v1448_v61  ;;  %v2538_v0 = vpack.c.bf16 %v1508_v62, %v1508_v62 }
 0x110   :  { %v989_v1 = vpop.f32.mrb[12].mxu0  ;;  %v1229_v2 = vpop.f32.mrb[12].mxu1 }
 0x111   :  { %2045 = vst.msk [vmem:[%s3872_s3 + $0x14] sm:$0xf] %vm2039_vm1, %v2478_v63  ;;  %2105 = vst.msk [vmem:[%s3872_s3 + $0x104] sm:$0xf] %vm2039_vm1, %v2538_v0  ;;  %v990_v3 = vadd.f32 %v3235_v56, %v989_v1  ;;  %v1230_v4 = vadd.f32 %v3235_v56, %v1229_v2  ;;  %v991_v5 = vpop.f32.mrb[13].mxu0  ;;  %v1231_v6 = vpop.f32.mrb[13].mxu1 }
 0x112   :  { %v992_v7 = vpop.f32.mrb[14].mxu0  ;;  %v1232_v8 = vpop.f32.mrb[14].mxu1 }
 0x113   :  { %v1449_v9 = vmax.f32 %v990_v3, 0.0  ;;  %v1509_v10 = vmax.f32 %v1230_v4, 0.0  ;;  %v993_v11 = vadd.f32 %v3235_v56, %v992_v7  ;;  %v1233_v12 = vadd.f32 %v3235_v56, %v1232_v8  ;;  %v994_v13 = vpop.f32.mrb[15].mxu0  ;;  %v1234_v14 = vpop.f32.mrb[15].mxu1 }
 0x115   :  { %v2479_v15 = vpack.c.bf16 %v1449_v9, %v1449_v9  ;;  %v2539_v16 = vpack.c.bf16 %v1509_v10, %v1509_v10  ;;  %v1450_v17 = vmax.f32 %v993_v11, 0.0  ;;  %v1510_v18 = vmax.f32 %v1233_v12, 0.0 }
 0x117   :  { %2046 = vst.msk [vmem:[%s3872_s3 + $0x18] sm:$0xf] %vm2039_vm1, %v2479_v15  ;;  %2106 = vst.msk [vmem:[%s3872_s3 + $0x108] sm:$0xf] %vm2039_vm1, %v2539_v16  ;;  %v2480_v19 = vpack.c.bf16 %v1450_v17, %v1450_v17  ;;  %v2540_v20 = vpack.c.bf16 %v1510_v18, %v1510_v18 }
 0x118   :  { %v997_v21 = vpop.f32.mrb[16].mxu0  ;;  %v1237_v22 = vpop.f32.mrb[16].mxu1 }
 0x119   :  { %2047 = vst.msk [vmem:[%s3872_s3 + $0x1c] sm:$0xf] %vm2039_vm1, %v2480_v19  ;;  %2107 = vst.msk [vmem:[%s3872_s3 + $0x10c] sm:$0xf] %vm2039_vm1, %v2540_v20  ;;  %v998_v23 = vadd.f32 %v3235_v56, %v997_v21  ;;  %v1238_v24 = vadd.f32 %v3235_v56, %v1237_v22  ;;  %v999_v25 = vpop.f32.mrb[17].mxu0  ;;  %v1239_v26 = vpop.f32.mrb[17].mxu1 }
 0x11a   :  { %v1000_v27 = vpop.f32.mrb[18].mxu0  ;;  %v1240_v28 = vpop.f32.mrb[18].mxu1 }
 0x11b   :  { %v1451_v29 = vmax.f32 %v998_v23, 0.0  ;;  %v1511_v30 = vmax.f32 %v1238_v24, 0.0  ;;  %v1001_v31 = vadd.f32 %v3235_v56, %v1000_v27  ;;  %v1241_v32 = vadd.f32 %v3235_v56, %v1240_v28  ;;  %v1002_v33 = vpop.f32.mrb[19].mxu0  ;;  %v1242_v34 = vpop.f32.mrb[19].mxu1 }
 0x11d   :  { %v2481_v35 = vpack.c.bf16 %v1451_v29, %v1451_v29  ;;  %v2541_v36 = vpack.c.bf16 %v1511_v30, %v1511_v30  ;;  %v1452_v37 = vmax.f32 %v1001_v31, 0.0  ;;  %v1512_v38 = vmax.f32 %v1241_v32, 0.0 }
 0x11f   :  { %2048 = vst.msk [vmem:[%s3872_s3 + $0x20] sm:$0xf] %vm2039_vm1, %v2481_v35  ;;  %2108 = vst.msk [vmem:[%s3872_s3 + $0x110] sm:$0xf] %vm2039_vm1, %v2541_v36  ;;  %v2482_v39 = vpack.c.bf16 %v1452_v37, %v1452_v37  ;;  %v2542_v40 = vpack.c.bf16 %v1512_v38, %v1512_v38 }
 0x120   :  { %v1005_v41 = vpop.f32.mrb[20].mxu0  ;;  %v1245_v42 = vpop.f32.mrb[20].mxu1 }
 0x121   :  { %2049 = vst.msk [vmem:[%s3872_s3 + $0x24] sm:$0xf] %vm2039_vm1, %v2482_v39  ;;  %2109 = vst.msk [vmem:[%s3872_s3 + $0x114] sm:$0xf] %vm2039_vm1, %v2542_v40  ;;  %v1006_v43 = vadd.f32 %v3235_v56, %v1005_v41  ;;  %v1246_v44 = vadd.f32 %v3235_v56, %v1245_v42  ;;  %v1007_v45 = vpop.f32.mrb[21].mxu0  ;;  %v1247_v46 = vpop.f32.mrb[21].mxu1 }
 0x122   :  { %v1008_v47 = vpop.f32.mrb[22].mxu0  ;;  %v1248_v48 = vpop.f32.mrb[22].mxu1 }
 0x123   :  { %v1453_v49 = vmax.f32 %v1006_v43, 0.0  ;;  %v1513_v50 = vmax.f32 %v1246_v44, 0.0  ;;  %v1009_v51 = vadd.f32 %v3235_v56, %v1008_v47  ;;  %v1249_v52 = vadd.f32 %v3235_v56, %v1248_v48  ;;  %v1010_v53 = vpop.f32.mrb[23].mxu0  ;;  %v1250_v54 = vpop.f32.mrb[23].mxu1 }
 0x125   :  { %v2483_v55 = vpack.c.bf16 %v1453_v49, %v1453_v49  ;;  %v2543_v57 = vpack.c.bf16 %v1513_v50, %v1513_v50  ;;  %v1454_v58 = vmax.f32 %v1009_v51, 0.0  ;;  %v1514_v59 = vmax.f32 %v1249_v52, 0.0 }
 0x127   :  { %2050 = vst.msk [vmem:[%s3872_s3 + $0x28] sm:$0xf] %vm2039_vm1, %v2483_v55  ;;  %2110 = vst.msk [vmem:[%s3872_s3 + $0x118] sm:$0xf] %vm2039_vm1, %v2543_v57  ;;  %v2484_v60 = vpack.c.bf16 %v1454_v58, %v1454_v58  ;;  %v2544_v61 = vpack.c.bf16 %v1514_v59, %v1514_v59 }
 0x128   :  { %v1013_v62 = vpop.f32.mrb[24].mxu0  ;;  %v1253_v63 = vpop.f32.mrb[24].mxu1 }
 0x129   :  { %2051 = vst.msk [vmem:[%s3872_s3 + $0x2c] sm:$0xf] %vm2039_vm1, %v2484_v60  ;;  %2111 = vst.msk [vmem:[%s3872_s3 + $0x11c] sm:$0xf] %vm2039_vm1, %v2544_v61  ;;  %v1014_v0 = vadd.f32 %v3235_v56, %v1013_v62  ;;  %v1254_v1 = vadd.f32 %v3235_v56, %v1253_v63  ;;  %v1015_v2 = vpop.f32.mrb[25].mxu0  ;;  %v1255_v3 = vpop.f32.mrb[25].mxu1 }
 0x12a   :  { %v1016_v4 = vpop.f32.mrb[26].mxu0  ;;  %v1256_v5 = vpop.f32.mrb[26].mxu1 }
 0x12b   :  { %v1455_v6 = vmax.f32 %v1014_v0, 0.0  ;;  %v1515_v7 = vmax.f32 %v1254_v1, 0.0  ;;  %v1017_v8 = vadd.f32 %v3235_v56, %v1016_v4  ;;  %v1257_v9 = vadd.f32 %v3235_v56, %v1256_v5  ;;  %v1018_v10 = vpop.f32.mrb[27].mxu0  ;;  %v1258_v11 = vpop.f32.mrb[27].mxu1 }
 0x12d   :  { %v2485_v12 = vpack.c.bf16 %v1455_v6, %v1455_v6  ;;  %v2545_v13 = vpack.c.bf16 %v1515_v7, %v1515_v7  ;;  %v1456_v14 = vmax.f32 %v1017_v8, 0.0  ;;  %v1516_v15 = vmax.f32 %v1257_v9, 0.0 }
 0x12f   :  { %2052 = vst.msk [vmem:[%s3872_s3 + $0x30] sm:$0xf] %vm2039_vm1, %v2485_v12  ;;  %2112 = vst.msk [vmem:[%s3872_s3 + $0x120] sm:$0xf] %vm2039_vm1, %v2545_v13  ;;  %v2486_v16 = vpack.c.bf16 %v1456_v14, %v1456_v14  ;;  %v2546_v17 = vpack.c.bf16 %v1516_v15, %v1516_v15 }
 0x130   :  { %v1021_v18 = vpop.f32.mrb[28].mxu0  ;;  %v1261_v19 = vpop.f32.mrb[28].mxu1 }
 0x131   :  { %2053 = vst.msk [vmem:[%s3872_s3 + $0x34] sm:$0xf] %vm2039_vm1, %v2486_v16  ;;  %2113 = vst.msk [vmem:[%s3872_s3 + $0x124] sm:$0xf] %vm2039_vm1, %v2546_v17  ;;  %v1022_v20 = vadd.f32 %v3235_v56, %v1021_v18  ;;  %v1262_v21 = vadd.f32 %v3235_v56, %v1261_v19  ;;  %v1023_v22 = vpop.f32.mrb[29].mxu0  ;;  %v1263_v23 = vpop.f32.mrb[29].mxu1 }
 0x132   :  { %v1024_v24 = vpop.f32.mrb[30].mxu0  ;;  %v1264_v25 = vpop.f32.mrb[30].mxu1 }
 0x133   :  { %v1457_v26 = vmax.f32 %v1022_v20, 0.0  ;;  %v1517_v27 = vmax.f32 %v1262_v21, 0.0  ;;  %v1025_v28 = vadd.f32 %v3235_v56, %v1024_v24  ;;  %v1265_v29 = vadd.f32 %v3235_v56, %v1264_v25  ;;  %v1026_v30 = vpop.f32.mrb[31].mxu0  ;;  %v1266_v31 = vpop.f32.mrb[31].mxu1 }
 0x135   :  { %v2487_v32 = vpack.c.bf16 %v1457_v26, %v1457_v26  ;;  %v2547_v33 = vpack.c.bf16 %v1517_v27, %v1517_v27  ;;  %v1458_v34 = vmax.f32 %v1025_v28, 0.0  ;;  %v1518_v35 = vmax.f32 %v1265_v29, 0.0 }
 0x137   :  { %2054 = vst.msk [vmem:[%s3872_s3 + $0x38] sm:$0xf] %vm2039_vm1, %v2487_v32  ;;  %2114 = vst.msk [vmem:[%s3872_s3 + $0x128] sm:$0xf] %vm2039_vm1, %v2547_v33  ;;  %v2488_v36 = vpack.c.bf16 %v1458_v34, %v1458_v34  ;;  %v2548_v37 = vpack.c.bf16 %v1518_v35, %v1518_v35 }
 0x138   :  { %v1029_v38 = vpop.f32.mrb[32].mxu0  ;;  %v1269_v39 = vpop.f32.mrb[32].mxu1 }
 0x139   :  { %2055 = vst.msk [vmem:[%s3872_s3 + $0x3c] sm:$0xf] %vm2039_vm1, %v2488_v36  ;;  %2115 = vst.msk [vmem:[%s3872_s3 + $0x12c] sm:$0xf] %vm2039_vm1, %v2548_v37  ;;  %v1030_v40 = vadd.f32 %v3235_v56, %v1029_v38  ;;  %v1270_v41 = vadd.f32 %v3235_v56, %v1269_v39  ;;  %v1031_v42 = vpop.f32.mrb[33].mxu0  ;;  %v1271_v43 = vpop.f32.mrb[33].mxu1 }
 0x13a   :  { %v1032_v44 = vpop.f32.mrb[34].mxu0  ;;  %v1272_v45 = vpop.f32.mrb[34].mxu1 }
 0x13b   :  { %v1459_v46 = vmax.f32 %v1030_v40, 0.0  ;;  %v1519_v47 = vmax.f32 %v1270_v41, 0.0  ;;  %v1033_v48 = vadd.f32 %v3235_v56, %v1032_v44  ;;  %v1273_v49 = vadd.f32 %v3235_v56, %v1272_v45  ;;  %v1034_v50 = vpop.f32.mrb[35].mxu0  ;;  %v1274_v51 = vpop.f32.mrb[35].mxu1 }
 0x13d   :  { %v2489_v52 = vpack.c.bf16 %v1459_v46, %v1459_v46  ;;  %v2549_v53 = vpack.c.bf16 %v1519_v47, %v1519_v47  ;;  %v1460_v54 = vmax.f32 %v1033_v48, 0.0  ;;  %v1520_v55 = vmax.f32 %v1273_v49, 0.0 }
 0x13f   :  { %2056 = vst.msk [vmem:[%s3872_s3 + $0x40] sm:$0xf] %vm2039_vm1, %v2489_v52  ;;  %2116 = vst.msk [vmem:[%s3872_s3 + $0x130] sm:$0xf] %vm2039_vm1, %v2549_v53  ;;  %v2490_v57 = vpack.c.bf16 %v1460_v54, %v1460_v54  ;;  %v2550_v58 = vpack.c.bf16 %v1520_v55, %v1520_v55 }
 0x140   :  { %v1037_v59 = vpop.f32.mrb[36].mxu0  ;;  %v1277_v60 = vpop.f32.mrb[36].mxu1 }
 0x141   :  { %2057 = vst.msk [vmem:[%s3872_s3 + $0x44] sm:$0xf] %vm2039_vm1, %v2490_v57  ;;  %2117 = vst.msk [vmem:[%s3872_s3 + $0x134] sm:$0xf] %vm2039_vm1, %v2550_v58  ;;  %v1038_v61 = vadd.f32 %v3235_v56, %v1037_v59  ;;  %v1278_v62 = vadd.f32 %v3235_v56, %v1277_v60  ;;  %v1039_v63 = vpop.f32.mrb[37].mxu0  ;;  %v1279_v0 = vpop.f32.mrb[37].mxu1 }
 0x142   :  { %v1040_v1 = vpop.f32.mrb[38].mxu0  ;;  %v1280_v2 = vpop.f32.mrb[38].mxu1 }
 0x143   :  { %v1461_v3 = vmax.f32 %v1038_v61, 0.0  ;;  %v1521_v4 = vmax.f32 %v1278_v62, 0.0  ;;  %v1041_v5 = vadd.f32 %v3235_v56, %v1040_v1  ;;  %v1281_v6 = vadd.f32 %v3235_v56, %v1280_v2  ;;  %v1042_v7 = vpop.f32.mrb[39].mxu0  ;;  %v1282_v8 = vpop.f32.mrb[39].mxu1 }
 0x145   :  { %v2491_v9 = vpack.c.bf16 %v1461_v3, %v1461_v3  ;;  %v2551_v10 = vpack.c.bf16 %v1521_v4, %v1521_v4  ;;  %v1462_v11 = vmax.f32 %v1041_v5, 0.0  ;;  %v1522_v12 = vmax.f32 %v1281_v6, 0.0 }
 0x147   :  { %2058 = vst.msk [vmem:[%s3872_s3 + $0x48] sm:$0xf] %vm2039_vm1, %v2491_v9  ;;  %2118 = vst.msk [vmem:[%s3872_s3 + $0x138] sm:$0xf] %vm2039_vm1, %v2551_v10  ;;  %v2492_v13 = vpack.c.bf16 %v1462_v11, %v1462_v11  ;;  %v2552_v14 = vpack.c.bf16 %v1522_v12, %v1522_v12 }
 0x148   :  { %v1045_v15 = vpop.f32.mrb[40].mxu0  ;;  %v1285_v16 = vpop.f32.mrb[40].mxu1 }
 0x149   :  { %2059 = vst.msk [vmem:[%s3872_s3 + $0x4c] sm:$0xf] %vm2039_vm1, %v2492_v13  ;;  %2119 = vst.msk [vmem:[%s3872_s3 + $0x13c] sm:$0xf] %vm2039_vm1, %v2552_v14  ;;  %v1046_v17 = vadd.f32 %v3235_v56, %v1045_v15  ;;  %v1286_v18 = vadd.f32 %v3235_v56, %v1285_v16  ;;  %v1047_v19 = vpop.f32.mrb[41].mxu0  ;;  %v1287_v20 = vpop.f32.mrb[41].mxu1 }
 0x14a   :  { %v1048_v21 = vpop.f32.mrb[42].mxu0  ;;  %v1288_v22 = vpop.f32.mrb[42].mxu1 }
 0x14b   :  { %v1463_v23 = vmax.f32 %v1046_v17, 0.0  ;;  %v1523_v24 = vmax.f32 %v1286_v18, 0.0  ;;  %v1049_v25 = vadd.f32 %v3235_v56, %v1048_v21  ;;  %v1289_v26 = vadd.f32 %v3235_v56, %v1288_v22  ;;  %v1050_v27 = vpop.f32.mrb[43].mxu0  ;;  %v1290_v28 = vpop.f32.mrb[43].mxu1 }
 0x14d   :  { %v2493_v29 = vpack.c.bf16 %v1463_v23, %v1463_v23  ;;  %v2553_v30 = vpack.c.bf16 %v1523_v24, %v1523_v24  ;;  %v1464_v31 = vmax.f32 %v1049_v25, 0.0  ;;  %v1524_v32 = vmax.f32 %v1289_v26, 0.0 }
 0x14f   :  { %2060 = vst.msk [vmem:[%s3872_s3 + $0x50] sm:$0xf] %vm2039_vm1, %v2493_v29  ;;  %2120 = vst.msk [vmem:[%s3872_s3 + $0x140] sm:$0xf] %vm2039_vm1, %v2553_v30  ;;  %v2494_v33 = vpack.c.bf16 %v1464_v31, %v1464_v31  ;;  %v2554_v34 = vpack.c.bf16 %v1524_v32, %v1524_v32 }
 0x150   :  { %v1053_v35 = vpop.f32.mrb[44].mxu0  ;;  %v1293_v36 = vpop.f32.mrb[44].mxu1 }
 0x151   :  { %2061 = vst.msk [vmem:[%s3872_s3 + $0x54] sm:$0xf] %vm2039_vm1, %v2494_v33  ;;  %2121 = vst.msk [vmem:[%s3872_s3 + $0x144] sm:$0xf] %vm2039_vm1, %v2554_v34  ;;  %v1054_v37 = vadd.f32 %v3235_v56, %v1053_v35  ;;  %v1294_v38 = vadd.f32 %v3235_v56, %v1293_v36  ;;  %v1055_v39 = vpop.f32.mrb[45].mxu0  ;;  %v1295_v40 = vpop.f32.mrb[45].mxu1 }
 0x152   :  { %v1056_v41 = vpop.f32.mrb[46].mxu0  ;;  %v1296_v42 = vpop.f32.mrb[46].mxu1 }
 0x153   :  { %v1465_v43 = vmax.f32 %v1054_v37, 0.0  ;;  %v1525_v44 = vmax.f32 %v1294_v38, 0.0  ;;  %v1057_v45 = vadd.f32 %v3235_v56, %v1056_v41  ;;  %v1297_v46 = vadd.f32 %v3235_v56, %v1296_v42  ;;  %v1058_v47 = vpop.f32.mrb[47].mxu0  ;;  %v1298_v48 = vpop.f32.mrb[47].mxu1 }
 0x155   :  { %v2495_v49 = vpack.c.bf16 %v1465_v43, %v1465_v43  ;;  %v2555_v50 = vpack.c.bf16 %v1525_v44, %v1525_v44  ;;  %v1466_v51 = vmax.f32 %v1057_v45, 0.0  ;;  %v1526_v52 = vmax.f32 %v1297_v46, 0.0 }
 0x157   :  { %2062 = vst.msk [vmem:[%s3872_s3 + $0x58] sm:$0xf] %vm2039_vm1, %v2495_v49  ;;  %2122 = vst.msk [vmem:[%s3872_s3 + $0x148] sm:$0xf] %vm2039_vm1, %v2555_v50  ;;  %v2496_v53 = vpack.c.bf16 %v1466_v51, %v1466_v51  ;;  %v2556_v54 = vpack.c.bf16 %v1526_v52, %v1526_v52 }
 0x158   :  { %v1061_v55 = vpop.f32.mrb[48].mxu0  ;;  %v1301_v57 = vpop.f32.mrb[48].mxu1 }
 0x159   :  { %2063 = vst.msk [vmem:[%s3872_s3 + $0x5c] sm:$0xf] %vm2039_vm1, %v2496_v53  ;;  %2123 = vst.msk [vmem:[%s3872_s3 + $0x14c] sm:$0xf] %vm2039_vm1, %v2556_v54  ;;  %v1062_v58 = vadd.f32 %v3235_v56, %v1061_v55  ;;  %v1302_v59 = vadd.f32 %v3235_v56, %v1301_v57  ;;  %v1063_v60 = vpop.f32.mrb[49].mxu0  ;;  %v1303_v61 = vpop.f32.mrb[49].mxu1 }
 0x15a   :  { %v1064_v62 = vpop.f32.mrb[50].mxu0  ;;  %v1304_v63 = vpop.f32.mrb[50].mxu1 }
 0x15b   :  { %v1467_v0 = vmax.f32 %v1062_v58, 0.0  ;;  %v1527_v1 = vmax.f32 %v1302_v59, 0.0  ;;  %v1065_v2 = vadd.f32 %v3235_v56, %v1064_v62  ;;  %v1305_v3 = vadd.f32 %v3235_v56, %v1304_v63  ;;  %v1066_v4 = vpop.f32.mrb[51].mxu0  ;;  %v1306_v5 = vpop.f32.mrb[51].mxu1 }
 0x15d   :  { %v2497_v6 = vpack.c.bf16 %v1467_v0, %v1467_v0  ;;  %v2557_v7 = vpack.c.bf16 %v1527_v1, %v1527_v1  ;;  %v1468_v8 = vmax.f32 %v1065_v2, 0.0  ;;  %v1528_v9 = vmax.f32 %v1305_v3, 0.0 }
 0x15f   :  { %2064 = vst.msk [vmem:[%s3872_s3 + $0x60] sm:$0xf] %vm2039_vm1, %v2497_v6  ;;  %2124 = vst.msk [vmem:[%s3872_s3 + $0x150] sm:$0xf] %vm2039_vm1, %v2557_v7  ;;  %v2498_v10 = vpack.c.bf16 %v1468_v8, %v1468_v8  ;;  %v2558_v11 = vpack.c.bf16 %v1528_v9, %v1528_v9 }
 0x160   :  { %v1069_v12 = vpop.f32.mrb[52].mxu0  ;;  %v1309_v13 = vpop.f32.mrb[52].mxu1 }
 0x161   :  { %2065 = vst.msk [vmem:[%s3872_s3 + $0x64] sm:$0xf] %vm2039_vm1, %v2498_v10  ;;  %2125 = vst.msk [vmem:[%s3872_s3 + $0x154] sm:$0xf] %vm2039_vm1, %v2558_v11  ;;  %v1070_v14 = vadd.f32 %v3235_v56, %v1069_v12  ;;  %v1310_v15 = vadd.f32 %v3235_v56, %v1309_v13  ;;  %v1071_v16 = vpop.f32.mrb[53].mxu0  ;;  %v1311_v17 = vpop.f32.mrb[53].mxu1 }
 0x162   :  { %v1072_v18 = vpop.f32.mrb[54].mxu0  ;;  %v1312_v19 = vpop.f32.mrb[54].mxu1 }
 0x163   :  { %v1469_v20 = vmax.f32 %v1070_v14, 0.0  ;;  %v1529_v21 = vmax.f32 %v1310_v15, 0.0  ;;  %v1073_v22 = vadd.f32 %v3235_v56, %v1072_v18  ;;  %v1313_v23 = vadd.f32 %v3235_v56, %v1312_v19  ;;  %v1074_v24 = vpop.f32.mrb[55].mxu0  ;;  %v1314_v25 = vpop.f32.mrb[55].mxu1 }
 0x165   :  { %v2499_v26 = vpack.c.bf16 %v1469_v20, %v1469_v20  ;;  %v2559_v27 = vpack.c.bf16 %v1529_v21, %v1529_v21  ;;  %v1470_v28 = vmax.f32 %v1073_v22, 0.0  ;;  %v1530_v29 = vmax.f32 %v1313_v23, 0.0 }
 0x167   :  { %2066 = vst.msk [vmem:[%s3872_s3 + $0x68] sm:$0xf] %vm2039_vm1, %v2499_v26  ;;  %2126 = vst.msk [vmem:[%s3872_s3 + $0x158] sm:$0xf] %vm2039_vm1, %v2559_v27  ;;  %v2500_v30 = vpack.c.bf16 %v1470_v28, %v1470_v28  ;;  %v2560_v31 = vpack.c.bf16 %v1530_v29, %v1530_v29 }
 0x168   :  { %v1077_v32 = vpop.f32.mrb[56].mxu0  ;;  %v1317_v33 = vpop.f32.mrb[56].mxu1 }
 0x169   :  { %2067 = vst.msk [vmem:[%s3872_s3 + $0x6c] sm:$0xf] %vm2039_vm1, %v2500_v30  ;;  %2127 = vst.msk [vmem:[%s3872_s3 + $0x15c] sm:$0xf] %vm2039_vm1, %v2560_v31  ;;  %v1078_v34 = vadd.f32 %v3235_v56, %v1077_v32  ;;  %v1318_v35 = vadd.f32 %v3235_v56, %v1317_v33  ;;  %v1079_v36 = vpop.f32.mrb[57].mxu0  ;;  %v1319_v37 = vpop.f32.mrb[57].mxu1 }
 0x16a   :  { %v1080_v38 = vpop.f32.mrb[58].mxu0  ;;  %v1320_v39 = vpop.f32.mrb[58].mxu1 }
 0x16b   :  { %v1471_v40 = vmax.f32 %v1078_v34, 0.0  ;;  %v1531_v41 = vmax.f32 %v1318_v35, 0.0  ;;  %v1081_v42 = vadd.f32 %v3235_v56, %v1080_v38  ;;  %v1321_v43 = vadd.f32 %v3235_v56, %v1320_v39  ;;  %v1082_v44 = vpop.f32.mrb[59].mxu0  ;;  %v1322_v45 = vpop.f32.mrb[59].mxu1 }
 0x16d   :  { %v2501_v46 = vpack.c.bf16 %v1471_v40, %v1471_v40  ;;  %v2561_v47 = vpack.c.bf16 %v1531_v41, %v1531_v41  ;;  %v1472_v48 = vmax.f32 %v1081_v42, 0.0  ;;  %v1532_v49 = vmax.f32 %v1321_v43, 0.0 }
 0x16f   :  { %2068 = vst.msk [vmem:[%s3872_s3 + $0x70] sm:$0xf] %vm2039_vm1, %v2501_v46  ;;  %2128 = vst.msk [vmem:[%s3872_s3 + $0x160] sm:$0xf] %vm2039_vm1, %v2561_v47  ;;  %v2502_v50 = vpack.c.bf16 %v1472_v48, %v1472_v48  ;;  %v2562_v51 = vpack.c.bf16 %v1532_v49, %v1532_v49 }
 0x170   :  { %v1085_v52 = vpop.f32.mrb[60].mxu0  ;;  %v1325_v53 = vpop.f32.mrb[60].mxu1 }
 0x171   :  { %2069 = vst.msk [vmem:[%s3872_s3 + $0x74] sm:$0xf] %vm2039_vm1, %v2502_v50  ;;  %2129 = vst.msk [vmem:[%s3872_s3 + $0x164] sm:$0xf] %vm2039_vm1, %v2562_v51  ;;  %v1086_v54 = vadd.f32 %v3235_v56, %v1085_v52  ;;  %v1326_v55 = vadd.f32 %v3235_v56, %v1325_v53  ;;  %v1087_v57 = vpop.f32.mrb[61].mxu0  ;;  %v1327_v58 = vpop.f32.mrb[61].mxu1 }
 0x172   :  { %v1088_v59 = vpop.f32.mrb[62].mxu0  ;;  %v1328_v60 = vpop.f32.mrb[62].mxu1 }
 0x173   :  { %v1473_v61 = vmax.f32 %v1086_v54, 0.0  ;;  %v1533_v62 = vmax.f32 %v1326_v55, 0.0  ;;  %v1089_v63 = vadd.f32 %v3235_v56, %v1088_v59  ;;  %v1329_v0 = vadd.f32 %v3235_v56, %v1328_v60  ;;  %v1090_v1 = vpop.f32.mrb[63].mxu0  ;;  %v1330_v2 = vpop.f32.mrb[63].mxu1 }
 0x175   :  { %v2503_v3 = vpack.c.bf16 %v1473_v61, %v1473_v61  ;;  %v2563_v4 = vpack.c.bf16 %v1533_v62, %v1533_v62  ;;  %v1474_v5 = vmax.f32 %v1089_v63, 0.0  ;;  %v1534_v6 = vmax.f32 %v1329_v0, 0.0 }
 0x177   :  { %2070 = vst.msk [vmem:[%s3872_s3 + $0x78] sm:$0xf] %vm2039_vm1, %v2503_v3  ;;  %2130 = vst.msk [vmem:[%s3872_s3 + $0x168] sm:$0xf] %vm2039_vm1, %v2563_v4  ;;  %v2504_v7 = vpack.c.bf16 %v1474_v5, %v1474_v5  ;;  %v2564_v8 = vpack.c.bf16 %v1534_v6, %v1534_v6 }
 0x178   :  { %v1093_v9 = vpop.f32.mrb[64].mxu0  ;;  %v1333_v10 = vpop.f32.mrb[64].mxu1 }
 0x179   :  { %2071 = vst.msk [vmem:[%s3872_s3 + $0x7c] sm:$0xf] %vm2039_vm1, %v2504_v7  ;;  %2131 = vst.msk [vmem:[%s3872_s3 + $0x16c] sm:$0xf] %vm2039_vm1, %v2564_v8  ;;  %v1094_v11 = vadd.f32 %v3235_v56, %v1093_v9  ;;  %v1334_v12 = vadd.f32 %v3235_v56, %v1333_v10  ;;  %v1095_v13 = vpop.f32.mrb[65].mxu0  ;;  %v1335_v14 = vpop.f32.mrb[65].mxu1 }
 0x17a   :  { %v1096_v15 = vpop.f32.mrb[66].mxu0  ;;  %v1336_v16 = vpop.f32.mrb[66].mxu1 }
 0x17b   :  { %v1475_v17 = vmax.f32 %v1094_v11, 0.0  ;;  %v1535_v18 = vmax.f32 %v1334_v12, 0.0  ;;  %v1097_v19 = vadd.f32 %v3235_v56, %v1096_v15  ;;  %v1337_v20 = vadd.f32 %v3235_v56, %v1336_v16  ;;  %v1098_v21 = vpop.f32.mrb[67].mxu0  ;;  %v1338_v22 = vpop.f32.mrb[67].mxu1 }
 0x17d   :  { %v2505_v23 = vpack.c.bf16 %v1475_v17, %v1475_v17  ;;  %v2565_v24 = vpack.c.bf16 %v1535_v18, %v1535_v18  ;;  %v1476_v25 = vmax.f32 %v1097_v19, 0.0  ;;  %v1536_v26 = vmax.f32 %v1337_v20, 0.0 }
 0x17f   :  { %2072 = vst.msk [vmem:[%s3872_s3 + $0x80] sm:$0xf] %vm2039_vm1, %v2505_v23  ;;  %2132 = vst.msk [vmem:[%s3872_s3 + $0x170] sm:$0xf] %vm2039_vm1, %v2565_v24  ;;  %v2506_v27 = vpack.c.bf16 %v1476_v25, %v1476_v25  ;;  %v2566_v28 = vpack.c.bf16 %v1536_v26, %v1536_v26 }
 0x180   :  { %v1101_v29 = vpop.f32.mrb[68].mxu0  ;;  %v1341_v30 = vpop.f32.mrb[68].mxu1 }
 0x181   :  { %2073 = vst.msk [vmem:[%s3872_s3 + $0x84] sm:$0xf] %vm2039_vm1, %v2506_v27  ;;  %2133 = vst.msk [vmem:[%s3872_s3 + $0x174] sm:$0xf] %vm2039_vm1, %v2566_v28  ;;  %v1102_v31 = vadd.f32 %v3235_v56, %v1101_v29  ;;  %v1342_v32 = vadd.f32 %v3235_v56, %v1341_v30  ;;  %v1103_v33 = vpop.f32.mrb[69].mxu0  ;;  %v1343_v34 = vpop.f32.mrb[69].mxu1 }
 0x182   :  { %v1104_v35 = vpop.f32.mrb[70].mxu0  ;;  %v1344_v36 = vpop.f32.mrb[70].mxu1 }
 0x183   :  { %v1477_v37 = vmax.f32 %v1102_v31, 0.0  ;;  %v1537_v38 = vmax.f32 %v1342_v32, 0.0  ;;  %v1105_v39 = vadd.f32 %v3235_v56, %v1104_v35  ;;  %v1345_v40 = vadd.f32 %v3235_v56, %v1344_v36  ;;  %v1106_v41 = vpop.f32.mrb[71].mxu0  ;;  %v1346_v42 = vpop.f32.mrb[71].mxu1  ;;  %v3675_v36 = vld [vmem:[%s3871_s2] ss:$0 sm:$0xff] }
 0x185   :  { %v2507_v43 = vpack.c.bf16 %v1477_v37, %v1477_v37  ;;  %v2567_v44 = vpack.c.bf16 %v1537_v38, %v1537_v38  ;;  %v1478_v45 = vmax.f32 %v1105_v39, 0.0  ;;  %v1538_v46 = vmax.f32 %v1345_v40, 0.0 }
 0x187   :  { %2074 = vst.msk [vmem:[%s3872_s3 + $0x88] sm:$0xf] %vm2039_vm1, %v2507_v43  ;;  %2134 = vst.msk [vmem:[%s3872_s3 + $0x178] sm:$0xf] %vm2039_vm1, %v2567_v44  ;;  %v2508_v47 = vpack.c.bf16 %v1478_v45, %v1478_v45  ;;  %v2568_v48 = vpack.c.bf16 %v1538_v46, %v1538_v46 }
 0x188   :  { %v1109_v49 = vpop.f32.mrb[72].mxu0  ;;  %v1349_v50 = vpop.f32.mrb[72].mxu1 }
 0x189   :  { %2075 = vst.msk [vmem:[%s3872_s3 + $0x8c] sm:$0xf] %vm2039_vm1, %v2508_v47  ;;  %2135 = vst.msk [vmem:[%s3872_s3 + $0x17c] sm:$0xf] %vm2039_vm1, %v2568_v48  ;;  %v1110_v51 = vadd.f32 %v3235_v56, %v1109_v49  ;;  %v1350_v52 = vadd.f32 %v3235_v56, %v1349_v50  ;;  %v1111_v53 = vpop.f32.mrb[73].mxu0  ;;  %v1351_v54 = vpop.f32.mrb[73].mxu1 }
 0x18a   :  { %v1112_v55 = vpop.f32.mrb[74].mxu0  ;;  %v1352_v57 = vpop.f32.mrb[74].mxu1 }
 0x18b   :  { %v1479_v58 = vmax.f32 %v1110_v51, 0.0  ;;  %v1539_v59 = vmax.f32 %v1350_v52, 0.0  ;;  %v1113_v60 = vadd.f32 %v3235_v56, %v1112_v55  ;;  %v1353_v61 = vadd.f32 %v3235_v56, %v1352_v57  ;;  %v1114_v62 = vpop.f32.mrb[75].mxu0  ;;  %v1354_v63 = vpop.f32.mrb[75].mxu1 }
 0x18d   :  { %v2509_v0 = vpack.c.bf16 %v1479_v58, %v1479_v58  ;;  %v2569_v1 = vpack.c.bf16 %v1539_v59, %v1539_v59  ;;  %v1480_v2 = vmax.f32 %v1113_v60, 0.0  ;;  %v1540_v3 = vmax.f32 %v1353_v61, 0.0 }
 0x18f   :  { %2076 = vst.msk [vmem:[%s3872_s3 + $0x90] sm:$0xf] %vm2039_vm1, %v2509_v0  ;;  %2136 = vst.msk [vmem:[%s3872_s3 + $0x180] sm:$0xf] %vm2039_vm1, %v2569_v1  ;;  %v2510_v4 = vpack.c.bf16 %v1480_v2, %v1480_v2  ;;  %v2570_v5 = vpack.c.bf16 %v1540_v3, %v1540_v3 }
 0x190   :  { %v1117_v6 = vpop.f32.mrb[76].mxu0  ;;  %v1357_v7 = vpop.f32.mrb[76].mxu1 }
 0x191   :  { %2077 = vst.msk [vmem:[%s3872_s3 + $0x94] sm:$0xf] %vm2039_vm1, %v2510_v4  ;;  %2137 = vst.msk [vmem:[%s3872_s3 + $0x184] sm:$0xf] %vm2039_vm1, %v2570_v5  ;;  %v1118_v8 = vadd.f32 %v3235_v56, %v1117_v6  ;;  %v1358_v9 = vadd.f32 %v3235_v56, %v1357_v7  ;;  %v1119_v10 = vpop.f32.mrb[77].mxu0  ;;  %v1359_v11 = vpop.f32.mrb[77].mxu1 }
 0x192   :  { %v1120_v12 = vpop.f32.mrb[78].mxu0  ;;  %v1360_v13 = vpop.f32.mrb[78].mxu1 }
 0x193   :  { %v1481_v14 = vmax.f32 %v1118_v8, 0.0  ;;  %v1541_v15 = vmax.f32 %v1358_v9, 0.0  ;;  %v1121_v16 = vadd.f32 %v3235_v56, %v1120_v12  ;;  %v1361_v17 = vadd.f32 %v3235_v56, %v1360_v13  ;;  %v1122_v18 = vpop.f32.mrb[79].mxu0  ;;  %v1362_v19 = vpop.f32.mrb[79].mxu1 }
 0x195   :  { %v2511_v20 = vpack.c.bf16 %v1481_v14, %v1481_v14  ;;  %v2571_v21 = vpack.c.bf16 %v1541_v15, %v1541_v15  ;;  %v1482_v22 = vmax.f32 %v1121_v16, 0.0  ;;  %v1542_v23 = vmax.f32 %v1361_v17, 0.0 }
 0x197   :  { %2078 = vst.msk [vmem:[%s3872_s3 + $0x98] sm:$0xf] %vm2039_vm1, %v2511_v20  ;;  %2138 = vst.msk [vmem:[%s3872_s3 + $0x188] sm:$0xf] %vm2039_vm1, %v2571_v21  ;;  %v2512_v24 = vpack.c.bf16 %v1482_v22, %v1482_v22  ;;  %v2572_v25 = vpack.c.bf16 %v1542_v23, %v1542_v23 }
 0x198   :  { %v1125_v26 = vpop.f32.mrb[80].mxu0  ;;  %v1365_v27 = vpop.f32.mrb[80].mxu1 }
 0x199   :  { %2079 = vst.msk [vmem:[%s3872_s3 + $0x9c] sm:$0xf] %vm2039_vm1, %v2512_v24  ;;  %2139 = vst.msk [vmem:[%s3872_s3 + $0x18c] sm:$0xf] %vm2039_vm1, %v2572_v25  ;;  %v1126_v28 = vadd.f32 %v3235_v56, %v1125_v26  ;;  %v1366_v29 = vadd.f32 %v3235_v56, %v1365_v27  ;;  %v1127_v30 = vpop.f32.mrb[81].mxu0  ;;  %v1367_v31 = vpop.f32.mrb[81].mxu1 }
 0x19a   :  { %v1128_v32 = vpop.f32.mrb[82].mxu0  ;;  %v1368_v33 = vpop.f32.mrb[82].mxu1 }
 0x19b   :  { %v1483_v34 = vmax.f32 %v1126_v28, 0.0  ;;  %v1543_v35 = vmax.f32 %v1366_v29, 0.0  ;;  %v1129_v37 = vadd.f32 %v3675_v36, %v1128_v32  ;;  %v1369_v38 = vadd.f32 %v3675_v36, %v1368_v33  ;;  %v1130_v39 = vpop.f32.mrb[83].mxu0  ;;  %v1370_v40 = vpop.f32.mrb[83].mxu1 }
 0x19d   :  { %v2513_v41 = vpack.c.bf16 %v1483_v34, %v1483_v34  ;;  %v2573_v42 = vpack.c.bf16 %v1543_v35, %v1543_v35  ;;  %v1484_v56 = vmax.f32 %v1129_v37, 0.0  ;;  %v1544_v43 = vmax.f32 %v1369_v38, 0.0 }
 0x19f   :  { %2080 = vst.msk [vmem:[%s3872_s3 + $0xa0] sm:$0xf] %vm2039_vm1, %v2513_v41  ;;  %2140 = vst.msk [vmem:[%s3872_s3 + $0x190] sm:$0xf] %vm2039_vm1, %v2573_v42  ;;  %v2514_v44 = vpack.c.bf16 %v1484_v56, %v1484_v56  ;;  %v2574_v45 = vpack.c.bf16 %v1544_v43, %v1544_v43 }
 0x1a0   :  { %v1133_v46 = vpop.f32.mrb[84].mxu0  ;;  %v1373_v47 = vpop.f32.mrb[84].mxu1 }
 0x1a1   :  { %2081 = vst.msk [vmem:[%s3872_s3 + $0xa4] sm:$0xf] %vm2039_vm1, %v2514_v44  ;;  %2141 = vst.msk [vmem:[%s3872_s3 + $0x194] sm:$0xf] %vm2039_vm1, %v2574_v45  ;;  %v1134_v48 = vadd.f32 %v3675_v36, %v1133_v46  ;;  %v1374_v49 = vadd.f32 %v3675_v36, %v1373_v47  ;;  %v1135_v50 = vpop.f32.mrb[85].mxu0  ;;  %v1375_v51 = vpop.f32.mrb[85].mxu1 }
 0x1a2   :  { %v1136_v52 = vpop.f32.mrb[86].mxu0  ;;  %v1376_v53 = vpop.f32.mrb[86].mxu1 }
 0x1a3   :  { %v1485_v54 = vmax.f32 %v1134_v48, 0.0  ;;  %v1545_v55 = vmax.f32 %v1374_v49, 0.0  ;;  %v1137_v57 = vadd.f32 %v3675_v36, %v1136_v52  ;;  %v1377_v58 = vadd.f32 %v3675_v36, %v1376_v53  ;;  %v1138_v59 = vpop.f32.mrb[87].mxu0  ;;  %v1378_v60 = vpop.f32.mrb[87].mxu1 }
 0x1a5   :  { %v2515_v61 = vpack.c.bf16 %v1485_v54, %v1485_v54  ;;  %v2575_v62 = vpack.c.bf16 %v1545_v55, %v1545_v55  ;;  %v1486_v63 = vmax.f32 %v1137_v57, 0.0  ;;  %v1546_v0 = vmax.f32 %v1377_v58, 0.0 }
 0x1a7   :  { %2082 = vst.msk [vmem:[%s3872_s3 + $0xa8] sm:$0xf] %vm2039_vm1, %v2515_v61  ;;  %2142 = vst.msk [vmem:[%s3872_s3 + $0x198] sm:$0xf] %vm2039_vm1, %v2575_v62  ;;  %v2516_v1 = vpack.c.bf16 %v1486_v63, %v1486_v63  ;;  %v2576_v2 = vpack.c.bf16 %v1546_v0, %v1546_v0 }
 0x1a8   :  { %v1141_v3 = vpop.f32.mrb[88].mxu0  ;;  %v1381_v4 = vpop.f32.mrb[88].mxu1 }
 0x1a9   :  { %2083 = vst.msk [vmem:[%s3872_s3 + $0xac] sm:$0xf] %vm2039_vm1, %v2516_v1  ;;  %2143 = vst.msk [vmem:[%s3872_s3 + $0x19c] sm:$0xf] %vm2039_vm1, %v2576_v2  ;;  %v1142_v5 = vadd.f32 %v3675_v36, %v1141_v3  ;;  %v1382_v6 = vadd.f32 %v3675_v36, %v1381_v4  ;;  %v1143_v7 = vpop.f32.mrb[89].mxu0  ;;  %v1383_v8 = vpop.f32.mrb[89].mxu1 }
 0x1aa   :  { %v1144_v9 = vpop.f32.mrb[90].mxu0  ;;  %v1384_v10 = vpop.f32.mrb[90].mxu1 }
 0x1ab   :  { %v1487_v11 = vmax.f32 %v1142_v5, 0.0  ;;  %v1547_v12 = vmax.f32 %v1382_v6, 0.0  ;;  %v1145_v13 = vadd.f32 %v3675_v36, %v1144_v9  ;;  %v1385_v14 = vadd.f32 %v3675_v36, %v1384_v10  ;;  %v1146_v15 = vpop.f32.mrb[91].mxu0  ;;  %v1386_v16 = vpop.f32.mrb[91].mxu1 }
 0x1ad   :  { %v2517_v17 = vpack.c.bf16 %v1487_v11, %v1487_v11  ;;  %v2577_v18 = vpack.c.bf16 %v1547_v12, %v1547_v12  ;;  %v1488_v19 = vmax.f32 %v1145_v13, 0.0  ;;  %v1548_v20 = vmax.f32 %v1385_v14, 0.0 }
 0x1af   :  { %2084 = vst.msk [vmem:[%s3872_s3 + $0xb0] sm:$0xf] %vm2039_vm1, %v2517_v17  ;;  %2144 = vst.msk [vmem:[%s3872_s3 + $0x1a0] sm:$0xf] %vm2039_vm1, %v2577_v18  ;;  %v2518_v21 = vpack.c.bf16 %v1488_v19, %v1488_v19  ;;  %v2578_v22 = vpack.c.bf16 %v1548_v20, %v1548_v20 }
 0x1b0   :  { %v1149_v23 = vpop.f32.mrb[92].mxu0  ;;  %v1389_v24 = vpop.f32.mrb[92].mxu1 }
 0x1b1   :  { %2085 = vst.msk [vmem:[%s3872_s3 + $0xb4] sm:$0xf] %vm2039_vm1, %v2518_v21  ;;  %2145 = vst.msk [vmem:[%s3872_s3 + $0x1a4] sm:$0xf] %vm2039_vm1, %v2578_v22  ;;  %v1150_v25 = vadd.f32 %v3675_v36, %v1149_v23  ;;  %v1390_v26 = vadd.f32 %v3675_v36, %v1389_v24  ;;  %v1151_v27 = vpop.f32.mrb[93].mxu0  ;;  %v1391_v28 = vpop.f32.mrb[93].mxu1 }
 0x1b2   :  { %v1152_v29 = vpop.f32.mrb[94].mxu0  ;;  %v1392_v30 = vpop.f32.mrb[94].mxu1 }
 0x1b3   :  { %v1489_v31 = vmax.f32 %v1150_v25, 0.0  ;;  %v1549_v32 = vmax.f32 %v1390_v26, 0.0  ;;  %v1153_v33 = vadd.f32 %v3675_v36, %v1152_v29  ;;  %v1393_v34 = vadd.f32 %v3675_v36, %v1392_v30  ;;  %v1154_v35 = vpop.f32.mrb[95].mxu0  ;;  %v1394_v37 = vpop.f32.mrb[95].mxu1 }
 0x1b5   :  { %v2519_v38 = vpack.c.bf16 %v1489_v31, %v1489_v31  ;;  %v2579_v39 = vpack.c.bf16 %v1549_v32, %v1549_v32  ;;  %v1490_v40 = vmax.f32 %v1153_v33, 0.0  ;;  %v1550_v41 = vmax.f32 %v1393_v34, 0.0 }
 0x1b7   :  { %2086 = vst.msk [vmem:[%s3872_s3 + $0xb8] sm:$0xf] %vm2039_vm1, %v2519_v38  ;;  %2146 = vst.msk [vmem:[%s3872_s3 + $0x1a8] sm:$0xf] %vm2039_vm1, %v2579_v39  ;;  %v2520_v42 = vpack.c.bf16 %v1490_v40, %v1490_v40  ;;  %v2580_v56 = vpack.c.bf16 %v1550_v41, %v1550_v41 }
 0x1b8   :  { %v1157_v43 = vpop.f32.mrb[96].mxu0  ;;  %v1397_v44 = vpop.f32.mrb[96].mxu1 }
 0x1b9   :  { %2087 = vst.msk [vmem:[%s3872_s3 + $0xbc] sm:$0xf] %vm2039_vm1, %v2520_v42  ;;  %2147 = vst.msk [vmem:[%s3872_s3 + $0x1ac] sm:$0xf] %vm2039_vm1, %v2580_v56  ;;  %v1158_v45 = vadd.f32 %v3675_v36, %v1157_v43  ;;  %v1398_v46 = vadd.f32 %v3675_v36, %v1397_v44  ;;  %v1159_v47 = vpop.f32.mrb[97].mxu0  ;;  %v1399_v48 = vpop.f32.mrb[97].mxu1 }
 0x1ba   :  { %v1160_v49 = vpop.f32.mrb[98].mxu0  ;;  %v1400_v50 = vpop.f32.mrb[98].mxu1 }
 0x1bb   :  { %v1491_v51 = vmax.f32 %v1158_v45, 0.0  ;;  %v1551_v52 = vmax.f32 %v1398_v46, 0.0  ;;  %v1161_v53 = vadd.f32 %v3675_v36, %v1160_v49  ;;  %v1401_v54 = vadd.f32 %v3675_v36, %v1400_v50  ;;  %v1162_v55 = vpop.f32.mrb[99].mxu0  ;;  %v1402_v57 = vpop.f32.mrb[99].mxu1 }
 0x1bd   :  { %v2521_v58 = vpack.c.bf16 %v1491_v51, %v1491_v51  ;;  %v2581_v59 = vpack.c.bf16 %v1551_v52, %v1551_v52  ;;  %v1492_v60 = vmax.f32 %v1161_v53, 0.0  ;;  %v1552_v61 = vmax.f32 %v1401_v54, 0.0 }
 0x1bf   :  { %2088 = vst.msk [vmem:[%s3872_s3 + $0xc0] sm:$0xf] %vm2039_vm1, %v2521_v58  ;;  %2148 = vst.msk [vmem:[%s3872_s3 + $0x1b0] sm:$0xf] %vm2039_vm1, %v2581_v59  ;;  %v2522_v62 = vpack.c.bf16 %v1492_v60, %v1492_v60  ;;  %v2582_v63 = vpack.c.bf16 %v1552_v61, %v1552_v61 }
 0x1c0   :  { %v1165_v0 = vpop.f32.mrb[100].mxu0  ;;  %v1405_v1 = vpop.f32.mrb[100].mxu1 }
 0x1c1   :  { %2089 = vst.msk [vmem:[%s3872_s3 + $0xc4] sm:$0xf] %vm2039_vm1, %v2522_v62  ;;  %2149 = vst.msk [vmem:[%s3872_s3 + $0x1b4] sm:$0xf] %vm2039_vm1, %v2582_v63  ;;  %v1166_v2 = vadd.f32 %v3675_v36, %v1165_v0  ;;  %v1406_v3 = vadd.f32 %v3675_v36, %v1405_v1  ;;  %v1167_v4 = vpop.f32.mrb[101].mxu0  ;;  %v1407_v5 = vpop.f32.mrb[101].mxu1 }
 0x1c2   :  { %v1168_v6 = vpop.f32.mrb[102].mxu0  ;;  %v1408_v7 = vpop.f32.mrb[102].mxu1 }
 0x1c3   :  { %v1493_v8 = vmax.f32 %v1166_v2, 0.0  ;;  %v1553_v9 = vmax.f32 %v1406_v3, 0.0  ;;  %v1169_v10 = vadd.f32 %v3675_v36, %v1168_v6  ;;  %v1409_v11 = vadd.f32 %v3675_v36, %v1408_v7  ;;  %v1170_v12 = vpop.f32.mrb[103].mxu0  ;;  %v1410_v13 = vpop.f32.mrb[103].mxu1 }
 0x1c5   :  { %v2523_v14 = vpack.c.bf16 %v1493_v8, %v1493_v8  ;;  %v2583_v15 = vpack.c.bf16 %v1553_v9, %v1553_v9  ;;  %v1494_v16 = vmax.f32 %v1169_v10, 0.0  ;;  %v1554_v17 = vmax.f32 %v1409_v11, 0.0 }
 0x1c7   :  { %2090 = vst.msk [vmem:[%s3872_s3 + $0xc8] sm:$0xf] %vm2039_vm1, %v2523_v14  ;;  %2150 = vst.msk [vmem:[%s3872_s3 + $0x1b8] sm:$0xf] %vm2039_vm1, %v2583_v15  ;;  %v2524_v18 = vpack.c.bf16 %v1494_v16, %v1494_v16  ;;  %v2584_v19 = vpack.c.bf16 %v1554_v17, %v1554_v17 }
 0x1c8   :  { %v1173_v20 = vpop.f32.mrb[104].mxu0  ;;  %v1413_v21 = vpop.f32.mrb[104].mxu1 }
 0x1c9   :  { %2091 = vst.msk [vmem:[%s3872_s3 + $0xcc] sm:$0xf] %vm2039_vm1, %v2524_v18  ;;  %2151 = vst.msk [vmem:[%s3872_s3 + $0x1bc] sm:$0xf] %vm2039_vm1, %v2584_v19  ;;  %v1174_v22 = vadd.f32 %v3675_v36, %v1173_v20  ;;  %v1414_v23 = vadd.f32 %v3675_v36, %v1413_v21  ;;  %v1175_v24 = vpop.f32.mrb[105].mxu0  ;;  %v1415_v25 = vpop.f32.mrb[105].mxu1 }
 0x1ca   :  { %v1176_v26 = vpop.f32.mrb[106].mxu0  ;;  %v1416_v27 = vpop.f32.mrb[106].mxu1 }
 0x1cb   :  { %v1495_v28 = vmax.f32 %v1174_v22, 0.0  ;;  %v1555_v29 = vmax.f32 %v1414_v23, 0.0  ;;  %v1177_v30 = vadd.f32 %v3675_v36, %v1176_v26  ;;  %v1417_v31 = vadd.f32 %v3675_v36, %v1416_v27  ;;  %v1178_v32 = vpop.f32.mrb[107].mxu0  ;;  %v1418_v33 = vpop.f32.mrb[107].mxu1 }
 0x1cd   :  { %v2525_v34 = vpack.c.bf16 %v1495_v28, %v1495_v28  ;;  %v2585_v35 = vpack.c.bf16 %v1555_v29, %v1555_v29  ;;  %v1496_v37 = vmax.f32 %v1177_v30, 0.0  ;;  %v1556_v38 = vmax.f32 %v1417_v31, 0.0 }
 0x1cf   :  { %2092 = vst.msk [vmem:[%s3872_s3 + $0xd0] sm:$0xf] %vm2039_vm1, %v2525_v34  ;;  %2152 = vst.msk [vmem:[%s3872_s3 + $0x1c0] sm:$0xf] %vm2039_vm1, %v2585_v35  ;;  %v2526_v39 = vpack.c.bf16 %v1496_v37, %v1496_v37  ;;  %v2586_v40 = vpack.c.bf16 %v1556_v38, %v1556_v38 }
 0x1d0   :  { %v1181_v41 = vpop.f32.mrb[108].mxu0  ;;  %v1421_v42 = vpop.f32.mrb[108].mxu1 }
 0x1d1   :  { %2093 = vst.msk [vmem:[%s3872_s3 + $0xd4] sm:$0xf] %vm2039_vm1, %v2526_v39  ;;  %2153 = vst.msk [vmem:[%s3872_s3 + $0x1c4] sm:$0xf] %vm2039_vm1, %v2586_v40  ;;  %v1182_v56 = vadd.f32 %v3675_v36, %v1181_v41  ;;  %v1422_v43 = vadd.f32 %v3675_v36, %v1421_v42  ;;  %v1183_v44 = vpop.f32.mrb[109].mxu0  ;;  %v1423_v45 = vpop.f32.mrb[109].mxu1 }
 0x1d2   :  { %v1184_v46 = vpop.f32.mrb[110].mxu0  ;;  %v1424_v47 = vpop.f32.mrb[110].mxu1 }
 0x1d3   :  { %v1497_v48 = vmax.f32 %v1182_v56, 0.0  ;;  %v1557_v49 = vmax.f32 %v1422_v43, 0.0  ;;  %v1185_v50 = vadd.f32 %v3675_v36, %v1184_v46  ;;  %v1425_v51 = vadd.f32 %v3675_v36, %v1424_v47  ;;  %v1186_v52 = vpop.f32.mrb[111].mxu0  ;;  %v1426_v53 = vpop.f32.mrb[111].mxu1 }
 0x1d5   :  { %v2527_v54 = vpack.c.bf16 %v1497_v48, %v1497_v48  ;;  %v2587_v55 = vpack.c.bf16 %v1557_v49, %v1557_v49  ;;  %v1498_v57 = vmax.f32 %v1185_v50, 0.0  ;;  %v1558_v58 = vmax.f32 %v1425_v51, 0.0 }
 0x1d7   :  { %2094 = vst.msk [vmem:[%s3872_s3 + $0xd8] sm:$0xf] %vm2039_vm1, %v2527_v54  ;;  %2154 = vst.msk [vmem:[%s3872_s3 + $0x1c8] sm:$0xf] %vm2039_vm1, %v2587_v55  ;;  %v2528_v59 = vpack.c.bf16 %v1498_v57, %v1498_v57  ;;  %v2588_v60 = vpack.c.bf16 %v1558_v58, %v1558_v58 }
 0x1d8   :  { %v1189_v61 = vpop.f32.mrb[112].mxu0  ;;  %v1429_v62 = vpop.f32.mrb[112].mxu1 }
 0x1d9   :  { %2095 = vst.msk [vmem:[%s3872_s3 + $0xdc] sm:$0xf] %vm2039_vm1, %v2528_v59  ;;  %2155 = vst.msk [vmem:[%s3872_s3 + $0x1cc] sm:$0xf] %vm2039_vm1, %v2588_v60  ;;  %v1190_v63 = vadd.f32 %v3675_v36, %v1189_v61  ;;  %v1430_v0 = vadd.f32 %v3675_v36, %v1429_v62  ;;  %v1191_v1 = vpop.f32.mrb[113].mxu0  ;;  %v1431_v2 = vpop.f32.mrb[113].mxu1 }
 0x1da   :  { %v1192_v3 = vpop.f32.mrb[114].mxu0  ;;  %v1432_v4 = vpop.f32.mrb[114].mxu1 }
 0x1db   :  { %v1499_v5 = vmax.f32 %v1190_v63, 0.0  ;;  %v1559_v6 = vmax.f32 %v1430_v0, 0.0  ;;  %v1193_v7 = vadd.f32 %v3675_v36, %v1192_v3  ;;  %v1433_v8 = vadd.f32 %v3675_v36, %v1432_v4  ;;  %v1194_v9 = vpop.f32.mrb[115].mxu0  ;;  %v1434_v10 = vpop.f32.mrb[115].mxu1 }
 0x1dd   :  { %v2529_v11 = vpack.c.bf16 %v1499_v5, %v1499_v5  ;;  %v2589_v12 = vpack.c.bf16 %v1559_v6, %v1559_v6  ;;  %v1500_v13 = vmax.f32 %v1193_v7, 0.0  ;;  %v1560_v14 = vmax.f32 %v1433_v8, 0.0 }
 0x1df   :  { %2096 = vst.msk [vmem:[%s3872_s3 + $0xe0] sm:$0xf] %vm2039_vm1, %v2529_v11  ;;  %2156 = vst.msk [vmem:[%s3872_s3 + $0x1d0] sm:$0xf] %vm2039_vm1, %v2589_v12  ;;  %v2530_v15 = vpack.c.bf16 %v1500_v13, %v1500_v13  ;;  %v2590_v16 = vpack.c.bf16 %v1560_v14, %v1560_v14 }
 0x1e0   :  { %v1197_v17 = vpop.f32.mrb[116].mxu0  ;;  %v1437_v18 = vpop.f32.mrb[116].mxu1 }
 0x1e1   :  { %2097 = vst.msk [vmem:[%s3872_s3 + $0xe4] sm:$0xf] %vm2039_vm1, %v2530_v15  ;;  %2157 = vst.msk [vmem:[%s3872_s3 + $0x1d4] sm:$0xf] %vm2039_vm1, %v2590_v16  ;;  %v1198_v19 = vadd.f32 %v3675_v36, %v1197_v17  ;;  %v1438_v20 = vadd.f32 %v3675_v36, %v1437_v18  ;;  %v1199_v21 = vpop.f32.mrb[117].mxu0  ;;  %v1439_v22 = vpop.f32.mrb[117].mxu1 }
 0x1e2   :  { %v1200_v23 = vpop.f32.mrb[118].mxu0  ;;  %v1440_v24 = vpop.f32.mrb[118].mxu1 }
 0x1e3   :  { %v1501_v25 = vmax.f32 %v1198_v19, 0.0  ;;  %v1561_v26 = vmax.f32 %v1438_v20, 0.0  ;;  %v1201_v27 = vadd.f32 %v3675_v36, %v1200_v23  ;;  %v1202_v28 = vpop.f32.mrb[119].mxu0  ;;  %v1441_v29 = vpop.f32.mrb[119].mxu1 }
 0x1e5   :  { %v2531_v30 = vpack.c.bf16 %v1501_v25, %v1501_v25  ;;  %v2591_v31 = vpack.c.bf16 %v1561_v26, %v1561_v26  ;;  %v1502_v32 = vmax.f32 %v1201_v27, 0.0 }
 0x1e7   :  { %2098 = vst.msk [vmem:[%s3872_s3 + $0xe8] sm:$0xf] %vm2039_vm1, %v2531_v30  ;;  %v2532_v33 = vpack.c.bf16 %v1502_v32, %v1502_v32 }
 0x1e8   :  { %2159 = vst.msk [vmem:[%s3872_s3 + $0x1d8] sm:$0x7] %vm2158_vm2, %v2591_v31 }
 0x1e9   :  { %2099 = vst.msk [vmem:[%s3872_s3 + $0xec] sm:$0xf] %vm2039_vm1, %v2532_v33 }

// kernel: multi_agent_cnn_actor_forward.5
= control target key start
LH: loop header
LB: loop body
LE: loop exit
PB: predicated region body
PF: predicated region fallthrough
CT: control target
= control target key end

     0   :  { %11 = vsyncpa [#allocation4], 0  ;;  %s10627_s21 = smov 0   ;;  %s12037_s0 = inlined_call_operand.vmem [shape: bf16[2,15360], index: 0, kind: input, shape index: {}]   ;;  %s12038_s1 = inlined_call_operand.vmem [shape: bf16[15360,256], index: 1, kind: input, shape index: {}]   ;;  %s12039_s2 = inlined_call_operand.vmem [shape: f32[1,256], index: 2, kind: input, shape index: {}]   ;;  %s12040_s3 = inlined_call_operand.vmem [shape: f32[256,2], index: 3, kind: input, shape index: {}]   ;;  %s12041_s4 = inlined_call_operand.vmem [shape: f32[1,2], index: 4, kind: input, shape index: {}]   ;;  %s12042_s5 = inlined_call_operand.vmem [shape: f32[2,2], index: 5, kind: input, shape index: {}]   ;;  %s12043_s6 = inlined_call_operand.hbm [shape: f32[2,2], index: 6, kind: output, shape index: {}]  }
   0x1 LB: > { %s10633_s22 = sadd.s32 4294967295, %s10586_s21   ;;  %p7918_p0 = scmp.ge.s32.totalorder %s10586_s21, 1  ;;  %s10586_s21 = sphi %s10627_s21, %s17_s21  }
   0x2   : > { %p210_p1 = scmp.lt.s32.totalorder %s10586_s21, 3 }
   0x4   : > { %p211_p2 = pnand %p7918_p0, %p210_p1 }
   0x5   : > { %s236_s23 = smul.u32 (!%p211_p2), 960, %s10633_s22  ;;  %p7921_p4 = scmp.ne.s32.totalorder (!%p211_p2), %s10633_s22, 0 }
   0x6   : > { %214 = sbr.rel (%p211_p2) target bundleno = 1779 (0x6f3), region = 44 }
   0x7   : > { %p237_p3 = scmp.lt.s32.totalorder (!%p211_p2), %s236_s23, 1919 }
   0xd   : > { %s12045_s23 = smov (!%p237_p3, %s236_s23), 1919  ;;  %246 = sbr.rel (%p7921_p4) target bundleno = 20 (0x14), region = 48 }
   0xe   : > { %s8889_s24 = sshll.u32 %s12045_s23, 3  ;;  %v10588_v0 = vmov (!%p7921_p4), 0.0  }
   0xf   : > { %s10641_s27 = scalar_lea.vmem %s12038_s1, %s8889_s24  ;;  %247 = vst [vmem:[#allocation2] sm:$0xf] (!%p7921_p4), %v10588_v0 }
  0x14 PF: > { %v9089_v1 = vld [vmem:[%s10641_s27 + $0x4] ss:$8 sps:$4 sm:$0xff]   ;;  %v9093_v3 = vld [vmem:[%s10641_s27] ss:$8 sps:$4 sm:$0xff]   ;;  %v9095_v5 = vld [vmem:[%s10641_s27 + $0x14] ss:$8 sps:$4 sm:$0xff]   ;;  %v1233_v41 = vlaneseq }
  0x15   : > { %v9091_v2 = vld [vmem:[%s10641_s27 + $0xf04] ss:$8 sps:$4 sm:$0xff]   ;;  %6456 = vmatprep.subr.bf16.mxu1 %v9089_v1  ;;  %v9094_v4 = vld [vmem:[%s10641_s27 + $0xf00] ss:$8 sps:$4 sm:$0xff]   ;;  %v9097_v6 = vld [vmem:[%s10641_s27 + $0xf14] ss:$8 sps:$4 sm:$0xff]  }
  0x16   : > { %7071 = vmatprep.subr.bf16.mxu0 %v9091_v2  ;;  %6457 = vmatpush1.bf16.msra.mxu1 %v9093_v3  ;;  %v9099_v7 = vld [vmem:[%s10641_s27 + $0x10] ss:$8 sps:$4 sm:$0xff]   ;;  %v9101_v9 = vld [vmem:[%s10641_s27 + $0x24] ss:$8 sps:$4 sm:$0xff]   ;;  %v9105_v11 = vld [vmem:[%s10641_s27 + $0x20] ss:$8 sps:$4 sm:$0xff]  }
  0x17   : > { %7072 = vmatpush1.bf16.msra.mxu0 %v9094_v4  ;;  %6458 = vmatprep.subr.bf16.mxu1 %v9095_v5  ;;  %v9100_v8 = vld [vmem:[%s10641_s27 + $0xf10] ss:$8 sps:$4 sm:$0xff]   ;;  %v9103_v10 = vld [vmem:[%s10641_s27 + $0xf24] ss:$8 sps:$4 sm:$0xff]   ;;  %v9106_v12 = vld [vmem:[%s10641_s27 + $0xf20] ss:$8 sps:$4 sm:$0xff]  }
  0x18   : > { %7073 = vmatprep.subr.bf16.mxu0 %v9097_v6  ;;  %v9107_v13 = vld [vmem:[%s10641_s27 + $0x34] ss:$8 sps:$4 sm:$0xff]   ;;  %v9111_v15 = vld [vmem:[%s10641_s27 + $0x30] ss:$8 sps:$4 sm:$0xff]   ;;  %v9113_v17 = vld [vmem:[%s10641_s27 + $0x44] ss:$8 sps:$4 sm:$0xff]  }
  0x19   : > { %v9109_v14 = vld [vmem:[%s10641_s27 + $0xf34] ss:$8 sps:$4 sm:$0xff]   ;;  %v9112_v16 = vld [vmem:[%s10641_s27 + $0xf30] ss:$8 sps:$4 sm:$0xff]   ;;  %v9115_v18 = vld [vmem:[%s10641_s27 + $0xf44] ss:$8 sps:$4 sm:$0xff]  }
  0x1a   : > { %6459 = vmatpush1.bf16.msra.mxu1 %v9099_v7  ;;  %v9117_v19 = vld [vmem:[%s10641_s27 + $0x40] ss:$8 sps:$4 sm:$0xff]   ;;  %v9119_v21 = vld [vmem:[%s10641_s27 + $0x54] ss:$8 sps:$4 sm:$0xff]   ;;  %v9123_v23 = vld [vmem:[%s10641_s27 + $0x50] ss:$8 sps:$4 sm:$0xff]  }
  0x1b   : > { %7074 = vmatpush1.bf16.msra.mxu0 %v9100_v8  ;;  %6460 = vmatprep.subr.bf16.mxu1 %v9101_v9  ;;  %v9118_v20 = vld [vmem:[%s10641_s27 + $0xf40] ss:$8 sps:$4 sm:$0xff]   ;;  %v9121_v22 = vld [vmem:[%s10641_s27 + $0xf54] ss:$8 sps:$4 sm:$0xff]   ;;  %v9124_v24 = vld [vmem:[%s10641_s27 + $0xf50] ss:$8 sps:$4 sm:$0xff]  }
  0x1c   : > { %7075 = vmatprep.subr.bf16.mxu0 %v9103_v10  ;;  %v9125_v25 = vld [vmem:[%s10641_s27 + $0x64] ss:$8 sps:$4 sm:$0xff]   ;;  %v9129_v27 = vld [vmem:[%s10641_s27 + $0x60] ss:$8 sps:$4 sm:$0xff]   ;;  %v9131_v29 = vld [vmem:[%s10641_s27 + $0x74] ss:$8 sps:$4 sm:$0xff]  }
  0x1d   : > { %v9127_v26 = vld [vmem:[%s10641_s27 + $0xf64] ss:$8 sps:$4 sm:$0xff]   ;;  %v9130_v28 = vld [vmem:[%s10641_s27 + $0xf60] ss:$8 sps:$4 sm:$0xff]   ;;  %v9133_v30 = vld [vmem:[%s10641_s27 + $0xf74] ss:$8 sps:$4 sm:$0xff]  }
  0x1e   : > { %6461 = vmatpush1.bf16.msra.mxu1 %v9105_v11  ;;  %v9135_v31 = vld [vmem:[%s10641_s27 + $0x70] ss:$8 sps:$4 sm:$0xff]   ;;  %v9137_v33 = vld [vmem:[%s10641_s27 + $0x84] ss:$8 sps:$4 sm:$0xff]   ;;  %v9141_v35 = vld [vmem:[%s10641_s27 + $0x80] ss:$8 sps:$4 sm:$0xff]  }
  0x1f   : > { %7076 = vmatpush1.bf16.msra.mxu0 %v9106_v12  ;;  %6462 = vmatprep.subr.bf16.mxu1 %v9107_v13  ;;  %v9136_v32 = vld [vmem:[%s10641_s27 + $0xf70] ss:$8 sps:$4 sm:$0xff]   ;;  %v9139_v34 = vld [vmem:[%s10641_s27 + $0xf84] ss:$8 sps:$4 sm:$0xff]   ;;  %v9142_v36 = vld [vmem:[%s10641_s27 + $0xf80] ss:$8 sps:$4 sm:$0xff]  }
  0x20   : > { %7077 = vmatprep.subr.bf16.mxu0 %v9109_v14  ;;  %v9143_v37 = vld [vmem:[%s10641_s27 + $0x94] ss:$8 sps:$4 sm:$0xff]   ;;  %v10589_v39 = vmov 1966171168   ;;  %s248_s28 = smul.u32 7680, %s10633_s22  ;;  %v10687_v47 = vshrl.u32 %v1233_v41, 7 }
  0x21   : > { %v9145_v38 = vld [vmem:[%s10641_s27 + $0xf94] ss:$8 sps:$4 sm:$0xff]   ;;  %v1231_v40 = vunpack.c.l.s4 %v10589_v39  ;;  %v9147_v42 = vld [vmem:[%s10641_s27 + $0x90] ss:$8 sps:$4 sm:$0xff]   ;;  %v9149_v44 = vld [vmem:[%s10641_s27 + $0xa4] ss:$8 sps:$4 sm:$0xff]  }
  0x22   : > { %6463 = vmatpush1.bf16.msra.mxu1 %v9111_v15  ;;  %v9148_v43 = vld [vmem:[%s10641_s27 + $0xf90] ss:$8 sps:$4 sm:$0xff]   ;;  %v9151_v45 = vld [vmem:[%s10641_s27 + $0xfa4] ss:$8 sps:$4 sm:$0xff]   ;;  %s250_s29 = sshra.s32 %s248_s28, 7  ;;  %p8883_p5 = scmp.ne.s32.totalorder %s10633_s22, 1 }
  0x23   : > { %7078 = vmatpush1.bf16.msra.mxu0 %v9112_v16  ;;  %6464 = vmatprep.subr.bf16.mxu1 %v9113_v17  ;;  %v1232_v46 = vunpack.c.0.s8 %v1231_v40  ;;  %v9153_v48 = vld [vmem:[%s10641_s27 + $0xa0] ss:$8 sps:$4 sm:$0xff]   ;;  %v9155_v50 = vld [vmem:[%s10641_s27 + $0xb4] ss:$8 sps:$4 sm:$0xff]   ;;  %s10696_s8 = scalar_lea.vmem %s12037_s0, %s250_s29  ;;  %v9159_v54 = vld [vmem:[%s10641_s27 + $0xb0] ss:$8 sps:$4 sm:$0xff]  }
  0x24   : > { %7079 = vmatprep.subr.bf16.mxu0 %v9115_v18  ;;  %v9154_v49 = vld [vmem:[%s10641_s27 + $0xfa0] ss:$8 sps:$4 sm:$0xff]   ;;  %v9157_v51 = vld [vmem:[%s10641_s27 + $0xfb4] ss:$8 sps:$4 sm:$0xff]   ;;  %v9160_v56 = vld [vmem:[%s10641_s27 + $0xfb0] ss:$8 sps:$4 sm:$0xff]  }
  0x25   : > { %v10699_v52 = vsub.s32 %v1232_v46, %v10687_v47  ;;  %v10702_v53 = vld [vmem:[%s10696_s8] sm:$0xff]  ;;  %v256_v57 = vld [vmem:[%s10696_s8 + $0x18] sm:$0xff]  ;;  %vm7855_vm0 = vcmask (!%p8883_p5), 9216  }
  0x26   : > { %6465 = vmatpush1.bf16.msra.mxu1 %v9117_v19  ;;  %v9161_v58 = vld [vmem:[%s10641_s27 + $0xc4] ss:$8 sps:$4 sm:$0xff]   ;;  %v1376_v61 = vcombine.high %v256_v57, %v256_v57  ;;  %v9165_v0 = vld [vmem:[%s10641_s27 + $0xc0] ss:$8 sps:$4 sm:$0xff]   ;;  %v9167_v2 = vld [vmem:[%s10641_s27 + $0xd4] ss:$8 sps:$4 sm:$0xff]  }
  0x27   : > { %7080 = vmatpush1.bf16.msra.mxu0 %v9118_v20  ;;  %6466 = vmatprep.subr.bf16.mxu1 %v9119_v21  ;;  %v1236_v55 = vrot.slane %v10702_v53, %v10699_v52  ;;  %v9163_v59 = vld [vmem:[%s10641_s27 + $0xfc4] ss:$8 sps:$4 sm:$0xff]   ;;  %v9166_v1 = vld [vmem:[%s10641_s27 + $0xfc0] ss:$8 sps:$4 sm:$0xff]   ;;  %v9169_v3 = vld [vmem:[%s10641_s27 + $0xfd4] ss:$8 sps:$4 sm:$0xff]  }
  0x28   : > { %7081 = vmatprep.subr.bf16.mxu0 %v9121_v22  ;;  %v1390_v63 = vrot.slane %v1376_v61, %v10699_v52  ;;  %v9171_v6 = vld [vmem:[%s10641_s27 + $0xd0] ss:$8 sps:$4 sm:$0xff]   ;;  %v9173_v8 = vld [vmem:[%s10641_s27 + $0xe4] ss:$8 sps:$4 sm:$0xff]   ;;  %v9177_v11 = vld [vmem:[%s10641_s27 + $0xe0] ss:$8 sps:$4 sm:$0xff]  }
  0x29   : > { %v1244_v60 = vcombine.high %v1236_v55, %v1236_v55  ;;  %v9172_v7 = vld [vmem:[%s10641_s27 + $0xfd0] ss:$8 sps:$4 sm:$0xff]   ;;  %v9175_v9 = vld [vmem:[%s10641_s27 + $0xfe4] ss:$8 sps:$4 sm:$0xff]   ;;  %v9178_v12 = vld [vmem:[%s10641_s27 + $0xfe0] ss:$8 sps:$4 sm:$0xff]   ;;  %v10738_v20 = vrot.slane %v1236_v55, %v10699_v52 }
  0x2a   : > { %6467 = vmatpush1.bf16.msra.mxu1 %v9123_v23  ;;  %v1392_v4 = vcombine.high %v1390_v63, %v1390_v63  ;;  %v9179_v13 = vld [vmem:[%s10641_s27 + $0xf4] ss:$8 sps:$4 sm:$0xff]   ;;  %v10731_v15 = vrot.slane %v1390_v63, %v10699_v52  ;;  %v9183_v16 = vld [vmem:[%s10641_s27 + $0xf0] ss:$8 sps:$4 sm:$0xff]   ;;  %v9188_v18 = vld [vmem:[%s10641_s27 + $0x104] ss:$8 sps:$4 sm:$0xff]  }
  0x2b   : > { %7082 = vmatpush1.bf16.msra.mxu0 %v9124_v24  ;;  %6468 = vmatprep.subr.bf16.mxu1 %v9125_v25  ;;  %v1266_v62 = vrot.slane %v1244_v60, %v10699_v52  ;;  %v9181_v14 = vld [vmem:[%s10641_s27 + $0xff4] ss:$8 sps:$4 sm:$0xff]   ;;  %v9184_v17 = vld [vmem:[%s10641_s27 + $0xff0] ss:$8 sps:$4 sm:$0xff]   ;;  %v9192_v19 = vld [vmem:[%s10641_s27 + $0x1004] ss:$8 sps:$4 sm:$0xff]  }
  0x2c   : > { %7083 = vmatprep.subr.bf16.mxu0 %v9127_v26  ;;  %v10718_v5 = vrot.slane %v1392_v4, %v10699_v52  ;;  %v1422_v21 = vcombine.high %v10731_v15, %v10731_v15  ;;  %v9186_v22 = vld [vmem:[%s10641_s27 + $0x100] ss:$8 sps:$4 sm:$0xff]   ;;  %v9195_v24 = vld [vmem:[%s10641_s27 + $0x114] ss:$8 sps:$4 sm:$0xff]   ;;  %v9228_v46 = vld [vmem:[%s10641_s27 + $0x1064] ss:$8 sps:$4 sm:$0xff]  }
  0x2d   : > { %6488 = vmatprep.mubr.bf16.mxu1 %v1266_v62  ;;  %v9190_v23 = vld [vmem:[%s10641_s27 + $0x1000] ss:$8 sps:$4 sm:$0xff]   ;;  %v9198_v25 = vld [vmem:[%s10641_s27 + $0x1014] ss:$8 sps:$4 sm:$0xff]   ;;  %v1276_v26 = vcombine.high %v1266_v62, %v1266_v62  ;;  %v9229_v57 = vld [vmem:[%s10641_s27 + $0x170] ss:$8 sps:$4 sm:$0xff]  }
  0x2e   : > { %6469 = vmatpush1.bf16.msra.mxu1 %v9129_v27  ;;  %v1424_v10 = vcombine.high %v10718_v5, %v10718_v5  ;;  %v9193_v27 = vld [vmem:[%s10641_s27 + $0x110] ss:$8 sps:$4 sm:$0xff]   ;;  %v9211_v39 = vld [vmem:[%s10641_s27 + $0x140] ss:$8 sps:$4 sm:$0xff]   ;;  %v9219_v41 = vld [vmem:[%s10641_s27 + $0x154] ss:$8 sps:$4 sm:$0xff]  }
  0x2f   : > { %7084 = vmatpush1.bf16.msra.mxu0 %v9130_v28  ;;  %6470 = vmatprep.subr.bf16.mxu1 %v9131_v29  ;;  %v9196_v28 = vld [vmem:[%s10641_s27 + $0x1010] ss:$8 sps:$4 sm:$0xff]   ;;  %v9201_v29 = vld [vmem:[%s10641_s27 + $0x124] ss:$8 sps:$4 sm:$0xff]   ;;  %v9214_v40 = vld [vmem:[%s10641_s27 + $0x1040] ss:$8 sps:$4 sm:$0xff]  }
  0x30   : > { %7085 = vmatprep.subr.bf16.mxu0 %v9133_v30  ;;  %7103 = vmatprep.mubr.bf16.mxu0 %v1424_v10  ;;  %v9204_v30 = vld [vmem:[%s10641_s27 + $0x1024] ss:$8 sps:$4 sm:$0xff]   ;;  %v9234_v55 = vld [vmem:[%s10641_s27 + $0x1074] ss:$8 sps:$4 sm:$0xff]   ;;  %v9235_v62 = vld [vmem:[%s10641_s27 + $0x180] ss:$8 sps:$4 sm:$0xff]  }
  0x31   : > { %v9240_v61 = vld [vmem:[%s10641_s27 + $0x1084] ss:$8 sps:$4 sm:$0xff]   ;;  %v9238_v63 = vld [vmem:[%s10641_s27 + $0x1080] ss:$8 sps:$4 sm:$0xff]   ;;  %v9258_v10 = vld [vmem:[%s10641_s27 + $0x10b4] ss:$8 sps:$4 sm:$0xff]  }
  0x32   : > { %6471 = vmatpush1.bf16.msra.mxu1 %v9135_v31  ;;  %v9199_v31 = vld [vmem:[%s10641_s27 + $0x120] ss:$8 sps:$4 sm:$0xff]   ;;  %v9249_v4 = vld [vmem:[%s10641_s27 + $0x1a4] ss:$8 sps:$4 sm:$0xff]  }
  0x33   : > { %7086 = vmatpush1.bf16.msra.mxu0 %v9136_v32  ;;  %6472 = vmatprep.subr.bf16.mxu1 %v9137_v33  ;;  %v9202_v32 = vld [vmem:[%s10641_s27 + $0x1020] ss:$8 sps:$4 sm:$0xff]   ;;  %v9207_v33 = vld [vmem:[%s10641_s27 + $0x134] ss:$8 sps:$4 sm:$0xff]  }
  0x34   : > { %7087 = vmatprep.subr.bf16.mxu0 %v9139_v34  ;;  %v9210_v34 = vld [vmem:[%s10641_s27 + $0x1034] ss:$8 sps:$4 sm:$0xff]  }
  0x36   : > { %6473 = vmatpush1.bf16.msra.mxu1 %v9141_v35  ;;  %v9205_v35 = vld [vmem:[%s10641_s27 + $0x130] ss:$8 sps:$4 sm:$0xff]  }
  0x37   : > { %7088 = vmatpush1.bf16.msra.mxu0 %v9142_v36  ;;  %6474 = vmatprep.subr.bf16.mxu1 %v9143_v37  ;;  %v9208_v36 = vld [vmem:[%s10641_s27 + $0x1030] ss:$8 sps:$4 sm:$0xff]   ;;  %v9213_v37 = vld [vmem:[%s10641_s27 + $0x144] ss:$8 sps:$4 sm:$0xff]  }
  0x38   : > { %7089 = vmatprep.subr.bf16.mxu0 %v9145_v38  ;;  %v9216_v38 = vld [vmem:[%s10641_s27 + $0x1044] ss:$8 sps:$4 sm:$0xff]  }
  0x3a   : > { %6475 = vmatpush1.bf16.msra.mxu1 %v9147_v42  ;;  %v9222_v42 = vld [vmem:[%s10641_s27 + $0x1054] ss:$8 sps:$4 sm:$0xff]  }
  0x3b   : > { %7090 = vmatpush1.bf16.msra.mxu0 %v9148_v43  ;;  %6476 = vmatprep.subr.bf16.mxu1 %v9149_v44  ;;  %v9217_v43 = vld [vmem:[%s10641_s27 + $0x150] ss:$8 sps:$4 sm:$0xff]  }
  0x3c   : > { %7091 = vmatprep.subr.bf16.mxu0 %v9151_v45  ;;  %v9220_v44 = vld [vmem:[%s10641_s27 + $0x1050] ss:$8 sps:$4 sm:$0xff]   ;;  %v9225_v45 = vld [vmem:[%s10641_s27 + $0x164] ss:$8 sps:$4 sm:$0xff]  }
  0x3e   : > { %6477 = vmatpush1.bf16.msra.mxu1 %v9153_v48  ;;  %v9223_v48 = vld [vmem:[%s10641_s27 + $0x160] ss:$8 sps:$4 sm:$0xff]  }
  0x3f   : > { %7092 = vmatpush1.bf16.msra.mxu0 %v9154_v49  ;;  %6478 = vmatprep.subr.bf16.mxu1 %v9155_v50  ;;  %v10769_v49 = vld [vmem:[%s10696_s8 + $0x20] sm:$0xff] }
  0x40   : > { %7093 = vmatprep.subr.bf16.mxu0 %v9157_v51  ;;  %v9226_v50 = vld [vmem:[%s10641_s27 + $0x1060] ss:$8 sps:$4 sm:$0xff]   ;;  %v9231_v51 = vld [vmem:[%s10641_s27 + $0x174] ss:$8 sps:$4 sm:$0xff]  }
  0x42   : > { %6479 = vmatpush1.bf16.msra.mxu1 %v9159_v54  ;;  %v10775_v54 = vrot.slane %v10769_v49, %v10699_v52 }
  0x43   : > { %7094 = vmatpush1.bf16.msra.mxu0 %v9160_v56  ;;  %6480 = vmatprep.subr.bf16.mxu1 %v9161_v58  ;;  %v9232_v58 = vld [vmem:[%s10641_s27 + $0x1070] ss:$8 sps:$4 sm:$0xff]  }
  0x44   : > { %7095 = vmatprep.subr.bf16.mxu0 %v9163_v59  ;;  %v1440_v56 = vcombine.high %v10775_v54, %v10775_v54  ;;  %v9237_v59 = vld [vmem:[%s10641_s27 + $0x184] ss:$8 sps:$4 sm:$0xff]  }
  0x46   : > { %6481 = vmatpush1.bf16.msra.mxu1 %v9165_v0  ;;  %v10784_v60 = vrot.slane %v1440_v56, %v10699_v52  ;;  %v9243_v0 = vld [vmem:[%s10641_s27 + $0x194] ss:$8 sps:$4 sm:$0xff]   ;;  %v9309_v56 = vld [vmem:[%s10641_s27 + $0x244] ss:$8 sps:$4 sm:$0xff]  }
  0x47   : > { %7096 = vmatpush1.bf16.msra.mxu0 %v9166_v1  ;;  %6482 = vmatprep.subr.bf16.mxu1 %v9167_v2  ;;  %v9246_v1 = vld [vmem:[%s10641_s27 + $0x1094] ss:$8 sps:$4 sm:$0xff]   ;;  %v9241_v2 = vld [vmem:[%s10641_s27 + $0x190] ss:$8 sps:$4 sm:$0xff]  }
  0x48   : > { %7097 = vmatprep.subr.bf16.mxu0 %v9169_v3  ;;  %v9244_v3 = vld [vmem:[%s10641_s27 + $0x1090] ss:$8 sps:$4 sm:$0xff]  }
  0x4a   : > { %6483 = vmatpush1.bf16.msra.mxu1 %v9171_v6  ;;  %v9252_v6 = vld [vmem:[%s10641_s27 + $0x10a4] ss:$8 sps:$4 sm:$0xff]  }
  0x4b   : > { %7098 = vmatpush1.bf16.msra.mxu0 %v9172_v7  ;;  %6484 = vmatprep.subr.bf16.mxu1 %v9173_v8  ;;  %v9247_v7 = vld [vmem:[%s10641_s27 + $0x1a0] ss:$8 sps:$4 sm:$0xff]  }
  0x4c   : > { %7099 = vmatprep.subr.bf16.mxu0 %v9175_v9  ;;  %v9250_v8 = vld [vmem:[%s10641_s27 + $0x10a0] ss:$8 sps:$4 sm:$0xff]   ;;  %v9255_v9 = vld [vmem:[%s10641_s27 + $0x1b4] ss:$8 sps:$4 sm:$0xff]  }
  0x4e   : > { %6485 = vmatpush1.bf16.msra.mxu1 %v9177_v11  ;;  %v9253_v11 = vld [vmem:[%s10641_s27 + $0x1b0] ss:$8 sps:$4 sm:$0xff]  }
  0x4f   : > { %7100 = vmatpush1.bf16.msra.mxu0 %v9178_v12  ;;  %6486 = vmatprep.subr.bf16.mxu1 %v9179_v13  ;;  %v9256_v12 = vld [vmem:[%s10641_s27 + $0x10b0] ss:$8 sps:$4 sm:$0xff]   ;;  %v9261_v13 = vld [vmem:[%s10641_s27 + $0x1c4] ss:$8 sps:$4 sm:$0xff]  }
  0x50   : > { %7101 = vmatprep.subr.bf16.mxu0 %v9181_v14  ;;  %v9264_v14 = vld [vmem:[%s10641_s27 + $0x10c4] ss:$8 sps:$4 sm:$0xff]  }
  0x52   : > { %6487 = vmatpush1.bf16.msra.mxu1 %v9183_v16  ;;  %v9259_v16 = vld [vmem:[%s10641_s27 + $0x1c0] ss:$8 sps:$4 sm:$0xff]  }
  0x53   : > { %7102 = vmatpush1.bf16.msra.mxu0 %v9184_v17  ;;  %6497 = vmatprep.subr.bf16.mxu1 %v9188_v18  ;;  %v9262_v17 = vld [vmem:[%s10641_s27 + $0x10c0] ss:$8 sps:$4 sm:$0xff]   ;;  %v9267_v18 = vld [vmem:[%s10641_s27 + $0x1d4] ss:$8 sps:$4 sm:$0xff]  }
  0x54   : > { %7112 = vmatprep.subr.bf16.mxu0 %v9192_v19  ;;  %v9270_v19 = vld [vmem:[%s10641_s27 + $0x10d4] ss:$8 sps:$4 sm:$0xff]  }
  0x55   : > { %6489 = vmatmul.mubr.bf16.vlgmr.msra.gmra.mrb[0].mxu1 %v10738_v20 }
  0x56   : > { %7104 = vmatmul.mubr.bf16.vlgmr.msra.gmra.mrb[0].mxu0 %v1422_v21  ;;  %6498 = vmatpush1.bf16.msra.mxu1 %v9186_v22  ;;  %v9265_v21 = vld [vmem:[%s10641_s27 + $0x1d0] ss:$8 sps:$4 sm:$0xff]  }
  0x57   : > { %7113 = vmatpush1.bf16.msra.mxu0 %v9190_v23  ;;  %6499 = vmatprep.subr.bf16.mxu1 %v9195_v24  ;;  %v9268_v22 = vld [vmem:[%s10641_s27 + $0x10d0] ss:$8 sps:$4 sm:$0xff]   ;;  %v9273_v23 = vld [vmem:[%s10641_s27 + $0x1e4] ss:$8 sps:$4 sm:$0xff]  }
  0x58   : > { %7114 = vmatprep.subr.bf16.mxu0 %v9198_v25  ;;  %6529 = vmatprep.mubr.bf16.mxu1 %v1276_v26  ;;  %v9276_v24 = vld [vmem:[%s10641_s27 + $0x10e4] ss:$8 sps:$4 sm:$0xff]   ;;  %v1229_v25 = vcombine.high %v10702_v53, %v10702_v53  ;;  %v9271_v26 = vld [vmem:[%s10641_s27 + $0x1e0] ss:$8 sps:$4 sm:$0xff]   ;;  %v9280_v53 = vld [vmem:[%s10641_s27 + $0x10f0] ss:$8 sps:$4 sm:$0xff]  }
  0x59   : > { %7144 = vmatprep.mubr.bf16.mxu0 %v10784_v60 }
  0x5a   : > { %6500 = vmatpush1.bf16.msra.mxu1 %v9193_v27  ;;  %v9274_v27 = vld [vmem:[%s10641_s27 + $0x10e0] ss:$8 sps:$4 sm:$0xff]  }
  0x5b   : > { %7115 = vmatpush1.bf16.msra.mxu0 %v9196_v28  ;;  %6501 = vmatprep.subr.bf16.mxu1 %v9201_v29  ;;  %v9279_v28 = vld [vmem:[%s10641_s27 + $0x1f4] ss:$8 sps:$4 sm:$0xff]  }
  0x5c   : > { %7116 = vmatprep.subr.bf16.mxu0 %v9204_v30  ;;  %v9282_v29 = vld [vmem:[%s10641_s27 + $0x10f4] ss:$8 sps:$4 sm:$0xff]   ;;  %v10819_v30 = vrot.slane %v1229_v25, %v10699_v52  ;;  %v9349_v25 = vld [vmem:[%s10641_s27 + $0x2b0] ss:$8 sps:$4 sm:$0xff]  }
  0x5e   : > { %6502 = vmatpush1.bf16.msra.mxu1 %v9199_v31  ;;  %v9277_v31 = vld [vmem:[%s10641_s27 + $0x1f0] ss:$8 sps:$4 sm:$0xff]  }
  0x5f   : > { %7117 = vmatpush1.bf16.msra.mxu0 %v9202_v32  ;;  %6503 = vmatprep.subr.bf16.mxu1 %v9207_v33  ;;  %v9285_v32 = vld [vmem:[%s10641_s27 + $0x204] ss:$8 sps:$4 sm:$0xff]  }
  0x60   : > { %7118 = vmatprep.subr.bf16.mxu0 %v9210_v34  ;;  %v9288_v33 = vld [vmem:[%s10641_s27 + $0x1104] ss:$8 sps:$4 sm:$0xff]   ;;  %v1245_v34 = vcombine.high %v10819_v30, %v10819_v30 }
  0x62   : > { %6504 = vmatpush1.bf16.msra.mxu1 %v9205_v35  ;;  %v1274_v35 = vcombine.high %v10738_v20, %v10738_v20  ;;  %v1472_v20 = vcombine.high %v10784_v60, %v10784_v60  ;;  %v9315_v60 = vld [vmem:[%s10641_s27 + $0x254] ss:$8 sps:$4 sm:$0xff]  }
  0x63   : > { %7119 = vmatpush1.bf16.msra.mxu0 %v9208_v36  ;;  %6505 = vmatprep.subr.bf16.mxu1 %v9213_v37  ;;  %v9283_v36 = vld [vmem:[%s10641_s27 + $0x200] ss:$8 sps:$4 sm:$0xff]   ;;  %v10832_v37 = vrot.slane %v10775_v54, %v10699_v52  ;;  %v9301_v54 = vld [vmem:[%s10641_s27 + $0x230] ss:$8 sps:$4 sm:$0xff]  }
  0x64   : > { %7120 = vmatprep.subr.bf16.mxu0 %v9216_v38  ;;  %v9286_v38 = vld [vmem:[%s10641_s27 + $0x1100] ss:$8 sps:$4 sm:$0xff]  }
  0x66   : > { %6506 = vmatpush1.bf16.msra.mxu1 %v9211_v39  ;;  %v9291_v39 = vld [vmem:[%s10641_s27 + $0x214] ss:$8 sps:$4 sm:$0xff]  }
  0x67   : > { %7121 = vmatpush1.bf16.msra.mxu0 %v9214_v40  ;;  %6507 = vmatprep.subr.bf16.mxu1 %v9219_v41  ;;  %v9294_v40 = vld [vmem:[%s10641_s27 + $0x1114] ss:$8 sps:$4 sm:$0xff]   ;;  %v10838_v41 = vrot.slane %v1245_v34, %v10699_v52  ;;  %v9364_v34 = vld [vmem:[%s10641_s27 + $0x11d0] ss:$8 sps:$4 sm:$0xff]  }
  0x68   : > { %7122 = vmatprep.subr.bf16.mxu0 %v9222_v42  ;;  %v9289_v42 = vld [vmem:[%s10641_s27 + $0x210] ss:$8 sps:$4 sm:$0xff]  }
  0x6a   : > { %6508 = vmatpush1.bf16.msra.mxu1 %v9217_v43  ;;  %v9292_v43 = vld [vmem:[%s10641_s27 + $0x1110] ss:$8 sps:$4 sm:$0xff]  }
  0x6b   : > { %7123 = vmatpush1.bf16.msra.mxu0 %v9220_v44  ;;  %6509 = vmatprep.subr.bf16.mxu1 %v9225_v45  ;;  %v9297_v44 = vld [vmem:[%s10641_s27 + $0x224] ss:$8 sps:$4 sm:$0xff]  }
  0x6c   : > { %7124 = vmatprep.subr.bf16.mxu0 %v9228_v46  ;;  %v9300_v45 = vld [vmem:[%s10641_s27 + $0x1124] ss:$8 sps:$4 sm:$0xff]   ;;  %v9295_v46 = vld [vmem:[%s10641_s27 + $0x220] ss:$8 sps:$4 sm:$0xff]  }
  0x6e   : > { %6510 = vmatpush1.bf16.msra.mxu1 %v9223_v48  ;;  %v9298_v48 = vld [vmem:[%s10641_s27 + $0x1120] ss:$8 sps:$4 sm:$0xff]  }
  0x6f   : > { %7125 = vmatpush1.bf16.msra.mxu0 %v9226_v50  ;;  %6511 = vmatprep.subr.bf16.mxu1 %v9231_v51  ;;  %v9303_v50 = vld [vmem:[%s10641_s27 + $0x234] ss:$8 sps:$4 sm:$0xff]  }
  0x70   : > { %7126 = vmatprep.subr.bf16.mxu0 %v9234_v55  ;;  %v9306_v51 = vld [vmem:[%s10641_s27 + $0x1134] ss:$8 sps:$4 sm:$0xff]   ;;  %v9304_v55 = vld [vmem:[%s10641_s27 + $0x1130] ss:$8 sps:$4 sm:$0xff]  }
  0x72   : > { %6512 = vmatpush1.bf16.msra.mxu1 %v9229_v57  ;;  %v9312_v57 = vld [vmem:[%s10641_s27 + $0x1144] ss:$8 sps:$4 sm:$0xff]  }
  0x73   : > { %7127 = vmatpush1.bf16.msra.mxu0 %v9232_v58  ;;  %6513 = vmatprep.subr.bf16.mxu1 %v9237_v59  ;;  %v9307_v58 = vld [vmem:[%s10641_s27 + $0x240] ss:$8 sps:$4 sm:$0xff]  }
  0x74   : > { %7128 = vmatprep.subr.bf16.mxu0 %v9240_v61  ;;  %v9310_v59 = vld [vmem:[%s10641_s27 + $0x1140] ss:$8 sps:$4 sm:$0xff]   ;;  %v9318_v61 = vld [vmem:[%s10641_s27 + $0x1154] ss:$8 sps:$4 sm:$0xff]  }
  0x76   : > { %6514 = vmatpush1.bf16.msra.mxu1 %v9235_v62  ;;  %v9313_v62 = vld [vmem:[%s10641_s27 + $0x250] ss:$8 sps:$4 sm:$0xff]  }
  0x77   : > { %7129 = vmatpush1.bf16.msra.mxu0 %v9238_v63  ;;  %6515 = vmatprep.subr.bf16.mxu1 %v9243_v0  ;;  %v9316_v63 = vld [vmem:[%s10641_s27 + $0x1150] ss:$8 sps:$4 sm:$0xff]   ;;  %v9321_v0 = vld [vmem:[%s10641_s27 + $0x264] ss:$8 sps:$4 sm:$0xff]  }
  0x78   : > { %7130 = vmatprep.subr.bf16.mxu0 %v9246_v1  ;;  %v9324_v1 = vld [vmem:[%s10641_s27 + $0x1164] ss:$8 sps:$4 sm:$0xff]  }
  0x7a   : > { %6516 = vmatpush1.bf16.msra.mxu1 %v9241_v2  ;;  %v9319_v2 = vld [vmem:[%s10641_s27 + $0x260] ss:$8 sps:$4 sm:$0xff]  }
  0x7b   : > { %7131 = vmatpush1.bf16.msra.mxu0 %v9244_v3  ;;  %6517 = vmatprep.subr.bf16.mxu1 %v9249_v4  ;;  %v9322_v3 = vld [vmem:[%s10641_s27 + $0x1160] ss:$8 sps:$4 sm:$0xff]   ;;  %v9327_v4 = vld [vmem:[%s10641_s27 + $0x274] ss:$8 sps:$4 sm:$0xff]  }
  0x7c   : > { %7132 = vmatprep.subr.bf16.mxu0 %v9252_v6  ;;  %v9330_v6 = vld [vmem:[%s10641_s27 + $0x1174] ss:$8 sps:$4 sm:$0xff]  }
  0x7e   : > { %6518 = vmatpush1.bf16.msra.mxu1 %v9247_v7  ;;  %v9325_v7 = vld [vmem:[%s10641_s27 + $0x270] ss:$8 sps:$4 sm:$0xff]  }
  0x7f   : > { %7133 = vmatpush1.bf16.msra.mxu0 %v9250_v8  ;;  %6519 = vmatprep.subr.bf16.mxu1 %v9255_v9  ;;  %v9328_v8 = vld [vmem:[%s10641_s27 + $0x1170] ss:$8 sps:$4 sm:$0xff]   ;;  %v9333_v9 = vld [vmem:[%s10641_s27 + $0x284] ss:$8 sps:$4 sm:$0xff]  }
  0x80   : > { %7134 = vmatprep.subr.bf16.mxu0 %v9258_v10  ;;  %v9336_v10 = vld [vmem:[%s10641_s27 + $0x1184] ss:$8 sps:$4 sm:$0xff]  }
  0x82   : > { %6520 = vmatpush1.bf16.msra.mxu1 %v9253_v11  ;;  %v9331_v11 = vld [vmem:[%s10641_s27 + $0x280] ss:$8 sps:$4 sm:$0xff]  }
  0x83   : > { %7135 = vmatpush1.bf16.msra.mxu0 %v9256_v12  ;;  %6521 = vmatprep.subr.bf16.mxu1 %v9261_v13  ;;  %v9334_v12 = vld [vmem:[%s10641_s27 + $0x1180] ss:$8 sps:$4 sm:$0xff]   ;;  %v9339_v13 = vld [vmem:[%s10641_s27 + $0x294] ss:$8 sps:$4 sm:$0xff]  }
  0x84   : > { %7136 = vmatprep.subr.bf16.mxu0 %v9264_v14  ;;  %v9342_v14 = vld [vmem:[%s10641_s27 + $0x1194] ss:$8 sps:$4 sm:$0xff]  }
  0x86   : > { %6522 = vmatpush1.bf16.msra.mxu1 %v9259_v16  ;;  %v9337_v16 = vld [vmem:[%s10641_s27 + $0x290] ss:$8 sps:$4 sm:$0xff]  }
  0x87   : > { %7137 = vmatpush1.bf16.msra.mxu0 %v9262_v17  ;;  %6523 = vmatprep.subr.bf16.mxu1 %v9267_v18  ;;  %v9340_v17 = vld [vmem:[%s10641_s27 + $0x1190] ss:$8 sps:$4 sm:$0xff]   ;;  %v9345_v18 = vld [vmem:[%s10641_s27 + $0x2a4] ss:$8 sps:$4 sm:$0xff]  }
  0x88   : > { %7138 = vmatprep.subr.bf16.mxu0 %v9270_v19  ;;  %v9348_v19 = vld [vmem:[%s10641_s27 + $0x11a4] ss:$8 sps:$4 sm:$0xff]  }
  0x8a   : > { %6524 = vmatpush1.bf16.msra.mxu1 %v9265_v21  ;;  %v9343_v21 = vld [vmem:[%s10641_s27 + $0x2a0] ss:$8 sps:$4 sm:$0xff]  }
  0x8b   : > { %7139 = vmatpush1.bf16.msra.mxu0 %v9268_v22  ;;  %6525 = vmatprep.subr.bf16.mxu1 %v9273_v23  ;;  %v9346_v22 = vld [vmem:[%s10641_s27 + $0x11a0] ss:$8 sps:$4 sm:$0xff]   ;;  %v9351_v23 = vld [vmem:[%s10641_s27 + $0x2b4] ss:$8 sps:$4 sm:$0xff]  }
  0x8c   : > { %7140 = vmatprep.subr.bf16.mxu0 %v9276_v24  ;;  %v9354_v24 = vld [vmem:[%s10641_s27 + $0x11b4] ss:$8 sps:$4 sm:$0xff]  }
  0x8e   : > { %6526 = vmatpush1.bf16.msra.mxu1 %v9271_v26  ;;  %v9352_v26 = vld [vmem:[%s10641_s27 + $0x11b0] ss:$8 sps:$4 sm:$0xff]  }
  0x8f   : > { %7141 = vmatpush1.bf16.msra.mxu0 %v9274_v27  ;;  %6527 = vmatprep.subr.bf16.mxu1 %v9279_v28  ;;  %v9357_v27 = vld [vmem:[%s10641_s27 + $0x2c4] ss:$8 sps:$4 sm:$0xff]  }
  0x90   : > { %7142 = vmatprep.subr.bf16.mxu0 %v9282_v29  ;;  %v9360_v28 = vld [vmem:[%s10641_s27 + $0x11c4] ss:$8 sps:$4 sm:$0xff]   ;;  %v9355_v29 = vld [vmem:[%s10641_s27 + $0x2c0] ss:$8 sps:$4 sm:$0xff]  }
  0x92   : > { %6528 = vmatpush1.bf16.msra.mxu1 %v9277_v31  ;;  %v9358_v31 = vld [vmem:[%s10641_s27 + $0x11c0] ss:$8 sps:$4 sm:$0xff]  }
  0x93   : > { %7143 = vmatpush1.bf16.msra.mxu0 %v9280_v53  ;;  %6538 = vmatprep.subr.bf16.mxu1 %v9285_v32  ;;  %v9363_v53 = vld [vmem:[%s10641_s27 + $0x2d4] ss:$8 sps:$4 sm:$0xff]  }
  0x94   : > { %7153 = vmatprep.subr.bf16.mxu0 %v9288_v33  ;;  %v9366_v32 = vld [vmem:[%s10641_s27 + $0x11d4] ss:$8 sps:$4 sm:$0xff]   ;;  %v9361_v33 = vld [vmem:[%s10641_s27 + $0x2d0] ss:$8 sps:$4 sm:$0xff]  }
  0x95   : > { %6530 = vmatmul.mubr.bf16.vlgmr.msra.gmra.mrb[0].mxu1 %v1274_v35  ;;  %v9369_v35 = vld [vmem:[%s10641_s27 + $0x2e4] ss:$8 sps:$4 sm:$0xff]  }
  0x96   : > { %7145 = vmatmul.mubr.bf16.vlgmr.msra.gmra.mrb[0].mxu0 %v10832_v37  ;;  %6539 = vmatpush1.bf16.msra.mxu1 %v9283_v36  ;;  %v9372_v36 = vld [vmem:[%s10641_s27 + $0x11e4] ss:$8 sps:$4 sm:$0xff]  }
  0x97   : > { %7154 = vmatpush1.bf16.msra.mxu0 %v9286_v38  ;;  %6540 = vmatprep.subr.bf16.mxu1 %v9291_v39  ;;  %v1425_v38 = vcombine.high %v10769_v49, %v10769_v49  ;;  %v9367_v39 = vld [vmem:[%s10641_s27 + $0x2e0] ss:$8 sps:$4 sm:$0xff]   ;;  %v9376_v49 = vld [vmem:[%s10641_s27 + $0x11f0] ss:$8 sps:$4 sm:$0xff]  }
  0x98   : > { %7155 = vmatprep.subr.bf16.mxu0 %v9294_v40  ;;  %6570 = vmatprep.mubr.bf16.mxu1 %v10838_v41  ;;  %v9370_v40 = vld [vmem:[%s10641_s27 + $0x11e0] ss:$8 sps:$4 sm:$0xff]  }
  0x99   : > { %7185 = vmatprep.mubr.bf16.mxu0 %v1472_v20  ;;  %v9375_v20 = vld [vmem:[%s10641_s27 + $0x2f4] ss:$8 sps:$4 sm:$0xff]  }
  0x9a   : > { %6541 = vmatpush1.bf16.msra.mxu1 %v9289_v42  ;;  %v9378_v42 = vld [vmem:[%s10641_s27 + $0x11f4] ss:$8 sps:$4 sm:$0xff]  }
  0x9b   : > { %7156 = vmatpush1.bf16.msra.mxu0 %v9292_v43  ;;  %6542 = vmatprep.subr.bf16.mxu1 %v9297_v44  ;;  %v10903_v43 = vrot.slane %v1425_v38, %v10699_v52  ;;  %v9373_v44 = vld [vmem:[%s10641_s27 + $0x2f0] ss:$8 sps:$4 sm:$0xff]  }
  0x9c   : > { %7157 = vmatprep.subr.bf16.mxu0 %v9300_v45  ;;  %v9381_v45 = vld [vmem:[%s10641_s27 + $0x304] ss:$8 sps:$4 sm:$0xff]   ;;  %v9448_v38 = vld [vmem:[%s10641_s27 + $0x12b0] ss:$8 sps:$4 sm:$0xff]  }
  0x9e   : > { %6543 = vmatpush1.bf16.msra.mxu1 %v9295_v46  ;;  %v9384_v46 = vld [vmem:[%s10641_s27 + $0x1204] ss:$8 sps:$4 sm:$0xff]  }
  0x9f   : > { %7158 = vmatpush1.bf16.msra.mxu0 %v9298_v48  ;;  %6544 = vmatprep.subr.bf16.mxu1 %v9303_v50  ;;  %v1441_v48 = vcombine.high %v10903_v43, %v10903_v43  ;;  %v9379_v50 = vld [vmem:[%s10641_s27 + $0x300] ss:$8 sps:$4 sm:$0xff]  }
  0xa0   : > { %7159 = vmatprep.subr.bf16.mxu0 %v9306_v51  ;;  %v10914_v51 = vrot.slane %v10819_v30, %v10699_v52 }
  0xa1   : > { %v10924_v30 = vrot.slane %v1441_v48, %v10699_v52  ;;  %v9465_v48 = vld [vmem:[%s10641_s27 + $0x3e4] ss:$8 sps:$4 sm:$0xff]  }
  0xa2   : > { %6545 = vmatpush1.bf16.msra.mxu1 %v9301_v54  ;;  %v1470_v54 = vcombine.high %v10832_v37, %v10832_v37  ;;  %v9385_v37 = vld [vmem:[%s10641_s27 + $0x310] ss:$8 sps:$4 sm:$0xff]  }
  0xa3   : > { %7160 = vmatpush1.bf16.msra.mxu0 %v9304_v55  ;;  %6546 = vmatprep.subr.bf16.mxu1 %v9309_v56  ;;  %v9382_v55 = vld [vmem:[%s10641_s27 + $0x1200] ss:$8 sps:$4 sm:$0xff]   ;;  %v9387_v56 = vld [vmem:[%s10641_s27 + $0x314] ss:$8 sps:$4 sm:$0xff]  }
  0xa4   : > { %7161 = vmatprep.subr.bf16.mxu0 %v9312_v57  ;;  %v9390_v57 = vld [vmem:[%s10641_s27 + $0x1214] ss:$8 sps:$4 sm:$0xff]  }
  0xa6   : > { %6547 = vmatpush1.bf16.msra.mxu1 %v9307_v58  ;;  %v1277_v58 = vcombine.high %v10838_v41, %v10838_v41  ;;  %v9396_v41 = vld [vmem:[%s10641_s27 + $0x1224] ss:$8 sps:$4 sm:$0xff]  }
  0xa7   : > { %7162 = vmatpush1.bf16.msra.mxu0 %v9310_v59  ;;  %6548 = vmatprep.subr.bf16.mxu1 %v9315_v60  ;;  %v9388_v59 = vld [vmem:[%s10641_s27 + $0x1210] ss:$8 sps:$4 sm:$0xff]   ;;  %v9393_v60 = vld [vmem:[%s10641_s27 + $0x324] ss:$8 sps:$4 sm:$0xff]  }
  0xa8   : > { %7163 = vmatprep.subr.bf16.mxu0 %v9318_v61  ;;  %v9391_v61 = vld [vmem:[%s10641_s27 + $0x320] ss:$8 sps:$4 sm:$0xff]  }
  0xaa   : > { %6549 = vmatpush1.bf16.msra.mxu1 %v9313_v62  ;;  %v9394_v62 = vld [vmem:[%s10641_s27 + $0x1220] ss:$8 sps:$4 sm:$0xff]  }
  0xab   : > { %7164 = vmatpush1.bf16.msra.mxu0 %v9316_v63  ;;  %6550 = vmatprep.subr.bf16.mxu1 %v9321_v0  ;;  %v9399_v63 = vld [vmem:[%s10641_s27 + $0x334] ss:$8 sps:$4 sm:$0xff]  }
  0xac   : > { %7165 = vmatprep.subr.bf16.mxu0 %v9324_v1  ;;  %v9402_v0 = vld [vmem:[%s10641_s27 + $0x1234] ss:$8 sps:$4 sm:$0xff]   ;;  %v9397_v1 = vld [vmem:[%s10641_s27 + $0x330] ss:$8 sps:$4 sm:$0xff]  }
  0xae   : > { %6551 = vmatpush1.bf16.msra.mxu1 %v9319_v2  ;;  %v9400_v2 = vld [vmem:[%s10641_s27 + $0x1230] ss:$8 sps:$4 sm:$0xff]  }
  0xaf   : > { %7166 = vmatpush1.bf16.msra.mxu0 %v9322_v3  ;;  %6552 = vmatprep.subr.bf16.mxu1 %v9327_v4  ;;  %v9405_v3 = vld [vmem:[%s10641_s27 + $0x344] ss:$8 sps:$4 sm:$0xff]  }
  0xb0   : > { %7167 = vmatprep.subr.bf16.mxu0 %v9330_v6  ;;  %v9408_v4 = vld [vmem:[%s10641_s27 + $0x1244] ss:$8 sps:$4 sm:$0xff]   ;;  %v9403_v6 = vld [vmem:[%s10641_s27 + $0x340] ss:$8 sps:$4 sm:$0xff]  }
  0xb2   : > { %6553 = vmatpush1.bf16.msra.mxu1 %v9325_v7  ;;  %v9406_v7 = vld [vmem:[%s10641_s27 + $0x1240] ss:$8 sps:$4 sm:$0xff]  }
  0xb3   : > { %7168 = vmatpush1.bf16.msra.mxu0 %v9328_v8  ;;  %6554 = vmatprep.subr.bf16.mxu1 %v9333_v9  ;;  %v9411_v8 = vld [vmem:[%s10641_s27 + $0x354] ss:$8 sps:$4 sm:$0xff]  }
  0xb4   : > { %7169 = vmatprep.subr.bf16.mxu0 %v9336_v10  ;;  %v9414_v9 = vld [vmem:[%s10641_s27 + $0x1254] ss:$8 sps:$4 sm:$0xff]   ;;  %v9409_v10 = vld [vmem:[%s10641_s27 + $0x350] ss:$8 sps:$4 sm:$0xff]  }
  0xb6   : > { %6555 = vmatpush1.bf16.msra.mxu1 %v9331_v11  ;;  %v9412_v11 = vld [vmem:[%s10641_s27 + $0x1250] ss:$8 sps:$4 sm:$0xff]  }
  0xb7   : > { %7170 = vmatpush1.bf16.msra.mxu0 %v9334_v12  ;;  %6556 = vmatprep.subr.bf16.mxu1 %v9339_v13  ;;  %v9417_v12 = vld [vmem:[%s10641_s27 + $0x364] ss:$8 sps:$4 sm:$0xff]  }
  0xb8   : > { %7171 = vmatprep.subr.bf16.mxu0 %v9342_v14  ;;  %v9420_v13 = vld [vmem:[%s10641_s27 + $0x1264] ss:$8 sps:$4 sm:$0xff]   ;;  %v9415_v14 = vld [vmem:[%s10641_s27 + $0x360] ss:$8 sps:$4 sm:$0xff]  }
  0xba   : > { %6557 = vmatpush1.bf16.msra.mxu1 %v9337_v16  ;;  %v9418_v16 = vld [vmem:[%s10641_s27 + $0x1260] ss:$8 sps:$4 sm:$0xff]  }
  0xbb   : > { %7172 = vmatpush1.bf16.msra.mxu0 %v9340_v17  ;;  %6558 = vmatprep.subr.bf16.mxu1 %v9345_v18  ;;  %v9423_v17 = vld [vmem:[%s10641_s27 + $0x374] ss:$8 sps:$4 sm:$0xff]  }
  0xbc   : > { %7173 = vmatprep.subr.bf16.mxu0 %v9348_v19  ;;  %v9426_v18 = vld [vmem:[%s10641_s27 + $0x1274] ss:$8 sps:$4 sm:$0xff]   ;;  %v9421_v19 = vld [vmem:[%s10641_s27 + $0x370] ss:$8 sps:$4 sm:$0xff]  }
  0xbe   : > { %6559 = vmatpush1.bf16.msra.mxu1 %v9343_v21  ;;  %v9424_v21 = vld [vmem:[%s10641_s27 + $0x1270] ss:$8 sps:$4 sm:$0xff]  }
  0xbf   : > { %7174 = vmatpush1.bf16.msra.mxu0 %v9346_v22  ;;  %6560 = vmatprep.subr.bf16.mxu1 %v9351_v23  ;;  %v9429_v22 = vld [vmem:[%s10641_s27 + $0x384] ss:$8 sps:$4 sm:$0xff]  }
  0xc0   : > { %7175 = vmatprep.subr.bf16.mxu0 %v9354_v24  ;;  %v9432_v23 = vld [vmem:[%s10641_s27 + $0x1284] ss:$8 sps:$4 sm:$0xff]   ;;  %v9427_v24 = vld [vmem:[%s10641_s27 + $0x380] ss:$8 sps:$4 sm:$0xff]  }
  0xc2   : > { %6561 = vmatpush1.bf16.msra.mxu1 %v9349_v25  ;;  %v9430_v25 = vld [vmem:[%s10641_s27 + $0x1280] ss:$8 sps:$4 sm:$0xff]  }
  0xc3   : > { %7176 = vmatpush1.bf16.msra.mxu0 %v9352_v26  ;;  %6562 = vmatprep.subr.bf16.mxu1 %v9357_v27  ;;  %v9435_v26 = vld [vmem:[%s10641_s27 + $0x394] ss:$8 sps:$4 sm:$0xff]  }
  0xc4   : > { %7177 = vmatprep.subr.bf16.mxu0 %v9360_v28  ;;  %v9438_v27 = vld [vmem:[%s10641_s27 + $0x1294] ss:$8 sps:$4 sm:$0xff]   ;;  %v9433_v28 = vld [vmem:[%s10641_s27 + $0x390] ss:$8 sps:$4 sm:$0xff]  }
  0xc6   : > { %6563 = vmatpush1.bf16.msra.mxu1 %v9355_v29  ;;  %v9436_v29 = vld [vmem:[%s10641_s27 + $0x1290] ss:$8 sps:$4 sm:$0xff]  }
  0xc7   : > { %7178 = vmatpush1.bf16.msra.mxu0 %v9358_v31  ;;  %6564 = vmatprep.subr.bf16.mxu1 %v9363_v53  ;;  %v9441_v31 = vld [vmem:[%s10641_s27 + $0x3a4] ss:$8 sps:$4 sm:$0xff]  }
  0xc8   : > { %7179 = vmatprep.subr.bf16.mxu0 %v9366_v32  ;;  %v9444_v53 = vld [vmem:[%s10641_s27 + $0x12a4] ss:$8 sps:$4 sm:$0xff]   ;;  %v9439_v32 = vld [vmem:[%s10641_s27 + $0x3a0] ss:$8 sps:$4 sm:$0xff]  }
  0xca   : > { %6565 = vmatpush1.bf16.msra.mxu1 %v9361_v33  ;;  %v9442_v33 = vld [vmem:[%s10641_s27 + $0x12a0] ss:$8 sps:$4 sm:$0xff]  }
  0xcb   : > { %7180 = vmatpush1.bf16.msra.mxu0 %v9364_v34  ;;  %6566 = vmatprep.subr.bf16.mxu1 %v9369_v35  ;;  %v9447_v34 = vld [vmem:[%s10641_s27 + $0x3b4] ss:$8 sps:$4 sm:$0xff]  }
  0xcc   : > { %7181 = vmatprep.subr.bf16.mxu0 %v9372_v36  ;;  %v9450_v35 = vld [vmem:[%s10641_s27 + $0x12b4] ss:$8 sps:$4 sm:$0xff]   ;;  %v9445_v36 = vld [vmem:[%s10641_s27 + $0x3b0] ss:$8 sps:$4 sm:$0xff]  }
  0xce   : > { %6567 = vmatpush1.bf16.msra.mxu1 %v9367_v39  ;;  %v9453_v39 = vld [vmem:[%s10641_s27 + $0x3c4] ss:$8 sps:$4 sm:$0xff]  }
  0xcf   : > { %7182 = vmatpush1.bf16.msra.mxu0 %v9370_v40  ;;  %6568 = vmatprep.subr.bf16.mxu1 %v9375_v20  ;;  %v9456_v40 = vld [vmem:[%s10641_s27 + $0x12c4] ss:$8 sps:$4 sm:$0xff]   ;;  %v9451_v20 = vld [vmem:[%s10641_s27 + $0x3c0] ss:$8 sps:$4 sm:$0xff]  }
  0xd0   : > { %7183 = vmatprep.subr.bf16.mxu0 %v9378_v42  ;;  %v9454_v42 = vld [vmem:[%s10641_s27 + $0x12c0] ss:$8 sps:$4 sm:$0xff]  }
  0xd2   : > { %6569 = vmatpush1.bf16.msra.mxu1 %v9373_v44  ;;  %v9459_v44 = vld [vmem:[%s10641_s27 + $0x3d4] ss:$8 sps:$4 sm:$0xff]  }
  0xd3   : > { %7184 = vmatpush1.bf16.msra.mxu0 %v9376_v49  ;;  %6579 = vmatprep.subr.bf16.mxu1 %v9381_v45  ;;  %v9462_v49 = vld [vmem:[%s10641_s27 + $0x12d4] ss:$8 sps:$4 sm:$0xff]   ;;  %v9457_v45 = vld [vmem:[%s10641_s27 + $0x3d0] ss:$8 sps:$4 sm:$0xff]  }
  0xd4   : > { %7194 = vmatprep.subr.bf16.mxu0 %v9384_v46  ;;  %v9460_v46 = vld [vmem:[%s10641_s27 + $0x12d0] ss:$8 sps:$4 sm:$0xff]  }
  0xd5   : > { %6571 = vmatmul.mubr.bf16.vlgmr.msra.gmra.mrb[0].mxu1 %v10914_v51 }
  0xd6   : > { %7186 = vmatmul.mubr.bf16.vlgmr.msra.gmra.mrb[0].mxu0 %v1470_v54  ;;  %6580 = vmatpush1.bf16.msra.mxu1 %v9379_v50  ;;  %v9468_v50 = vld [vmem:[%s10641_s27 + $0x12e4] ss:$8 sps:$4 sm:$0xff]   ;;  %v9463_v54 = vld [vmem:[%s10641_s27 + $0x3e0] ss:$8 sps:$4 sm:$0xff]  }
  0xd7   : > { %7195 = vmatpush1.bf16.msra.mxu0 %v9382_v55  ;;  %6581 = vmatprep.subr.bf16.mxu1 %v9387_v56  ;;  %v9466_v55 = vld [vmem:[%s10641_s27 + $0x12e0] ss:$8 sps:$4 sm:$0xff]  }
  0xd8   : > { %7196 = vmatprep.subr.bf16.mxu0 %v9390_v57  ;;  %6611 = vmatprep.mubr.bf16.mxu1 %v1277_v58  ;;  %v10983_v56 = vld.sshfl [vmem:[%s10696_s8 + $0x8] sm:$0xff pattern:$0x75316420]  ;;  %v9471_v57 = vld [vmem:[%s10641_s27 + $0x3f4] ss:$8 sps:$4 sm:$0xff]  }
  0xd9   : > { %7226 = vmatprep.mubr.bf16.mxu0 %v10924_v30  ;;  %v9474_v58 = vld [vmem:[%s10641_s27 + $0x12f4] ss:$8 sps:$4 sm:$0xff]  }
  0xda   : > { %6582 = vmatpush1.bf16.msra.mxu1 %v9385_v37  ;;  %v9469_v37 = vld [vmem:[%s10641_s27 + $0x3f0] ss:$8 sps:$4 sm:$0xff]  }
  0xdb   : > { %7197 = vmatpush1.bf16.msra.mxu0 %v9388_v59  ;;  %6583 = vmatprep.subr.bf16.mxu1 %v9393_v60  ;;  %v9472_v59 = vld [vmem:[%s10641_s27 + $0x12f0] ss:$8 sps:$4 sm:$0xff]   ;;  %v9477_v60 = vld [vmem:[%s10641_s27 + $0x404] ss:$8 sps:$4 sm:$0xff]  }
  0xdc   : > { %7198 = vmatprep.subr.bf16.mxu0 %v9396_v41  ;;  %v9481_v41 = vld [vmem:[%s10641_s27 + $0x1304] ss:$8 sps:$4 sm:$0xff]  }
  0xde   : > { %6584 = vmatpush1.bf16.msra.mxu1 %v9391_v61  ;;  %v1293_v61 = vcombine.high %v10983_v56, %v10983_v56 }
  0xdf   : > { %7199 = vmatpush1.bf16.msra.mxu0 %v9394_v62  ;;  %6585 = vmatprep.subr.bf16.mxu1 %v9399_v63  ;;  %v9475_v62 = vld [vmem:[%s10641_s27 + $0x400] ss:$8 sps:$4 sm:$0xff]  }
  0xe0   : > { %7200 = vmatprep.subr.bf16.mxu0 %v9402_v0  ;;  %v9479_v63 = vld [vmem:[%s10641_s27 + $0x1300] ss:$8 sps:$4 sm:$0xff]   ;;  %v1275_v0 = vcombine.high %v10914_v51, %v10914_v51  ;;  %v9485_v51 = vld [vmem:[%s10641_s27 + $0x1310] ss:$8 sps:$4 sm:$0xff]  }
  0xe2   : > { %6586 = vmatpush1.bf16.msra.mxu1 %v9397_v1  ;;  %v10999_v1 = vrot.slane %v10903_v43, %v10699_v52  ;;  %v9482_v43 = vld [vmem:[%s10641_s27 + $0x410] ss:$8 sps:$4 sm:$0xff]  }
  0xe3   : > { %7201 = vmatpush1.bf16.msra.mxu0 %v9400_v2  ;;  %6587 = vmatprep.subr.bf16.mxu1 %v9405_v3  ;;  %v9484_v2 = vld [vmem:[%s10641_s27 + $0x414] ss:$8 sps:$4 sm:$0xff]  }
  0xe4   : > { %7202 = vmatprep.subr.bf16.mxu0 %v9408_v4  ;;  %v9487_v3 = vld [vmem:[%s10641_s27 + $0x1314] ss:$8 sps:$4 sm:$0xff]   ;;  %v11004_v4 = vrot.slane %v1293_v61, %v10699_v52  ;;  %v9562_v61 = vld [vmem:[%s10641_s27 + $0x4e4] ss:$8 sps:$4 sm:$0xff]  }
  0xe6   : > { %6588 = vmatpush1.bf16.msra.mxu1 %v9403_v6  ;;  %v1473_v6 = vcombine.high %v10924_v30, %v10924_v30  ;;  %v9488_v30 = vld [vmem:[%s10641_s27 + $0x420] ss:$8 sps:$4 sm:$0xff]  }
  0xe7   : > { %7203 = vmatpush1.bf16.msra.mxu0 %v9406_v7  ;;  %6589 = vmatprep.subr.bf16.mxu1 %v9411_v8  ;;  %v9490_v7 = vld [vmem:[%s10641_s27 + $0x424] ss:$8 sps:$4 sm:$0xff]  }
  0xe8   : > { %7204 = vmatprep.subr.bf16.mxu0 %v9414_v9  ;;  %v9493_v8 = vld [vmem:[%s10641_s27 + $0x1324] ss:$8 sps:$4 sm:$0xff]   ;;  %v9491_v9 = vld [vmem:[%s10641_s27 + $0x1320] ss:$8 sps:$4 sm:$0xff]  }
  0xea   : > { %6590 = vmatpush1.bf16.msra.mxu1 %v9409_v10  ;;  %v9496_v10 = vld [vmem:[%s10641_s27 + $0x434] ss:$8 sps:$4 sm:$0xff]  }
  0xeb   : > { %7205 = vmatpush1.bf16.msra.mxu0 %v9412_v11  ;;  %6591 = vmatprep.subr.bf16.mxu1 %v9417_v12  ;;  %v9499_v11 = vld [vmem:[%s10641_s27 + $0x1334] ss:$8 sps:$4 sm:$0xff]   ;;  %v9494_v12 = vld [vmem:[%s10641_s27 + $0x430] ss:$8 sps:$4 sm:$0xff]  }
  0xec   : > { %7206 = vmatprep.subr.bf16.mxu0 %v9420_v13  ;;  %v9497_v13 = vld [vmem:[%s10641_s27 + $0x1330] ss:$8 sps:$4 sm:$0xff]  }
  0xee   : > { %6592 = vmatpush1.bf16.msra.mxu1 %v9415_v14  ;;  %v9502_v14 = vld [vmem:[%s10641_s27 + $0x444] ss:$8 sps:$4 sm:$0xff]  }
  0xef   : > { %7207 = vmatpush1.bf16.msra.mxu0 %v9418_v16  ;;  %6593 = vmatprep.subr.bf16.mxu1 %v9423_v17  ;;  %v9505_v16 = vld [vmem:[%s10641_s27 + $0x1344] ss:$8 sps:$4 sm:$0xff]   ;;  %v9500_v17 = vld [vmem:[%s10641_s27 + $0x440] ss:$8 sps:$4 sm:$0xff]  }
  0xf0   : > { %7208 = vmatprep.subr.bf16.mxu0 %v9426_v18  ;;  %v9503_v18 = vld [vmem:[%s10641_s27 + $0x1340] ss:$8 sps:$4 sm:$0xff]  }
  0xf2   : > { %6594 = vmatpush1.bf16.msra.mxu1 %v9421_v19  ;;  %v9508_v19 = vld [vmem:[%s10641_s27 + $0x454] ss:$8 sps:$4 sm:$0xff]  }
  0xf3   : > { %7209 = vmatpush1.bf16.msra.mxu0 %v9424_v21  ;;  %6595 = vmatprep.subr.bf16.mxu1 %v9429_v22  ;;  %v9511_v21 = vld [vmem:[%s10641_s27 + $0x1354] ss:$8 sps:$4 sm:$0xff]   ;;  %v9506_v22 = vld [vmem:[%s10641_s27 + $0x450] ss:$8 sps:$4 sm:$0xff]  }
  0xf4   : > { %7210 = vmatprep.subr.bf16.mxu0 %v9432_v23  ;;  %v9509_v23 = vld [vmem:[%s10641_s27 + $0x1350] ss:$8 sps:$4 sm:$0xff]  }
  0xf6   : > { %6596 = vmatpush1.bf16.msra.mxu1 %v9427_v24  ;;  %v9514_v24 = vld [vmem:[%s10641_s27 + $0x464] ss:$8 sps:$4 sm:$0xff]  }
  0xf7   : > { %7211 = vmatpush1.bf16.msra.mxu0 %v9430_v25  ;;  %6597 = vmatprep.subr.bf16.mxu1 %v9435_v26  ;;  %v9517_v25 = vld [vmem:[%s10641_s27 + $0x1364] ss:$8 sps:$4 sm:$0xff]   ;;  %v9512_v26 = vld [vmem:[%s10641_s27 + $0x460] ss:$8 sps:$4 sm:$0xff]  }
  0xf8   : > { %7212 = vmatprep.subr.bf16.mxu0 %v9438_v27  ;;  %v9515_v27 = vld [vmem:[%s10641_s27 + $0x1360] ss:$8 sps:$4 sm:$0xff]  }
  0xfa   : > { %6598 = vmatpush1.bf16.msra.mxu1 %v9433_v28  ;;  %v9520_v28 = vld [vmem:[%s10641_s27 + $0x474] ss:$8 sps:$4 sm:$0xff]  }
  0xfb   : > { %7213 = vmatpush1.bf16.msra.mxu0 %v9436_v29  ;;  %6599 = vmatprep.subr.bf16.mxu1 %v9441_v31  ;;  %v9523_v29 = vld [vmem:[%s10641_s27 + $0x1374] ss:$8 sps:$4 sm:$0xff]   ;;  %v9518_v31 = vld [vmem:[%s10641_s27 + $0x470] ss:$8 sps:$4 sm:$0xff]  }
  0xfc   : > { %7214 = vmatprep.subr.bf16.mxu0 %v9444_v53  ;;  %v9521_v53 = vld [vmem:[%s10641_s27 + $0x1370] ss:$8 sps:$4 sm:$0xff]  }
  0xfe   : > { %6600 = vmatpush1.bf16.msra.mxu1 %v9439_v32  ;;  %v9526_v32 = vld [vmem:[%s10641_s27 + $0x484] ss:$8 sps:$4 sm:$0xff]  }
  0xff   : > { %7215 = vmatpush1.bf16.msra.mxu0 %v9442_v33  ;;  %6601 = vmatprep.subr.bf16.mxu1 %v9447_v34  ;;  %v9529_v33 = vld [vmem:[%s10641_s27 + $0x1384] ss:$8 sps:$4 sm:$0xff]   ;;  %v9524_v34 = vld [vmem:[%s10641_s27 + $0x480] ss:$8 sps:$4 sm:$0xff]  }
 0x100   : > { %7216 = vmatprep.subr.bf16.mxu0 %v9450_v35  ;;  %v9527_v35 = vld [vmem:[%s10641_s27 + $0x1380] ss:$8 sps:$4 sm:$0xff]  }
 0x102   : > { %6602 = vmatpush1.bf16.msra.mxu1 %v9445_v36  ;;  %v9532_v36 = vld [vmem:[%s10641_s27 + $0x494] ss:$8 sps:$4 sm:$0xff]  }
 0x103   : > { %7217 = vmatpush1.bf16.msra.mxu0 %v9448_v38  ;;  %6603 = vmatprep.subr.bf16.mxu1 %v9453_v39  ;;  %v9535_v38 = vld [vmem:[%s10641_s27 + $0x1394] ss:$8 sps:$4 sm:$0xff]   ;;  %v9530_v39 = vld [vmem:[%s10641_s27 + $0x490] ss:$8 sps:$4 sm:$0xff]  }
 0x104   : > { %7218 = vmatprep.subr.bf16.mxu0 %v9456_v40  ;;  %v9533_v40 = vld [vmem:[%s10641_s27 + $0x1390] ss:$8 sps:$4 sm:$0xff]  }
 0x106   : > { %6604 = vmatpush1.bf16.msra.mxu1 %v9451_v20  ;;  %v9538_v20 = vld [vmem:[%s10641_s27 + $0x4a4] ss:$8 sps:$4 sm:$0xff]  }
 0x107   : > { %7219 = vmatpush1.bf16.msra.mxu0 %v9454_v42  ;;  %6605 = vmatprep.subr.bf16.mxu1 %v9459_v44  ;;  %v9541_v42 = vld [vmem:[%s10641_s27 + $0x13a4] ss:$8 sps:$4 sm:$0xff]   ;;  %v9536_v44 = vld [vmem:[%s10641_s27 + $0x4a0] ss:$8 sps:$4 sm:$0xff]  }
 0x108   : > { %7220 = vmatprep.subr.bf16.mxu0 %v9462_v49  ;;  %v9539_v49 = vld [vmem:[%s10641_s27 + $0x13a0] ss:$8 sps:$4 sm:$0xff]  }
 0x10a   : > { %6606 = vmatpush1.bf16.msra.mxu1 %v9457_v45  ;;  %v9544_v45 = vld [vmem:[%s10641_s27 + $0x4b4] ss:$8 sps:$4 sm:$0xff]  }
 0x10b   : > { %7221 = vmatpush1.bf16.msra.mxu0 %v9460_v46  ;;  %6607 = vmatprep.subr.bf16.mxu1 %v9465_v48  ;;  %v9547_v46 = vld [vmem:[%s10641_s27 + $0x13b4] ss:$8 sps:$4 sm:$0xff]   ;;  %v9542_v48 = vld [vmem:[%s10641_s27 + $0x4b0] ss:$8 sps:$4 sm:$0xff]  }
 0x10c   : > { %7222 = vmatprep.subr.bf16.mxu0 %v9468_v50  ;;  %v9545_v50 = vld [vmem:[%s10641_s27 + $0x13b0] ss:$8 sps:$4 sm:$0xff]  }
 0x10e   : > { %6608 = vmatpush1.bf16.msra.mxu1 %v9463_v54  ;;  %v9550_v54 = vld [vmem:[%s10641_s27 + $0x4c4] ss:$8 sps:$4 sm:$0xff]  }
 0x10f   : > { %7223 = vmatpush1.bf16.msra.mxu0 %v9466_v55  ;;  %6609 = vmatprep.subr.bf16.mxu1 %v9471_v57  ;;  %v9553_v55 = vld [vmem:[%s10641_s27 + $0x13c4] ss:$8 sps:$4 sm:$0xff]   ;;  %v9548_v57 = vld [vmem:[%s10641_s27 + $0x4c0] ss:$8 sps:$4 sm:$0xff]  }
 0x110   : > { %7224 = vmatprep.subr.bf16.mxu0 %v9474_v58  ;;  %v9551_v58 = vld [vmem:[%s10641_s27 + $0x13c0] ss:$8 sps:$4 sm:$0xff]  }
 0x112   : > { %6610 = vmatpush1.bf16.msra.mxu1 %v9469_v37  ;;  %v9556_v37 = vld [vmem:[%s10641_s27 + $0x4d4] ss:$8 sps:$4 sm:$0xff]  }
 0x113   : > { %7225 = vmatpush1.bf16.msra.mxu0 %v9472_v59  ;;  %6620 = vmatprep.subr.bf16.mxu1 %v9477_v60  ;;  %v9559_v59 = vld [vmem:[%s10641_s27 + $0x13d4] ss:$8 sps:$4 sm:$0xff]   ;;  %v9554_v60 = vld [vmem:[%s10641_s27 + $0x4d0] ss:$8 sps:$4 sm:$0xff]  }
 0x114   : > { %7235 = vmatprep.subr.bf16.mxu0 %v9481_v41  ;;  %v9557_v41 = vld [vmem:[%s10641_s27 + $0x13d0] ss:$8 sps:$4 sm:$0xff]  }
 0x115   : > { %6612 = vmatmul.mubr.bf16.vlgmr.msra.gmra.mrb[0].mxu1 %v1275_v0  ;;  %v9560_v0 = vld [vmem:[%s10641_s27 + $0x4e0] ss:$8 sps:$4 sm:$0xff]  }
 0x116   : > { %7227 = vmatmul.mubr.bf16.vlgmr.msra.gmra.mrb[0].mxu0 %v10999_v1  ;;  %6621 = vmatpush1.bf16.msra.mxu1 %v9475_v62  ;;  %v9565_v62 = vld [vmem:[%s10641_s27 + $0x13e4] ss:$8 sps:$4 sm:$0xff]  }
 0x117   : > { %7236 = vmatpush1.bf16.msra.mxu0 %v9479_v63  ;;  %6622 = vmatprep.subr.bf16.mxu1 %v9484_v2  ;;  %v11063_v63 = vld.sshfl [vmem:[%s10696_s8 + $0x28] sm:$0xff pattern:$0x75316420] }
 0x118   : > { %7237 = vmatprep.subr.bf16.mxu0 %v9487_v3  ;;  %6652 = vmatprep.mubr.bf16.mxu1 %v11004_v4  ;;  %v9563_v2 = vld [vmem:[%s10641_s27 + $0x13e0] ss:$8 sps:$4 sm:$0xff]   ;;  %v9568_v3 = vld [vmem:[%s10641_s27 + $0x4f4] ss:$8 sps:$4 sm:$0xff]  }
 0x119   : > { %7267 = vmatprep.mubr.bf16.mxu0 %v1473_v6  ;;  %v9571_v6 = vld [vmem:[%s10641_s27 + $0x13f4] ss:$8 sps:$4 sm:$0xff]  }
 0x11a   : > { %6623 = vmatpush1.bf16.msra.mxu1 %v9482_v43  ;;  %v9566_v43 = vld [vmem:[%s10641_s27 + $0x4f0] ss:$8 sps:$4 sm:$0xff]  }
 0x11b   : > { %7238 = vmatpush1.bf16.msra.mxu0 %v9485_v51  ;;  %6624 = vmatprep.subr.bf16.mxu1 %v9490_v7  ;;  %v9569_v51 = vld [vmem:[%s10641_s27 + $0x13f0] ss:$8 sps:$4 sm:$0xff]   ;;  %v9574_v7 = vld [vmem:[%s10641_s27 + $0x504] ss:$8 sps:$4 sm:$0xff]  }
 0x11c   : > { %7239 = vmatprep.subr.bf16.mxu0 %v9493_v8  ;;  %v9577_v8 = vld [vmem:[%s10641_s27 + $0x1404] ss:$8 sps:$4 sm:$0xff]  }
 0x11e   : > { %6625 = vmatpush1.bf16.msra.mxu1 %v9488_v30  ;;  %v1489_v30 = vcombine.high %v11063_v63, %v11063_v63 }
 0x11f   : > { %7240 = vmatpush1.bf16.msra.mxu0 %v9491_v9  ;;  %6626 = vmatprep.subr.bf16.mxu1 %v9496_v10  ;;  %v11077_v9 = vrot.slane %v10983_v56, %v10699_v52  ;;  %v1471_v10 = vcombine.high %v10999_v1, %v10999_v1  ;;  %v9578_v1 = vld [vmem:[%s10641_s27 + $0x510] ss:$8 sps:$4 sm:$0xff]  }
 0x120   : > { %7241 = vmatprep.subr.bf16.mxu0 %v9499_v11  ;;  %v9572_v11 = vld [vmem:[%s10641_s27 + $0x500] ss:$8 sps:$4 sm:$0xff]   ;;  %v11088_v56 = vrot.slane %v1489_v30, %v10699_v52  ;;  %v9658_v30 = vld [vmem:[%s10641_s27 + $0x5e4] ss:$8 sps:$4 sm:$0xff]  }
 0x122   : > { %6627 = vmatpush1.bf16.msra.mxu1 %v9494_v12  ;;  %v9575_v12 = vld [vmem:[%s10641_s27 + $0x1400] ss:$8 sps:$4 sm:$0xff]  }
 0x123   : > { %7242 = vmatpush1.bf16.msra.mxu0 %v9497_v13  ;;  %6628 = vmatprep.subr.bf16.mxu1 %v9502_v14  ;;  %v9580_v13 = vld [vmem:[%s10641_s27 + $0x514] ss:$8 sps:$4 sm:$0xff]  }
 0x124   : > { %7243 = vmatprep.subr.bf16.mxu0 %v9505_v16  ;;  %v9583_v14 = vld [vmem:[%s10641_s27 + $0x1414] ss:$8 sps:$4 sm:$0xff]   ;;  %v1325_v16 = vcombine.high %v11004_v4, %v11004_v4  ;;  %v9589_v4 = vld [vmem:[%s10641_s27 + $0x1424] ss:$8 sps:$4 sm:$0xff]  }
 0x126   : > { %6629 = vmatpush1.bf16.msra.mxu1 %v9500_v17  ;;  %v9581_v17 = vld [vmem:[%s10641_s27 + $0x1410] ss:$8 sps:$4 sm:$0xff]  }
 0x127   : > { %7244 = vmatpush1.bf16.msra.mxu0 %v9503_v18  ;;  %6630 = vmatprep.subr.bf16.mxu1 %v9508_v19  ;;  %v9586_v18 = vld [vmem:[%s10641_s27 + $0x524] ss:$8 sps:$4 sm:$0xff]   ;;  %v9584_v19 = vld [vmem:[%s10641_s27 + $0x520] ss:$8 sps:$4 sm:$0xff]  }
 0x128   : > { %7245 = vmatprep.subr.bf16.mxu0 %v9511_v21  ;;  %v9587_v21 = vld [vmem:[%s10641_s27 + $0x1420] ss:$8 sps:$4 sm:$0xff]  }
 0x12a   : > { %6631 = vmatpush1.bf16.msra.mxu1 %v9506_v22  ;;  %v9592_v22 = vld [vmem:[%s10641_s27 + $0x534] ss:$8 sps:$4 sm:$0xff]  }
 0x12b   : > { %7246 = vmatpush1.bf16.msra.mxu0 %v9509_v23  ;;  %6632 = vmatprep.subr.bf16.mxu1 %v9514_v24  ;;  %v9595_v23 = vld [vmem:[%s10641_s27 + $0x1434] ss:$8 sps:$4 sm:$0xff]   ;;  %v9590_v24 = vld [vmem:[%s10641_s27 + $0x530] ss:$8 sps:$4 sm:$0xff]  }
 0x12c   : > { %7247 = vmatprep.subr.bf16.mxu0 %v9517_v25  ;;  %v9593_v25 = vld [vmem:[%s10641_s27 + $0x1430] ss:$8 sps:$4 sm:$0xff]  }
 0x12e   : > { %6633 = vmatpush1.bf16.msra.mxu1 %v9512_v26  ;;  %v9598_v26 = vld [vmem:[%s10641_s27 + $0x544] ss:$8 sps:$4 sm:$0xff]  }
 0x12f   : > { %7248 = vmatpush1.bf16.msra.mxu0 %v9515_v27  ;;  %6634 = vmatprep.subr.bf16.mxu1 %v9520_v28  ;;  %v9601_v27 = vld [vmem:[%s10641_s27 + $0x1444] ss:$8 sps:$4 sm:$0xff]   ;;  %v9596_v28 = vld [vmem:[%s10641_s27 + $0x540] ss:$8 sps:$4 sm:$0xff]  }
 0x130   : > { %7249 = vmatprep.subr.bf16.mxu0 %v9523_v29  ;;  %v9599_v29 = vld [vmem:[%s10641_s27 + $0x1440] ss:$8 sps:$4 sm:$0xff]  }
 0x132   : > { %6635 = vmatpush1.bf16.msra.mxu1 %v9518_v31  ;;  %v9604_v31 = vld [vmem:[%s10641_s27 + $0x554] ss:$8 sps:$4 sm:$0xff]  }
 0x133   : > { %7250 = vmatpush1.bf16.msra.mxu0 %v9521_v53  ;;  %6636 = vmatprep.subr.bf16.mxu1 %v9526_v32  ;;  %v9607_v53 = vld [vmem:[%s10641_s27 + $0x1454] ss:$8 sps:$4 sm:$0xff]   ;;  %v9602_v32 = vld [vmem:[%s10641_s27 + $0x550] ss:$8 sps:$4 sm:$0xff]  }
 0x134   : > { %7251 = vmatprep.subr.bf16.mxu0 %v9529_v33  ;;  %v9605_v33 = vld [vmem:[%s10641_s27 + $0x1450] ss:$8 sps:$4 sm:$0xff]  }
 0x136   : > { %6637 = vmatpush1.bf16.msra.mxu1 %v9524_v34  ;;  %v9610_v34 = vld [vmem:[%s10641_s27 + $0x564] ss:$8 sps:$4 sm:$0xff]  }
 0x137   : > { %7252 = vmatpush1.bf16.msra.mxu0 %v9527_v35  ;;  %6638 = vmatprep.subr.bf16.mxu1 %v9532_v36  ;;  %v9613_v35 = vld [vmem:[%s10641_s27 + $0x1464] ss:$8 sps:$4 sm:$0xff]   ;;  %v9608_v36 = vld [vmem:[%s10641_s27 + $0x560] ss:$8 sps:$4 sm:$0xff]  }
 0x138   : > { %7253 = vmatprep.subr.bf16.mxu0 %v9535_v38  ;;  %v9611_v38 = vld [vmem:[%s10641_s27 + $0x1460] ss:$8 sps:$4 sm:$0xff]  }
 0x13a   : > { %6639 = vmatpush1.bf16.msra.mxu1 %v9530_v39  ;;  %v9616_v39 = vld [vmem:[%s10641_s27 + $0x574] ss:$8 sps:$4 sm:$0xff]  }
 0x13b   : > { %7254 = vmatpush1.bf16.msra.mxu0 %v9533_v40  ;;  %6640 = vmatprep.subr.bf16.mxu1 %v9538_v20  ;;  %v9619_v40 = vld [vmem:[%s10641_s27 + $0x1474] ss:$8 sps:$4 sm:$0xff]   ;;  %v9614_v20 = vld [vmem:[%s10641_s27 + $0x570] ss:$8 sps:$4 sm:$0xff]  }
 0x13c   : > { %7255 = vmatprep.subr.bf16.mxu0 %v9541_v42  ;;  %v9617_v42 = vld [vmem:[%s10641_s27 + $0x1470] ss:$8 sps:$4 sm:$0xff]  }
 0x13e   : > { %6641 = vmatpush1.bf16.msra.mxu1 %v9536_v44  ;;  %v9622_v44 = vld [vmem:[%s10641_s27 + $0x584] ss:$8 sps:$4 sm:$0xff]  }
 0x13f   : > { %7256 = vmatpush1.bf16.msra.mxu0 %v9539_v49  ;;  %6642 = vmatprep.subr.bf16.mxu1 %v9544_v45  ;;  %v9625_v49 = vld [vmem:[%s10641_s27 + $0x1484] ss:$8 sps:$4 sm:$0xff]   ;;  %v9620_v45 = vld [vmem:[%s10641_s27 + $0x580] ss:$8 sps:$4 sm:$0xff]  }
 0x140   : > { %7257 = vmatprep.subr.bf16.mxu0 %v9547_v46  ;;  %v9623_v46 = vld [vmem:[%s10641_s27 + $0x1480] ss:$8 sps:$4 sm:$0xff]  }
 0x142   : > { %6643 = vmatpush1.bf16.msra.mxu1 %v9542_v48  ;;  %v9628_v48 = vld [vmem:[%s10641_s27 + $0x594] ss:$8 sps:$4 sm:$0xff]  }
 0x143   : > { %7258 = vmatpush1.bf16.msra.mxu0 %v9545_v50  ;;  %6644 = vmatprep.subr.bf16.mxu1 %v9550_v54  ;;  %v9631_v50 = vld [vmem:[%s10641_s27 + $0x1494] ss:$8 sps:$4 sm:$0xff]   ;;  %v9626_v54 = vld [vmem:[%s10641_s27 + $0x590] ss:$8 sps:$4 sm:$0xff]  }
 0x144   : > { %7259 = vmatprep.subr.bf16.mxu0 %v9553_v55  ;;  %v9629_v55 = vld [vmem:[%s10641_s27 + $0x1490] ss:$8 sps:$4 sm:$0xff]  }
 0x146   : > { %6645 = vmatpush1.bf16.msra.mxu1 %v9548_v57  ;;  %v9634_v57 = vld [vmem:[%s10641_s27 + $0x5a4] ss:$8 sps:$4 sm:$0xff]  }
 0x147   : > { %7260 = vmatpush1.bf16.msra.mxu0 %v9551_v58  ;;  %6646 = vmatprep.subr.bf16.mxu1 %v9556_v37  ;;  %v9637_v58 = vld [vmem:[%s10641_s27 + $0x14a4] ss:$8 sps:$4 sm:$0xff]   ;;  %v9632_v37 = vld [vmem:[%s10641_s27 + $0x5a0] ss:$8 sps:$4 sm:$0xff]  }
 0x148   : > { %7261 = vmatprep.subr.bf16.mxu0 %v9559_v59  ;;  %v9635_v59 = vld [vmem:[%s10641_s27 + $0x14a0] ss:$8 sps:$4 sm:$0xff]  }
 0x14a   : > { %6647 = vmatpush1.bf16.msra.mxu1 %v9554_v60  ;;  %v9640_v60 = vld [vmem:[%s10641_s27 + $0x5b4] ss:$8 sps:$4 sm:$0xff]  }
 0x14b   : > { %7262 = vmatpush1.bf16.msra.mxu0 %v9557_v41  ;;  %6648 = vmatprep.subr.bf16.mxu1 %v9562_v61  ;;  %v9643_v41 = vld [vmem:[%s10641_s27 + $0x14b4] ss:$8 sps:$4 sm:$0xff]   ;;  %v9638_v61 = vld [vmem:[%s10641_s27 + $0x5b0] ss:$8 sps:$4 sm:$0xff]  }
 0x14c   : > { %7263 = vmatprep.subr.bf16.mxu0 %v9565_v62  ;;  %v9641_v62 = vld [vmem:[%s10641_s27 + $0x14b0] ss:$8 sps:$4 sm:$0xff]  }
 0x14e   : > { %6649 = vmatpush1.bf16.msra.mxu1 %v9560_v0  ;;  %v9646_v0 = vld [vmem:[%s10641_s27 + $0x5c4] ss:$8 sps:$4 sm:$0xff]  }
 0x14f   : > { %7264 = vmatpush1.bf16.msra.mxu0 %v9563_v2  ;;  %6650 = vmatprep.subr.bf16.mxu1 %v9568_v3  ;;  %v9649_v2 = vld [vmem:[%s10641_s27 + $0x14c4] ss:$8 sps:$4 sm:$0xff]   ;;  %v9644_v3 = vld [vmem:[%s10641_s27 + $0x5c0] ss:$8 sps:$4 sm:$0xff]  }
 0x150   : > { %7265 = vmatprep.subr.bf16.mxu0 %v9571_v6  ;;  %v9647_v6 = vld [vmem:[%s10641_s27 + $0x14c0] ss:$8 sps:$4 sm:$0xff]  }
 0x152   : > { %6651 = vmatpush1.bf16.msra.mxu1 %v9566_v43  ;;  %v9652_v43 = vld [vmem:[%s10641_s27 + $0x5d4] ss:$8 sps:$4 sm:$0xff]  }
 0x153   : > { %7266 = vmatpush1.bf16.msra.mxu0 %v9569_v51  ;;  %6661 = vmatprep.subr.bf16.mxu1 %v9574_v7  ;;  %v9655_v51 = vld [vmem:[%s10641_s27 + $0x14d4] ss:$8 sps:$4 sm:$0xff]   ;;  %v9650_v7 = vld [vmem:[%s10641_s27 + $0x5d0] ss:$8 sps:$4 sm:$0xff]  }
 0x154   : > { %7276 = vmatprep.subr.bf16.mxu0 %v9577_v8  ;;  %v9653_v8 = vld [vmem:[%s10641_s27 + $0x14d0] ss:$8 sps:$4 sm:$0xff]  }
 0x155   : > { %6653 = vmatmul.mubr.bf16.vlgmr.msra.gmra.mrb[0].mxu1 %v11077_v9 }
 0x156   : > { %7268 = vmatmul.mubr.bf16.vlgmr.msra.gmra.mrb[0].mxu0 %v1471_v10  ;;  %6662 = vmatpush1.bf16.msra.mxu1 %v9572_v11  ;;  %v9661_v10 = vld [vmem:[%s10641_s27 + $0x14e4] ss:$8 sps:$4 sm:$0xff]  }
 0x157   : > { %7277 = vmatpush1.bf16.msra.mxu0 %v9575_v12  ;;  %6663 = vmatprep.subr.bf16.mxu1 %v9580_v13  ;;  %v10536_v11 = vld [vmem:[%s10696_s8 + $0x8] sm:$0xff] }
 0x158   : > { %7278 = vmatprep.subr.bf16.mxu0 %v9583_v14  ;;  %6693 = vmatprep.mubr.bf16.mxu1 %v1325_v16  ;;  %v1278_v12 = vcombine.high %v10536_v11, %v10536_v11  ;;  %v9656_v13 = vld [vmem:[%s10641_s27 + $0x5e0] ss:$8 sps:$4 sm:$0xff]   ;;  %v9664_v16 = vld [vmem:[%s10641_s27 + $0x5f4] ss:$8 sps:$4 sm:$0xff]   ;;  %v9734_v11 = vld [vmem:[%s10641_s27 + $0x6b0] ss:$8 sps:$4 sm:$0xff]  }
 0x159   : > { %7308 = vmatprep.mubr.bf16.mxu0 %v11088_v56  ;;  %v9659_v14 = vld [vmem:[%s10641_s27 + $0x14e0] ss:$8 sps:$4 sm:$0xff]  }
 0x15a   : > { %6664 = vmatpush1.bf16.msra.mxu1 %v9578_v1  ;;  %v9667_v1 = vld [vmem:[%s10641_s27 + $0x14f4] ss:$8 sps:$4 sm:$0xff]  }
 0x15b   : > { %7279 = vmatpush1.bf16.msra.mxu0 %v9581_v17  ;;  %6665 = vmatprep.subr.bf16.mxu1 %v9586_v18  ;;  %v11150_v17 = vrot.slane %v1278_v12, %v10699_v52  ;;  %v9662_v18 = vld [vmem:[%s10641_s27 + $0x5f0] ss:$8 sps:$4 sm:$0xff]  }
 0x15c   : > { %7280 = vmatprep.subr.bf16.mxu0 %v9589_v4  ;;  %v9665_v4 = vld [vmem:[%s10641_s27 + $0x14f0] ss:$8 sps:$4 sm:$0xff]  }
 0x15d   : > { %v9737_v12 = vld [vmem:[%s10641_s27 + $0x15b0] ss:$8 sps:$4 sm:$0xff]  }
 0x15e   : > { %6666 = vmatpush1.bf16.msra.mxu1 %v9584_v19  ;;  %v9670_v19 = vld [vmem:[%s10641_s27 + $0x604] ss:$8 sps:$4 sm:$0xff]  }
 0x15f   : > { %7281 = vmatpush1.bf16.msra.mxu0 %v9587_v21  ;;  %6667 = vmatprep.subr.bf16.mxu1 %v9592_v22  ;;  %v9673_v21 = vld [vmem:[%s10641_s27 + $0x1504] ss:$8 sps:$4 sm:$0xff]   ;;  %v1294_v22 = vcombine.high %v11150_v17, %v11150_v17 }
 0x160   : > { %7282 = vmatprep.subr.bf16.mxu0 %v9595_v23  ;;  %v1323_v23 = vcombine.high %v11077_v9, %v11077_v9  ;;  %v1521_v9 = vcombine.high %v11088_v56, %v11088_v56  ;;  %v9680_v56 = vld [vmem:[%s10641_s27 + $0x620] ss:$8 sps:$4 sm:$0xff]  }
 0x162   : > { %6668 = vmatpush1.bf16.msra.mxu1 %v9590_v24  ;;  %v11162_v24 = vrot.slane %v11063_v63, %v10699_v52  ;;  %v9674_v63 = vld [vmem:[%s10641_s27 + $0x610] ss:$8 sps:$4 sm:$0xff]  }
 0x163   : > { %7283 = vmatpush1.bf16.msra.mxu0 %v9593_v25  ;;  %6669 = vmatprep.subr.bf16.mxu1 %v9598_v26  ;;  %v9668_v25 = vld [vmem:[%s10641_s27 + $0x600] ss:$8 sps:$4 sm:$0xff]  }
 0x164   : > { %7284 = vmatprep.subr.bf16.mxu0 %v9601_v27  ;;  %v9671_v26 = vld [vmem:[%s10641_s27 + $0x1500] ss:$8 sps:$4 sm:$0xff]   ;;  %v9676_v27 = vld [vmem:[%s10641_s27 + $0x614] ss:$8 sps:$4 sm:$0xff]  }
 0x166   : > { %6670 = vmatpush1.bf16.msra.mxu1 %v9596_v28  ;;  %v9679_v28 = vld [vmem:[%s10641_s27 + $0x1514] ss:$8 sps:$4 sm:$0xff]  }
 0x167   : > { %7285 = vmatpush1.bf16.msra.mxu0 %v9599_v29  ;;  %6671 = vmatprep.subr.bf16.mxu1 %v9604_v31  ;;  %v11169_v29 = vrot.slane %v1294_v22, %v10699_v52  ;;  %v9677_v31 = vld [vmem:[%s10641_s27 + $0x1510] ss:$8 sps:$4 sm:$0xff]   ;;  %v9754_v22 = vld [vmem:[%s10641_s27 + $0x6e4] ss:$8 sps:$4 sm:$0xff]  }
 0x168   : > { %7286 = vmatprep.subr.bf16.mxu0 %v9607_v53  ;;  %v9682_v53 = vld [vmem:[%s10641_s27 + $0x624] ss:$8 sps:$4 sm:$0xff]  }
 0x16a   : > { %6672 = vmatpush1.bf16.msra.mxu1 %v9602_v32  ;;  %v9685_v32 = vld [vmem:[%s10641_s27 + $0x1524] ss:$8 sps:$4 sm:$0xff]  }
 0x16b   : > { %7287 = vmatpush1.bf16.msra.mxu0 %v9605_v33  ;;  %6673 = vmatprep.subr.bf16.mxu1 %v9610_v34  ;;  %v9683_v33 = vld [vmem:[%s10641_s27 + $0x1520] ss:$8 sps:$4 sm:$0xff]   ;;  %v9688_v34 = vld [vmem:[%s10641_s27 + $0x634] ss:$8 sps:$4 sm:$0xff]  }
 0x16c   : > { %7288 = vmatprep.subr.bf16.mxu0 %v9613_v35  ;;  %v9691_v35 = vld [vmem:[%s10641_s27 + $0x1534] ss:$8 sps:$4 sm:$0xff]  }
 0x16e   : > { %6674 = vmatpush1.bf16.msra.mxu1 %v9608_v36  ;;  %v9686_v36 = vld [vmem:[%s10641_s27 + $0x630] ss:$8 sps:$4 sm:$0xff]  }
 0x16f   : > { %7289 = vmatpush1.bf16.msra.mxu0 %v9611_v38  ;;  %6675 = vmatprep.subr.bf16.mxu1 %v9616_v39  ;;  %v9689_v38 = vld [vmem:[%s10641_s27 + $0x1530] ss:$8 sps:$4 sm:$0xff]   ;;  %v9694_v39 = vld [vmem:[%s10641_s27 + $0x644] ss:$8 sps:$4 sm:$0xff]  }
 0x170   : > { %7290 = vmatprep.subr.bf16.mxu0 %v9619_v40  ;;  %v9697_v40 = vld [vmem:[%s10641_s27 + $0x1544] ss:$8 sps:$4 sm:$0xff]  }
 0x172   : > { %6676 = vmatpush1.bf16.msra.mxu1 %v9614_v20  ;;  %v9692_v20 = vld [vmem:[%s10641_s27 + $0x640] ss:$8 sps:$4 sm:$0xff]  }
 0x173   : > { %7291 = vmatpush1.bf16.msra.mxu0 %v9617_v42  ;;  %6677 = vmatprep.subr.bf16.mxu1 %v9622_v44  ;;  %v9695_v42 = vld [vmem:[%s10641_s27 + $0x1540] ss:$8 sps:$4 sm:$0xff]   ;;  %v9700_v44 = vld [vmem:[%s10641_s27 + $0x654] ss:$8 sps:$4 sm:$0xff]  }
 0x174   : > { %7292 = vmatprep.subr.bf16.mxu0 %v9625_v49  ;;  %v9703_v49 = vld [vmem:[%s10641_s27 + $0x1554] ss:$8 sps:$4 sm:$0xff]  }
 0x176   : > { %6678 = vmatpush1.bf16.msra.mxu1 %v9620_v45  ;;  %v9698_v45 = vld [vmem:[%s10641_s27 + $0x650] ss:$8 sps:$4 sm:$0xff]  }
 0x177   : > { %7293 = vmatpush1.bf16.msra.mxu0 %v9623_v46  ;;  %6679 = vmatprep.subr.bf16.mxu1 %v9628_v48  ;;  %v9701_v46 = vld [vmem:[%s10641_s27 + $0x1550] ss:$8 sps:$4 sm:$0xff]   ;;  %v9706_v48 = vld [vmem:[%s10641_s27 + $0x664] ss:$8 sps:$4 sm:$0xff]  }
 0x178   : > { %7294 = vmatprep.subr.bf16.mxu0 %v9631_v50  ;;  %v9709_v50 = vld [vmem:[%s10641_s27 + $0x1564] ss:$8 sps:$4 sm:$0xff]  }
 0x17a   : > { %6680 = vmatpush1.bf16.msra.mxu1 %v9626_v54  ;;  %v9704_v54 = vld [vmem:[%s10641_s27 + $0x660] ss:$8 sps:$4 sm:$0xff]  }
 0x17b   : > { %7295 = vmatpush1.bf16.msra.mxu0 %v9629_v55  ;;  %6681 = vmatprep.subr.bf16.mxu1 %v9634_v57  ;;  %v9707_v55 = vld [vmem:[%s10641_s27 + $0x1560] ss:$8 sps:$4 sm:$0xff]   ;;  %v9712_v57 = vld [vmem:[%s10641_s27 + $0x674] ss:$8 sps:$4 sm:$0xff]  }
 0x17c   : > { %7296 = vmatprep.subr.bf16.mxu0 %v9637_v58  ;;  %v9715_v58 = vld [vmem:[%s10641_s27 + $0x1574] ss:$8 sps:$4 sm:$0xff]  }
 0x17e   : > { %6682 = vmatpush1.bf16.msra.mxu1 %v9632_v37  ;;  %v9710_v37 = vld [vmem:[%s10641_s27 + $0x670] ss:$8 sps:$4 sm:$0xff]  }
 0x17f   : > { %7297 = vmatpush1.bf16.msra.mxu0 %v9635_v59  ;;  %6683 = vmatprep.subr.bf16.mxu1 %v9640_v60  ;;  %v9713_v59 = vld [vmem:[%s10641_s27 + $0x1570] ss:$8 sps:$4 sm:$0xff]   ;;  %v9718_v60 = vld [vmem:[%s10641_s27 + $0x684] ss:$8 sps:$4 sm:$0xff]  }
 0x180   : > { %7298 = vmatprep.subr.bf16.mxu0 %v9643_v41  ;;  %v9721_v41 = vld [vmem:[%s10641_s27 + $0x1584] ss:$8 sps:$4 sm:$0xff]  }
 0x182   : > { %6684 = vmatpush1.bf16.msra.mxu1 %v9638_v61  ;;  %v9716_v61 = vld [vmem:[%s10641_s27 + $0x680] ss:$8 sps:$4 sm:$0xff]  }
 0x183   : > { %7299 = vmatpush1.bf16.msra.mxu0 %v9641_v62  ;;  %6685 = vmatprep.subr.bf16.mxu1 %v9646_v0  ;;  %v9719_v62 = vld [vmem:[%s10641_s27 + $0x1580] ss:$8 sps:$4 sm:$0xff]   ;;  %v9724_v0 = vld [vmem:[%s10641_s27 + $0x694] ss:$8 sps:$4 sm:$0xff]  }
 0x184   : > { %7300 = vmatprep.subr.bf16.mxu0 %v9649_v2  ;;  %v9727_v2 = vld [vmem:[%s10641_s27 + $0x1594] ss:$8 sps:$4 sm:$0xff]  }
 0x186   : > { %6686 = vmatpush1.bf16.msra.mxu1 %v9644_v3  ;;  %v9722_v3 = vld [vmem:[%s10641_s27 + $0x690] ss:$8 sps:$4 sm:$0xff]  }
 0x187   : > { %7301 = vmatpush1.bf16.msra.mxu0 %v9647_v6  ;;  %6687 = vmatprep.subr.bf16.mxu1 %v9652_v43  ;;  %v9725_v6 = vld [vmem:[%s10641_s27 + $0x1590] ss:$8 sps:$4 sm:$0xff]   ;;  %v9730_v43 = vld [vmem:[%s10641_s27 + $0x6a4] ss:$8 sps:$4 sm:$0xff]  }
 0x188   : > { %7302 = vmatprep.subr.bf16.mxu0 %v9655_v51  ;;  %v9733_v51 = vld [vmem:[%s10641_s27 + $0x15a4] ss:$8 sps:$4 sm:$0xff]  }
 0x18a   : > { %6688 = vmatpush1.bf16.msra.mxu1 %v9650_v7  ;;  %v9728_v7 = vld [vmem:[%s10641_s27 + $0x6a0] ss:$8 sps:$4 sm:$0xff]  }
 0x18b   : > { %7303 = vmatpush1.bf16.msra.mxu0 %v9653_v8  ;;  %6689 = vmatprep.subr.bf16.mxu1 %v9658_v30  ;;  %v9731_v8 = vld [vmem:[%s10641_s27 + $0x15a0] ss:$8 sps:$4 sm:$0xff]   ;;  %v9736_v30 = vld [vmem:[%s10641_s27 + $0x6b4] ss:$8 sps:$4 sm:$0xff]  }
 0x18c   : > { %7304 = vmatprep.subr.bf16.mxu0 %v9661_v10  ;;  %v9739_v10 = vld [vmem:[%s10641_s27 + $0x15b4] ss:$8 sps:$4 sm:$0xff]  }
 0x18e   : > { %6690 = vmatpush1.bf16.msra.mxu1 %v9656_v13  ;;  %v9742_v13 = vld [vmem:[%s10641_s27 + $0x6c4] ss:$8 sps:$4 sm:$0xff]  }
 0x18f   : > { %7305 = vmatpush1.bf16.msra.mxu0 %v9659_v14  ;;  %6691 = vmatprep.subr.bf16.mxu1 %v9664_v16  ;;  %v9745_v14 = vld [vmem:[%s10641_s27 + $0x15c4] ss:$8 sps:$4 sm:$0xff]   ;;  %v9740_v16 = vld [vmem:[%s10641_s27 + $0x6c0] ss:$8 sps:$4 sm:$0xff]  }
 0x190   : > { %7306 = vmatprep.subr.bf16.mxu0 %v9667_v1  ;;  %v9743_v1 = vld [vmem:[%s10641_s27 + $0x15c0] ss:$8 sps:$4 sm:$0xff]  }
 0x192   : > { %6692 = vmatpush1.bf16.msra.mxu1 %v9662_v18  ;;  %v9748_v18 = vld [vmem:[%s10641_s27 + $0x6d4] ss:$8 sps:$4 sm:$0xff]  }
 0x193   : > { %7307 = vmatpush1.bf16.msra.mxu0 %v9665_v4  ;;  %6702 = vmatprep.subr.bf16.mxu1 %v9670_v19  ;;  %v9751_v4 = vld [vmem:[%s10641_s27 + $0x15d4] ss:$8 sps:$4 sm:$0xff]   ;;  %v9746_v19 = vld [vmem:[%s10641_s27 + $0x6d0] ss:$8 sps:$4 sm:$0xff]  }
 0x194   : > { %7317 = vmatprep.subr.bf16.mxu0 %v9673_v21  ;;  %v9749_v21 = vld [vmem:[%s10641_s27 + $0x15d0] ss:$8 sps:$4 sm:$0xff]  }
 0x195   : > { %6694 = vmatmul.mubr.bf16.vlgmr.msra.gmra.mrb[0].mxu1 %v1323_v23  ;;  %v9757_v23 = vld [vmem:[%s10641_s27 + $0x15e4] ss:$8 sps:$4 sm:$0xff]  }
 0x196   : > { %7309 = vmatmul.mubr.bf16.vlgmr.msra.gmra.mrb[0].mxu0 %v11162_v24  ;;  %6703 = vmatpush1.bf16.msra.mxu1 %v9668_v25  ;;  %v10537_v25 = vld [vmem:[%s10696_s8 + $0x28] sm:$0xff] }
 0x197   : > { %7318 = vmatpush1.bf16.msra.mxu0 %v9671_v26  ;;  %6704 = vmatprep.subr.bf16.mxu1 %v9676_v27  ;;  %v1474_v26 = vcombine.high %v10537_v25, %v10537_v25  ;;  %v9752_v27 = vld [vmem:[%s10641_s27 + $0x6e0] ss:$8 sps:$4 sm:$0xff]   ;;  %v9831_v25 = vld [vmem:[%s10641_s27 + $0x7b0] ss:$8 sps:$4 sm:$0xff]  }
 0x198   : > { %7319 = vmatprep.subr.bf16.mxu0 %v9679_v28  ;;  %6734 = vmatprep.mubr.bf16.mxu1 %v11169_v29  ;;  %v9755_v28 = vld [vmem:[%s10641_s27 + $0x15e0] ss:$8 sps:$4 sm:$0xff]  }
 0x199   : > { %7349 = vmatprep.mubr.bf16.mxu0 %v1521_v9  ;;  %v9760_v9 = vld [vmem:[%s10641_s27 + $0x6f4] ss:$8 sps:$4 sm:$0xff]  }
 0x19a   : > { %6705 = vmatpush1.bf16.msra.mxu1 %v9674_v63  ;;  %v9763_v63 = vld [vmem:[%s10641_s27 + $0x15f4] ss:$8 sps:$4 sm:$0xff]  }
 0x19b   : > { %7320 = vmatpush1.bf16.msra.mxu0 %v9677_v31  ;;  %6706 = vmatprep.subr.bf16.mxu1 %v9682_v53  ;;  %v11233_v31 = vrot.slane %v1474_v26, %v10699_v52  ;;  %v9758_v53 = vld [vmem:[%s10641_s27 + $0x6f0] ss:$8 sps:$4 sm:$0xff]  }
 0x19c   : > { %7321 = vmatprep.subr.bf16.mxu0 %v9685_v32  ;;  %v9761_v32 = vld [vmem:[%s10641_s27 + $0x15f0] ss:$8 sps:$4 sm:$0xff]  }
 0x19d   : > { %v9834_v26 = vld [vmem:[%s10641_s27 + $0x16b0] ss:$8 sps:$4 sm:$0xff]  }
 0x19e   : > { %6707 = vmatpush1.bf16.msra.mxu1 %v9680_v56  ;;  %v9767_v56 = vld [vmem:[%s10641_s27 + $0x704] ss:$8 sps:$4 sm:$0xff]  }
 0x19f   : > { %7322 = vmatpush1.bf16.msra.mxu0 %v9683_v33  ;;  %6708 = vmatprep.subr.bf16.mxu1 %v9688_v34  ;;  %v9770_v33 = vld [vmem:[%s10641_s27 + $0x1604] ss:$8 sps:$4 sm:$0xff]   ;;  %v1490_v34 = vcombine.high %v11233_v31, %v11233_v31 }
 0x1a0   : > { %7323 = vmatprep.subr.bf16.mxu0 %v9691_v35  ;;  %v11243_v35 = vrot.slane %v11150_v17, %v10699_v52 }
 0x1a1   : > { %v11254_v17 = vrot.slane %v1490_v34, %v10699_v52  ;;  %v9851_v34 = vld [vmem:[%s10641_s27 + $0x7e4] ss:$8 sps:$4 sm:$0xff]  }
 0x1a2   : > { %6709 = vmatpush1.bf16.msra.mxu1 %v9686_v36  ;;  %v1519_v36 = vcombine.high %v11162_v24, %v11162_v24  ;;  %v9771_v24 = vld [vmem:[%s10641_s27 + $0x710] ss:$8 sps:$4 sm:$0xff]  }
 0x1a3   : > { %7324 = vmatpush1.bf16.msra.mxu0 %v9689_v38  ;;  %6710 = vmatprep.subr.bf16.mxu1 %v9694_v39  ;;  %v9765_v38 = vld [vmem:[%s10641_s27 + $0x700] ss:$8 sps:$4 sm:$0xff]  }
 0x1a4   : > { %7325 = vmatprep.subr.bf16.mxu0 %v9697_v40  ;;  %v9768_v39 = vld [vmem:[%s10641_s27 + $0x1600] ss:$8 sps:$4 sm:$0xff]   ;;  %v9773_v40 = vld [vmem:[%s10641_s27 + $0x714] ss:$8 sps:$4 sm:$0xff]  }
 0x1a6   : > { %6711 = vmatpush1.bf16.msra.mxu1 %v9692_v20  ;;  %v9776_v20 = vld [vmem:[%s10641_s27 + $0x1614] ss:$8 sps:$4 sm:$0xff]  }
 0x1a7   : > { %7326 = vmatpush1.bf16.msra.mxu0 %v9695_v42  ;;  %6712 = vmatprep.subr.bf16.mxu1 %v9700_v44  ;;  %v1326_v42 = vcombine.high %v11169_v29, %v11169_v29  ;;  %v9774_v44 = vld [vmem:[%s10641_s27 + $0x1610] ss:$8 sps:$4 sm:$0xff]   ;;  %v9782_v29 = vld [vmem:[%s10641_s27 + $0x1624] ss:$8 sps:$4 sm:$0xff]  }
 0x1a8   : > { %7327 = vmatprep.subr.bf16.mxu0 %v9703_v49  ;;  %v9779_v49 = vld [vmem:[%s10641_s27 + $0x724] ss:$8 sps:$4 sm:$0xff]  }
 0x1aa   : > { %6713 = vmatpush1.bf16.msra.mxu1 %v9698_v45  ;;  %v9777_v45 = vld [vmem:[%s10641_s27 + $0x720] ss:$8 sps:$4 sm:$0xff]  }
 0x1ab   : > { %7328 = vmatpush1.bf16.msra.mxu0 %v9701_v46  ;;  %6714 = vmatprep.subr.bf16.mxu1 %v9706_v48  ;;  %v9780_v46 = vld [vmem:[%s10641_s27 + $0x1620] ss:$8 sps:$4 sm:$0xff]   ;;  %v9785_v48 = vld [vmem:[%s10641_s27 + $0x734] ss:$8 sps:$4 sm:$0xff]  }
 0x1ac   : > { %7329 = vmatprep.subr.bf16.mxu0 %v9709_v50  ;;  %v9788_v50 = vld [vmem:[%s10641_s27 + $0x1634] ss:$8 sps:$4 sm:$0xff]  }
 0x1ae   : > { %6715 = vmatpush1.bf16.msra.mxu1 %v9704_v54  ;;  %v9783_v54 = vld [vmem:[%s10641_s27 + $0x730] ss:$8 sps:$4 sm:$0xff]  }
 0x1af   : > { %7330 = vmatpush1.bf16.msra.mxu0 %v9707_v55  ;;  %6716 = vmatprep.subr.bf16.mxu1 %v9712_v57  ;;  %v9786_v55 = vld [vmem:[%s10641_s27 + $0x1630] ss:$8 sps:$4 sm:$0xff]   ;;  %v9791_v57 = vld [vmem:[%s10641_s27 + $0x744] ss:$8 sps:$4 sm:$0xff]  }
 0x1b0   : > { %7331 = vmatprep.subr.bf16.mxu0 %v9715_v58  ;;  %v9794_v58 = vld [vmem:[%s10641_s27 + $0x1644] ss:$8 sps:$4 sm:$0xff]  }
 0x1b2   : > { %6717 = vmatpush1.bf16.msra.mxu1 %v9710_v37  ;;  %v9789_v37 = vld [vmem:[%s10641_s27 + $0x740] ss:$8 sps:$4 sm:$0xff]  }
 0x1b3   : > { %7332 = vmatpush1.bf16.msra.mxu0 %v9713_v59  ;;  %6718 = vmatprep.subr.bf16.mxu1 %v9718_v60  ;;  %v9792_v59 = vld [vmem:[%s10641_s27 + $0x1640] ss:$8 sps:$4 sm:$0xff]   ;;  %v9797_v60 = vld [vmem:[%s10641_s27 + $0x754] ss:$8 sps:$4 sm:$0xff]  }
 0x1b4   : > { %7333 = vmatprep.subr.bf16.mxu0 %v9721_v41  ;;  %v9800_v41 = vld [vmem:[%s10641_s27 + $0x1654] ss:$8 sps:$4 sm:$0xff]  }
 0x1b6   : > { %6719 = vmatpush1.bf16.msra.mxu1 %v9716_v61  ;;  %v9795_v61 = vld [vmem:[%s10641_s27 + $0x750] ss:$8 sps:$4 sm:$0xff]  }
 0x1b7   : > { %7334 = vmatpush1.bf16.msra.mxu0 %v9719_v62  ;;  %6720 = vmatprep.subr.bf16.mxu1 %v9724_v0  ;;  %v9798_v62 = vld [vmem:[%s10641_s27 + $0x1650] ss:$8 sps:$4 sm:$0xff]   ;;  %v9803_v0 = vld [vmem:[%s10641_s27 + $0x764] ss:$8 sps:$4 sm:$0xff]  }
 0x1b8   : > { %7335 = vmatprep.subr.bf16.mxu0 %v9727_v2  ;;  %v9806_v2 = vld [vmem:[%s10641_s27 + $0x1664] ss:$8 sps:$4 sm:$0xff]  }
 0x1ba   : > { %6721 = vmatpush1.bf16.msra.mxu1 %v9722_v3  ;;  %v9801_v3 = vld [vmem:[%s10641_s27 + $0x760] ss:$8 sps:$4 sm:$0xff]  }
 0x1bb   : > { %7336 = vmatpush1.bf16.msra.mxu0 %v9725_v6  ;;  %6722 = vmatprep.subr.bf16.mxu1 %v9730_v43  ;;  %v9804_v6 = vld [vmem:[%s10641_s27 + $0x1660] ss:$8 sps:$4 sm:$0xff]   ;;  %v9809_v43 = vld [vmem:[%s10641_s27 + $0x774] ss:$8 sps:$4 sm:$0xff]  }
 0x1bc   : > { %7337 = vmatprep.subr.bf16.mxu0 %v9733_v51  ;;  %v9812_v51 = vld [vmem:[%s10641_s27 + $0x1674] ss:$8 sps:$4 sm:$0xff]  }
 0x1be   : > { %6723 = vmatpush1.bf16.msra.mxu1 %v9728_v7  ;;  %v9807_v7 = vld [vmem:[%s10641_s27 + $0x770] ss:$8 sps:$4 sm:$0xff]  }
 0x1bf   : > { %7338 = vmatpush1.bf16.msra.mxu0 %v9731_v8  ;;  %6724 = vmatprep.subr.bf16.mxu1 %v9736_v30  ;;  %v9810_v8 = vld [vmem:[%s10641_s27 + $0x1670] ss:$8 sps:$4 sm:$0xff]   ;;  %v9815_v30 = vld [vmem:[%s10641_s27 + $0x784] ss:$8 sps:$4 sm:$0xff]  }
 0x1c0   : > { %7339 = vmatprep.subr.bf16.mxu0 %v9739_v10  ;;  %v9818_v10 = vld [vmem:[%s10641_s27 + $0x1684] ss:$8 sps:$4 sm:$0xff]  }
 0x1c2   : > { %6725 = vmatpush1.bf16.msra.mxu1 %v9734_v11  ;;  %v9813_v11 = vld [vmem:[%s10641_s27 + $0x780] ss:$8 sps:$4 sm:$0xff]  }
 0x1c3   : > { %7340 = vmatpush1.bf16.msra.mxu0 %v9737_v12  ;;  %6726 = vmatprep.subr.bf16.mxu1 %v9742_v13  ;;  %v9816_v12 = vld [vmem:[%s10641_s27 + $0x1680] ss:$8 sps:$4 sm:$0xff]   ;;  %v9821_v13 = vld [vmem:[%s10641_s27 + $0x794] ss:$8 sps:$4 sm:$0xff]  }
 0x1c4   : > { %7341 = vmatprep.subr.bf16.mxu0 %v9745_v14  ;;  %v9824_v14 = vld [vmem:[%s10641_s27 + $0x1694] ss:$8 sps:$4 sm:$0xff]  }
 0x1c6   : > { %6727 = vmatpush1.bf16.msra.mxu1 %v9740_v16  ;;  %v9819_v16 = vld [vmem:[%s10641_s27 + $0x790] ss:$8 sps:$4 sm:$0xff]  }
 0x1c7   : > { %7342 = vmatpush1.bf16.msra.mxu0 %v9743_v1  ;;  %6728 = vmatprep.subr.bf16.mxu1 %v9748_v18  ;;  %v9822_v1 = vld [vmem:[%s10641_s27 + $0x1690] ss:$8 sps:$4 sm:$0xff]   ;;  %v9827_v18 = vld [vmem:[%s10641_s27 + $0x7a4] ss:$8 sps:$4 sm:$0xff]  }
 0x1c8   : > { %7343 = vmatprep.subr.bf16.mxu0 %v9751_v4  ;;  %v9830_v4 = vld [vmem:[%s10641_s27 + $0x16a4] ss:$8 sps:$4 sm:$0xff]  }
 0x1ca   : > { %6729 = vmatpush1.bf16.msra.mxu1 %v9746_v19  ;;  %v9825_v19 = vld [vmem:[%s10641_s27 + $0x7a0] ss:$8 sps:$4 sm:$0xff]  }
 0x1cb   : > { %7344 = vmatpush1.bf16.msra.mxu0 %v9749_v21  ;;  %6730 = vmatprep.subr.bf16.mxu1 %v9754_v22  ;;  %v9828_v21 = vld [vmem:[%s10641_s27 + $0x16a0] ss:$8 sps:$4 sm:$0xff]   ;;  %v9833_v22 = vld [vmem:[%s10641_s27 + $0x7b4] ss:$8 sps:$4 sm:$0xff]  }
 0x1cc   : > { %7345 = vmatprep.subr.bf16.mxu0 %v9757_v23  ;;  %v9836_v23 = vld [vmem:[%s10641_s27 + $0x16b4] ss:$8 sps:$4 sm:$0xff]  }
 0x1ce   : > { %6731 = vmatpush1.bf16.msra.mxu1 %v9752_v27  ;;  %v9839_v27 = vld [vmem:[%s10641_s27 + $0x7c4] ss:$8 sps:$4 sm:$0xff]  }
 0x1cf   : > { %7346 = vmatpush1.bf16.msra.mxu0 %v9755_v28  ;;  %6732 = vmatprep.subr.bf16.mxu1 %v9760_v9  ;;  %v9842_v28 = vld [vmem:[%s10641_s27 + $0x16c4] ss:$8 sps:$4 sm:$0xff]   ;;  %v9837_v9 = vld [vmem:[%s10641_s27 + $0x7c0] ss:$8 sps:$4 sm:$0xff]  }
 0x1d0   : > { %7347 = vmatprep.subr.bf16.mxu0 %v9763_v63  ;;  %v9840_v63 = vld [vmem:[%s10641_s27 + $0x16c0] ss:$8 sps:$4 sm:$0xff]  }
 0x1d2   : > { %6733 = vmatpush1.bf16.msra.mxu1 %v9758_v53  ;;  %v9845_v53 = vld [vmem:[%s10641_s27 + $0x7d4] ss:$8 sps:$4 sm:$0xff]  }
 0x1d3   : > { %7348 = vmatpush1.bf16.msra.mxu0 %v9761_v32  ;;  %6743 = vmatprep.subr.bf16.mxu1 %v9767_v56  ;;  %v9848_v32 = vld [vmem:[%s10641_s27 + $0x16d4] ss:$8 sps:$4 sm:$0xff]   ;;  %v9843_v56 = vld [vmem:[%s10641_s27 + $0x7d0] ss:$8 sps:$4 sm:$0xff]  }
 0x1d4   : > { %7358 = vmatprep.subr.bf16.mxu0 %v9770_v33  ;;  %v9846_v33 = vld [vmem:[%s10641_s27 + $0x16d0] ss:$8 sps:$4 sm:$0xff]  }
 0x1d5   : > { %6735 = vmatmul.mubr.bf16.vlgmr.msra.gmra.mrb[0].mxu1 %v11243_v35 }
 0x1d6   : > { %7350 = vmatmul.mubr.bf16.vlgmr.msra.gmra.mrb[0].mxu0 %v1519_v36  ;;  %6744 = vmatpush1.bf16.msra.mxu1 %v9765_v38  ;;  %v9854_v36 = vld [vmem:[%s10641_s27 + $0x16e4] ss:$8 sps:$4 sm:$0xff]   ;;  %v11311_v38 = vld [vmem:[%s10696_s8 + $0x10] sm:$0xff] }
 0x1d7   : > { %7359 = vmatpush1.bf16.msra.mxu0 %v9768_v39  ;;  %6745 = vmatprep.subr.bf16.mxu1 %v9773_v40  ;;  %v9849_v39 = vld [vmem:[%s10641_s27 + $0x7e0] ss:$8 sps:$4 sm:$0xff]  }
 0x1d8   : > { %7360 = vmatprep.subr.bf16.mxu0 %v9776_v20  ;;  %6775 = vmatprep.mubr.bf16.mxu1 %v1326_v42  ;;  %v9852_v40 = vld [vmem:[%s10641_s27 + $0x16e0] ss:$8 sps:$4 sm:$0xff]   ;;  %v9857_v20 = vld [vmem:[%s10641_s27 + $0x7f4] ss:$8 sps:$4 sm:$0xff]  }
 0x1d9   : > { %7390 = vmatprep.mubr.bf16.mxu0 %v11254_v17  ;;  %v9860_v42 = vld [vmem:[%s10641_s27 + $0x16f4] ss:$8 sps:$4 sm:$0xff]  }
 0x1da   : > { %6746 = vmatpush1.bf16.msra.mxu1 %v9771_v24  ;;  %v11319_v24 = vrot.slane %v11311_v38, %v10699_v52 }
 0x1db   : > { %7361 = vmatpush1.bf16.msra.mxu0 %v9774_v44  ;;  %6747 = vmatprep.subr.bf16.mxu1 %v9779_v49  ;;  %v9855_v44 = vld [vmem:[%s10641_s27 + $0x7f0] ss:$8 sps:$4 sm:$0xff]  }
 0x1dc   : > { %7362 = vmatprep.subr.bf16.mxu0 %v9782_v29  ;;  %v9858_v49 = vld [vmem:[%s10641_s27 + $0x16f0] ss:$8 sps:$4 sm:$0xff]   ;;  %v9863_v29 = vld [vmem:[%s10641_s27 + $0x804] ss:$8 sps:$4 sm:$0xff]  }
 0x1de   : > { %6748 = vmatpush1.bf16.msra.mxu1 %v9777_v45  ;;  %v9867_v45 = vld [vmem:[%s10641_s27 + $0x1704] ss:$8 sps:$4 sm:$0xff]  }
 0x1df   : > { %7363 = vmatpush1.bf16.msra.mxu0 %v9780_v46  ;;  %6749 = vmatprep.subr.bf16.mxu1 %v9785_v48  ;;  %v1342_v46 = vcombine.high %v11319_v24, %v11319_v24  ;;  %v1324_v48 = vcombine.high %v11243_v35, %v11243_v35  ;;  %v1522_v35 = vcombine.high %v11254_v17, %v11254_v17  ;;  %v9874_v17 = vld [vmem:[%s10641_s27 + $0x820] ss:$8 sps:$4 sm:$0xff]  }
 0x1e0   : > { %7364 = vmatprep.subr.bf16.mxu0 %v9788_v50  ;;  %v11331_v50 = vrot.slane %v11233_v31, %v10699_v52  ;;  %v9868_v31 = vld [vmem:[%s10641_s27 + $0x810] ss:$8 sps:$4 sm:$0xff]  }
 0x1e2   : > { %6750 = vmatpush1.bf16.msra.mxu1 %v9783_v54  ;;  %v9861_v54 = vld [vmem:[%s10641_s27 + $0x800] ss:$8 sps:$4 sm:$0xff]  }
 0x1e3   : > { %7365 = vmatpush1.bf16.msra.mxu0 %v9786_v55  ;;  %6751 = vmatprep.subr.bf16.mxu1 %v9791_v57  ;;  %v9865_v55 = vld [vmem:[%s10641_s27 + $0x1700] ss:$8 sps:$4 sm:$0xff]   ;;  %v9870_v57 = vld [vmem:[%s10641_s27 + $0x814] ss:$8 sps:$4 sm:$0xff]  }
 0x1e4   : > { %7366 = vmatprep.subr.bf16.mxu0 %v9794_v58  ;;  %v9873_v58 = vld [vmem:[%s10641_s27 + $0x1714] ss:$8 sps:$4 sm:$0xff]  }
 0x1e6   : > { %6752 = vmatpush1.bf16.msra.mxu1 %v9789_v37  ;;  %v11338_v37 = vrot.slane %v1342_v46, %v10699_v52  ;;  %v9943_v46 = vld [vmem:[%s10641_s27 + $0x17d0] ss:$8 sps:$4 sm:$0xff]  }
 0x1e7   : > { %7367 = vmatpush1.bf16.msra.mxu0 %v9792_v59  ;;  %6753 = vmatprep.subr.bf16.mxu1 %v9797_v60  ;;  %v9871_v59 = vld [vmem:[%s10641_s27 + $0x1710] ss:$8 sps:$4 sm:$0xff]   ;;  %v9876_v60 = vld [vmem:[%s10641_s27 + $0x824] ss:$8 sps:$4 sm:$0xff]  }
 0x1e8   : > { %7368 = vmatprep.subr.bf16.mxu0 %v9800_v41  ;;  %v9879_v41 = vld [vmem:[%s10641_s27 + $0x1724] ss:$8 sps:$4 sm:$0xff]  }
 0x1ea   : > { %6754 = vmatpush1.bf16.msra.mxu1 %v9795_v61  ;;  %v9877_v61 = vld [vmem:[%s10641_s27 + $0x1720] ss:$8 sps:$4 sm:$0xff]  }
 0x1eb   : > { %7369 = vmatpush1.bf16.msra.mxu0 %v9798_v62  ;;  %6755 = vmatprep.subr.bf16.mxu1 %v9803_v0  ;;  %v9882_v62 = vld [vmem:[%s10641_s27 + $0x834] ss:$8 sps:$4 sm:$0xff]  }
 0x1ec   : > { %7370 = vmatprep.subr.bf16.mxu0 %v9806_v2  ;;  %v9885_v0 = vld [vmem:[%s10641_s27 + $0x1734] ss:$8 sps:$4 sm:$0xff]   ;;  %v9880_v2 = vld [vmem:[%s10641_s27 + $0x830] ss:$8 sps:$4 sm:$0xff]  }
 0x1ee   : > { %6756 = vmatpush1.bf16.msra.mxu1 %v9801_v3  ;;  %v9883_v3 = vld [vmem:[%s10641_s27 + $0x1730] ss:$8 sps:$4 sm:$0xff]  }
 0x1ef   : > { %7371 = vmatpush1.bf16.msra.mxu0 %v9804_v6  ;;  %6757 = vmatprep.subr.bf16.mxu1 %v9809_v43  ;;  %v9888_v6 = vld [vmem:[%s10641_s27 + $0x844] ss:$8 sps:$4 sm:$0xff]  }
 0x1f0   : > { %7372 = vmatprep.subr.bf16.mxu0 %v9812_v51  ;;  %v9891_v43 = vld [vmem:[%s10641_s27 + $0x1744] ss:$8 sps:$4 sm:$0xff]   ;;  %v9886_v51 = vld [vmem:[%s10641_s27 + $0x840] ss:$8 sps:$4 sm:$0xff]  }
 0x1f2   : > { %6758 = vmatpush1.bf16.msra.mxu1 %v9807_v7  ;;  %v9889_v7 = vld [vmem:[%s10641_s27 + $0x1740] ss:$8 sps:$4 sm:$0xff]  }
 0x1f3   : > { %7373 = vmatpush1.bf16.msra.mxu0 %v9810_v8  ;;  %6759 = vmatprep.subr.bf16.mxu1 %v9815_v30  ;;  %v9894_v8 = vld [vmem:[%s10641_s27 + $0x854] ss:$8 sps:$4 sm:$0xff]  }
 0x1f4   : > { %7374 = vmatprep.subr.bf16.mxu0 %v9818_v10  ;;  %v9897_v30 = vld [vmem:[%s10641_s27 + $0x1754] ss:$8 sps:$4 sm:$0xff]   ;;  %v9892_v10 = vld [vmem:[%s10641_s27 + $0x850] ss:$8 sps:$4 sm:$0xff]  }
 0x1f6   : > { %6760 = vmatpush1.bf16.msra.mxu1 %v9813_v11  ;;  %v9895_v11 = vld [vmem:[%s10641_s27 + $0x1750] ss:$8 sps:$4 sm:$0xff]  }
 0x1f7   : > { %7375 = vmatpush1.bf16.msra.mxu0 %v9816_v12  ;;  %6761 = vmatprep.subr.bf16.mxu1 %v9821_v13  ;;  %v9900_v12 = vld [vmem:[%s10641_s27 + $0x864] ss:$8 sps:$4 sm:$0xff]  }
 0x1f8   : > { %7376 = vmatprep.subr.bf16.mxu0 %v9824_v14  ;;  %v9903_v13 = vld [vmem:[%s10641_s27 + $0x1764] ss:$8 sps:$4 sm:$0xff]   ;;  %v9898_v14 = vld [vmem:[%s10641_s27 + $0x860] ss:$8 sps:$4 sm:$0xff]  }
 0x1fa   : > { %6762 = vmatpush1.bf16.msra.mxu1 %v9819_v16  ;;  %v9901_v16 = vld [vmem:[%s10641_s27 + $0x1760] ss:$8 sps:$4 sm:$0xff]  }
 0x1fb   : > { %7377 = vmatpush1.bf16.msra.mxu0 %v9822_v1  ;;  %6763 = vmatprep.subr.bf16.mxu1 %v9827_v18  ;;  %v9906_v1 = vld [vmem:[%s10641_s27 + $0x874] ss:$8 sps:$4 sm:$0xff]  }
 0x1fc   : > { %7378 = vmatprep.subr.bf16.mxu0 %v9830_v4  ;;  %v9909_v18 = vld [vmem:[%s10641_s27 + $0x1774] ss:$8 sps:$4 sm:$0xff]   ;;  %v9904_v4 = vld [vmem:[%s10641_s27 + $0x870] ss:$8 sps:$4 sm:$0xff]  }
 0x1fe   : > { %6764 = vmatpush1.bf16.msra.mxu1 %v9825_v19  ;;  %v9907_v19 = vld [vmem:[%s10641_s27 + $0x1770] ss:$8 sps:$4 sm:$0xff]  }
 0x1ff   : > { %7379 = vmatpush1.bf16.msra.mxu0 %v9828_v21  ;;  %6765 = vmatprep.subr.bf16.mxu1 %v9833_v22  ;;  %v9912_v21 = vld [vmem:[%s10641_s27 + $0x884] ss:$8 sps:$4 sm:$0xff]  }
 0x200   : > { %7380 = vmatprep.subr.bf16.mxu0 %v9836_v23  ;;  %v9915_v22 = vld [vmem:[%s10641_s27 + $0x1784] ss:$8 sps:$4 sm:$0xff]   ;;  %v9910_v23 = vld [vmem:[%s10641_s27 + $0x880] ss:$8 sps:$4 sm:$0xff]  }
 0x202   : > { %6766 = vmatpush1.bf16.msra.mxu1 %v9831_v25  ;;  %v9913_v25 = vld [vmem:[%s10641_s27 + $0x1780] ss:$8 sps:$4 sm:$0xff]  }
 0x203   : > { %7381 = vmatpush1.bf16.msra.mxu0 %v9834_v26  ;;  %6767 = vmatprep.subr.bf16.mxu1 %v9839_v27  ;;  %v9918_v26 = vld [vmem:[%s10641_s27 + $0x894] ss:$8 sps:$4 sm:$0xff]  }
 0x204   : > { %7382 = vmatprep.subr.bf16.mxu0 %v9842_v28  ;;  %v9921_v27 = vld [vmem:[%s10641_s27 + $0x1794] ss:$8 sps:$4 sm:$0xff]   ;;  %v9916_v28 = vld [vmem:[%s10641_s27 + $0x890] ss:$8 sps:$4 sm:$0xff]  }
 0x206   : > { %6768 = vmatpush1.bf16.msra.mxu1 %v9837_v9  ;;  %v9919_v9 = vld [vmem:[%s10641_s27 + $0x1790] ss:$8 sps:$4 sm:$0xff]  }
 0x207   : > { %7383 = vmatpush1.bf16.msra.mxu0 %v9840_v63  ;;  %6769 = vmatprep.subr.bf16.mxu1 %v9845_v53  ;;  %v9924_v63 = vld [vmem:[%s10641_s27 + $0x8a4] ss:$8 sps:$4 sm:$0xff]  }
 0x208   : > { %7384 = vmatprep.subr.bf16.mxu0 %v9848_v32  ;;  %v9927_v53 = vld [vmem:[%s10641_s27 + $0x17a4] ss:$8 sps:$4 sm:$0xff]   ;;  %v9922_v32 = vld [vmem:[%s10641_s27 + $0x8a0] ss:$8 sps:$4 sm:$0xff]  }
 0x20a   : > { %6770 = vmatpush1.bf16.msra.mxu1 %v9843_v56  ;;  %v9925_v56 = vld [vmem:[%s10641_s27 + $0x17a0] ss:$8 sps:$4 sm:$0xff]  }
 0x20b   : > { %7385 = vmatpush1.bf16.msra.mxu0 %v9846_v33  ;;  %6771 = vmatprep.subr.bf16.mxu1 %v9851_v34  ;;  %v9930_v33 = vld [vmem:[%s10641_s27 + $0x8b4] ss:$8 sps:$4 sm:$0xff]  }
 0x20c   : > { %7386 = vmatprep.subr.bf16.mxu0 %v9854_v36  ;;  %v9933_v34 = vld [vmem:[%s10641_s27 + $0x17b4] ss:$8 sps:$4 sm:$0xff]   ;;  %v9928_v36 = vld [vmem:[%s10641_s27 + $0x8b0] ss:$8 sps:$4 sm:$0xff]  }
 0x20e   : > { %6772 = vmatpush1.bf16.msra.mxu1 %v9849_v39  ;;  %v9931_v39 = vld [vmem:[%s10641_s27 + $0x17b0] ss:$8 sps:$4 sm:$0xff]  }
 0x20f   : > { %7387 = vmatpush1.bf16.msra.mxu0 %v9852_v40  ;;  %6773 = vmatprep.subr.bf16.mxu1 %v9857_v20  ;;  %v9936_v40 = vld [vmem:[%s10641_s27 + $0x8c4] ss:$8 sps:$4 sm:$0xff]  }
 0x210   : > { %7388 = vmatprep.subr.bf16.mxu0 %v9860_v42  ;;  %v9939_v20 = vld [vmem:[%s10641_s27 + $0x17c4] ss:$8 sps:$4 sm:$0xff]   ;;  %v9934_v42 = vld [vmem:[%s10641_s27 + $0x8c0] ss:$8 sps:$4 sm:$0xff]  }
 0x212   : > { %6774 = vmatpush1.bf16.msra.mxu1 %v9855_v44  ;;  %v9937_v44 = vld [vmem:[%s10641_s27 + $0x17c0] ss:$8 sps:$4 sm:$0xff]  }
 0x213   : > { %7389 = vmatpush1.bf16.msra.mxu0 %v9858_v49  ;;  %6784 = vmatprep.subr.bf16.mxu1 %v9863_v29  ;;  %v9942_v49 = vld [vmem:[%s10641_s27 + $0x8d4] ss:$8 sps:$4 sm:$0xff]  }
 0x214   : > { %7399 = vmatprep.subr.bf16.mxu0 %v9867_v45  ;;  %v9945_v29 = vld [vmem:[%s10641_s27 + $0x17d4] ss:$8 sps:$4 sm:$0xff]   ;;  %v9940_v45 = vld [vmem:[%s10641_s27 + $0x8d0] ss:$8 sps:$4 sm:$0xff]  }
 0x215   : > { %6776 = vmatmul.mubr.bf16.vlgmr.msra.gmra.mrb[0].mxu1 %v1324_v48  ;;  %v9948_v48 = vld [vmem:[%s10641_s27 + $0x8e4] ss:$8 sps:$4 sm:$0xff]  }
 0x216   : > { %7391 = vmatmul.mubr.bf16.vlgmr.msra.gmra.mrb[0].mxu0 %v11331_v50  ;;  %6785 = vmatpush1.bf16.msra.mxu1 %v9861_v54  ;;  %v9951_v54 = vld [vmem:[%s10641_s27 + $0x17e4] ss:$8 sps:$4 sm:$0xff]  }
 0x217   : > { %7400 = vmatpush1.bf16.msra.mxu0 %v9865_v55  ;;  %6786 = vmatprep.subr.bf16.mxu1 %v9870_v57  ;;  %v11397_v55 = vld [vmem:[%s10696_s8 + $0x30] sm:$0xff]  ;;  %v9946_v57 = vld [vmem:[%s10641_s27 + $0x8e0] ss:$8 sps:$4 sm:$0xff]  }
 0x218   : > { %7401 = vmatprep.subr.bf16.mxu0 %v9873_v58  ;;  %6816 = vmatprep.mubr.bf16.mxu1 %v11338_v37  ;;  %v9949_v58 = vld [vmem:[%s10641_s27 + $0x17e0] ss:$8 sps:$4 sm:$0xff]  }
 0x219   : > { %7431 = vmatprep.mubr.bf16.mxu0 %v1522_v35  ;;  %v9954_v35 = vld [vmem:[%s10641_s27 + $0x8f4] ss:$8 sps:$4 sm:$0xff]  }
 0x21a   : > { %6787 = vmatpush1.bf16.msra.mxu1 %v9868_v31  ;;  %v9957_v31 = vld [vmem:[%s10641_s27 + $0x17f4] ss:$8 sps:$4 sm:$0xff]  }
 0x21b   : > { %7402 = vmatpush1.bf16.msra.mxu0 %v9871_v59  ;;  %6788 = vmatprep.subr.bf16.mxu1 %v9876_v60  ;;  %v11405_v59 = vrot.slane %v11397_v55, %v10699_v52  ;;  %v9952_v60 = vld [vmem:[%s10641_s27 + $0x8f0] ss:$8 sps:$4 sm:$0xff]  }
 0x21c   : > { %7403 = vmatprep.subr.bf16.mxu0 %v9879_v41  ;;  %v9955_v41 = vld [vmem:[%s10641_s27 + $0x17f0] ss:$8 sps:$4 sm:$0xff]  }
 0x21e   : > { %6789 = vmatpush1.bf16.msra.mxu1 %v9874_v17  ;;  %v9960_v17 = vld [vmem:[%s10641_s27 + $0x904] ss:$8 sps:$4 sm:$0xff]  }
 0x21f   : > { %7404 = vmatpush1.bf16.msra.mxu0 %v9877_v61  ;;  %6790 = vmatprep.subr.bf16.mxu1 %v9882_v62  ;;  %v9963_v61 = vld [vmem:[%s10641_s27 + $0x1804] ss:$8 sps:$4 sm:$0xff]   ;;  %v1538_v62 = vcombine.high %v11405_v59, %v11405_v59 }
 0x220   : > { %7405 = vmatprep.subr.bf16.mxu0 %v9885_v0  ;;  %v11415_v0 = vrot.slane %v11319_v24, %v10699_v52 }
 0x221   : > { %v11426_v24 = vrot.slane %v1538_v62, %v10699_v52  ;;  %v10036_v62 = vld [vmem:[%s10641_s27 + $0x9d0] ss:$8 sps:$4 sm:$0xff]  }
 0x222   : > { %6791 = vmatpush1.bf16.msra.mxu1 %v9880_v2  ;;  %v1520_v2 = vcombine.high %v11331_v50, %v11331_v50  ;;  %v9964_v50 = vld [vmem:[%s10641_s27 + $0x910] ss:$8 sps:$4 sm:$0xff]  }
 0x223   : > { %7406 = vmatpush1.bf16.msra.mxu0 %v9883_v3  ;;  %6792 = vmatprep.subr.bf16.mxu1 %v9888_v6  ;;  %v9958_v3 = vld [vmem:[%s10641_s27 + $0x900] ss:$8 sps:$4 sm:$0xff]  }
 0x224   : > { %7407 = vmatprep.subr.bf16.mxu0 %v9891_v43  ;;  %v9961_v6 = vld [vmem:[%s10641_s27 + $0x1800] ss:$8 sps:$4 sm:$0xff]   ;;  %v9966_v43 = vld [vmem:[%s10641_s27 + $0x914] ss:$8 sps:$4 sm:$0xff]  }
 0x226   : > { %6793 = vmatpush1.bf16.msra.mxu1 %v9886_v51  ;;  %v9969_v51 = vld [vmem:[%s10641_s27 + $0x1814] ss:$8 sps:$4 sm:$0xff]  }
 0x227   : > { %7408 = vmatpush1.bf16.msra.mxu0 %v9889_v7  ;;  %6794 = vmatprep.subr.bf16.mxu1 %v9894_v8  ;;  %v1374_v7 = vcombine.high %v11338_v37, %v11338_v37  ;;  %v9967_v8 = vld [vmem:[%s10641_s27 + $0x1810] ss:$8 sps:$4 sm:$0xff]   ;;  %v9975_v37 = vld [vmem:[%s10641_s27 + $0x1824] ss:$8 sps:$4 sm:$0xff]  }
 0x228   : > { %7409 = vmatprep.subr.bf16.mxu0 %v9897_v30  ;;  %v9972_v30 = vld [vmem:[%s10641_s27 + $0x924] ss:$8 sps:$4 sm:$0xff]  }
 0x22a   : > { %6795 = vmatpush1.bf16.msra.mxu1 %v9892_v10  ;;  %v9970_v10 = vld [vmem:[%s10641_s27 + $0x920] ss:$8 sps:$4 sm:$0xff]  }
 0x22b   : > { %7410 = vmatpush1.bf16.msra.mxu0 %v9895_v11  ;;  %6796 = vmatprep.subr.bf16.mxu1 %v9900_v12  ;;  %v9973_v11 = vld [vmem:[%s10641_s27 + $0x1820] ss:$8 sps:$4 sm:$0xff]   ;;  %v9978_v12 = vld [vmem:[%s10641_s27 + $0x934] ss:$8 sps:$4 sm:$0xff]  }
 0x22c   : > { %7411 = vmatprep.subr.bf16.mxu0 %v9903_v13  ;;  %v9981_v13 = vld [vmem:[%s10641_s27 + $0x1834] ss:$8 sps:$4 sm:$0xff]  }
 0x22e   : > { %6797 = vmatpush1.bf16.msra.mxu1 %v9898_v14  ;;  %v9976_v14 = vld [vmem:[%s10641_s27 + $0x930] ss:$8 sps:$4 sm:$0xff]  }
 0x22f   : > { %7412 = vmatpush1.bf16.msra.mxu0 %v9901_v16  ;;  %6798 = vmatprep.subr.bf16.mxu1 %v9906_v1  ;;  %v9979_v16 = vld [vmem:[%s10641_s27 + $0x1830] ss:$8 sps:$4 sm:$0xff]   ;;  %v9984_v1 = vld [vmem:[%s10641_s27 + $0x944] ss:$8 sps:$4 sm:$0xff]  }
 0x230   : > { %7413 = vmatprep.subr.bf16.mxu0 %v9909_v18  ;;  %v9987_v18 = vld [vmem:[%s10641_s27 + $0x1844] ss:$8 sps:$4 sm:$0xff]  }
 0x232   : > { %6799 = vmatpush1.bf16.msra.mxu1 %v9904_v4  ;;  %v9982_v4 = vld [vmem:[%s10641_s27 + $0x940] ss:$8 sps:$4 sm:$0xff]  }
 0x233   : > { %7414 = vmatpush1.bf16.msra.mxu0 %v9907_v19  ;;  %6800 = vmatprep.subr.bf16.mxu1 %v9912_v21  ;;  %v9985_v19 = vld [vmem:[%s10641_s27 + $0x1840] ss:$8 sps:$4 sm:$0xff]   ;;  %v9990_v21 = vld [vmem:[%s10641_s27 + $0x954] ss:$8 sps:$4 sm:$0xff]  }
 0x234   : > { %7415 = vmatprep.subr.bf16.mxu0 %v9915_v22  ;;  %v9993_v22 = vld [vmem:[%s10641_s27 + $0x1854] ss:$8 sps:$4 sm:$0xff]  }
 0x236   : > { %6801 = vmatpush1.bf16.msra.mxu1 %v9910_v23  ;;  %v9988_v23 = vld [vmem:[%s10641_s27 + $0x950] ss:$8 sps:$4 sm:$0xff]  }
 0x237   : > { %7416 = vmatpush1.bf16.msra.mxu0 %v9913_v25  ;;  %6802 = vmatprep.subr.bf16.mxu1 %v9918_v26  ;;  %v9991_v25 = vld [vmem:[%s10641_s27 + $0x1850] ss:$8 sps:$4 sm:$0xff]   ;;  %v9996_v26 = vld [vmem:[%s10641_s27 + $0x964] ss:$8 sps:$4 sm:$0xff]  }
 0x238   : > { %7417 = vmatprep.subr.bf16.mxu0 %v9921_v27  ;;  %v9999_v27 = vld [vmem:[%s10641_s27 + $0x1864] ss:$8 sps:$4 sm:$0xff]  }
 0x23a   : > { %6803 = vmatpush1.bf16.msra.mxu1 %v9916_v28  ;;  %v9994_v28 = vld [vmem:[%s10641_s27 + $0x960] ss:$8 sps:$4 sm:$0xff]  }
 0x23b   : > { %7418 = vmatpush1.bf16.msra.mxu0 %v9919_v9  ;;  %6804 = vmatprep.subr.bf16.mxu1 %v9924_v63  ;;  %v9997_v9 = vld [vmem:[%s10641_s27 + $0x1860] ss:$8 sps:$4 sm:$0xff]   ;;  %v10002_v63 = vld [vmem:[%s10641_s27 + $0x974] ss:$8 sps:$4 sm:$0xff]  }
 0x23c   : > { %7419 = vmatprep.subr.bf16.mxu0 %v9927_v53  ;;  %v10005_v53 = vld [vmem:[%s10641_s27 + $0x1874] ss:$8 sps:$4 sm:$0xff]  }
 0x23e   : > { %6805 = vmatpush1.bf16.msra.mxu1 %v9922_v32  ;;  %v10000_v32 = vld [vmem:[%s10641_s27 + $0x970] ss:$8 sps:$4 sm:$0xff]  }
 0x23f   : > { %7420 = vmatpush1.bf16.msra.mxu0 %v9925_v56  ;;  %6806 = vmatprep.subr.bf16.mxu1 %v9930_v33  ;;  %v10003_v56 = vld [vmem:[%s10641_s27 + $0x1870] ss:$8 sps:$4 sm:$0xff]   ;;  %v10008_v33 = vld [vmem:[%s10641_s27 + $0x984] ss:$8 sps:$4 sm:$0xff]  }
 0x240   : > { %7421 = vmatprep.subr.bf16.mxu0 %v9933_v34  ;;  %v10011_v34 = vld [vmem:[%s10641_s27 + $0x1884] ss:$8 sps:$4 sm:$0xff]  }
 0x242   : > { %6807 = vmatpush1.bf16.msra.mxu1 %v9928_v36  ;;  %v10006_v36 = vld [vmem:[%s10641_s27 + $0x980] ss:$8 sps:$4 sm:$0xff]  }
 0x243   : > { %7422 = vmatpush1.bf16.msra.mxu0 %v9931_v39  ;;  %6808 = vmatprep.subr.bf16.mxu1 %v9936_v40  ;;  %v10009_v39 = vld [vmem:[%s10641_s27 + $0x1880] ss:$8 sps:$4 sm:$0xff]   ;;  %v10014_v40 = vld [vmem:[%s10641_s27 + $0x994] ss:$8 sps:$4 sm:$0xff]  }
 0x244   : > { %7423 = vmatprep.subr.bf16.mxu0 %v9939_v20  ;;  %v10017_v20 = vld [vmem:[%s10641_s27 + $0x1894] ss:$8 sps:$4 sm:$0xff]  }
 0x246   : > { %6809 = vmatpush1.bf16.msra.mxu1 %v9934_v42  ;;  %v10012_v42 = vld [vmem:[%s10641_s27 + $0x990] ss:$8 sps:$4 sm:$0xff]  }
 0x247   : > { %7424 = vmatpush1.bf16.msra.mxu0 %v9937_v44  ;;  %6810 = vmatprep.subr.bf16.mxu1 %v9942_v49  ;;  %v10015_v44 = vld [vmem:[%s10641_s27 + $0x1890] ss:$8 sps:$4 sm:$0xff]   ;;  %v10020_v49 = vld [vmem:[%s10641_s27 + $0x9a4] ss:$8 sps:$4 sm:$0xff]  }
 0x248   : > { %7425 = vmatprep.subr.bf16.mxu0 %v9945_v29  ;;  %v10023_v29 = vld [vmem:[%s10641_s27 + $0x18a4] ss:$8 sps:$4 sm:$0xff]  }
 0x24a   : > { %6811 = vmatpush1.bf16.msra.mxu1 %v9940_v45  ;;  %v10018_v45 = vld [vmem:[%s10641_s27 + $0x9a0] ss:$8 sps:$4 sm:$0xff]  }
 0x24b   : > { %7426 = vmatpush1.bf16.msra.mxu0 %v9943_v46  ;;  %6812 = vmatprep.subr.bf16.mxu1 %v9948_v48  ;;  %v10021_v46 = vld [vmem:[%s10641_s27 + $0x18a0] ss:$8 sps:$4 sm:$0xff]   ;;  %v10026_v48 = vld [vmem:[%s10641_s27 + $0x9b4] ss:$8 sps:$4 sm:$0xff]  }
 0x24c   : > { %7427 = vmatprep.subr.bf16.mxu0 %v9951_v54  ;;  %v10029_v54 = vld [vmem:[%s10641_s27 + $0x18b4] ss:$8 sps:$4 sm:$0xff]  }
 0x24e   : > { %6813 = vmatpush1.bf16.msra.mxu1 %v9946_v57  ;;  %v10024_v57 = vld [vmem:[%s10641_s27 + $0x9b0] ss:$8 sps:$4 sm:$0xff]  }
 0x24f   : > { %7428 = vmatpush1.bf16.msra.mxu0 %v9949_v58  ;;  %6814 = vmatprep.subr.bf16.mxu1 %v9954_v35  ;;  %v10027_v58 = vld [vmem:[%s10641_s27 + $0x18b0] ss:$8 sps:$4 sm:$0xff]   ;;  %v10032_v35 = vld [vmem:[%s10641_s27 + $0x9c4] ss:$8 sps:$4 sm:$0xff]  }
 0x250   : > { %7429 = vmatprep.subr.bf16.mxu0 %v9957_v31  ;;  %v10035_v31 = vld [vmem:[%s10641_s27 + $0x18c4] ss:$8 sps:$4 sm:$0xff]  }
 0x252   : > { %6815 = vmatpush1.bf16.msra.mxu1 %v9952_v60  ;;  %v10030_v60 = vld [vmem:[%s10641_s27 + $0x9c0] ss:$8 sps:$4 sm:$0xff]  }
 0x253   : > { %7430 = vmatpush1.bf16.msra.mxu0 %v9955_v41  ;;  %6825 = vmatprep.subr.bf16.mxu1 %v9960_v17  ;;  %v10033_v41 = vld [vmem:[%s10641_s27 + $0x18c0] ss:$8 sps:$4 sm:$0xff]   ;;  %v10038_v17 = vld [vmem:[%s10641_s27 + $0x9d4] ss:$8 sps:$4 sm:$0xff]  }
 0x254   : > { %7440 = vmatprep.subr.bf16.mxu0 %v9963_v61  ;;  %v10041_v61 = vld [vmem:[%s10641_s27 + $0x18d4] ss:$8 sps:$4 sm:$0xff]  }
 0x255   : > { %6817 = vmatmul.mubr.bf16.vlgmr.msra.gmra.mrb[0].mxu1 %v11415_v0 }
 0x256   : > { %7432 = vmatmul.mubr.bf16.vlgmr.msra.gmra.mrb[0].mxu0 %v1520_v2  ;;  %6826 = vmatpush1.bf16.msra.mxu1 %v9958_v3  ;;  %v10039_v2 = vld [vmem:[%s10641_s27 + $0x18d0] ss:$8 sps:$4 sm:$0xff]   ;;  %v10044_v3 = vld [vmem:[%s10641_s27 + $0x9e4] ss:$8 sps:$4 sm:$0xff]  }
 0x257   : > { %7441 = vmatpush1.bf16.msra.mxu0 %v9961_v6  ;;  %6827 = vmatprep.subr.bf16.mxu1 %v9966_v43  ;;  %v10047_v6 = vld [vmem:[%s10641_s27 + $0x18e4] ss:$8 sps:$4 sm:$0xff]   ;;  %v1327_v43 = vcombine.high %v11311_v38, %v11311_v38  ;;  %v10051_v38 = vld [vmem:[%s10641_s27 + $0x18f0] ss:$8 sps:$4 sm:$0xff]  }
 0x258   : > { %7442 = vmatprep.subr.bf16.mxu0 %v9969_v51  ;;  %6857 = vmatprep.mubr.bf16.mxu1 %v1374_v7  ;;  %v10042_v51 = vld [vmem:[%s10641_s27 + $0x9e0] ss:$8 sps:$4 sm:$0xff]  }
 0x259   : > { %7472 = vmatprep.mubr.bf16.mxu0 %v11426_v24  ;;  %v10045_v7 = vld [vmem:[%s10641_s27 + $0x18e0] ss:$8 sps:$4 sm:$0xff]  }
 0x25a   : > { %6828 = vmatpush1.bf16.msra.mxu1 %v9964_v50  ;;  %v10050_v50 = vld [vmem:[%s10641_s27 + $0x9f4] ss:$8 sps:$4 sm:$0xff]  }
 0x25b   : > { %7443 = vmatpush1.bf16.msra.mxu0 %v9967_v8  ;;  %6829 = vmatprep.subr.bf16.mxu1 %v9972_v30  ;;  %v10053_v8 = vld [vmem:[%s10641_s27 + $0x18f4] ss:$8 sps:$4 sm:$0xff]   ;;  %v11489_v30 = vrot.slane %v1327_v43, %v10699_v52  ;;  %v10120_v43 = vld [vmem:[%s10641_s27 + $0xab0] ss:$8 sps:$4 sm:$0xff]  }
 0x25c   : > { %7444 = vmatprep.subr.bf16.mxu0 %v9975_v37  ;;  %v10048_v37 = vld [vmem:[%s10641_s27 + $0x9f0] ss:$8 sps:$4 sm:$0xff]  }
 0x25e   : > { %6830 = vmatpush1.bf16.msra.mxu1 %v9970_v10  ;;  %v10056_v10 = vld [vmem:[%s10641_s27 + $0xa04] ss:$8 sps:$4 sm:$0xff]  }
 0x25f   : > { %7445 = vmatpush1.bf16.msra.mxu0 %v9973_v11  ;;  %6831 = vmatprep.subr.bf16.mxu1 %v9978_v12  ;;  %v10059_v11 = vld [vmem:[%s10641_s27 + $0x1904] ss:$8 sps:$4 sm:$0xff]   ;;  %v1343_v12 = vcombine.high %v11489_v30, %v11489_v30 }
 0x260   : > { %7446 = vmatprep.subr.bf16.mxu0 %v9981_v13  ;;  %v1372_v13 = vcombine.high %v11415_v0, %v11415_v0  ;;  %v1570_v0 = vcombine.high %v11426_v24, %v11426_v24  ;;  %v10066_v24 = vld [vmem:[%s10641_s27 + $0xa20] ss:$8 sps:$4 sm:$0xff]  }
 0x262   : > { %6832 = vmatpush1.bf16.msra.mxu1 %v9976_v14  ;;  %v11501_v14 = vrot.slane %v11405_v59, %v10699_v52  ;;  %v10060_v59 = vld [vmem:[%s10641_s27 + $0xa10] ss:$8 sps:$4 sm:$0xff]  }
 0x263   : > { %7447 = vmatpush1.bf16.msra.mxu0 %v9979_v16  ;;  %6833 = vmatprep.subr.bf16.mxu1 %v9984_v1  ;;  %v10054_v16 = vld [vmem:[%s10641_s27 + $0xa00] ss:$8 sps:$4 sm:$0xff]  }
 0x264   : > { %7448 = vmatprep.subr.bf16.mxu0 %v9987_v18  ;;  %v10057_v1 = vld [vmem:[%s10641_s27 + $0x1900] ss:$8 sps:$4 sm:$0xff]   ;;  %v10062_v18 = vld [vmem:[%s10641_s27 + $0xa14] ss:$8 sps:$4 sm:$0xff]  }
 0x266   : > { %6834 = vmatpush1.bf16.msra.mxu1 %v9982_v4  ;;  %v10065_v4 = vld [vmem:[%s10641_s27 + $0x1914] ss:$8 sps:$4 sm:$0xff]  }
 0x267   : > { %7449 = vmatpush1.bf16.msra.mxu0 %v9985_v19  ;;  %6835 = vmatprep.subr.bf16.mxu1 %v9990_v21  ;;  %v11508_v19 = vrot.slane %v1343_v12, %v10699_v52  ;;  %v10063_v21 = vld [vmem:[%s10641_s27 + $0x1910] ss:$8 sps:$4 sm:$0xff]  }
 0x268   : > { %7450 = vmatprep.subr.bf16.mxu0 %v9993_v22  ;;  %v10068_v22 = vld [vmem:[%s10641_s27 + $0xa24] ss:$8 sps:$4 sm:$0xff]   ;;  %v10135_v12 = vld [vmem:[%s10641_s27 + $0x19d0] ss:$8 sps:$4 sm:$0xff]  }
 0x26a   : > { %6836 = vmatpush1.bf16.msra.mxu1 %v9988_v23  ;;  %v10071_v23 = vld [vmem:[%s10641_s27 + $0x1924] ss:$8 sps:$4 sm:$0xff]  }
 0x26b   : > { %7451 = vmatpush1.bf16.msra.mxu0 %v9991_v25  ;;  %6837 = vmatprep.subr.bf16.mxu1 %v9996_v26  ;;  %v10069_v25 = vld [vmem:[%s10641_s27 + $0x1920] ss:$8 sps:$4 sm:$0xff]   ;;  %v10074_v26 = vld [vmem:[%s10641_s27 + $0xa34] ss:$8 sps:$4 sm:$0xff]  }
 0x26c   : > { %7452 = vmatprep.subr.bf16.mxu0 %v9999_v27  ;;  %v10077_v27 = vld [vmem:[%s10641_s27 + $0x1934] ss:$8 sps:$4 sm:$0xff]  }
 0x26e   : > { %6838 = vmatpush1.bf16.msra.mxu1 %v9994_v28  ;;  %v10072_v28 = vld [vmem:[%s10641_s27 + $0xa30] ss:$8 sps:$4 sm:$0xff]  }
 0x26f   : > { %7453 = vmatpush1.bf16.msra.mxu0 %v9997_v9  ;;  %6839 = vmatprep.subr.bf16.mxu1 %v10002_v63  ;;  %v10075_v9 = vld [vmem:[%s10641_s27 + $0x1930] ss:$8 sps:$4 sm:$0xff]   ;;  %v10080_v63 = vld [vmem:[%s10641_s27 + $0xa44] ss:$8 sps:$4 sm:$0xff]  }
 0x270   : > { %7454 = vmatprep.subr.bf16.mxu0 %v10005_v53  ;;  %v10083_v53 = vld [vmem:[%s10641_s27 + $0x1944] ss:$8 sps:$4 sm:$0xff]  }
 0x272   : > { %6840 = vmatpush1.bf16.msra.mxu1 %v10000_v32  ;;  %v10078_v32 = vld [vmem:[%s10641_s27 + $0xa40] ss:$8 sps:$4 sm:$0xff]  }
 0x273   : > { %7455 = vmatpush1.bf16.msra.mxu0 %v10003_v56  ;;  %6841 = vmatprep.subr.bf16.mxu1 %v10008_v33  ;;  %v10081_v56 = vld [vmem:[%s10641_s27 + $0x1940] ss:$8 sps:$4 sm:$0xff]   ;;  %v10086_v33 = vld [vmem:[%s10641_s27 + $0xa54] ss:$8 sps:$4 sm:$0xff]  }
 0x274   : > { %7456 = vmatprep.subr.bf16.mxu0 %v10011_v34  ;;  %v10089_v34 = vld [vmem:[%s10641_s27 + $0x1954] ss:$8 sps:$4 sm:$0xff]  }
 0x276   : > { %6842 = vmatpush1.bf16.msra.mxu1 %v10006_v36  ;;  %v10084_v36 = vld [vmem:[%s10641_s27 + $0xa50] ss:$8 sps:$4 sm:$0xff]  }
 0x277   : > { %7457 = vmatpush1.bf16.msra.mxu0 %v10009_v39  ;;  %6843 = vmatprep.subr.bf16.mxu1 %v10014_v40  ;;  %v10087_v39 = vld [vmem:[%s10641_s27 + $0x1950] ss:$8 sps:$4 sm:$0xff]   ;;  %v10092_v40 = vld [vmem:[%s10641_s27 + $0xa64] ss:$8 sps:$4 sm:$0xff]  }
 0x278   : > { %7458 = vmatprep.subr.bf16.mxu0 %v10017_v20  ;;  %v10095_v20 = vld [vmem:[%s10641_s27 + $0x1964] ss:$8 sps:$4 sm:$0xff]  }
 0x27a   : > { %6844 = vmatpush1.bf16.msra.mxu1 %v10012_v42  ;;  %v10090_v42 = vld [vmem:[%s10641_s27 + $0xa60] ss:$8 sps:$4 sm:$0xff]  }
 0x27b   : > { %7459 = vmatpush1.bf16.msra.mxu0 %v10015_v44  ;;  %6845 = vmatprep.subr.bf16.mxu1 %v10020_v49  ;;  %v10093_v44 = vld [vmem:[%s10641_s27 + $0x1960] ss:$8 sps:$4 sm:$0xff]   ;;  %v10098_v49 = vld [vmem:[%s10641_s27 + $0xa74] ss:$8 sps:$4 sm:$0xff]  }
 0x27c   : > { %7460 = vmatprep.subr.bf16.mxu0 %v10023_v29  ;;  %v10101_v29 = vld [vmem:[%s10641_s27 + $0x1974] ss:$8 sps:$4 sm:$0xff]  }
 0x27e   : > { %6846 = vmatpush1.bf16.msra.mxu1 %v10018_v45  ;;  %v10096_v45 = vld [vmem:[%s10641_s27 + $0xa70] ss:$8 sps:$4 sm:$0xff]  }
 0x27f   : > { %7461 = vmatpush1.bf16.msra.mxu0 %v10021_v46  ;;  %6847 = vmatprep.subr.bf16.mxu1 %v10026_v48  ;;  %v10099_v46 = vld [vmem:[%s10641_s27 + $0x1970] ss:$8 sps:$4 sm:$0xff]   ;;  %v10104_v48 = vld [vmem:[%s10641_s27 + $0xa84] ss:$8 sps:$4 sm:$0xff]  }
 0x280   : > { %7462 = vmatprep.subr.bf16.mxu0 %v10029_v54  ;;  %v10107_v54 = vld [vmem:[%s10641_s27 + $0x1984] ss:$8 sps:$4 sm:$0xff]  }
 0x282   : > { %6848 = vmatpush1.bf16.msra.mxu1 %v10024_v57  ;;  %v10102_v57 = vld [vmem:[%s10641_s27 + $0xa80] ss:$8 sps:$4 sm:$0xff]  }
 0x283   : > { %7463 = vmatpush1.bf16.msra.mxu0 %v10027_v58  ;;  %6849 = vmatprep.subr.bf16.mxu1 %v10032_v35  ;;  %v10105_v58 = vld [vmem:[%s10641_s27 + $0x1980] ss:$8 sps:$4 sm:$0xff]   ;;  %v10110_v35 = vld [vmem:[%s10641_s27 + $0xa94] ss:$8 sps:$4 sm:$0xff]  }
 0x284   : > { %7464 = vmatprep.subr.bf16.mxu0 %v10035_v31  ;;  %v10113_v31 = vld [vmem:[%s10641_s27 + $0x1994] ss:$8 sps:$4 sm:$0xff]  }
 0x286   : > { %6850 = vmatpush1.bf16.msra.mxu1 %v10030_v60  ;;  %v10108_v60 = vld [vmem:[%s10641_s27 + $0xa90] ss:$8 sps:$4 sm:$0xff]  }
 0x287   : > { %7465 = vmatpush1.bf16.msra.mxu0 %v10033_v41  ;;  %6851 = vmatprep.subr.bf16.mxu1 %v10038_v17  ;;  %v10111_v41 = vld [vmem:[%s10641_s27 + $0x1990] ss:$8 sps:$4 sm:$0xff]   ;;  %v10116_v17 = vld [vmem:[%s10641_s27 + $0xaa4] ss:$8 sps:$4 sm:$0xff]  }
 0x288   : > { %7466 = vmatprep.subr.bf16.mxu0 %v10041_v61  ;;  %v10119_v61 = vld [vmem:[%s10641_s27 + $0x19a4] ss:$8 sps:$4 sm:$0xff]  }
 0x28a   : > { %6852 = vmatpush1.bf16.msra.mxu1 %v10036_v62  ;;  %v10114_v62 = vld [vmem:[%s10641_s27 + $0xaa0] ss:$8 sps:$4 sm:$0xff]  }
 0x28b   : > { %7467 = vmatpush1.bf16.msra.mxu0 %v10039_v2  ;;  %6853 = vmatprep.subr.bf16.mxu1 %v10044_v3  ;;  %v10117_v2 = vld [vmem:[%s10641_s27 + $0x19a0] ss:$8 sps:$4 sm:$0xff]   ;;  %v10122_v3 = vld [vmem:[%s10641_s27 + $0xab4] ss:$8 sps:$4 sm:$0xff]  }
 0x28c   : > { %7468 = vmatprep.subr.bf16.mxu0 %v10047_v6  ;;  %v10125_v6 = vld [vmem:[%s10641_s27 + $0x19b4] ss:$8 sps:$4 sm:$0xff]  }
 0x28e   : > { %6854 = vmatpush1.bf16.msra.mxu1 %v10042_v51  ;;  %v10123_v51 = vld [vmem:[%s10641_s27 + $0x19b0] ss:$8 sps:$4 sm:$0xff]  }
 0x28f   : > { %7469 = vmatpush1.bf16.msra.mxu0 %v10045_v7  ;;  %6855 = vmatprep.subr.bf16.mxu1 %v10050_v50  ;;  %v10128_v7 = vld [vmem:[%s10641_s27 + $0xac4] ss:$8 sps:$4 sm:$0xff]  }
 0x290   : > { %7470 = vmatprep.subr.bf16.mxu0 %v10053_v8  ;;  %v10131_v50 = vld [vmem:[%s10641_s27 + $0x19c4] ss:$8 sps:$4 sm:$0xff]   ;;  %v10126_v8 = vld [vmem:[%s10641_s27 + $0xac0] ss:$8 sps:$4 sm:$0xff]  }
 0x292   : > { %6856 = vmatpush1.bf16.msra.mxu1 %v10048_v37  ;;  %v10129_v37 = vld [vmem:[%s10641_s27 + $0x19c0] ss:$8 sps:$4 sm:$0xff]  }
 0x293   : > { %7471 = vmatpush1.bf16.msra.mxu0 %v10051_v38  ;;  %6866 = vmatprep.subr.bf16.mxu1 %v10056_v10  ;;  %v10134_v38 = vld [vmem:[%s10641_s27 + $0xad4] ss:$8 sps:$4 sm:$0xff]  }
 0x294   : > { %7481 = vmatprep.subr.bf16.mxu0 %v10059_v11  ;;  %v10137_v10 = vld [vmem:[%s10641_s27 + $0x19d4] ss:$8 sps:$4 sm:$0xff]   ;;  %v10132_v11 = vld [vmem:[%s10641_s27 + $0xad0] ss:$8 sps:$4 sm:$0xff]  }
 0x295   : > { %6858 = vmatmul.mubr.bf16.vlgmr.msra.gmra.mrb[0].mxu1 %v1372_v13  ;;  %v10140_v13 = vld [vmem:[%s10641_s27 + $0xae4] ss:$8 sps:$4 sm:$0xff]  }
 0x296   : > { %7473 = vmatmul.mubr.bf16.vlgmr.msra.gmra.mrb[0].mxu0 %v11501_v14  ;;  %6867 = vmatpush1.bf16.msra.mxu1 %v10054_v16  ;;  %v10143_v16 = vld [vmem:[%s10641_s27 + $0x19e4] ss:$8 sps:$4 sm:$0xff]  }
 0x297   : > { %7482 = vmatpush1.bf16.msra.mxu0 %v10057_v1  ;;  %6868 = vmatprep.subr.bf16.mxu1 %v10062_v18  ;;  %v1523_v1 = vcombine.high %v11397_v55, %v11397_v55  ;;  %v10138_v18 = vld [vmem:[%s10641_s27 + $0xae0] ss:$8 sps:$4 sm:$0xff]   ;;  %v10147_v55 = vld [vmem:[%s10641_s27 + $0x19f0] ss:$8 sps:$4 sm:$0xff]  }
 0x298   : > { %7483 = vmatprep.subr.bf16.mxu0 %v10065_v4  ;;  %6898 = vmatprep.mubr.bf16.mxu1 %v11508_v19  ;;  %v10141_v4 = vld [vmem:[%s10641_s27 + $0x19e0] ss:$8 sps:$4 sm:$0xff]  }
 0x299   : > { %7513 = vmatprep.mubr.bf16.mxu0 %v1570_v0  ;;  %v10146_v0 = vld [vmem:[%s10641_s27 + $0xaf4] ss:$8 sps:$4 sm:$0xff]  }
 0x29a   : > { %6869 = vmatpush1.bf16.msra.mxu1 %v10060_v59  ;;  %v10149_v59 = vld [vmem:[%s10641_s27 + $0x19f4] ss:$8 sps:$4 sm:$0xff]  }
 0x29b   : > { %7484 = vmatpush1.bf16.msra.mxu0 %v10063_v21  ;;  %6870 = vmatprep.subr.bf16.mxu1 %v10068_v22  ;;  %v11573_v21 = vrot.slane %v1523_v1, %v10699_v52  ;;  %v10144_v22 = vld [vmem:[%s10641_s27 + $0xaf0] ss:$8 sps:$4 sm:$0xff]  }
 0x29c   : > { %7485 = vmatprep.subr.bf16.mxu0 %v10071_v23  ;;  %v10153_v23 = vld [vmem:[%s10641_s27 + $0xb04] ss:$8 sps:$4 sm:$0xff]   ;;  %v10220_v1 = vld [vmem:[%s10641_s27 + $0x1ab0] ss:$8 sps:$4 sm:$0xff]  }
 0x29e   : > { %6871 = vmatpush1.bf16.msra.mxu1 %v10066_v24  ;;  %v10156_v24 = vld [vmem:[%s10641_s27 + $0x1a04] ss:$8 sps:$4 sm:$0xff]  }
 0x29f   : > { %7486 = vmatpush1.bf16.msra.mxu0 %v10069_v25  ;;  %6872 = vmatprep.subr.bf16.mxu1 %v10074_v26  ;;  %v1539_v25 = vcombine.high %v11573_v21, %v11573_v21  ;;  %v11583_v26 = vrot.slane %v11489_v30, %v10699_v52 }
 0x2a0   : > { %7487 = vmatprep.subr.bf16.mxu0 %v10077_v27  ;;  %v1568_v27 = vcombine.high %v11501_v14, %v11501_v14  ;;  %v10157_v14 = vld [vmem:[%s10641_s27 + $0xb10] ss:$8 sps:$4 sm:$0xff]  }
 0x2a1   : > { %v11594_v30 = vrot.slane %v1539_v25, %v10699_v52  ;;  %v10237_v25 = vld [vmem:[%s10641_s27 + $0xbe4] ss:$8 sps:$4 sm:$0xff]  }
 0x2a2   : > { %6873 = vmatpush1.bf16.msra.mxu1 %v10072_v28  ;;  %v10151_v28 = vld [vmem:[%s10641_s27 + $0xb00] ss:$8 sps:$4 sm:$0xff]  }
 0x2a3   : > { %7488 = vmatpush1.bf16.msra.mxu0 %v10075_v9  ;;  %6874 = vmatprep.subr.bf16.mxu1 %v10080_v63  ;;  %v10154_v9 = vld [vmem:[%s10641_s27 + $0x1a00] ss:$8 sps:$4 sm:$0xff]   ;;  %v10159_v63 = vld [vmem:[%s10641_s27 + $0xb14] ss:$8 sps:$4 sm:$0xff]  }
 0x2a4   : > { %7489 = vmatprep.subr.bf16.mxu0 %v10083_v53  ;;  %v10162_v53 = vld [vmem:[%s10641_s27 + $0x1a14] ss:$8 sps:$4 sm:$0xff]  }
 0x2a6   : > { %6875 = vmatpush1.bf16.msra.mxu1 %v10078_v32  ;;  %v1375_v32 = vcombine.high %v11508_v19, %v11508_v19  ;;  %v10168_v19 = vld [vmem:[%s10641_s27 + $0x1a24] ss:$8 sps:$4 sm:$0xff]  }
 0x2a7   : > { %7490 = vmatpush1.bf16.msra.mxu0 %v10081_v56  ;;  %6876 = vmatprep.subr.bf16.mxu1 %v10086_v33  ;;  %v10160_v56 = vld [vmem:[%s10641_s27 + $0x1a10] ss:$8 sps:$4 sm:$0xff]   ;;  %v10165_v33 = vld [vmem:[%s10641_s27 + $0xb24] ss:$8 sps:$4 sm:$0xff]  }
 0x2a8   : > { %7491 = vmatprep.subr.bf16.mxu0 %v10089_v34  ;;  %v10163_v34 = vld [vmem:[%s10641_s27 + $0xb20] ss:$8 sps:$4 sm:$0xff]  }
 0x2aa   : > { %6877 = vmatpush1.bf16.msra.mxu1 %v10084_v36  ;;  %v10166_v36 = vld [vmem:[%s10641_s27 + $0x1a20] ss:$8 sps:$4 sm:$0xff]  }
 0x2ab   : > { %7492 = vmatpush1.bf16.msra.mxu0 %v10087_v39  ;;  %6878 = vmatprep.subr.bf16.mxu1 %v10092_v40  ;;  %v10171_v39 = vld [vmem:[%s10641_s27 + $0xb34] ss:$8 sps:$4 sm:$0xff]  }
 0x2ac   : > { %7493 = vmatprep.subr.bf16.mxu0 %v10095_v20  ;;  %v10174_v40 = vld [vmem:[%s10641_s27 + $0x1a34] ss:$8 sps:$4 sm:$0xff]   ;;  %v10169_v20 = vld [vmem:[%s10641_s27 + $0xb30] ss:$8 sps:$4 sm:$0xff]  }
 0x2ae   : > { %6879 = vmatpush1.bf16.msra.mxu1 %v10090_v42  ;;  %v10172_v42 = vld [vmem:[%s10641_s27 + $0x1a30] ss:$8 sps:$4 sm:$0xff]  }
 0x2af   : > { %7494 = vmatpush1.bf16.msra.mxu0 %v10093_v44  ;;  %6880 = vmatprep.subr.bf16.mxu1 %v10098_v49  ;;  %v10177_v44 = vld [vmem:[%s10641_s27 + $0xb44] ss:$8 sps:$4 sm:$0xff]  }
 0x2b0   : > { %7495 = vmatprep.subr.bf16.mxu0 %v10101_v29  ;;  %v10180_v49 = vld [vmem:[%s10641_s27 + $0x1a44] ss:$8 sps:$4 sm:$0xff]   ;;  %v10175_v29 = vld [vmem:[%s10641_s27 + $0xb40] ss:$8 sps:$4 sm:$0xff]  }
 0x2b2   : > { %6881 = vmatpush1.bf16.msra.mxu1 %v10096_v45  ;;  %v10178_v45 = vld [vmem:[%s10641_s27 + $0x1a40] ss:$8 sps:$4 sm:$0xff]  }
 0x2b3   : > { %7496 = vmatpush1.bf16.msra.mxu0 %v10099_v46  ;;  %6882 = vmatprep.subr.bf16.mxu1 %v10104_v48  ;;  %v10183_v46 = vld [vmem:[%s10641_s27 + $0xb54] ss:$8 sps:$4 sm:$0xff]  }
 0x2b4   : > { %7497 = vmatprep.subr.bf16.mxu0 %v10107_v54  ;;  %v10186_v48 = vld [vmem:[%s10641_s27 + $0x1a54] ss:$8 sps:$4 sm:$0xff]   ;;  %v10181_v54 = vld [vmem:[%s10641_s27 + $0xb50] ss:$8 sps:$4 sm:$0xff]  }
 0x2b6   : > { %6883 = vmatpush1.bf16.msra.mxu1 %v10102_v57  ;;  %v10184_v57 = vld [vmem:[%s10641_s27 + $0x1a50] ss:$8 sps:$4 sm:$0xff]  }
 0x2b7   : > { %7498 = vmatpush1.bf16.msra.mxu0 %v10105_v58  ;;  %6884 = vmatprep.subr.bf16.mxu1 %v10110_v35  ;;  %v10189_v58 = vld [vmem:[%s10641_s27 + $0xb64] ss:$8 sps:$4 sm:$0xff]  }
 0x2b8   : > { %7499 = vmatprep.subr.bf16.mxu0 %v10113_v31  ;;  %v10192_v35 = vld [vmem:[%s10641_s27 + $0x1a64] ss:$8 sps:$4 sm:$0xff]   ;;  %v10187_v31 = vld [vmem:[%s10641_s27 + $0xb60] ss:$8 sps:$4 sm:$0xff]  }
 0x2ba   : > { %6885 = vmatpush1.bf16.msra.mxu1 %v10108_v60  ;;  %v10190_v60 = vld [vmem:[%s10641_s27 + $0x1a60] ss:$8 sps:$4 sm:$0xff]  }
 0x2bb   : > { %7500 = vmatpush1.bf16.msra.mxu0 %v10111_v41  ;;  %6886 = vmatprep.subr.bf16.mxu1 %v10116_v17  ;;  %v10195_v41 = vld [vmem:[%s10641_s27 + $0xb74] ss:$8 sps:$4 sm:$0xff]  }
 0x2bc   : > { %7501 = vmatprep.subr.bf16.mxu0 %v10119_v61  ;;  %v10198_v17 = vld [vmem:[%s10641_s27 + $0x1a74] ss:$8 sps:$4 sm:$0xff]   ;;  %v10193_v61 = vld [vmem:[%s10641_s27 + $0xb70] ss:$8 sps:$4 sm:$0xff]  }
 0x2be   : > { %6887 = vmatpush1.bf16.msra.mxu1 %v10114_v62  ;;  %v10196_v62 = vld [vmem:[%s10641_s27 + $0x1a70] ss:$8 sps:$4 sm:$0xff]  }
 0x2bf   : > { %7502 = vmatpush1.bf16.msra.mxu0 %v10117_v2  ;;  %6888 = vmatprep.subr.bf16.mxu1 %v10122_v3  ;;  %v10201_v2 = vld [vmem:[%s10641_s27 + $0xb84] ss:$8 sps:$4 sm:$0xff]  }
 0x2c0   : > { %7503 = vmatprep.subr.bf16.mxu0 %v10125_v6  ;;  %v10204_v3 = vld [vmem:[%s10641_s27 + $0x1a84] ss:$8 sps:$4 sm:$0xff]   ;;  %v10199_v6 = vld [vmem:[%s10641_s27 + $0xb80] ss:$8 sps:$4 sm:$0xff]  }
 0x2c2   : > { %6889 = vmatpush1.bf16.msra.mxu1 %v10120_v43  ;;  %v10202_v43 = vld [vmem:[%s10641_s27 + $0x1a80] ss:$8 sps:$4 sm:$0xff]  }
 0x2c3   : > { %7504 = vmatpush1.bf16.msra.mxu0 %v10123_v51  ;;  %6890 = vmatprep.subr.bf16.mxu1 %v10128_v7  ;;  %v10207_v51 = vld [vmem:[%s10641_s27 + $0xb94] ss:$8 sps:$4 sm:$0xff]  }
 0x2c4   : > { %7505 = vmatprep.subr.bf16.mxu0 %v10131_v50  ;;  %v10210_v7 = vld [vmem:[%s10641_s27 + $0x1a94] ss:$8 sps:$4 sm:$0xff]   ;;  %v10205_v50 = vld [vmem:[%s10641_s27 + $0xb90] ss:$8 sps:$4 sm:$0xff]  }
 0x2c6   : > { %6891 = vmatpush1.bf16.msra.mxu1 %v10126_v8  ;;  %v10208_v8 = vld [vmem:[%s10641_s27 + $0x1a90] ss:$8 sps:$4 sm:$0xff]  }
 0x2c7   : > { %7506 = vmatpush1.bf16.msra.mxu0 %v10129_v37  ;;  %6892 = vmatprep.subr.bf16.mxu1 %v10134_v38  ;;  %v10213_v37 = vld [vmem:[%s10641_s27 + $0xba4] ss:$8 sps:$4 sm:$0xff]  }
 0x2c8   : > { %7507 = vmatprep.subr.bf16.mxu0 %v10137_v10  ;;  %v10216_v38 = vld [vmem:[%s10641_s27 + $0x1aa4] ss:$8 sps:$4 sm:$0xff]   ;;  %v10211_v10 = vld [vmem:[%s10641_s27 + $0xba0] ss:$8 sps:$4 sm:$0xff]  }
 0x2ca   : > { %6893 = vmatpush1.bf16.msra.mxu1 %v10132_v11  ;;  %v10214_v11 = vld [vmem:[%s10641_s27 + $0x1aa0] ss:$8 sps:$4 sm:$0xff]  }
 0x2cb   : > { %7508 = vmatpush1.bf16.msra.mxu0 %v10135_v12  ;;  %6894 = vmatprep.subr.bf16.mxu1 %v10140_v13  ;;  %v10219_v12 = vld [vmem:[%s10641_s27 + $0xbb4] ss:$8 sps:$4 sm:$0xff]  }
 0x2cc   : > { %7509 = vmatprep.subr.bf16.mxu0 %v10143_v16  ;;  %v10222_v13 = vld [vmem:[%s10641_s27 + $0x1ab4] ss:$8 sps:$4 sm:$0xff]   ;;  %v10217_v16 = vld [vmem:[%s10641_s27 + $0xbb0] ss:$8 sps:$4 sm:$0xff]  }
 0x2ce   : > { %6895 = vmatpush1.bf16.msra.mxu1 %v10138_v18  ;;  %v10225_v18 = vld [vmem:[%s10641_s27 + $0xbc4] ss:$8 sps:$4 sm:$0xff]  }
 0x2cf   : > { %7510 = vmatpush1.bf16.msra.mxu0 %v10141_v4  ;;  %6896 = vmatprep.subr.bf16.mxu1 %v10146_v0  ;;  %v10228_v4 = vld [vmem:[%s10641_s27 + $0x1ac4] ss:$8 sps:$4 sm:$0xff]   ;;  %v10223_v0 = vld [vmem:[%s10641_s27 + $0xbc0] ss:$8 sps:$4 sm:$0xff]  }
 0x2d0   : > { %7511 = vmatprep.subr.bf16.mxu0 %v10149_v59  ;;  %v10226_v59 = vld [vmem:[%s10641_s27 + $0x1ac0] ss:$8 sps:$4 sm:$0xff]  }
 0x2d2   : > { %6897 = vmatpush1.bf16.msra.mxu1 %v10144_v22  ;;  %v10231_v22 = vld [vmem:[%s10641_s27 + $0xbd4] ss:$8 sps:$4 sm:$0xff]  }
 0x2d3   : > { %7512 = vmatpush1.bf16.msra.mxu0 %v10147_v55  ;;  %6907 = vmatprep.subr.bf16.mxu1 %v10153_v23  ;;  %v10234_v55 = vld [vmem:[%s10641_s27 + $0x1ad4] ss:$8 sps:$4 sm:$0xff]   ;;  %v10229_v23 = vld [vmem:[%s10641_s27 + $0xbd0] ss:$8 sps:$4 sm:$0xff]  }
 0x2d4   : > { %7522 = vmatprep.subr.bf16.mxu0 %v10156_v24  ;;  %v10232_v24 = vld [vmem:[%s10641_s27 + $0x1ad0] ss:$8 sps:$4 sm:$0xff]  }
 0x2d5   : > { %6899 = vmatmul.mubr.bf16.vlgmr.msra.gmra.mrb[0].mxu1 %v11583_v26 }
 0x2d6   : > { %7514 = vmatmul.mubr.bf16.vlgmr.msra.gmra.mrb[0].mxu0 %v1568_v27  ;;  %6908 = vmatpush1.bf16.msra.mxu1 %v10151_v28  ;;  %v10240_v27 = vld [vmem:[%s10641_s27 + $0x1ae4] ss:$8 sps:$4 sm:$0xff]   ;;  %v10235_v28 = vld [vmem:[%s10641_s27 + $0xbe0] ss:$8 sps:$4 sm:$0xff]  }
 0x2d7   : > { %7523 = vmatpush1.bf16.msra.mxu0 %v10154_v9  ;;  %6909 = vmatprep.subr.bf16.mxu1 %v10159_v63  ;;  %v10238_v9 = vld [vmem:[%s10641_s27 + $0x1ae0] ss:$8 sps:$4 sm:$0xff]   ;;  %v10243_v63 = vld [vmem:[%s10641_s27 + $0xbf4] ss:$8 sps:$4 sm:$0xff]  }
 0x2d8   : > { %7524 = vmatprep.subr.bf16.mxu0 %v10162_v53  ;;  %6939 = vmatprep.mubr.bf16.mxu1 %v1375_v32  ;;  %v10246_v53 = vld [vmem:[%s10641_s27 + $0x1af4] ss:$8 sps:$4 sm:$0xff]  }
 0x2d9   : > { %7554 = vmatprep.mubr.bf16.mxu0 %v11594_v30  ;;  %v11655_v32 = vld.sshfl [vmem:[%s10696_s8 + $0x18] sm:$0xff pattern:$0x75316420] }
 0x2da   : > { %6910 = vmatpush1.bf16.msra.mxu1 %v10157_v14  ;;  %v10241_v14 = vld [vmem:[%s10641_s27 + $0xbf0] ss:$8 sps:$4 sm:$0xff]  }
 0x2db   : > { %7525 = vmatpush1.bf16.msra.mxu0 %v10160_v56  ;;  %6911 = vmatprep.subr.bf16.mxu1 %v10165_v33  ;;  %v10244_v56 = vld [vmem:[%s10641_s27 + $0x1af0] ss:$8 sps:$4 sm:$0xff]   ;;  %v10249_v33 = vld [vmem:[%s10641_s27 + $0xc04] ss:$8 sps:$4 sm:$0xff]  }
 0x2dc   : > { %7526 = vmatprep.subr.bf16.mxu0 %v10168_v19  ;;  %v10253_v19 = vld [vmem:[%s10641_s27 + $0x1b04] ss:$8 sps:$4 sm:$0xff]  }
 0x2de   : > { %6912 = vmatpush1.bf16.msra.mxu1 %v10163_v34  ;;  %v1391_v34 = vcombine.high %v11655_v32, %v11655_v32 }
 0x2df   : > { %7527 = vmatpush1.bf16.msra.mxu0 %v10166_v36  ;;  %6913 = vmatprep.subr.bf16.mxu1 %v10171_v39  ;;  %v1373_v36 = vcombine.high %v11583_v26, %v11583_v26  ;;  %v11667_v39 = vrot.slane %v11573_v21, %v10699_v52  ;;  %v1571_v26 = vcombine.high %v11594_v30, %v11594_v30  ;;  %v10254_v21 = vld [vmem:[%s10641_s27 + $0xc10] ss:$8 sps:$4 sm:$0xff]   ;;  %v10260_v30 = vld [vmem:[%s10641_s27 + $0xc20] ss:$8 sps:$4 sm:$0xff]  }
 0x2e0   : > { %7528 = vmatprep.subr.bf16.mxu0 %v10174_v40  ;;  %v10247_v40 = vld [vmem:[%s10641_s27 + $0xc00] ss:$8 sps:$4 sm:$0xff]  }
 0x2e2   : > { %6914 = vmatpush1.bf16.msra.mxu1 %v10169_v20  ;;  %v10251_v20 = vld [vmem:[%s10641_s27 + $0x1b00] ss:$8 sps:$4 sm:$0xff]  }
 0x2e3   : > { %7529 = vmatpush1.bf16.msra.mxu0 %v10172_v42  ;;  %6915 = vmatprep.subr.bf16.mxu1 %v10177_v44  ;;  %v10256_v42 = vld [vmem:[%s10641_s27 + $0xc14] ss:$8 sps:$4 sm:$0xff]  }
 0x2e4   : > { %7530 = vmatprep.subr.bf16.mxu0 %v10180_v49  ;;  %v10259_v44 = vld [vmem:[%s10641_s27 + $0x1b14] ss:$8 sps:$4 sm:$0xff]   ;;  %v11674_v49 = vrot.slane %v1391_v34, %v10699_v52  ;;  %v10334_v34 = vld [vmem:[%s10641_s27 + $0xce4] ss:$8 sps:$4 sm:$0xff]  }
 0x2e6   : > { %6916 = vmatpush1.bf16.msra.mxu1 %v10175_v29  ;;  %v10257_v29 = vld [vmem:[%s10641_s27 + $0x1b10] ss:$8 sps:$4 sm:$0xff]  }
 0x2e7   : > { %7531 = vmatpush1.bf16.msra.mxu0 %v10178_v45  ;;  %6917 = vmatprep.subr.bf16.mxu1 %v10183_v46  ;;  %v10262_v45 = vld [vmem:[%s10641_s27 + $0xc24] ss:$8 sps:$4 sm:$0xff]  }
 0x2e8   : > { %7532 = vmatprep.subr.bf16.mxu0 %v10186_v48  ;;  %v10265_v46 = vld [vmem:[%s10641_s27 + $0x1b24] ss:$8 sps:$4 sm:$0xff]   ;;  %v10263_v48 = vld [vmem:[%s10641_s27 + $0x1b20] ss:$8 sps:$4 sm:$0xff]  }
 0x2ea   : > { %6918 = vmatpush1.bf16.msra.mxu1 %v10181_v54  ;;  %v10268_v54 = vld [vmem:[%s10641_s27 + $0xc34] ss:$8 sps:$4 sm:$0xff]  }
 0x2eb   : > { %7533 = vmatpush1.bf16.msra.mxu0 %v10184_v57  ;;  %6919 = vmatprep.subr.bf16.mxu1 %v10189_v58  ;;  %v10271_v57 = vld [vmem:[%s10641_s27 + $0x1b34] ss:$8 sps:$4 sm:$0xff]   ;;  %v10266_v58 = vld [vmem:[%s10641_s27 + $0xc30] ss:$8 sps:$4 sm:$0xff]  }
 0x2ec   : > { %7534 = vmatprep.subr.bf16.mxu0 %v10192_v35  ;;  %v10269_v35 = vld [vmem:[%s10641_s27 + $0x1b30] ss:$8 sps:$4 sm:$0xff]  }
 0x2ee   : > { %6920 = vmatpush1.bf16.msra.mxu1 %v10187_v31  ;;  %v10274_v31 = vld [vmem:[%s10641_s27 + $0xc44] ss:$8 sps:$4 sm:$0xff]  }
 0x2ef   : > { %7535 = vmatpush1.bf16.msra.mxu0 %v10190_v60  ;;  %6921 = vmatprep.subr.bf16.mxu1 %v10195_v41  ;;  %v10277_v60 = vld [vmem:[%s10641_s27 + $0x1b44] ss:$8 sps:$4 sm:$0xff]   ;;  %v10272_v41 = vld [vmem:[%s10641_s27 + $0xc40] ss:$8 sps:$4 sm:$0xff]  }
 0x2f0   : > { %7536 = vmatprep.subr.bf16.mxu0 %v10198_v17  ;;  %v10275_v17 = vld [vmem:[%s10641_s27 + $0x1b40] ss:$8 sps:$4 sm:$0xff]  }
 0x2f2   : > { %6922 = vmatpush1.bf16.msra.mxu1 %v10193_v61  ;;  %v10280_v61 = vld [vmem:[%s10641_s27 + $0xc54] ss:$8 sps:$4 sm:$0xff]  }
 0x2f3   : > { %7537 = vmatpush1.bf16.msra.mxu0 %v10196_v62  ;;  %6923 = vmatprep.subr.bf16.mxu1 %v10201_v2  ;;  %v10283_v62 = vld [vmem:[%s10641_s27 + $0x1b54] ss:$8 sps:$4 sm:$0xff]   ;;  %v10278_v2 = vld [vmem:[%s10641_s27 + $0xc50] ss:$8 sps:$4 sm:$0xff]  }
 0x2f4   : > { %7538 = vmatprep.subr.bf16.mxu0 %v10204_v3  ;;  %v10281_v3 = vld [vmem:[%s10641_s27 + $0x1b50] ss:$8 sps:$4 sm:$0xff]  }
 0x2f6   : > { %6924 = vmatpush1.bf16.msra.mxu1 %v10199_v6  ;;  %v10286_v6 = vld [vmem:[%s10641_s27 + $0xc64] ss:$8 sps:$4 sm:$0xff]  }
 0x2f7   : > { %7539 = vmatpush1.bf16.msra.mxu0 %v10202_v43  ;;  %6925 = vmatprep.subr.bf16.mxu1 %v10207_v51  ;;  %v10289_v43 = vld [vmem:[%s10641_s27 + $0x1b64] ss:$8 sps:$4 sm:$0xff]   ;;  %v10284_v51 = vld [vmem:[%s10641_s27 + $0xc60] ss:$8 sps:$4 sm:$0xff]  }
 0x2f8   : > { %7540 = vmatprep.subr.bf16.mxu0 %v10210_v7  ;;  %v10287_v7 = vld [vmem:[%s10641_s27 + $0x1b60] ss:$8 sps:$4 sm:$0xff]  }
 0x2fa   : > { %6926 = vmatpush1.bf16.msra.mxu1 %v10205_v50  ;;  %v10292_v50 = vld [vmem:[%s10641_s27 + $0xc74] ss:$8 sps:$4 sm:$0xff]  }
 0x2fb   : > { %7541 = vmatpush1.bf16.msra.mxu0 %v10208_v8  ;;  %6927 = vmatprep.subr.bf16.mxu1 %v10213_v37  ;;  %v10295_v8 = vld [vmem:[%s10641_s27 + $0x1b74] ss:$8 sps:$4 sm:$0xff]   ;;  %v10290_v37 = vld [vmem:[%s10641_s27 + $0xc70] ss:$8 sps:$4 sm:$0xff]  }
 0x2fc   : > { %7542 = vmatprep.subr.bf16.mxu0 %v10216_v38  ;;  %v10293_v38 = vld [vmem:[%s10641_s27 + $0x1b70] ss:$8 sps:$4 sm:$0xff]  }
 0x2fe   : > { %6928 = vmatpush1.bf16.msra.mxu1 %v10211_v10  ;;  %v10298_v10 = vld [vmem:[%s10641_s27 + $0xc84] ss:$8 sps:$4 sm:$0xff]  }
 0x2ff   : > { %7543 = vmatpush1.bf16.msra.mxu0 %v10214_v11  ;;  %6929 = vmatprep.subr.bf16.mxu1 %v10219_v12  ;;  %v10301_v11 = vld [vmem:[%s10641_s27 + $0x1b84] ss:$8 sps:$4 sm:$0xff]   ;;  %v10296_v12 = vld [vmem:[%s10641_s27 + $0xc80] ss:$8 sps:$4 sm:$0xff]  }
 0x300   : > { %7544 = vmatprep.subr.bf16.mxu0 %v10222_v13  ;;  %v10299_v13 = vld [vmem:[%s10641_s27 + $0x1b80] ss:$8 sps:$4 sm:$0xff]  }
 0x302   : > { %6930 = vmatpush1.bf16.msra.mxu1 %v10217_v16  ;;  %v10304_v16 = vld [vmem:[%s10641_s27 + $0xc94] ss:$8 sps:$4 sm:$0xff]  }
 0x303   : > { %7545 = vmatpush1.bf16.msra.mxu0 %v10220_v1  ;;  %6931 = vmatprep.subr.bf16.mxu1 %v10225_v18  ;;  %v10307_v1 = vld [vmem:[%s10641_s27 + $0x1b94] ss:$8 sps:$4 sm:$0xff]   ;;  %v10302_v18 = vld [vmem:[%s10641_s27 + $0xc90] ss:$8 sps:$4 sm:$0xff]  }
 0x304   : > { %7546 = vmatprep.subr.bf16.mxu0 %v10228_v4  ;;  %v10305_v4 = vld [vmem:[%s10641_s27 + $0x1b90] ss:$8 sps:$4 sm:$0xff]  }
 0x306   : > { %6932 = vmatpush1.bf16.msra.mxu1 %v10223_v0  ;;  %v10310_v0 = vld [vmem:[%s10641_s27 + $0xca4] ss:$8 sps:$4 sm:$0xff]  }
 0x307   : > { %7547 = vmatpush1.bf16.msra.mxu0 %v10226_v59  ;;  %6933 = vmatprep.subr.bf16.mxu1 %v10231_v22  ;;  %v10313_v59 = vld [vmem:[%s10641_s27 + $0x1ba4] ss:$8 sps:$4 sm:$0xff]   ;;  %v10308_v22 = vld [vmem:[%s10641_s27 + $0xca0] ss:$8 sps:$4 sm:$0xff]  }
 0x308   : > { %7548 = vmatprep.subr.bf16.mxu0 %v10234_v55  ;;  %v10311_v55 = vld [vmem:[%s10641_s27 + $0x1ba0] ss:$8 sps:$4 sm:$0xff]  }
 0x30a   : > { %6934 = vmatpush1.bf16.msra.mxu1 %v10229_v23  ;;  %v10316_v23 = vld [vmem:[%s10641_s27 + $0xcb4] ss:$8 sps:$4 sm:$0xff]  }
 0x30b   : > { %7549 = vmatpush1.bf16.msra.mxu0 %v10232_v24  ;;  %6935 = vmatprep.subr.bf16.mxu1 %v10237_v25  ;;  %v10319_v24 = vld [vmem:[%s10641_s27 + $0x1bb4] ss:$8 sps:$4 sm:$0xff]   ;;  %v10314_v25 = vld [vmem:[%s10641_s27 + $0xcb0] ss:$8 sps:$4 sm:$0xff]  }
 0x30c   : > { %7550 = vmatprep.subr.bf16.mxu0 %v10240_v27  ;;  %v10317_v27 = vld [vmem:[%s10641_s27 + $0x1bb0] ss:$8 sps:$4 sm:$0xff]  }
 0x30e   : > { %6936 = vmatpush1.bf16.msra.mxu1 %v10235_v28  ;;  %v10322_v28 = vld [vmem:[%s10641_s27 + $0xcc4] ss:$8 sps:$4 sm:$0xff]  }
 0x30f   : > { %7551 = vmatpush1.bf16.msra.mxu0 %v10238_v9  ;;  %6937 = vmatprep.subr.bf16.mxu1 %v10243_v63  ;;  %v10325_v9 = vld [vmem:[%s10641_s27 + $0x1bc4] ss:$8 sps:$4 sm:$0xff]   ;;  %v10320_v63 = vld [vmem:[%s10641_s27 + $0xcc0] ss:$8 sps:$4 sm:$0xff]  }
 0x310   : > { %7552 = vmatprep.subr.bf16.mxu0 %v10246_v53  ;;  %v10323_v53 = vld [vmem:[%s10641_s27 + $0x1bc0] ss:$8 sps:$4 sm:$0xff]  }
 0x312   : > { %6938 = vmatpush1.bf16.msra.mxu1 %v10241_v14  ;;  %v10328_v14 = vld [vmem:[%s10641_s27 + $0xcd4] ss:$8 sps:$4 sm:$0xff]  }
 0x313   : > { %7553 = vmatpush1.bf16.msra.mxu0 %v10244_v56  ;;  %6948 = vmatprep.subr.bf16.mxu1 %v10249_v33  ;;  %v10331_v56 = vld [vmem:[%s10641_s27 + $0x1bd4] ss:$8 sps:$4 sm:$0xff]   ;;  %v10326_v33 = vld [vmem:[%s10641_s27 + $0xcd0] ss:$8 sps:$4 sm:$0xff]  }
 0x314   : > { %7563 = vmatprep.subr.bf16.mxu0 %v10253_v19  ;;  %v10329_v19 = vld [vmem:[%s10641_s27 + $0x1bd0] ss:$8 sps:$4 sm:$0xff]  }
 0x315   : > { %6940 = vmatmul.mubr.bf16.vlgmr.msra.gmra.mrb[0].mxu1 %v1373_v36  ;;  %v10337_v36 = vld [vmem:[%s10641_s27 + $0x1be4] ss:$8 sps:$4 sm:$0xff]  }
 0x316   : > { %7555 = vmatmul.mubr.bf16.vlgmr.msra.gmra.mrb[0].mxu0 %v11667_v39  ;;  %6949 = vmatpush1.bf16.msra.mxu1 %v10247_v40  ;;  %v10332_v40 = vld [vmem:[%s10641_s27 + $0xce0] ss:$8 sps:$4 sm:$0xff]  }
 0x317   : > { %7564 = vmatpush1.bf16.msra.mxu0 %v10251_v20  ;;  %6950 = vmatprep.subr.bf16.mxu1 %v10256_v42  ;;  %v10335_v20 = vld [vmem:[%s10641_s27 + $0x1be0] ss:$8 sps:$4 sm:$0xff]   ;;  %v10340_v42 = vld [vmem:[%s10641_s27 + $0xcf4] ss:$8 sps:$4 sm:$0xff]  }
 0x318   : > { %7565 = vmatprep.subr.bf16.mxu0 %v10259_v44  ;;  %6980 = vmatprep.mubr.bf16.mxu1 %v11674_v49  ;;  %v10343_v44 = vld [vmem:[%s10641_s27 + $0x1bf4] ss:$8 sps:$4 sm:$0xff]  }
 0x319   : > { %7595 = vmatprep.mubr.bf16.mxu0 %v1571_v26  ;;  %v11737_v26 = vld.sshfl [vmem:[%s10696_s8 + $0x38] sm:$0x33 pattern:$0x75316420] }
 0x31a   : > { %6951 = vmatpush1.bf16.msra.mxu1 %v10254_v21  ;;  %v10338_v21 = vld [vmem:[%s10641_s27 + $0xcf0] ss:$8 sps:$4 sm:$0xff]  }
 0x31b   : > { %7566 = vmatpush1.bf16.msra.mxu0 %v10257_v29  ;;  %6952 = vmatprep.subr.bf16.mxu1 %v10262_v45  ;;  %v10341_v29 = vld [vmem:[%s10641_s27 + $0x1bf0] ss:$8 sps:$4 sm:$0xff]   ;;  %v10346_v45 = vld [vmem:[%s10641_s27 + $0xd04] ss:$8 sps:$4 sm:$0xff]  }
 0x31c   : > { %7567 = vmatprep.subr.bf16.mxu0 %v10265_v46  ;;  %v10349_v46 = vld [vmem:[%s10641_s27 + $0x1c04] ss:$8 sps:$4 sm:$0xff]  }
 0x31e   : > { %6953 = vmatpush1.bf16.msra.mxu1 %v10260_v30  ;;  %v1579_v30 = vcombine.high %v11737_v26, %v11737_v26 }
 0x31f   : > { %7568 = vmatpush1.bf16.msra.mxu0 %v10263_v48  ;;  %6954 = vmatprep.subr.bf16.mxu1 %v10268_v54  ;;  %v11747_v48 = vrot.slane %v11655_v32, %v10699_v52  ;;  %v1569_v54 = vcombine.high %v11667_v39, %v11667_v39  ;;  %v10350_v39 = vld [vmem:[%s10641_s27 + $0xd10] ss:$8 sps:$4 sm:$0xff]  }
 0x320   : > { %7569 = vmatprep.subr.bf16.mxu0 %v10271_v57  ;;  %v10344_v57 = vld [vmem:[%s10641_s27 + $0xd00] ss:$8 sps:$4 sm:$0xff]   ;;  %v11758_v32 = vrot.slane %v1579_v30, %v10699_v52  ;;  %v10430_v30 = vld [vmem:[%s10641_s27 + $0xde4] ss:$8 sps:$4 sm:$0xff]  }
 0x322   : > { %6955 = vmatpush1.bf16.msra.mxu1 %v10266_v58  ;;  %v10347_v58 = vld [vmem:[%s10641_s27 + $0x1c00] ss:$8 sps:$4 sm:$0xff]  }
 0x323   : > { %7570 = vmatpush1.bf16.msra.mxu0 %v10269_v35  ;;  %6956 = vmatprep.subr.bf16.mxu1 %v10274_v31  ;;  %v10352_v35 = vld [vmem:[%s10641_s27 + $0xd14] ss:$8 sps:$4 sm:$0xff]  }
 0x324   : > { %7571 = vmatprep.subr.bf16.mxu0 %v10277_v60  ;;  %v10355_v31 = vld [vmem:[%s10641_s27 + $0x1c14] ss:$8 sps:$4 sm:$0xff]   ;;  %v1423_v60 = vcombine.high %v11674_v49, %v11674_v49  ;;  %v10361_v49 = vld [vmem:[%s10641_s27 + $0x1c24] ss:$8 sps:$4 sm:$0xff]  }
 0x326   : > { %6957 = vmatpush1.bf16.msra.mxu1 %v10272_v41  ;;  %v10353_v41 = vld [vmem:[%s10641_s27 + $0x1c10] ss:$8 sps:$4 sm:$0xff]  }
 0x327   : > { %7572 = vmatpush1.bf16.msra.mxu0 %v10275_v17  ;;  %6958 = vmatprep.subr.bf16.mxu1 %v10280_v61  ;;  %v10358_v17 = vld [vmem:[%s10641_s27 + $0xd24] ss:$8 sps:$4 sm:$0xff]   ;;  %v10356_v61 = vld [vmem:[%s10641_s27 + $0xd20] ss:$8 sps:$4 sm:$0xff]  }
 0x328   : > { %7573 = vmatprep.subr.bf16.mxu0 %v10283_v62  ;;  %v10359_v62 = vld [vmem:[%s10641_s27 + $0x1c20] ss:$8 sps:$4 sm:$0xff]  }
 0x32a   : > { %6959 = vmatpush1.bf16.msra.mxu1 %v10278_v2  ;;  %v10364_v2 = vld [vmem:[%s10641_s27 + $0xd34] ss:$8 sps:$4 sm:$0xff]  }
 0x32b   : > { %7574 = vmatpush1.bf16.msra.mxu0 %v10281_v3  ;;  %6960 = vmatprep.subr.bf16.mxu1 %v10286_v6  ;;  %v10367_v3 = vld [vmem:[%s10641_s27 + $0x1c34] ss:$8 sps:$4 sm:$0xff]   ;;  %v10362_v6 = vld [vmem:[%s10641_s27 + $0xd30] ss:$8 sps:$4 sm:$0xff]  }
 0x32c   : > { %7575 = vmatprep.subr.bf16.mxu0 %v10289_v43  ;;  %v10365_v43 = vld [vmem:[%s10641_s27 + $0x1c30] ss:$8 sps:$4 sm:$0xff]  }
 0x32e   : > { %6961 = vmatpush1.bf16.msra.mxu1 %v10284_v51  ;;  %v10370_v51 = vld [vmem:[%s10641_s27 + $0xd44] ss:$8 sps:$4 sm:$0xff]  }
 0x32f   : > { %7576 = vmatpush1.bf16.msra.mxu0 %v10287_v7  ;;  %6962 = vmatprep.subr.bf16.mxu1 %v10292_v50  ;;  %v10373_v7 = vld [vmem:[%s10641_s27 + $0x1c44] ss:$8 sps:$4 sm:$0xff]   ;;  %v10368_v50 = vld [vmem:[%s10641_s27 + $0xd40] ss:$8 sps:$4 sm:$0xff]  }
 0x330   : > { %7577 = vmatprep.subr.bf16.mxu0 %v10295_v8  ;;  %v10371_v8 = vld [vmem:[%s10641_s27 + $0x1c40] ss:$8 sps:$4 sm:$0xff]  }
 0x332   : > { %6963 = vmatpush1.bf16.msra.mxu1 %v10290_v37  ;;  %v10376_v37 = vld [vmem:[%s10641_s27 + $0xd54] ss:$8 sps:$4 sm:$0xff]  }
 0x333   : > { %7578 = vmatpush1.bf16.msra.mxu0 %v10293_v38  ;;  %6964 = vmatprep.subr.bf16.mxu1 %v10298_v10  ;;  %v10379_v38 = vld [vmem:[%s10641_s27 + $0x1c54] ss:$8 sps:$4 sm:$0xff]   ;;  %v10374_v10 = vld [vmem:[%s10641_s27 + $0xd50] ss:$8 sps:$4 sm:$0xff]  }
 0x334   : > { %7579 = vmatprep.subr.bf16.mxu0 %v10301_v11  ;;  %v10377_v11 = vld [vmem:[%s10641_s27 + $0x1c50] ss:$8 sps:$4 sm:$0xff]  }
 0x336   : > { %6965 = vmatpush1.bf16.msra.mxu1 %v10296_v12  ;;  %v10382_v12 = vld [vmem:[%s10641_s27 + $0xd64] ss:$8 sps:$4 sm:$0xff]  }
 0x337   : > { %7580 = vmatpush1.bf16.msra.mxu0 %v10299_v13  ;;  %6966 = vmatprep.subr.bf16.mxu1 %v10304_v16  ;;  %v10385_v13 = vld [vmem:[%s10641_s27 + $0x1c64] ss:$8 sps:$4 sm:$0xff]   ;;  %v10380_v16 = vld [vmem:[%s10641_s27 + $0xd60] ss:$8 sps:$4 sm:$0xff]  }
 0x338   : > { %7581 = vmatprep.subr.bf16.mxu0 %v10307_v1  ;;  %v10383_v1 = vld [vmem:[%s10641_s27 + $0x1c60] ss:$8 sps:$4 sm:$0xff]  }
 0x33a   : > { %6967 = vmatpush1.bf16.msra.mxu1 %v10302_v18  ;;  %v10388_v18 = vld [vmem:[%s10641_s27 + $0xd74] ss:$8 sps:$4 sm:$0xff]  }
 0x33b   : > { %7582 = vmatpush1.bf16.msra.mxu0 %v10305_v4  ;;  %6968 = vmatprep.subr.bf16.mxu1 %v10310_v0  ;;  %v10391_v4 = vld [vmem:[%s10641_s27 + $0x1c74] ss:$8 sps:$4 sm:$0xff]   ;;  %v10386_v0 = vld [vmem:[%s10641_s27 + $0xd70] ss:$8 sps:$4 sm:$0xff]  }
 0x33c   : > { %7583 = vmatprep.subr.bf16.mxu0 %v10313_v59  ;;  %v10389_v59 = vld [vmem:[%s10641_s27 + $0x1c70] ss:$8 sps:$4 sm:$0xff]  }
 0x33e   : > { %6969 = vmatpush1.bf16.msra.mxu1 %v10308_v22  ;;  %v10394_v22 = vld [vmem:[%s10641_s27 + $0xd84] ss:$8 sps:$4 sm:$0xff]  }
 0x33f   : > { %7584 = vmatpush1.bf16.msra.mxu0 %v10311_v55  ;;  %6970 = vmatprep.subr.bf16.mxu1 %v10316_v23  ;;  %v10397_v55 = vld [vmem:[%s10641_s27 + $0x1c84] ss:$8 sps:$4 sm:$0xff]   ;;  %v10392_v23 = vld [vmem:[%s10641_s27 + $0xd80] ss:$8 sps:$4 sm:$0xff]  }
 0x340   : > { %7585 = vmatprep.subr.bf16.mxu0 %v10319_v24  ;;  %v10395_v24 = vld [vmem:[%s10641_s27 + $0x1c80] ss:$8 sps:$4 sm:$0xff]  }
 0x342   : > { %6971 = vmatpush1.bf16.msra.mxu1 %v10314_v25  ;;  %v10400_v25 = vld [vmem:[%s10641_s27 + $0xd94] ss:$8 sps:$4 sm:$0xff]  }
 0x343   : > { %7586 = vmatpush1.bf16.msra.mxu0 %v10317_v27  ;;  %6972 = vmatprep.subr.bf16.mxu1 %v10322_v28  ;;  %v10403_v27 = vld [vmem:[%s10641_s27 + $0x1c94] ss:$8 sps:$4 sm:$0xff]   ;;  %v10398_v28 = vld [vmem:[%s10641_s27 + $0xd90] ss:$8 sps:$4 sm:$0xff]  }
 0x344   : > { %7587 = vmatprep.subr.bf16.mxu0 %v10325_v9  ;;  %v10401_v9 = vld [vmem:[%s10641_s27 + $0x1c90] ss:$8 sps:$4 sm:$0xff]  }
 0x346   : > { %6973 = vmatpush1.bf16.msra.mxu1 %v10320_v63  ;;  %v10406_v63 = vld [vmem:[%s10641_s27 + $0xda4] ss:$8 sps:$4 sm:$0xff]  }
 0x347   : > { %7588 = vmatpush1.bf16.msra.mxu0 %v10323_v53  ;;  %6974 = vmatprep.subr.bf16.mxu1 %v10328_v14  ;;  %v10409_v53 = vld [vmem:[%s10641_s27 + $0x1ca4] ss:$8 sps:$4 sm:$0xff]   ;;  %v10404_v14 = vld [vmem:[%s10641_s27 + $0xda0] ss:$8 sps:$4 sm:$0xff]  }
 0x348   : > { %7589 = vmatprep.subr.bf16.mxu0 %v10331_v56  ;;  %v10407_v56 = vld [vmem:[%s10641_s27 + $0x1ca0] ss:$8 sps:$4 sm:$0xff]  }
 0x34a   : > { %6975 = vmatpush1.bf16.msra.mxu1 %v10326_v33  ;;  %v10412_v33 = vld [vmem:[%s10641_s27 + $0xdb4] ss:$8 sps:$4 sm:$0xff]  }
 0x34b   : > { %7590 = vmatpush1.bf16.msra.mxu0 %v10329_v19  ;;  %6976 = vmatprep.subr.bf16.mxu1 %v10334_v34  ;;  %v10415_v19 = vld [vmem:[%s10641_s27 + $0x1cb4] ss:$8 sps:$4 sm:$0xff]   ;;  %v10410_v34 = vld [vmem:[%s10641_s27 + $0xdb0] ss:$8 sps:$4 sm:$0xff]  }
 0x34c   : > { %7591 = vmatprep.subr.bf16.mxu0 %v10337_v36  ;;  %v10413_v36 = vld [vmem:[%s10641_s27 + $0x1cb0] ss:$8 sps:$4 sm:$0xff]  }
 0x34e   : > { %6977 = vmatpush1.bf16.msra.mxu1 %v10332_v40  ;;  %v10418_v40 = vld [vmem:[%s10641_s27 + $0xdc4] ss:$8 sps:$4 sm:$0xff]  }
 0x34f   : > { %7592 = vmatpush1.bf16.msra.mxu0 %v10335_v20  ;;  %6978 = vmatprep.subr.bf16.mxu1 %v10340_v42  ;;  %v10421_v20 = vld [vmem:[%s10641_s27 + $0x1cc4] ss:$8 sps:$4 sm:$0xff]   ;;  %v10416_v42 = vld [vmem:[%s10641_s27 + $0xdc0] ss:$8 sps:$4 sm:$0xff]  }
 0x350   : > { %7593 = vmatprep.subr.bf16.mxu0 %v10343_v44  ;;  %v10419_v44 = vld [vmem:[%s10641_s27 + $0x1cc0] ss:$8 sps:$4 sm:$0xff]  }
 0x352   : > { %6979 = vmatpush1.bf16.msra.mxu1 %v10338_v21  ;;  %v10424_v21 = vld [vmem:[%s10641_s27 + $0xdd4] ss:$8 sps:$4 sm:$0xff]  }
 0x353   : > { %7594 = vmatpush1.bf16.msra.mxu0 %v10341_v29  ;;  %6989 = vmatprep.subr.bf16.mxu1 %v10346_v45  ;;  %v10427_v29 = vld [vmem:[%s10641_s27 + $0x1cd4] ss:$8 sps:$4 sm:$0xff]   ;;  %v10422_v45 = vld [vmem:[%s10641_s27 + $0xdd0] ss:$8 sps:$4 sm:$0xff]  }
 0x354   : > { %7604 = vmatprep.subr.bf16.mxu0 %v10349_v46  ;;  %v10425_v46 = vld [vmem:[%s10641_s27 + $0x1cd0] ss:$8 sps:$4 sm:$0xff]  }
 0x355   : > { %6981 = vmatmul.mubr.bf16.vlgmr.msra.gmra.mrb[0].mxu1 %v11747_v48 }
 0x356   : > { %7596 = vmatmul.mubr.bf16.vlgmr.msra.gmra.mrb[0].mxu0 %v1569_v54  ;;  %6990 = vmatpush1.bf16.msra.mxu1 %v10344_v57  ;;  %v10433_v54 = vld [vmem:[%s10641_s27 + $0x1ce4] ss:$8 sps:$4 sm:$0xff]   ;;  %v10428_v57 = vld [vmem:[%s10641_s27 + $0xde0] ss:$8 sps:$4 sm:$0xff]  }
 0x357   : > { %7605 = vmatpush1.bf16.msra.mxu0 %v10347_v58  ;;  %6991 = vmatprep.subr.bf16.mxu1 %v10352_v35  ;;  %v10431_v58 = vld [vmem:[%s10641_s27 + $0x1ce0] ss:$8 sps:$4 sm:$0xff]   ;;  %v10436_v35 = vld [vmem:[%s10641_s27 + $0xdf4] ss:$8 sps:$4 sm:$0xff]  }
 0x358   : > { %7606 = vmatprep.subr.bf16.mxu0 %v10355_v31  ;;  %7021 = vmatprep.mubr.bf16.mxu1 %v1423_v60  ;;  %v10439_v31 = vld [vmem:[%s10641_s27 + $0x1cf4] ss:$8 sps:$4 sm:$0xff]   ;;  %v10434_v60 = vld [vmem:[%s10641_s27 + $0xdf0] ss:$8 sps:$4 sm:$0xff]  }
 0x359   : > { %7636 = vmatprep.mubr.bf16.mxu0 %v11758_v32 }
 0x35a   : > { %6992 = vmatpush1.bf16.msra.mxu1 %v10350_v39  ;;  %v10437_v39 = vld [vmem:[%s10641_s27 + $0x1cf0] ss:$8 sps:$4 sm:$0xff]  }
 0x35b   : > { %7607 = vmatpush1.bf16.msra.mxu0 %v10353_v41  ;;  %6993 = vmatprep.subr.bf16.mxu1 %v10358_v17  ;;  %v10442_v41 = vld [vmem:[%s10641_s27 + $0xe04] ss:$8 sps:$4 sm:$0xff]  }
 0x35c   : > { %7608 = vmatprep.subr.bf16.mxu0 %v10361_v49  ;;  %v10445_v17 = vld [vmem:[%s10641_s27 + $0x1d04] ss:$8 sps:$4 sm:$0xff]   ;;  %v1421_v49 = vcombine.high %v11747_v48, %v11747_v48 }
 0x35d   : > { %v10454_v48 = vld [vmem:[%s10641_s27 + $0xe24] ss:$8 sps:$4 sm:$0xff]  }
 0x35e   : > { %6994 = vmatpush1.bf16.msra.mxu1 %v10356_v61  ;;  %v11826_v61 = vrot.slane %v11737_v26, %v10699_v52  ;;  %v10446_v52 = vld [vmem:[%s10641_s27 + $0xe10] ss:$8 sps:$4 sm:$0xff]  }
 0x35f   : > { %7609 = vmatpush1.bf16.msra.mxu0 %v10359_v62  ;;  %6995 = vmatprep.subr.bf16.mxu1 %v10364_v2  ;;  %v10440_v62 = vld [vmem:[%s10641_s27 + $0xe00] ss:$8 sps:$4 sm:$0xff]   ;;  %v10449_v26 = vld [vmem:[%s10641_s27 + $0x1d10] ss:$8 sps:$4 sm:$0xff]  }
 0x360   : > { %7610 = vmatprep.subr.bf16.mxu0 %v10367_v3  ;;  %v10443_v2 = vld [vmem:[%s10641_s27 + $0x1d00] ss:$8 sps:$4 sm:$0xff]   ;;  %v10448_v3 = vld [vmem:[%s10641_s27 + $0xe14] ss:$8 sps:$4 sm:$0xff]  }
 0x362   : > { %6996 = vmatpush1.bf16.msra.mxu1 %v10362_v6  ;;  %v10451_v6 = vld [vmem:[%s10641_s27 + $0x1d14] ss:$8 sps:$4 sm:$0xff]  }
 0x363   : > { %7611 = vmatpush1.bf16.msra.mxu0 %v10365_v43  ;;  %6997 = vmatprep.subr.bf16.mxu1 %v10370_v51  ;;  %v1595_v43 = vcombine.high %v11758_v32, %v11758_v32  ;;  %v10457_v51 = vld [vmem:[%s10641_s27 + $0x1d24] ss:$8 sps:$4 sm:$0xff]   ;;  %v10452_v32 = vld [vmem:[%s10641_s27 + $0xe20] ss:$8 sps:$4 sm:$0xff]  }
 0x364   : > { %7612 = vmatprep.subr.bf16.mxu0 %v10373_v7  ;;  %v10455_v7 = vld [vmem:[%s10641_s27 + $0x1d20] ss:$8 sps:$4 sm:$0xff]  }
 0x366   : > { %6998 = vmatpush1.bf16.msra.mxu1 %v10368_v50  ;;  %v10460_v50 = vld [vmem:[%s10641_s27 + $0xe34] ss:$8 sps:$4 sm:$0xff]  }
 0x367   : > { %7613 = vmatpush1.bf16.msra.mxu0 %v10371_v8  ;;  %6999 = vmatprep.subr.bf16.mxu1 %v10376_v37  ;;  %v10463_v8 = vld [vmem:[%s10641_s27 + $0x1d34] ss:$8 sps:$4 sm:$0xff]   ;;  %v10458_v37 = vld [vmem:[%s10641_s27 + $0xe30] ss:$8 sps:$4 sm:$0xff]  }
 0x368   : > { %7614 = vmatprep.subr.bf16.mxu0 %v10379_v38  ;;  %v10466_v38 = vld [vmem:[%s10641_s27 + $0xe44] ss:$8 sps:$4 sm:$0xff]  }
 0x36a   : > { %7000 = vmatpush1.bf16.msra.mxu1 %v10374_v10  ;;  %v10469_v10 = vld [vmem:[%s10641_s27 + $0x1d44] ss:$8 sps:$4 sm:$0xff]  }
 0x36b   : > { %7615 = vmatpush1.bf16.msra.mxu0 %v10377_v11  ;;  %7001 = vmatprep.subr.bf16.mxu1 %v10382_v12  ;;  %v10464_v11 = vld [vmem:[%s10641_s27 + $0xe40] ss:$8 sps:$4 sm:$0xff]  }
 0x36c   : > { %7616 = vmatprep.subr.bf16.mxu0 %v10385_v13  ;;  %v10467_v12 = vld [vmem:[%s10641_s27 + $0x1d40] ss:$8 sps:$4 sm:$0xff]   ;;  %v10472_v13 = vld [vmem:[%s10641_s27 + $0xe54] ss:$8 sps:$4 sm:$0xff]  }
 0x36e   : > { %7002 = vmatpush1.bf16.msra.mxu1 %v10380_v16  ;;  %v10475_v16 = vld [vmem:[%s10641_s27 + $0x1d54] ss:$8 sps:$4 sm:$0xff]  }
 0x36f   : > { %7617 = vmatpush1.bf16.msra.mxu0 %v10383_v1  ;;  %7003 = vmatprep.subr.bf16.mxu1 %v10388_v18  ;;  %v10470_v1 = vld [vmem:[%s10641_s27 + $0xe50] ss:$8 sps:$4 sm:$0xff]  }
 0x370   : > { %7618 = vmatprep.subr.bf16.mxu0 %v10391_v4  ;;  %v10473_v18 = vld [vmem:[%s10641_s27 + $0x1d50] ss:$8 sps:$4 sm:$0xff]   ;;  %v10478_v4 = vld [vmem:[%s10641_s27 + $0xe64] ss:$8 sps:$4 sm:$0xff]  }
 0x372   : > { %7004 = vmatpush1.bf16.msra.mxu1 %v10386_v0  ;;  %v10481_v0 = vld [vmem:[%s10641_s27 + $0x1d64] ss:$8 sps:$4 sm:$0xff]  }
 0x373   : > { %7619 = vmatpush1.bf16.msra.mxu0 %v10389_v59  ;;  %7005 = vmatprep.subr.bf16.mxu1 %v10394_v22  ;;  %v10476_v59 = vld [vmem:[%s10641_s27 + $0xe60] ss:$8 sps:$4 sm:$0xff]  }
 0x374   : > { %7620 = vmatprep.subr.bf16.mxu0 %v10397_v55  ;;  %v10479_v22 = vld [vmem:[%s10641_s27 + $0x1d60] ss:$8 sps:$4 sm:$0xff]   ;;  %v10484_v55 = vld [vmem:[%s10641_s27 + $0xe74] ss:$8 sps:$4 sm:$0xff]  }
 0x376   : > { %7006 = vmatpush1.bf16.msra.mxu1 %v10392_v23  ;;  %v10487_v23 = vld [vmem:[%s10641_s27 + $0x1d74] ss:$8 sps:$4 sm:$0xff]  }
 0x377   : > { %7621 = vmatpush1.bf16.msra.mxu0 %v10395_v24  ;;  %7007 = vmatprep.subr.bf16.mxu1 %v10400_v25  ;;  %v10482_v24 = vld [vmem:[%s10641_s27 + $0xe70] ss:$8 sps:$4 sm:$0xff]  }
 0x378   : > { %7622 = vmatprep.subr.bf16.mxu0 %v10403_v27  ;;  %v10485_v25 = vld [vmem:[%s10641_s27 + $0x1d70] ss:$8 sps:$4 sm:$0xff]   ;;  %v10490_v27 = vld [vmem:[%s10641_s27 + $0xe84] ss:$8 sps:$4 sm:$0xff]  }
 0x37a   : > { %7008 = vmatpush1.bf16.msra.mxu1 %v10398_v28  ;;  %v10493_v28 = vld [vmem:[%s10641_s27 + $0x1d84] ss:$8 sps:$4 sm:$0xff]  }
 0x37b   : > { %7623 = vmatpush1.bf16.msra.mxu0 %v10401_v9  ;;  %7009 = vmatprep.subr.bf16.mxu1 %v10406_v63  ;;  %v10488_v9 = vld [vmem:[%s10641_s27 + $0xe80] ss:$8 sps:$4 sm:$0xff]  }
 0x37c   : > { %7624 = vmatprep.subr.bf16.mxu0 %v10409_v53  ;;  %v10491_v63 = vld [vmem:[%s10641_s27 + $0x1d80] ss:$8 sps:$4 sm:$0xff]   ;;  %v10496_v53 = vld [vmem:[%s10641_s27 + $0xe94] ss:$8 sps:$4 sm:$0xff]  }
 0x37e   : > { %7010 = vmatpush1.bf16.msra.mxu1 %v10404_v14  ;;  %v10499_v14 = vld [vmem:[%s10641_s27 + $0x1d94] ss:$8 sps:$4 sm:$0xff]  }
 0x37f   : > { %7625 = vmatpush1.bf16.msra.mxu0 %v10407_v56  ;;  %7011 = vmatprep.subr.bf16.mxu1 %v10412_v33  ;;  %v10494_v56 = vld [vmem:[%s10641_s27 + $0xe90] ss:$8 sps:$4 sm:$0xff]  }
 0x380   : > { %7626 = vmatprep.subr.bf16.mxu0 %v10415_v19  ;;  %v10497_v33 = vld [vmem:[%s10641_s27 + $0x1d90] ss:$8 sps:$4 sm:$0xff]   ;;  %v10502_v19 = vld [vmem:[%s10641_s27 + $0xea4] ss:$8 sps:$4 sm:$0xff]  }
 0x382   : > { %7012 = vmatpush1.bf16.msra.mxu1 %v10410_v34  ;;  %v10505_v34 = vld [vmem:[%s10641_s27 + $0x1da4] ss:$8 sps:$4 sm:$0xff]  }
 0x383   : > { %7627 = vmatpush1.bf16.msra.mxu0 %v10413_v36  ;;  %7013 = vmatprep.subr.bf16.mxu1 %v10418_v40  ;;  %v10500_v36 = vld [vmem:[%s10641_s27 + $0xea0] ss:$8 sps:$4 sm:$0xff]  }
 0x384   : > { %7628 = vmatprep.subr.bf16.mxu0 %v10421_v20  ;;  %v10503_v40 = vld [vmem:[%s10641_s27 + $0x1da0] ss:$8 sps:$4 sm:$0xff]   ;;  %v10508_v20 = vld [vmem:[%s10641_s27 + $0xeb4] ss:$8 sps:$4 sm:$0xff]  }
 0x386   : > { %7014 = vmatpush1.bf16.msra.mxu1 %v10416_v42  ;;  %v10511_v42 = vld [vmem:[%s10641_s27 + $0x1db4] ss:$8 sps:$4 sm:$0xff]  }
 0x387   : > { %7629 = vmatpush1.bf16.msra.mxu0 %v10419_v44  ;;  %7015 = vmatprep.subr.bf16.mxu1 %v10424_v21  ;;  %v10506_v44 = vld [vmem:[%s10641_s27 + $0xeb0] ss:$8 sps:$4 sm:$0xff]  }
 0x388   : > { %7630 = vmatprep.subr.bf16.mxu0 %v10427_v29  ;;  %v10509_v21 = vld [vmem:[%s10641_s27 + $0x1db0] ss:$8 sps:$4 sm:$0xff]   ;;  %v10514_v29 = vld [vmem:[%s10641_s27 + $0xec4] ss:$8 sps:$4 sm:$0xff]  }
 0x38a   : > { %7016 = vmatpush1.bf16.msra.mxu1 %v10422_v45  ;;  %v10517_v45 = vld [vmem:[%s10641_s27 + $0x1dc4] ss:$8 sps:$4 sm:$0xff]  }
 0x38b   : > { %7631 = vmatpush1.bf16.msra.mxu0 %v10425_v46  ;;  %7017 = vmatprep.subr.bf16.mxu1 %v10430_v30  ;;  %v10512_v46 = vld [vmem:[%s10641_s27 + $0xec0] ss:$8 sps:$4 sm:$0xff]  }
 0x38c   : > { %7632 = vmatprep.subr.bf16.mxu0 %v10433_v54  ;;  %v10515_v30 = vld [vmem:[%s10641_s27 + $0x1dc0] ss:$8 sps:$4 sm:$0xff]   ;;  %v10520_v54 = vld [vmem:[%s10641_s27 + $0xed4] ss:$8 sps:$4 sm:$0xff]  }
 0x38e   : > { %7018 = vmatpush1.bf16.msra.mxu1 %v10428_v57  ;;  %v10523_v57 = vld [vmem:[%s10641_s27 + $0x1dd4] ss:$8 sps:$4 sm:$0xff]  }
 0x38f   : > { %7633 = vmatpush1.bf16.msra.mxu0 %v10431_v58  ;;  %7019 = vmatprep.subr.bf16.mxu1 %v10436_v35  ;;  %v10518_v58 = vld [vmem:[%s10641_s27 + $0xed0] ss:$8 sps:$4 sm:$0xff]  }
 0x390   : > { %7634 = vmatprep.subr.bf16.mxu0 %v10439_v31  ;;  %v10521_v35 = vld [vmem:[%s10641_s27 + $0x1dd0] ss:$8 sps:$4 sm:$0xff]   ;;  %v10526_v31 = vld [vmem:[%s10641_s27 + $0xee4] ss:$8 sps:$4 sm:$0xff]  }
 0x392   : > { %7020 = vmatpush1.bf16.msra.mxu1 %v10434_v60  ;;  %v10529_v60 = vld [vmem:[%s10641_s27 + $0x1de4] ss:$8 sps:$4 sm:$0xff]  }
 0x393   : > { %7635 = vmatpush1.bf16.msra.mxu0 %v10437_v39  ;;  %7030 = vmatprep.subr.bf16.mxu1 %v10442_v41  ;;  %v10524_v39 = vld [vmem:[%s10641_s27 + $0xee0] ss:$8 sps:$4 sm:$0xff]  }
 0x394   : > { %7645 = vmatprep.subr.bf16.mxu0 %v10445_v17  ;;  %v10527_v41 = vld [vmem:[%s10641_s27 + $0x1de0] ss:$8 sps:$4 sm:$0xff]   ;;  %v10532_v17 = vld [vmem:[%s10641_s27 + $0xef4] ss:$8 sps:$4 sm:$0xff]  }
 0x395   : > { %7022 = vmatmul.mubr.bf16.vlgmr.msra.gmra.mrb[0].mxu1 %v1421_v49  ;;  %v10535_v49 = vld [vmem:[%s10641_s27 + $0x1df4] ss:$8 sps:$4 sm:$0xff]  }
 0x396   : > { %7637 = vmatmul.mubr.bf16.vlgmr.msra.gmra.mrb[0].mxu0 %v11826_v61  ;;  %7031 = vmatpush1.bf16.msra.mxu1 %v10440_v62  ;;  %v10530_v62 = vld [vmem:[%s10641_s27 + $0xef0] ss:$8 sps:$4 sm:$0xff]  }
 0x397   : > { %7646 = vmatpush1.bf16.msra.mxu0 %v10443_v2  ;;  %7032 = vmatprep.subr.bf16.mxu1 %v10448_v3  ;;  %v10533_v2 = vld [vmem:[%s10641_s27 + $0x1df0] ss:$8 sps:$4 sm:$0xff]   ;;  %v1594_v3 = vcombine.high %v11826_v61, %v11826_v61 }
 0x398   : > { %7647 = vmatprep.subr.bf16.mxu0 %v10451_v6  ;;  %7062 = vmatprep.mubr.bf16.mxu1 %v10718_v5  ;;  %v10461_v5 = vld [vmem:[%s10641_s27 + $0x1d30] ss:$8 sps:$4 sm:$0xff]   ;;  %v10590_v6 = vmov 1983009808  }
 0x399   : > { %7677 = vmatprep.mubr.bf16.mxu0 %v1595_v43  ;;  %v7690_v43 = vunpack.c.l.s4 %v10590_v6 }
 0x39a   : > { %7033 = vmatpush1.bf16.msra.mxu1 %v10446_v52 }
 0x39b   : > { %7648 = vmatpush1.bf16.msra.mxu0 %v10449_v26  ;;  %7034 = vmatprep.subr.bf16.mxu1 %v10454_v48  ;;  %v7691_v52 = vunpack.c.0.s8 %v7690_v43 }
 0x39c   : > { %7649 = vmatprep.subr.bf16.mxu0 %v10457_v51 }
 0x39e   : > { %7035 = vmatpush1.bf16.msra.mxu1 %v10452_v32 }
 0x39f   : > { %7650 = vmatpush1.bf16.msra.mxu0 %v10455_v7  ;;  %7036 = vmatprep.subr.bf16.mxu1 %v10460_v50 }
 0x3a0   : > { %7651 = vmatprep.subr.bf16.mxu0 %v10463_v8  ;;  %v11898_v8 = vsub.s32 %v7691_v52, %v10687_v47 }
 0x3a2   : > { %7037 = vmatpush1.bf16.msra.mxu1 %v10458_v37 }
 0x3a3   : > { %7652 = vmatpush1.bf16.msra.mxu0 %v10461_v5  ;;  %7038 = vmatprep.subr.bf16.mxu1 %v10466_v38 }
 0x3a4   : > { %7653 = vmatprep.subr.bf16.mxu0 %v10469_v10 }
 0x3a6   : > { %7039 = vmatpush1.bf16.msra.mxu1 %v10464_v11  ;;  %v249_v11 = vld [vmem:[#allocation2] sm:$0xf] }
 0x3a7   : > { %7654 = vmatpush1.bf16.msra.mxu0 %v10467_v12  ;;  %7040 = vmatprep.subr.bf16.mxu1 %v10472_v13  ;;  %v7741_v13 = vld [vmem:[%s12040_s3 + $0x80] sm:$0xff] (!%p8883_p5) }
 0x3a8   : > { %7655 = vmatprep.subr.bf16.mxu0 %v10475_v16  ;;  %v7742_v16 = vld [vmem:[%s12040_s3 + $0x88] sm:$0xff] (!%p8883_p5) }
 0x3aa   : > { %7041 = vmatpush1.bf16.msra.mxu1 %v10470_v1  ;;  %v7725_v1 = vld [vmem:[%s12040_s3] sm:$0xff] (!%p8883_p5) }
 0x3ab   : > { %7656 = vmatpush1.bf16.msra.mxu0 %v10473_v18  ;;  %7042 = vmatprep.subr.bf16.mxu1 %v10478_v4  ;;  %v8925_v18 = vpack.c.bf16 (!%p8883_p5), %v7742_v16, %v7741_v13  ;;  %v7726_v4 = vld [vmem:[%s12040_s3 + $0x8] sm:$0xff] (!%p8883_p5) }
 0x3ac   : > { %7657 = vmatprep.subr.bf16.mxu0 %v10481_v0  ;;  %v7743_v0 = vld [vmem:[%s12040_s3 + $0x90] sm:$0xff] (!%p8883_p5) }
 0x3ae   : > { %7043 = vmatpush1.bf16.msra.mxu1 %v10476_v59  ;;  %v7744_v59 = vld [vmem:[%s12040_s3 + $0x98] sm:$0xff] (!%p8883_p5) }
 0x3af   : > { %7658 = vmatpush1.bf16.msra.mxu0 %v10479_v22  ;;  %7044 = vmatprep.subr.bf16.mxu1 %v10484_v55  ;;  %v8927_v22 = vpack.c.bf16 (!%p8883_p5), %v7726_v4, %v7725_v1  ;;  %v8929_v55 = vpack.c.bf16 (!%p8883_p5), %v7744_v59, %v7743_v0  ;;  %v8884_v0 = vld [vmem:[%s12041_s4] ss:$0 sm:$0xff] (!%p8883_p5) }
 0x3b0   : > { %7659 = vmatprep.subr.bf16.mxu0 %v10487_v23  ;;  %v7727_v23 = vld [vmem:[%s12040_s3 + $0x10] sm:$0xff] (!%p8883_p5) }
 0x3b2   : > { %7045 = vmatpush1.bf16.msra.mxu1 %v10482_v24  ;;  %v7728_v24 = vld [vmem:[%s12040_s3 + $0x18] sm:$0xff] (!%p8883_p5) }
 0x3b3   : > { %7660 = vmatpush1.bf16.msra.mxu0 %v10485_v25  ;;  %7046 = vmatprep.subr.bf16.mxu1 %v10490_v27  ;;  %v7745_v25 = vld [vmem:[%s12040_s3 + $0xa0] sm:$0xff] (!%p8883_p5)  ;;  %v7746_v27 = vld [vmem:[%s12040_s3 + $0xa8] sm:$0xff] (!%p8883_p5) }
 0x3b4   : > { %7661 = vmatprep.subr.bf16.mxu0 %v10493_v28  ;;  %v8931_v28 = vpack.c.bf16 (!%p8883_p5), %v7728_v24, %v7727_v23 }
 0x3b6   : > { %7047 = vmatpush1.bf16.msra.mxu1 %v10488_v9  ;;  %v8933_v9 = vpack.c.bf16 (!%p8883_p5), %v7746_v27, %v7745_v25 }
 0x3b7   : > { %7662 = vmatpush1.bf16.msra.mxu0 %v10491_v63  ;;  %7048 = vmatprep.subr.bf16.mxu1 %v10496_v53  ;;  %v7729_v63 = vld [vmem:[%s12040_s3 + $0x20] sm:$0xff] (!%p8883_p5)  ;;  %v7730_v53 = vld [vmem:[%s12040_s3 + $0x28] sm:$0xff] (!%p8883_p5) }
 0x3b8   : > { %7663 = vmatprep.subr.bf16.mxu0 %v10499_v14  ;;  %v7747_v14 = vld [vmem:[%s12040_s3 + $0xb0] sm:$0xff] (!%p8883_p5) }
 0x3ba   : > { %7049 = vmatpush1.bf16.msra.mxu1 %v10494_v56  ;;  %v7748_v56 = vld [vmem:[%s12040_s3 + $0xb8] sm:$0xff] (!%p8883_p5) }
 0x3bb   : > { %7664 = vmatpush1.bf16.msra.mxu0 %v10497_v33  ;;  %7050 = vmatprep.subr.bf16.mxu1 %v10502_v19  ;;  %v8935_v33 = vpack.c.bf16 (!%p8883_p5), %v7730_v53, %v7729_v63  ;;  %v7708_v19 = vsub.s32 (!%p8883_p5), 0, %v10687_v47 }
 0x3bc   : > { %7665 = vmatprep.subr.bf16.mxu0 %v10505_v34  ;;  %v7712_v34 = vsub.s32 (!%p8883_p5), 1, %v10687_v47  ;;  %v7704_v47 = vld [vmem:[%s12039_s2] sm:$0x3] (!%p8883_p5) }
 0x3be   : > { %7051 = vmatpush1.bf16.msra.mxu1 %v10500_v36  ;;  %v8937_v36 = vpack.c.bf16 (!%p8883_p5), %v7748_v56, %v7747_v14 }
 0x3bf   : > { %7666 = vmatpush1.bf16.msra.mxu0 %v10503_v40  ;;  %7052 = vmatprep.subr.bf16.mxu1 %v10508_v20  ;;  %v7731_v40 = vld [vmem:[%s12040_s3 + $0x30] sm:$0xff] (!%p8883_p5)  ;;  %v7732_v20 = vld [vmem:[%s12040_s3 + $0x38] sm:$0xff] (!%p8883_p5) }
 0x3c0   : > { %7667 = vmatprep.subr.bf16.mxu0 %v10511_v42  ;;  %v7749_v42 = vld [vmem:[%s12040_s3 + $0xc0] sm:$0xff] (!%p8883_p5) }
 0x3c2   : > { %7053 = vmatpush1.bf16.msra.mxu1 %v10506_v44  ;;  %v7750_v44 = vld [vmem:[%s12040_s3 + $0xc8] sm:$0xff] (!%p8883_p5) }
 0x3c3   : > { %7668 = vmatpush1.bf16.msra.mxu0 %v10509_v21  ;;  %7054 = vmatprep.subr.bf16.mxu1 %v10514_v29  ;;  %v8939_v21 = vpack.c.bf16 (!%p8883_p5), %v7732_v20, %v7731_v40  ;;  %v7709_v29 = vrot.slane (!%p8883_p5), %v7704_v47, %v7708_v19 }
 0x3c4   : > { %7669 = vmatprep.subr.bf16.mxu0 %v10517_v45  ;;  %v7713_v45 = vrot.slane (!%p8883_p5), %v7704_v47, %v7712_v34 }
 0x3c6   : > { %7055 = vmatpush1.bf16.msra.mxu1 %v10512_v46  ;;  %v8941_v46 = vpack.c.bf16 (!%p8883_p5), %v7750_v44, %v7749_v42 }
 0x3c7   : > { %7670 = vmatpush1.bf16.msra.mxu0 %v10515_v30  ;;  %7056 = vmatprep.subr.bf16.mxu1 %v10520_v54  ;;  %v7733_v30 = vld [vmem:[%s12040_s3 + $0x40] sm:$0xff] (!%p8883_p5)  ;;  %v7734_v54 = vld [vmem:[%s12040_s3 + $0x48] sm:$0xff] (!%p8883_p5) }
 0x3c8   : > { %7671 = vmatprep.subr.bf16.mxu0 %v10523_v57  ;;  %v7751_v57 = vld [vmem:[%s12040_s3 + $0xd0] sm:$0xff] (!%p8883_p5) }
 0x3ca   : > { %7057 = vmatpush1.bf16.msra.mxu1 %v10518_v58  ;;  %v7752_v58 = vld [vmem:[%s12040_s3 + $0xd8] sm:$0xff] (!%p8883_p5) }
 0x3cb   : > { %7672 = vmatpush1.bf16.msra.mxu0 %v10521_v35  ;;  %7058 = vmatprep.subr.bf16.mxu1 %v10526_v31  ;;  %v7714_v35 = vcombine.low (!%p8883_p5), %v7709_v29, %v7713_v45 }
 0x3cc   : > { %7673 = vmatprep.subr.bf16.mxu0 %v10529_v60  ;;  %v8943_v60 = vpack.c.bf16 (!%p8883_p5), %v7734_v54, %v7733_v30 }
 0x3ce   : > { %7059 = vmatpush1.bf16.msra.mxu1 %v10524_v39  ;;  %v7721_v39 = vrot.slane (!%p8883_p5), %v7714_v35, %v11898_v8 }
 0x3cf   : > { %7674 = vmatpush1.bf16.msra.mxu0 %v10527_v41  ;;  %7060 = vmatprep.subr.bf16.mxu1 %v10532_v17  ;;  %v8945_v41 = vpack.c.bf16 (!%p8883_p5), %v7752_v58, %v7751_v57  ;;  %v7735_v17 = vld [vmem:[%s12040_s3 + $0x50] sm:$0xff] (!%p8883_p5) }
 0x3d0   : > { %7675 = vmatprep.subr.bf16.mxu0 %v10535_v49  ;;  %v7736_v49 = vld [vmem:[%s12040_s3 + $0x58] sm:$0xff] (!%p8883_p5) }
 0x3d1   : > { %v8947_v6 = vpack.c.bf16 (!%p8883_p5), %v7736_v49, %v7735_v17 }
 0x3d2   : > { %7061 = vmatpush1.bf16.msra.mxu1 %v10530_v62  ;;  %v7753_v62 = vld [vmem:[%s12040_s3 + $0xe0] sm:$0xff] (!%p8883_p5) }
 0x3d3   : > { %7676 = vmatpush1.bf16.msra.mxu0 %v10533_v2  ;;  %v7754_v2 = vld [vmem:[%s12040_s3 + $0xe8] sm:$0xff] (!%p8883_p5) }
 0x3d4   : > { %8926 = vmatprep.subr.bf16.mxu0 (!%p8883_p5), %v8925_v18  ;;  %v8949_v52 = vpack.c.bf16 (!%p8883_p5), %v7754_v2, %v7753_v62 }
 0x3d5   : > { %7063 = vmatmul.mubr.bf16.vlgmr.msra.gmra.mrb[0].mxu1 %v10731_v15 }
 0x3d6   : > { %7678 = vmatmul.mubr.bf16.vlgmr.msra.gmra.mrb[0].mxu0 %v1594_v3 }
 0x3d7   : > { %8928 = vmatpush3.bf16.msra.mxu0 (!%p8883_p5), %v8927_v22 }
 0x3d8   : > { %8930 = vmatprep.subr.bf16.mxu0 (!%p8883_p5), %v8929_v55 }
 0x3db   : > { %8932 = vmatpush3.bf16.msra.mxu0 (!%p8883_p5), %v8931_v28 }
 0x3dc   : > { %8934 = vmatprep.subr.bf16.mxu0 (!%p8883_p5), %v8933_v9 }
 0x3df   : > { %8936 = vmatpush3.bf16.msra.mxu0 (!%p8883_p5), %v8935_v33 }
 0x3e0   : > { %8938 = vmatprep.subr.bf16.mxu0 (!%p8883_p5), %v8937_v36 }
 0x3e3   : > { %8940 = vmatpush3.bf16.msra.mxu0 (!%p8883_p5), %v8939_v21 }
 0x3e4   : > { %8942 = vmatprep.subr.bf16.mxu0 (!%p8883_p5), %v8941_v46 }
 0x3e7   : > { %8944 = vmatpush3.bf16.msra.mxu0 (!%p8883_p5), %v8943_v60 }
 0x3e8   : > { %8946 = vmatprep.subr.bf16.mxu0 (!%p8883_p5), %v8945_v41 }
 0x3eb   : > { %8948 = vmatpush3.bf16.msra.mxu0 (!%p8883_p5), %v8947_v6 }
 0x3ec   : > { %8950 = vmatprep.subr.bf16.mxu0 (!%p8883_p5), %v8949_v52 }
 0x4a8   : > { %v7064_v26 = vpop.f32.mrb[0].mxu1 }
 0x4a9   : > { %v7679_v48 = vpop.f32.mrb[0].mxu0  ;;  %v7066_v32 = vpop.f32.mrb[1].mxu1 }
 0x4aa   : > { %v8957_v51 = vadd.f32 %v7679_v48, %v7064_v26  ;;  %v7681_v7 = vpop.f32.mrb[1].mxu0  ;;  %v7068_v37 = vpop.f32.mrb[2].mxu1  ;;  %v7737_v26 = vld [vmem:[%s12040_s3 + $0x60] sm:$0xff] (!%p8883_p5)  ;;  %v7738_v48 = vld [vmem:[%s12040_s3 + $0x68] sm:$0xff] (!%p8883_p5) }
 0x4ab   : > { %v8958_v50 = vadd.f32 %v7681_v7, %v7066_v32  ;;  %v7683_v5 = vpop.f32.mrb[2].mxu0  ;;  %v7069_v61 = vpop.f32.mrb[3].mxu1  ;;  %v7756_v32 = vld [vmem:[%s12040_s3 + $0xf8] sm:$0xff] (!%p8883_p5) }
 0x4ac   : > { %v7684_v38 = vpop.f32.mrb[3].mxu0  ;;  %v7739_v61 = vld [vmem:[%s12040_s3 + $0x70] sm:$0xff] (!%p8883_p5) }
 0x4ad   : > { %v7688_v10 = vcombine.low %v8957_v51, %v8958_v50  ;;  %7702 = sbr.rel (%p8883_p5) target bundleno = 1754 (0x6da), region = 52  ;;  %v7755_v51 = vld [vmem:[%s12040_s3 + $0xf0] sm:$0xff] (!%p8883_p5)  ;;  %v8951_v50 = vpack.c.bf16 (!%p8883_p5), %v7738_v48, %v7737_v26  ;;  %v7740_v38 = vld [vmem:[%s12040_s3 + $0x78] sm:$0xff] (!%p8883_p5) }
 0x4ae   : > { %v8953_v5 = vpack.c.bf16 (!%p8883_p5), %v7756_v32, %v7755_v51 }
 0x4af   : > { %v7695_v15 = vrot.slane %v7688_v10, %v11898_v8  ;;  %8952 = vmatpush3.bf16.msra.mxu0 (!%p8883_p5), %v8951_v50  ;;  %v8955_v10 = vpack.c.bf16 (!%p8883_p5), %v7740_v38, %v7739_v61 }
 0x4b0   : > { %8954 = vmatprep.subr.bf16.mxu0 (!%p8883_p5), %v8953_v5 }
 0x4b1   : > { %v7697_v12 = vadd.f32 %v7695_v15, %v249_v11 }
 0x4b3   : > { %7698 = vst [vmem:[#allocation2] sm:$0xf] %v7697_v12  ;;  %8956 = vmatpush3.bf16.msra.mxu0 (!%p8883_p5), %v8955_v10 }
 0x4ba   : > { %v7703_v31 = vld [vmem:[#allocation2] sm:$0xf] }
 0x4bb   : > { %v7723_v3 = vadd.f32 %v7721_v39, %v7703_v31 }
 0x4bd   : > { %v7724_v43 = vmax.f32 %v7723_v3, 0.0 }
 0x4bf   : > { %v7771_v7 = vrot.slane %v7724_v43, %v11898_v8  ;;  %v7845_v8 = vld [vmem:[%s12042_s5] sm:$0x3] }
 0x4c0   : > { %v7846_v11 = vadd.f32 1e-08, %v7845_v8 }
 0x4c1   : > { %v7772_v37 = vcombine.high %v7771_v7, %v7771_v7 }
 0x4c2   : > { %10539 = vlog2.f32 %v7846_v11 }
 0x4c3   : > { %7839 = vmatprep.mubr.f32.mxu0 %v7772_v37 }
 0x4c4   : > { %7840 = vmatmul.mubr.f32.vlgmr.msra.gmra.mrb[0].mxu0 %v7771_v7 }
 0x4cc   : > { %v10540_v15 = vpop.eup %10539 }
 0x4cd   : > { %v7848_v12 = vmul.f32 0.6931472, %v10540_v15 }
 0x4cf   : > { %v7849_v13 = vsub.f32 0.0, %v7848_v12 }
 0x4d1   : > { %v7850_v16 = vadd.f32 1e-08, %v7849_v13 }
 0x4d3   : > { %10541 = vlog2.f32 %v7850_v16 }
 0x4dd   : > { %v10542_v1 = vpop.eup %10541 }
 0x4de   : > { %v7852_v18 = vmul.f32 0.6931472, %v10542_v1 }
 0x4e0   : > { %v7853_v55 = vsub.f32 0.0, %v7852_v18 }
 0x597   : > { %v8922_v4 = vpop.f32.mrb[0].mxu0 }
 0x598   : > { %v8923_v59 = vpop.f32.mrb[1].mxu0 }
 0x599   : > { %v8924_v22 = vadd.f32 %v8923_v59, %v8922_v4 }
 0x59b   : > { %v7842_v23 = vadd.f32 %v8924_v22, %v8884_v0 }
 0x59d   : > { %v7854_v24 = vadd.f32 %v7853_v55, %v7842_v23 }
 0x59f   : > { %v7856_v25 = vsel %vm7855_vm0, %v7854_v24, -inf }
 0x5a0   : > { %7857 = vmax.xlane.f32.xlu0 %v7856_v25 }
 0x62d   : > { %v7858_v27 = vpop.xlane.xlu0 %7857 }
 0x62e   : > { %v7859_v28 = vsub.f32 %v7854_v24, %v7858_v27 }
 0x630   : > { %v7860_v9 = vmul.f32 1.442695, %v7859_v28 }
 0x632   : > { %10543 = vpow2.f32 %v7860_v9 }
 0x63c   : > { %v10544_v63 = vpop.eup %10543 }
 0x63d   : > { %v7862_v53 = vsel %vm7855_vm0, %v10544_v63, 0.0 }
 0x63e   : > { %7863 = vadd.xlane.f32.xlu0 %v7862_v53 }
 0x6cb   : > { %v7864_v14 = vpop.xlane.xlu0 %7863 }
 0x6cc   : > { %10545 = vrcp.f32 %v7864_v14 }
 0x6d6   : > { %v10546_v56 = vpop.eup %10545 }
 0x6d7   : > { %v7866_v33 = vmul.f32 %v10546_v56, %v10544_v63 }
 0x6d9   : > { %7867 = vst.msk [vmem:[#allocation3] sm:$0x3] %vm7855_vm0, %v7866_v33 }
 0x6da PF: > { %p9075_p6 = scmp.eq.s32.totalorder %s10633_s22, 1  ;;  %s10591_s13 = smov [#allocation3]  }
 0x6db   : > { %s7875_s14 = sshll.u32 %s10591_s13, 4  ;;  %s7876_s14 = int_to_ptr.vmem [resolvable:$true] %s7875_s14 }
 0x6dc   : > { %s10550_s15 = scalar_lea.vmem %s7876_s14, 32  ;;  %p10557_p10 = scmp.lt.s32.totalorder %s7876_s14, %s7876_s14 }
 0x6dd   : > { %p10551_p7 = scmp.ne.s32.totalorder %s7876_s14, %s10550_s15  ;;  %p10558_p11 = scmp.lt.s32.totalorder %s10550_s15, %s10550_s15 }
 0x6df   : > { %p10552_p8 = pnand %p10551_p7, %p9075_p6  ;;  %p10559_p12 = por %p10558_p11, %p10557_p10 }
 0x6e1   : > { %p10553_p9 = pneg %p10552_p8 }
 0x6e3   : > { %p10560_p13 = pnand %p10559_p12, %p10553_p9 }
 0x6e5   : > { %10563 = shalt.err (!%p10560_p13)
}
 0x6e6   : > { %s10564_s18 = scalar_lea.hbm %s12043_s6, 32 }
 0x6e7   : > { %p10565_p0 = scmp.ne.s32.totalorder %s12043_s6, %s10564_s18  ;;  %p10570_p3 = scmp.lt.u32.totalorder %s10564_s18, %s12043_s6 }
 0x6e9   : > { %p10566_p1 = pnand %p10565_p0, %p9075_p6 }
 0x6eb   : > { %p10567_p2 = pneg %p10566_p1 }
 0x6ed   : > { %p10572_p4 = pnand %p10570_p3, %p10567_p2 }
 0x6ef   : > { %10575 = shalt.err (!%p10572_p4)
}
 0x6f0   : > { %9072 = dma.vmem_to_hbm [thread:$0]  (%p9075_p6), %s7876_s14, 32, %s12043_s6, [#allocation4]  }
 0x6f1   : > { %10581 = dma.done.wait (%p9075_p6), [#allocation4], 32  }
 0x6f2   : > { %10583 = vsyncadd (%p9075_p6), [#allocation4], 4294967264 }
 0x6f3 PF: > { %s17_s21 = sadd.s32 1, %s10586_s21  }
 0x6f4   : > { %p14_p5 = scmp.ge.s32.totalorder %s17_s21, 4  }
 0x6f6   :  { %16 = sbr.rel (!%p14_p5) target bundleno = 1 (0x1), region = 80 }
 0x6fd   :  { %7888 = vsyncpa [#allocation4], 1 }
 0x6fe   :  { %7890 = vsyncpa [#allocation4 + $0x1], 1 }

</bundles_post_ra>
